<compile_context>
chip_gen: v6e
topology: v6e:2x2x1
jax: 0.10.0
libtpu: 0.0.40
codegen_flags: <defaults>
</compile_context>

<pallas_src>
import functools

import jax
import jax.numpy as jnp
from jax.experimental import pallas as pl
from jax.experimental.pallas import tpu as pltpu

EPS = 1e-5  # PyTorch InstanceNorm2d default eps


def _round_up(x, m):
    return (x + m - 1) // m * m


def _pick_row_tile(hw):
    # Largest 8/128-aligned row tile (<= 512) dividing HW; fall back to HW.
    for t in (512, 256, 128):
        if hw >= t and hw % t == 0:
            return t
    return hw


def _physical_vmem_bytes():
    try:
        info = pltpu.get_tpu_info()
        for name in ("vmem_capacity_bytes", "vmem_size_bytes", "vmem_bytes"):
            cap = getattr(info, name, None)
            if cap:
                return int(cap)
    except Exception:
        pass
    return 64 << 20  # conservative default (v7x per-core VMEM)


def _vmem_limit(need_bytes):
    cap = _physical_vmem_bytes()
    return int(min(max(need_bytes + (4 << 20), 32 << 20), int(cap * 0.85)))


# ----------------------------------------------------------------------------
# Fused kernel: q/k/v 1x1 conv + InstanceNorm + ReLU, then attention chains.
# Everything is in (channels, HW) layout so HW sits on the 128-lane axis.
# ----------------------------------------------------------------------------
def _fused_kernel(x1_ref, x2_ref, x3_ref, w_ref, g_ref, b_ref,
                  v1_ref, v2_ref, v3_ref, pseudo_ref,
                  qk_ref, lhs_ref, acc_ref, *, cpad, tile):
    hw = pseudo_ref.shape[-1]
    n_tiles = hw // tile
    inv_hw = 1.0 / hw

    # ---- stage 1: fused q/k/v 1x1 conv + InstanceNorm2d(affine) + ReLU -----
    # w_ref rows: [query(cpad) | key(cpad) | value(cpad)], zero-padded rows.
    w = w_ref[...]                      # (3*cpad, Cin)
    g = g_ref[...]                      # (3*cpad, 1)
    b = b_ref[...]                      # (3*cpad, 1)
    for idx, (x_ref, v_ref) in enumerate(((x1_ref, v1_ref),
                                          (x2_ref, v2_ref),
                                          (x3_ref, v3_ref))):
        y = jnp.dot(w, x_ref[0], preferred_element_type=jnp.float32)   # (3cpad, hw)
        mean = jnp.sum(y, axis=-1, keepdims=True) * inv_hw
        d = y - mean
        var = jnp.sum(d * d, axis=-1, keepdims=True) * inv_hw          # biased var
        out = jnp.maximum(d * jax.lax.rsqrt(var + EPS) * g + b, 0.0)
        qk_ref[idx] = out[0:2 * cpad, :]        # query|key -> VMEM scratch only
        v_ref[0] = out[2 * cpad:3 * cpad, :]    # value     -> HBM output

    # ---- stage 2: attention maps + rank-1 `ones @ A` chains -----------------
    # Every consumer of a softmax map A is a (<=2)-row-weighted column sum, so
    # each map is produced in (tile, hw) row blocks and contracted on the fly
    # against the stacked LHS [row0; row1; 0...] -- one (8,tile)@(tile,hw) MXU
    # pass per tile; VMEM stays O(tile*hw).
    lhs_ref[...] = jnp.zeros_like(lhs_ref)      # rows 2..7 stay zero

    def chain(q_idx, k_idx, row0, row1):
        lhs_ref[0:1, :] = row0
        lhs_ref[1:2, :] = row1
        acc_ref[...] = jnp.zeros_like(acc_ref)
        k = qk_ref[k_idx, cpad:2 * cpad, :]     # (cpad, hw)

        def tile_step(t):
            r0 = t * tile
            if not isinstance(r0, int):
                r0 = pl.multiple_of(r0, tile)
            q_t = qk_ref[q_idx, 0:cpad, pl.ds(r0, tile)]                 # (cpad, tile)
            s = jax.lax.dot_general(q_t, k, (((0,), (0,)), ((), ())),
                                    preferred_element_type=jnp.float32)  # (tile, hw)
            m = jnp.max(s, axis=-1, keepdims=True)
            p = jnp.exp(s - m)                                           # unnormalized rows
            r = 1.0 / jnp.sum(p, axis=-1, keepdims=True)                 # exact reciprocal
            # Row-normalize the single live (tile, hw) block via a trailing-dim
            # broadcast.  Folding r into the (8, tile) LHS slice instead would
            # save these tile*hw VPU multiplies, but needs a sublane->lane
            # relayout of r every tile; the multiplies hide fully under the EUP
            # exp above (the binding unit here), so keep the robust form.
            p = p * r
            lhs_t = lhs_ref[:, pl.ds(r0, tile)]                          # (8, tile)
            acc_ref[...] += jnp.dot(lhs_t, p,
                                    preferred_element_type=jnp.float32)

        if n_tiles == 1:
            tile_step(0)
        else:
            def body(t, carry):
                tile_step(t)
                return carry
            jax.lax.fori_loop(0, n_tiles, body, 0)

    ones = jnp.ones((1, hw), jnp.float32)
    zeros = jnp.zeros((1, hw), jnp.float32)

    chain(0, 1, ones, zeros)                    # A12
    t1 = acc_ref[0:1, :]                        # ones @ A12
    chain(0, 2, ones, zeros)                    # A13
    p3b = acc_ref[0:1, :]                       # ones @ A13          (pseudo_x3_b)
    chain(1, 2, ones, t1)                       # A23
    u1 = acc_ref[0:1, :]                        # ones @ A23
    t2 = acc_ref[1:2, :]                        # ones @ A12 @ A23    (pseudo_x3_a)
    chain(2, 1, t2, u1)                         # A32
    t3 = acc_ref[0:1, :]                        # ones @ A12 @ A23 @ A32
    p2 = acc_ref[1:2, :]                        # ones @ A23 @ A32    (pseudo_x2)
    chain(1, 0, t3, t1)                         # A21 -> acc rows 0,1 = p1a, p1b

    # Assemble the lane-dense (8, hw) pseudo slab in the accumulator (rows
    # 2..7 of acc are exactly zero by construction) and store it once.
    acc_ref[2:3, :] = p2
    acc_ref[3:4, :] = t2
    acc_ref[4:5, :] = p3b
    pseudo_ref[0] = acc_ref[...]


# ----------------------------------------------------------------------------
# Module wrapper (glue in plain JAX: reshapes, zero-pad params, broadcasts)
# ----------------------------------------------------------------------------
def make_params(key, in_ch):
    c = in_ch // 8
    ks = jax.random.split(key, 9)
    p = {}
    for i, n in enumerate(("1", "2", "3")):
        # Conv2d 1x1 weight in the natural PyTorch layout W[:, :, 0, 0] = (Cout, Cin)
        p["w" + n] = 0.1 * jax.random.normal(ks[3 * i + 0], (c, in_ch), jnp.float32)
        p["g" + n] = 1.0 + 0.1 * jax.random.normal(ks[3 * i + 1], (c,), jnp.float32)
        p["b" + n] = 0.1 * jax.random.normal(ks[3 * i + 2], (c,), jnp.float32)
    return p


def contrastive_module(params, x1, x2, x3):
    B, Cin, H, W = x1.shape
    HW = H * W                          # best perf when H*W is a multiple of 128
    C = params["w1"].shape[0]
    CPAD = _round_up(C, 8)              # 8-aligned channel groups (zero pad rows)
    tile = _pick_row_tile(HW)

    def pad_w(wgt):                     # (C, Cin) -> (CPAD, Cin)
        return jnp.pad(wgt, ((0, CPAD - C), (0, 0)))

    def pad_v(vec):                     # (C,) -> (CPAD, 1)
        return jnp.pad(vec, (0, CPAD - C)).reshape(CPAD, 1)

    # Fused weight rows: [query | key | value], each CPAD rows.
    w_all = jnp.concatenate([pad_w(params["w1"]), pad_w(params["w2"]),
                             pad_w(params["w3"])], axis=0).astype(jnp.float32)
    g_all = jnp.concatenate([pad_v(params["g1"]), pad_v(params["g2"]),
                             pad_v(params["g3"])], axis=0).astype(jnp.float32)
    b_all = jnp.concatenate([pad_v(params["b1"]), pad_v(params["b2"]),
                             pad_v(params["b3"])], axis=0).astype(jnp.float32)

    # NCHW -> (B, Cin, HW): pure reshape, no HBM transpose.
    x1f = x1.reshape(B, Cin, HW).astype(jnp.float32)
    x2f = x2.reshape(B, Cin, HW).astype(jnp.float32)
    x3f = x3.reshape(B, Cin, HW).astype(jnp.float32)

    x_spec = pl.BlockSpec((1, Cin, HW), lambda i: (i, 0, 0))
    v_spec = pl.BlockSpec((1, CPAD, HW), lambda i: (i, 0, 0))
    p_spec = pl.BlockSpec((1, 8, HW), lambda i: (i, 0, 0))
    w_spec = pl.BlockSpec((3 * CPAD, Cin), lambda i: (0, 0))
    s_spec = pl.BlockSpec((3 * CPAD, 1), lambda i: (0, 0))

    # Per-grid-step VMEM working set (incl. double buffers) -> scoped limit.
    need = (2 * 3 * Cin * HW * 4                       # x inputs (dbl-buffered)
            + 2 * (3 * CPAD * HW * 4 + 8 * HW * 4)     # value + pseudo outputs
            + 3 * 2 * CPAD * HW * 4                    # q|k VMEM scratch
            + 2 * 8 * HW * 4                           # lhs + acc scratch
            + 3 * CPAD * HW * 4                        # conv/IN intermediate
            + 4 * tile * HW * 4                        # softmax row-tile temps
            + 3 * CPAD * (Cin + 2) * 4)                # fused weights

    kernel = functools.partial(_fused_kernel, cpad=CPAD, tile=tile)
    v_shape = jax.ShapeDtypeStruct((B, CPAD, HW), jnp.float32)
    v1, v2, v3, pseudo = pl.pallas_call(
        kernel,
        out_shape=(v_shape, v_shape, v_shape,
                   jax.ShapeDtypeStruct((B, 8, HW), jnp.float32)),
        grid=(B,),
        in_specs=[x_spec, x_spec, x_spec, w_spec, s_spec, s_spec],
        out_specs=(v_spec, v_spec, v_spec, p_spec),
        scratch_shapes=[pltpu.VMEM((3, 2 * CPAD, HW), jnp.float32),  # q|k rows
                        pltpu.VMEM((8, HW), jnp.float32),            # LHS stack
                        pltpu.VMEM((8, HW), jnp.float32)],           # accumulator
        compiler_params=pltpu.CompilerParams(
            dimension_semantics=("parallel",),       # both v7x cores when B >= 2
            vmem_limit_bytes=_vmem_limit(need)),
    )(x1f, x2f, x3f, w_all, g_all, b_all)

    def expand(i):   # all C rows of each pseudo map are identical (ones @ A chain)
        return jnp.broadcast_to(pseudo[:, i:i + 1, :], (B, C, HW)).reshape(B, C, H, W)

    def value(v):
        return v[:, :C, :].reshape(B, C, H, W)

    return (expand(0), expand(1), expand(2), expand(3), expand(4),
            value(v1), value(v2), value(v3))


# ----------------------------------------------------------------------------
# Pure-JAX reference (mirrors the PyTorch module)
# ----------------------------------------------------------------------------
def _branch_ref(x, w, g, b):
    y = jnp.einsum("oc,bchw->bohw", w, x.astype(jnp.float32))
    mean = jnp.mean(y, axis=(2, 3), keepdims=True)
    var = jnp.mean((y - mean) ** 2, axis=(2, 3), keepdims=True)
    yn = (y - mean) / jnp.sqrt(var + EPS)
    yn = yn * g.reshape(1, -1, 1, 1) + b.reshape(1, -1, 1, 1)
    return jnp.maximum(yn, 0.0)


def reference_forward(params, x1, x2, x3):
    qf = lambda x: _branch_ref(x, params["w1"], params["g1"], params["b1"])
    kf = lambda x: _branch_ref(x, params["w2"], params["g2"], params["b2"])
    vf = lambda x: _branch_ref(x, params["w3"], params["g3"], params["b3"])
    x1q, x2q, x3q = qf(x1), qf(x2), qf(x3)
    x1k, x2k, x3k = kf(x1), kf(x2), kf(x3)
    x1v, x2v, x3v = vf(x1), vf(x2), vf(x3)
    B, C, H, W = x1q.shape
    HW = H * W
    rq = lambda t: t.reshape(B, C, HW).transpose(0, 2, 1)
    rk = lambda t: t.reshape(B, C, HW)
    q1, q2, q3 = rq(x1q), rq(x2q), rq(x3q)
    k1, k2, k3 = rk(x1k), rk(x2k), rk(x3k)
    sm = lambda m: jax.nn.softmax(m, axis=-1)
    a12, a21, a23 = sm(q1 @ k2), sm(q2 @ k1), sm(q2 @ k3)
    a32, a13 = sm(q3 @ k2), sm(q1 @ k3)
    ones = jnp.ones((B, C, HW), jnp.float32)
    p1a = ((((ones @ a12) @ a23) @ a32) @ a21).reshape(B, C, H, W)
    p1b = ((ones @ a12) @ a21).reshape(B, C, H, W)
    p2 = ((ones @ a23) @ a32).reshape(B, C, H, W)
    p3a = ((ones @ a12) @ a23).reshape(B, C, H, W)
    p3b = (ones @ a13).reshape(B, C, H, W)
    return (p1a, p1b, p2, p3a, p3b, x1v, x2v, x3v)


if __name__ == "__main__":
    configs = [
        # (B, in_ch, H, W)
        (2, 32, 16, 16),    # HW=256  -> single softmax row-tile per map
        (1, 16, 32, 32),    # HW=1024 -> exercises the row-tiled fori_loop path
    ]
    fwd = jax.jit(contrastive_module)
    for (B, in_ch, H, W) in configs:
        key = jax.random.PRNGKey(0)
        kx1, kx2, kx3, kp = jax.random.split(key, 4)
        x1 = jax.random.normal(kx1, (B, in_ch, H, W), jnp.float32)
        x2 = jax.random.normal(kx2, (B, in_ch, H, W), jnp.float32)
        x3 = jax.random.normal(kx3, (B, in_ch, H, W), jnp.float32)
        params = make_params(kp, in_ch)

        outs = jax.block_until_ready(fwd(params, x1, x2, x3))
        refs = reference_forward(params, x1, x2, x3)

        # Pseudo maps go through 4 chained softmax bmms whose pure-JAX
        # reference runs at TPU default matmul precision -> looser tolerance;
        # value branches are tight.  (Kernel softmax uses exact 1/rowsum.)
        tols = [(2e-2, 2e-2)] * 5 + [(1e-4, 1e-4)] * 3
        for o, r, (rt, at) in zip(outs, refs, tols):
            assert o.shape == r.shape, (o.shape, r.shape)
            assert jnp.allclose(o, r, rtol=rt, atol=at), \
                float(jnp.max(jnp.abs(o - r)))

    print("KERNEL_OK")
</pallas_src>

<mosaic_0001>
module attributes {stable_mosaic.version = 11 : i64} {
  func.func @_fused_kernel(%arg0: i32, %arg1: memref<1x32x256xf32, #tpu.memory_space<vmem>>, %arg2: memref<1x32x256xf32, #tpu.memory_space<vmem>>, %arg3: memref<1x32x256xf32, #tpu.memory_space<vmem>>, %arg4: memref<24x32xf32, #tpu.memory_space<vmem>>, %arg5: memref<24x1xf32, #tpu.memory_space<vmem>>, %arg6: memref<24x1xf32, #tpu.memory_space<vmem>>, %arg7: memref<1x8x256xf32, #tpu.memory_space<vmem>>, %arg8: memref<1x8x256xf32, #tpu.memory_space<vmem>>, %arg9: memref<1x8x256xf32, #tpu.memory_space<vmem>>, %arg10: memref<1x8x256xf32, #tpu.memory_space<vmem>>, %arg11: memref<3x16x256xf32, #tpu.memory_space<vmem>>, %arg12: memref<8x256xf32, #tpu.memory_space<vmem>>, %arg13: memref<8x256xf32, #tpu.memory_space<vmem>>) attributes {dimension_semantics = [#tpu.dimension_semantics<parallel>], iteration_bounds = array<i64: 2>, scalar_prefetch = 0 : i64, scratch_operands = 3 : i64, tpu.core_type = #tpu.core_type<tc>, window_params = [{transform_indices = @transform_0, window_bounds = array<i64: 1, 32, 256>}, {transform_indices = @transform_1, window_bounds = array<i64: 1, 32, 256>}, {transform_indices = @transform_2, window_bounds = array<i64: 1, 32, 256>}, {pipeline_mode = #tpu.pipeline_mode<synchronous>, transform_indices = @transform_3, window_bounds = array<i64: 24, 32>}, {pipeline_mode = #tpu.pipeline_mode<synchronous>, transform_indices = @transform_4, window_bounds = array<i64: 24, 1>}, {pipeline_mode = #tpu.pipeline_mode<synchronous>, transform_indices = @transform_5, window_bounds = array<i64: 24, 1>}, {transform_indices = @transform_6, window_bounds = array<i64: 1, 8, 256>}, {transform_indices = @transform_7, window_bounds = array<i64: 1, 8, 256>}, {transform_indices = @transform_8, window_bounds = array<i64: 1, 8, 256>}, {transform_indices = @transform_9, window_bounds = array<i64: 1, 8, 256>}]} {
    %c0 = arith.constant 0 : index
    %c0_0 = arith.constant 0 : index
    %0 = vector.load %arg4[%c0, %c0_0] : memref<24x32xf32, #tpu.memory_space<vmem>>, vector<24x32xf32>
    %c0_1 = arith.constant 0 : index
    %c0_2 = arith.constant 0 : index
    %1 = vector.load %arg5[%c0_1, %c0_2] : memref<24x1xf32, #tpu.memory_space<vmem>>, vector<24x1xf32>
    %c0_3 = arith.constant 0 : index
    %c0_4 = arith.constant 0 : index
    %2 = vector.load %arg6[%c0_3, %c0_4] : memref<24x1xf32, #tpu.memory_space<vmem>>, vector<24x1xf32>
    %c0_5 = arith.constant 0 : index
    %c0_6 = arith.constant 0 : index
    %c0_7 = arith.constant 0 : index
    %3 = vector.load %arg1[%c0_5, %c0_6, %c0_7] : memref<1x32x256xf32, #tpu.memory_space<vmem>>, vector<1x32x256xf32>
    %4 = vector.shape_cast %3 : vector<1x32x256xf32> to vector<32x256xf32>
    %cst = arith.constant dense<0.000000e+00> : vector<24x256xf32>
    %5 = tpu.matmul %0, %4, %cst {dimension_numbers = #tpu.dot_dimension_numbers<[1], [0], [0], [1], [0, 0, 1, 1], [], []>} : vector<24x32xf32>, vector<32x256xf32>, vector<24x256xf32> -> vector<24x256xf32>
    %cst_8 = arith.constant dense<0.000000e+00> : vector<24xf32>
    %6 = vector.multi_reduction <add>, %5, %cst_8 [1] : vector<24x256xf32> to vector<24xf32>
    %7 = vector.shape_cast %6 : vector<24xf32> to vector<24x1xf32>
    %cst_9 = arith.constant 3.906250e-03 : f32
    %8 = vector.broadcast %cst_9 : f32 to vector<24x1xf32>
    %9 = arith.mulf %7, %8 : vector<24x1xf32>
    %10 = vector.broadcast %9 : vector<24x1xf32> to vector<24x256xf32>
    %11 = arith.subf %5, %10 : vector<24x256xf32>
    %12 = arith.mulf %11, %11 : vector<24x256xf32>
    %cst_10 = arith.constant dense<0.000000e+00> : vector<24xf32>
    %13 = vector.multi_reduction <add>, %12, %cst_10 [1] : vector<24x256xf32> to vector<24xf32>
    %14 = vector.shape_cast %13 : vector<24xf32> to vector<24x1xf32>
    %cst_11 = arith.constant 3.906250e-03 : f32
    %15 = vector.broadcast %cst_11 : f32 to vector<24x1xf32>
    %16 = arith.mulf %14, %15 : vector<24x1xf32>
    %cst_12 = arith.constant 9.99999974E-6 : f32
    %17 = vector.broadcast %cst_12 : f32 to vector<24x1xf32>
    %18 = arith.addf %16, %17 : vector<24x1xf32>
    %19 = math.rsqrt %18 : vector<24x1xf32>
    %20 = vector.broadcast %19 : vector<24x1xf32> to vector<24x256xf32>
    %21 = arith.mulf %11, %20 : vector<24x256xf32>
    %22 = vector.broadcast %1 : vector<24x1xf32> to vector<24x256xf32>
    %23 = arith.mulf %21, %22 : vector<24x256xf32>
    %24 = vector.broadcast %2 : vector<24x1xf32> to vector<24x256xf32>
    %25 = arith.addf %23, %24 : vector<24x256xf32>
    %cst_13 = arith.constant 0.000000e+00 : f32
    %26 = vector.broadcast %cst_13 : f32 to vector<24x256xf32>
    %27 = arith.maximumf %25, %26 : vector<24x256xf32>
    %28 = vector.extract_strided_slice %27 {offsets = [0, 0], sizes = [16, 256], strides = [1, 1]} : vector<24x256xf32> to vector<16x256xf32>
    %c0_14 = arith.constant 0 : index
    %c0_15 = arith.constant 0 : index
    %c0_16 = arith.constant 0 : index
    %29 = vector.load %arg11[%c0_14, %c0_15, %c0_16] : memref<3x16x256xf32, #tpu.memory_space<vmem>>, vector<1x16x256xf32>
    %30 = vector.shape_cast %29 : vector<1x16x256xf32> to vector<16x256xf32>
    %31 = vector.shape_cast %28 : vector<16x256xf32> to vector<1x16x256xf32>
    tpu.vector_store %arg11[%c0_14, %c0_15, %c0_16], %31 {strides = array<i32>} : memref<3x16x256xf32, #tpu.memory_space<vmem>>, vector<1x16x256xf32>,
    %32 = vector.extract_strided_slice %27 {offsets = [16, 0], sizes = [8, 256], strides = [1, 1]} : vector<24x256xf32> to vector<8x256xf32>
    %c0_17 = arith.constant 0 : index
    %c0_18 = arith.constant 0 : index
    %c0_19 = arith.constant 0 : index
    %33 = vector.load %arg7[%c0_17, %c0_18, %c0_19] : memref<1x8x256xf32, #tpu.memory_space<vmem>>, vector<1x8x256xf32>
    %34 = vector.shape_cast %33 : vector<1x8x256xf32> to vector<8x256xf32>
    %35 = vector.shape_cast %32 : vector<8x256xf32> to vector<1x8x256xf32>
    tpu.vector_store %arg7[%c0_17, %c0_18, %c0_19], %35 {strides = array<i32>} : memref<1x8x256xf32, #tpu.memory_space<vmem>>, vector<1x8x256xf32>,
    %c0_20 = arith.constant 0 : index
    %c0_21 = arith.constant 0 : index
    %c0_22 = arith.constant 0 : index
    %36 = vector.load %arg2[%c0_20, %c0_21, %c0_22] : memref<1x32x256xf32, #tpu.memory_space<vmem>>, vector<1x32x256xf32>
    %37 = vector.shape_cast %36 : vector<1x32x256xf32> to vector<32x256xf32>
    %cst_23 = arith.constant dense<0.000000e+00> : vector<24x256xf32>
    %38 = tpu.matmul %0, %37, %cst_23 {dimension_numbers = #tpu.dot_dimension_numbers<[1], [0], [0], [1], [0, 0, 1, 1], [], []>} : vector<24x32xf32>, vector<32x256xf32>, vector<24x256xf32> -> vector<24x256xf32>
    %cst_24 = arith.constant dense<0.000000e+00> : vector<24xf32>
    %39 = vector.multi_reduction <add>, %38, %cst_24 [1] : vector<24x256xf32> to vector<24xf32>
    %40 = vector.shape_cast %39 : vector<24xf32> to vector<24x1xf32>
    %cst_25 = arith.constant 3.906250e-03 : f32
    %41 = vector.broadcast %cst_25 : f32 to vector<24x1xf32>
    %42 = arith.mulf %40, %41 : vector<24x1xf32>
    %43 = vector.broadcast %42 : vector<24x1xf32> to vector<24x256xf32>
    %44 = arith.subf %38, %43 : vector<24x256xf32>
    %45 = arith.mulf %44, %44 : vector<24x256xf32>
    %cst_26 = arith.constant dense<0.000000e+00> : vector<24xf32>
    %46 = vector.multi_reduction <add>, %45, %cst_26 [1] : vector<24x256xf32> to vector<24xf32>
    %47 = vector.shape_cast %46 : vector<24xf32> to vector<24x1xf32>
    %cst_27 = arith.constant 3.906250e-03 : f32
    %48 = vector.broadcast %cst_27 : f32 to vector<24x1xf32>
    %49 = arith.mulf %47, %48 : vector<24x1xf32>
    %cst_28 = arith.constant 9.99999974E-6 : f32
    %50 = vector.broadcast %cst_28 : f32 to vector<24x1xf32>
    %51 = arith.addf %49, %50 : vector<24x1xf32>
    %52 = math.rsqrt %51 : vector<24x1xf32>
    %53 = vector.broadcast %52 : vector<24x1xf32> to vector<24x256xf32>
    %54 = arith.mulf %44, %53 : vector<24x256xf32>
    %55 = vector.broadcast %1 : vector<24x1xf32> to vector<24x256xf32>
    %56 = arith.mulf %54, %55 : vector<24x256xf32>
    %57 = vector.broadcast %2 : vector<24x1xf32> to vector<24x256xf32>
    %58 = arith.addf %56, %57 : vector<24x256xf32>
    %cst_29 = arith.constant 0.000000e+00 : f32
    %59 = vector.broadcast %cst_29 : f32 to vector<24x256xf32>
    %60 = arith.maximumf %58, %59 : vector<24x256xf32>
    %61 = vector.extract_strided_slice %60 {offsets = [0, 0], sizes = [16, 256], strides = [1, 1]} : vector<24x256xf32> to vector<16x256xf32>
    %c1 = arith.constant 1 : index
    %c0_30 = arith.constant 0 : index
    %c0_31 = arith.constant 0 : index
    %62 = vector.load %arg11[%c1, %c0_30, %c0_31] : memref<3x16x256xf32, #tpu.memory_space<vmem>>, vector<1x16x256xf32>
    %63 = vector.shape_cast %62 : vector<1x16x256xf32> to vector<16x256xf32>
    %64 = vector.shape_cast %61 : vector<16x256xf32> to vector<1x16x256xf32>
    tpu.vector_store %arg11[%c1, %c0_30, %c0_31], %64 {strides = array<i32>} : memref<3x16x256xf32, #tpu.memory_space<vmem>>, vector<1x16x256xf32>,
    %65 = vector.extract_strided_slice %60 {offsets = [16, 0], sizes = [8, 256], strides = [1, 1]} : vector<24x256xf32> to vector<8x256xf32>
    %c0_32 = arith.constant 0 : index
    %c0_33 = arith.constant 0 : index
    %c0_34 = arith.constant 0 : index
    %66 = vector.load %arg8[%c0_32, %c0_33, %c0_34] : memref<1x8x256xf32, #tpu.memory_space<vmem>>, vector<1x8x256xf32>
    %67 = vector.shape_cast %66 : vector<1x8x256xf32> to vector<8x256xf32>
    %68 = vector.shape_cast %65 : vector<8x256xf32> to vector<1x8x256xf32>
    tpu.vector_store %arg8[%c0_32, %c0_33, %c0_34], %68 {strides = array<i32>} : memref<1x8x256xf32, #tpu.memory_space<vmem>>, vector<1x8x256xf32>,
    %c0_35 = arith.constant 0 : index
    %c0_36 = arith.constant 0 : index
    %c0_37 = arith.constant 0 : index
    %69 = vector.load %arg3[%c0_35, %c0_36, %c0_37] : memref<1x32x256xf32, #tpu.memory_space<vmem>>, vector<1x32x256xf32>
    %70 = vector.shape_cast %69 : vector<1x32x256xf32> to vector<32x256xf32>
    %cst_38 = arith.constant dense<0.000000e+00> : vector<24x256xf32>
    %71 = tpu.matmul %0, %70, %cst_38 {dimension_numbers = #tpu.dot_dimension_numbers<[1], [0], [0], [1], [0, 0, 1, 1], [], []>} : vector<24x32xf32>, vector<32x256xf32>, vector<24x256xf32> -> vector<24x256xf32>
    %cst_39 = arith.constant dense<0.000000e+00> : vector<24xf32>
    %72 = vector.multi_reduction <add>, %71, %cst_39 [1] : vector<24x256xf32> to vector<24xf32>
    %73 = vector.shape_cast %72 : vector<24xf32> to vector<24x1xf32>
    %cst_40 = arith.constant 3.906250e-03 : f32
    %74 = vector.broadcast %cst_40 : f32 to vector<24x1xf32>
    %75 = arith.mulf %73, %74 : vector<24x1xf32>
    %76 = vector.broadcast %75 : vector<24x1xf32> to vector<24x256xf32>
    %77 = arith.subf %71, %76 : vector<24x256xf32>
    %78 = arith.mulf %77, %77 : vector<24x256xf32>
    %cst_41 = arith.constant dense<0.000000e+00> : vector<24xf32>
    %79 = vector.multi_reduction <add>, %78, %cst_41 [1] : vector<24x256xf32> to vector<24xf32>
    %80 = vector.shape_cast %79 : vector<24xf32> to vector<24x1xf32>
    %cst_42 = arith.constant 3.906250e-03 : f32
    %81 = vector.broadcast %cst_42 : f32 to vector<24x1xf32>
    %82 = arith.mulf %80, %81 : vector<24x1xf32>
    %cst_43 = arith.constant 9.99999974E-6 : f32
    %83 = vector.broadcast %cst_43 : f32 to vector<24x1xf32>
    %84 = arith.addf %82, %83 : vector<24x1xf32>
    %85 = math.rsqrt %84 : vector<24x1xf32>
    %86 = vector.broadcast %85 : vector<24x1xf32> to vector<24x256xf32>
    %87 = arith.mulf %77, %86 : vector<24x256xf32>
    %88 = vector.broadcast %1 : vector<24x1xf32> to vector<24x256xf32>
    %89 = arith.mulf %87, %88 : vector<24x256xf32>
    %90 = vector.broadcast %2 : vector<24x1xf32> to vector<24x256xf32>
    %91 = arith.addf %89, %90 : vector<24x256xf32>
    %cst_44 = arith.constant 0.000000e+00 : f32
    %92 = vector.broadcast %cst_44 : f32 to vector<24x256xf32>
    %93 = arith.maximumf %91, %92 : vector<24x256xf32>
    %94 = vector.extract_strided_slice %93 {offsets = [0, 0], sizes = [16, 256], strides = [1, 1]} : vector<24x256xf32> to vector<16x256xf32>
    %c2 = arith.constant 2 : index
    %c0_45 = arith.constant 0 : index
    %c0_46 = arith.constant 0 : index
    %95 = vector.load %arg11[%c2, %c0_45, %c0_46] : memref<3x16x256xf32, #tpu.memory_space<vmem>>, vector<1x16x256xf32>
    %96 = vector.shape_cast %95 : vector<1x16x256xf32> to vector<16x256xf32>
    %97 = vector.shape_cast %94 : vector<16x256xf32> to vector<1x16x256xf32>
    tpu.vector_store %arg11[%c2, %c0_45, %c0_46], %97 {strides = array<i32>} : memref<3x16x256xf32, #tpu.memory_space<vmem>>, vector<1x16x256xf32>,
    %98 = vector.extract_strided_slice %93 {offsets = [16, 0], sizes = [8, 256], strides = [1, 1]} : vector<24x256xf32> to vector<8x256xf32>
    %c0_47 = arith.constant 0 : index
    %c0_48 = arith.constant 0 : index
    %c0_49 = arith.constant 0 : index
    %99 = vector.load %arg9[%c0_47, %c0_48, %c0_49] : memref<1x8x256xf32, #tpu.memory_space<vmem>>, vector<1x8x256xf32>
    %100 = vector.shape_cast %99 : vector<1x8x256xf32> to vector<8x256xf32>
    %101 = vector.shape_cast %98 : vector<8x256xf32> to vector<1x8x256xf32>
    tpu.vector_store %arg9[%c0_47, %c0_48, %c0_49], %101 {strides = array<i32>} : memref<1x8x256xf32, #tpu.memory_space<vmem>>, vector<1x8x256xf32>,
    %cst_50 = arith.constant 0.000000e+00 : f32
    %102 = vector.broadcast %cst_50 : f32 to vector<8x256xf32>
    %c0_51 = arith.constant 0 : index
    %c0_52 = arith.constant 0 : index
    %103 = vector.load %arg12[%c0_51, %c0_52] : memref<8x256xf32, #tpu.memory_space<vmem>>, vector<8x256xf32>
    tpu.vector_store %arg12[%c0_51, %c0_52], %102 {strides = array<i32>} : memref<8x256xf32, #tpu.memory_space<vmem>>, vector<8x256xf32>,
    %cst_53 = arith.constant 1.000000e+00 : f32
    %104 = vector.broadcast %cst_53 : f32 to vector<1x256xf32>
    %cst_54 = arith.constant 0.000000e+00 : f32
    %105 = vector.broadcast %cst_54 : f32 to vector<1x256xf32>
    %c0_55 = arith.constant 0 : index
    %c0_56 = arith.constant 0 : index
    %106 = vector.load %arg12[%c0_55, %c0_56] : memref<8x256xf32, #tpu.memory_space<vmem>>, vector<1x256xf32>
    tpu.vector_store %arg12[%c0_55, %c0_56], %104 {strides = array<i32>} : memref<8x256xf32, #tpu.memory_space<vmem>>, vector<1x256xf32>,
    %c1_57 = arith.constant 1 : index
    %c0_58 = arith.constant 0 : index
    %107 = vector.load %arg12[%c1_57, %c0_58] : memref<8x256xf32, #tpu.memory_space<vmem>>, vector<1x256xf32>
    tpu.vector_store %arg12[%c1_57, %c0_58], %105 {strides = array<i32>} : memref<8x256xf32, #tpu.memory_space<vmem>>, vector<1x256xf32>,
    %cst_59 = arith.constant 0.000000e+00 : f32
    %108 = vector.broadcast %cst_59 : f32 to vector<8x256xf32>
    %c0_60 = arith.constant 0 : index
    %c0_61 = arith.constant 0 : index
    %109 = vector.load %arg13[%c0_60, %c0_61] : memref<8x256xf32, #tpu.memory_space<vmem>>, vector<8x256xf32>
    tpu.vector_store %arg13[%c0_60, %c0_61], %108 {strides = array<i32>} : memref<8x256xf32, #tpu.memory_space<vmem>>, vector<8x256xf32>,
    %c1_62 = arith.constant 1 : index
    %c8 = arith.constant 8 : index
    %c0_63 = arith.constant 0 : index
    %110 = vector.load %arg11[%c1_62, %c8, %c0_63] : memref<3x16x256xf32, #tpu.memory_space<vmem>>, vector<1x8x256xf32>
    %111 = vector.shape_cast %110 : vector<1x8x256xf32> to vector<8x256xf32>
    %c0_64 = arith.constant 0 : index
    %c0_65 = arith.constant 0 : index
    %c0_66 = arith.constant 0 : index
    %112 = vector.load %arg11[%c0_64, %c0_65, %c0_66] : memref<3x16x256xf32, #tpu.memory_space<vmem>>, vector<1x8x256xf32>
    %113 = vector.shape_cast %112 : vector<1x8x256xf32> to vector<8x256xf32>
    %cst_67 = arith.constant dense<0.000000e+00> : vector<256x256xf32>
    %114 = tpu.matmul %113, %111, %cst_67 {dimension_numbers = #tpu.dot_dimension_numbers<[0], [0], [1], [1], [0, 1, 1, 1], [], []>} : vector<8x256xf32>, vector<8x256xf32>, vector<256x256xf32> -> vector<256x256xf32>
    %cst_68 = arith.constant dense<0xFF800000> : vector<256xf32>
    %115 = vector.multi_reduction <maximumf>, %114, %cst_68 [1] : vector<256x256xf32> to vector<256xf32>
    %116 = vector.shape_cast %115 : vector<256xf32> to vector<256x1xf32>
    %117 = vector.broadcast %116 : vector<256x1xf32> to vector<256x256xf32>
    %118 = arith.subf %114, %117 : vector<256x256xf32>
    %119 = math.exp %118 : vector<256x256xf32>
    %cst_69 = arith.constant dense<0.000000e+00> : vector<256xf32>
    %120 = vector.multi_reduction <add>, %119, %cst_69 [1] : vector<256x256xf32> to vector<256xf32>
    %121 = vector.shape_cast %120 : vector<256xf32> to vector<256x1xf32>
    %cst_70 = arith.constant 1.000000e+00 : f32
    %122 = vector.broadcast %cst_70 : f32 to vector<256x1xf32>
    %123 = arith.divf %122, %121 : vector<256x1xf32>
    %124 = vector.broadcast %123 : vector<256x1xf32> to vector<256x256xf32>
    %125 = arith.mulf %119, %124 : vector<256x256xf32>
    %c0_71 = arith.constant 0 : index
    %c0_72 = arith.constant 0 : index
    %126 = vector.load %arg12[%c0_71, %c0_72] : memref<8x256xf32, #tpu.memory_space<vmem>>, vector<8x256xf32>
    %c0_73 = arith.constant 0 : index
    %c0_74 = arith.constant 0 : index
    %127 = vector.load %arg13[%c0_73, %c0_74] : memref<8x256xf32, #tpu.memory_space<vmem>>, vector<8x256xf32>
    %cst_75 = arith.constant dense<0.000000e+00> : vector<8x256xf32>
    %128 = tpu.matmul %126, %125, %cst_75 {dimension_numbers = #tpu.dot_dimension_numbers<[1], [0], [0], [1], [0, 0, 1, 1], [], []>} : vector<8x256xf32>, vector<256x256xf32>, vector<8x256xf32> -> vector<8x256xf32>
    %129 = arith.addf %127, %128 : vector<8x256xf32>
    %c0_76 = arith.constant 0 : index
    %c0_77 = arith.constant 0 : index
    %130 = vector.load %arg13[%c0_76, %c0_77] : memref<8x256xf32, #tpu.memory_space<vmem>>, vector<8x256xf32>
    tpu.vector_store %arg13[%c0_76, %c0_77], %129 {strides = array<i32>} : memref<8x256xf32, #tpu.memory_space<vmem>>, vector<8x256xf32>,
    %c0_78 = arith.constant 0 : index
    %c0_79 = arith.constant 0 : index
    %131 = vector.load %arg13[%c0_78, %c0_79] : memref<8x256xf32, #tpu.memory_space<vmem>>, vector<1x256xf32>
    %c0_80 = arith.constant 0 : index
    %c0_81 = arith.constant 0 : index
    %132 = vector.load %arg12[%c0_80, %c0_81] : memref<8x256xf32, #tpu.memory_space<vmem>>, vector<1x256xf32>
    tpu.vector_store %arg12[%c0_80, %c0_81], %104 {strides = array<i32>} : memref<8x256xf32, #tpu.memory_space<vmem>>, vector<1x256xf32>,
    %c1_82 = arith.constant 1 : index
    %c0_83 = arith.constant 0 : index
    %133 = vector.load %arg12[%c1_82, %c0_83] : memref<8x256xf32, #tpu.memory_space<vmem>>, vector<1x256xf32>
    tpu.vector_store %arg12[%c1_82, %c0_83], %105 {strides = array<i32>} : memref<8x256xf32, #tpu.memory_space<vmem>>, vector<1x256xf32>,
    %cst_84 = arith.constant 0.000000e+00 : f32
    %134 = vector.broadcast %cst_84 : f32 to vector<8x256xf32>
    %c0_85 = arith.constant 0 : index
    %c0_86 = arith.constant 0 : index
    %135 = vector.load %arg13[%c0_85, %c0_86] : memref<8x256xf32, #tpu.memory_space<vmem>>, vector<8x256xf32>
    tpu.vector_store %arg13[%c0_85, %c0_86], %134 {strides = array<i32>} : memref<8x256xf32, #tpu.memory_space<vmem>>, vector<8x256xf32>,
    %c2_87 = arith.constant 2 : index
    %c8_88 = arith.constant 8 : index
    %c0_89 = arith.constant 0 : index
    %136 = vector.load %arg11[%c2_87, %c8_88, %c0_89] : memref<3x16x256xf32, #tpu.memory_space<vmem>>, vector<1x8x256xf32>
    %137 = vector.shape_cast %136 : vector<1x8x256xf32> to vector<8x256xf32>
    %c0_90 = arith.constant 0 : index
    %c0_91 = arith.constant 0 : index
    %c0_92 = arith.constant 0 : index
    %138 = vector.load %arg11[%c0_90, %c0_91, %c0_92] : memref<3x16x256xf32, #tpu.memory_space<vmem>>, vector<1x8x256xf32>
    %139 = vector.shape_cast %138 : vector<1x8x256xf32> to vector<8x256xf32>
    %cst_93 = arith.constant dense<0.000000e+00> : vector<256x256xf32>
    %140 = tpu.matmul %139, %137, %cst_93 {dimension_numbers = #tpu.dot_dimension_numbers<[0], [0], [1], [1], [0, 1, 1, 1], [], []>} : vector<8x256xf32>, vector<8x256xf32>, vector<256x256xf32> -> vector<256x256xf32>
    %cst_94 = arith.constant dense<0xFF800000> : vector<256xf32>
    %141 = vector.multi_reduction <maximumf>, %140, %cst_94 [1] : vector<256x256xf32> to vector<256xf32>
    %142 = vector.shape_cast %141 : vector<256xf32> to vector<256x1xf32>
    %143 = vector.broadcast %142 : vector<256x1xf32> to vector<256x256xf32>
    %144 = arith.subf %140, %143 : vector<256x256xf32>
    %145 = math.exp %144 : vector<256x256xf32>
    %cst_95 = arith.constant dense<0.000000e+00> : vector<256xf32>
    %146 = vector.multi_reduction <add>, %145, %cst_95 [1] : vector<256x256xf32> to vector<256xf32>
    %147 = vector.shape_cast %146 : vector<256xf32> to vector<256x1xf32>
    %cst_96 = arith.constant 1.000000e+00 : f32
    %148 = vector.broadcast %cst_96 : f32 to vector<256x1xf32>
    %149 = arith.divf %148, %147 : vector<256x1xf32>
    %150 = vector.broadcast %149 : vector<256x1xf32> to vector<256x256xf32>
    %151 = arith.mulf %145, %150 : vector<256x256xf32>
    %c0_97 = arith.constant 0 : index
    %c0_98 = arith.constant 0 : index
    %152 = vector.load %arg12[%c0_97, %c0_98] : memref<8x256xf32, #tpu.memory_space<vmem>>, vector<8x256xf32>
    %c0_99 = arith.constant 0 : index
    %c0_100 = arith.constant 0 : index
    %153 = vector.load %arg13[%c0_99, %c0_100] : memref<8x256xf32, #tpu.memory_space<vmem>>, vector<8x256xf32>
    %cst_101 = arith.constant dense<0.000000e+00> : vector<8x256xf32>
    %154 = tpu.matmul %152, %151, %cst_101 {dimension_numbers = #tpu.dot_dimension_numbers<[1], [0], [0], [1], [0, 0, 1, 1], [], []>} : vector<8x256xf32>, vector<256x256xf32>, vector<8x256xf32> -> vector<8x256xf32>
    %155 = arith.addf %153, %154 : vector<8x256xf32>
    %c0_102 = arith.constant 0 : index
    %c0_103 = arith.constant 0 : index
    %156 = vector.load %arg13[%c0_102, %c0_103] : memref<8x256xf32, #tpu.memory_space<vmem>>, vector<8x256xf32>
    tpu.vector_store %arg13[%c0_102, %c0_103], %155 {strides = array<i32>} : memref<8x256xf32, #tpu.memory_space<vmem>>, vector<8x256xf32>,
    %c0_104 = arith.constant 0 : index
    %c0_105 = arith.constant 0 : index
    %157 = vector.load %arg13[%c0_104, %c0_105] : memref<8x256xf32, #tpu.memory_space<vmem>>, vector<1x256xf32>
    %c0_106 = arith.constant 0 : index
    %c0_107 = arith.constant 0 : index
    %158 = vector.load %arg12[%c0_106, %c0_107] : memref<8x256xf32, #tpu.memory_space<vmem>>, vector<1x256xf32>
    tpu.vector_store %arg12[%c0_106, %c0_107], %104 {strides = array<i32>} : memref<8x256xf32, #tpu.memory_space<vmem>>, vector<1x256xf32>,
    %c1_108 = arith.constant 1 : index
    %c0_109 = arith.constant 0 : index
    %159 = vector.load %arg12[%c1_108, %c0_109] : memref<8x256xf32, #tpu.memory_space<vmem>>, vector<1x256xf32>
    tpu.vector_store %arg12[%c1_108, %c0_109], %131 {strides = array<i32>} : memref<8x256xf32, #tpu.memory_space<vmem>>, vector<1x256xf32>,
    %cst_110 = arith.constant 0.000000e+00 : f32
    %160 = vector.broadcast %cst_110 : f32 to vector<8x256xf32>
    %c0_111 = arith.constant 0 : index
    %c0_112 = arith.constant 0 : index
    %161 = vector.load %arg13[%c0_111, %c0_112] : memref<8x256xf32, #tpu.memory_space<vmem>>, vector<8x256xf32>
    tpu.vector_store %arg13[%c0_111, %c0_112], %160 {strides = array<i32>} : memref<8x256xf32, #tpu.memory_space<vmem>>, vector<8x256xf32>,
    %c2_113 = arith.constant 2 : index
    %c8_114 = arith.constant 8 : index
    %c0_115 = arith.constant 0 : index
    %162 = vector.load %arg11[%c2_113, %c8_114, %c0_115] : memref<3x16x256xf32, #tpu.memory_space<vmem>>, vector<1x8x256xf32>
    %163 = vector.shape_cast %162 : vector<1x8x256xf32> to vector<8x256xf32>
    %c1_116 = arith.constant 1 : index
    %c0_117 = arith.constant 0 : index
    %c0_118 = arith.constant 0 : index
    %164 = vector.load %arg11[%c1_116, %c0_117, %c0_118] : memref<3x16x256xf32, #tpu.memory_space<vmem>>, vector<1x8x256xf32>
    %165 = vector.shape_cast %164 : vector<1x8x256xf32> to vector<8x256xf32>
    %cst_119 = arith.constant dense<0.000000e+00> : vector<256x256xf32>
    %166 = tpu.matmul %165, %163, %cst_119 {dimension_numbers = #tpu.dot_dimension_numbers<[0], [0], [1], [1], [0, 1, 1, 1], [], []>} : vector<8x256xf32>, vector<8x256xf32>, vector<256x256xf32> -> vector<256x256xf32>
    %cst_120 = arith.constant dense<0xFF800000> : vector<256xf32>
    %167 = vector.multi_reduction <maximumf>, %166, %cst_120 [1] : vector<256x256xf32> to vector<256xf32>
    %168 = vector.shape_cast %167 : vector<256xf32> to vector<256x1xf32>
    %169 = vector.broadcast %168 : vector<256x1xf32> to vector<256x256xf32>
    %170 = arith.subf %166, %169 : vector<256x256xf32>
    %171 = math.exp %170 : vector<256x256xf32>
    %cst_121 = arith.constant dense<0.000000e+00> : vector<256xf32>
    %172 = vector.multi_reduction <add>, %171, %cst_121 [1] : vector<256x256xf32> to vector<256xf32>
    %173 = vector.shape_cast %172 : vector<256xf32> to vector<256x1xf32>
    %cst_122 = arith.constant 1.000000e+00 : f32
    %174 = vector.broadcast %cst_122 : f32 to vector<256x1xf32>
    %175 = arith.divf %174, %173 : vector<256x1xf32>
    %176 = vector.broadcast %175 : vector<256x1xf32> to vector<256x256xf32>
    %177 = arith.mulf %171, %176 : vector<256x256xf32>
    %c0_123 = arith.constant 0 : index
    %c0_124 = arith.constant 0 : index
    %178 = vector.load %arg12[%c0_123, %c0_124] : memref<8x256xf32, #tpu.memory_space<vmem>>, vector<8x256xf32>
    %c0_125 = arith.constant 0 : index
    %c0_126 = arith.constant 0 : index
    %179 = vector.load %arg13[%c0_125, %c0_126] : memref<8x256xf32, #tpu.memory_space<vmem>>, vector<8x256xf32>
    %cst_127 = arith.constant dense<0.000000e+00> : vector<8x256xf32>
    %180 = tpu.matmul %178, %177, %cst_127 {dimension_numbers = #tpu.dot_dimension_numbers<[1], [0], [0], [1], [0, 0, 1, 1], [], []>} : vector<8x256xf32>, vector<256x256xf32>, vector<8x256xf32> -> vector<8x256xf32>
    %181 = arith.addf %179, %180 : vector<8x256xf32>
    %c0_128 = arith.constant 0 : index
    %c0_129 = arith.constant 0 : index
    %182 = vector.load %arg13[%c0_128, %c0_129] : memref<8x256xf32, #tpu.memory_space<vmem>>, vector<8x256xf32>
    tpu.vector_store %arg13[%c0_128, %c0_129], %181 {strides = array<i32>} : memref<8x256xf32, #tpu.memory_space<vmem>>, vector<8x256xf32>,
    %c0_130 = arith.constant 0 : index
    %c0_131 = arith.constant 0 : index
    %183 = vector.load %arg13[%c0_130, %c0_131] : memref<8x256xf32, #tpu.memory_space<vmem>>, vector<1x256xf32>
    %c1_132 = arith.constant 1 : index
    %c0_133 = arith.constant 0 : index
    %184 = vector.load %arg13[%c1_132, %c0_133] : memref<8x256xf32, #tpu.memory_space<vmem>>, vector<1x256xf32>
    %c0_134 = arith.constant 0 : index
    %c0_135 = arith.constant 0 : index
    %185 = vector.load %arg12[%c0_134, %c0_135] : memref<8x256xf32, #tpu.memory_space<vmem>>, vector<1x256xf32>
    tpu.vector_store %arg12[%c0_134, %c0_135], %184 {strides = array<i32>} : memref<8x256xf32, #tpu.memory_space<vmem>>, vector<1x256xf32>,
    %c1_136 = arith.constant 1 : index
    %c0_137 = arith.constant 0 : index
    %186 = vector.load %arg12[%c1_136, %c0_137] : memref<8x256xf32, #tpu.memory_space<vmem>>, vector<1x256xf32>
    tpu.vector_store %arg12[%c1_136, %c0_137], %183 {strides = array<i32>} : memref<8x256xf32, #tpu.memory_space<vmem>>, vector<1x256xf32>,
    %cst_138 = arith.constant 0.000000e+00 : f32
    %187 = vector.broadcast %cst_138 : f32 to vector<8x256xf32>
    %c0_139 = arith.constant 0 : index
    %c0_140 = arith.constant 0 : index
    %188 = vector.load %arg13[%c0_139, %c0_140] : memref<8x256xf32, #tpu.memory_space<vmem>>, vector<8x256xf32>
    tpu.vector_store %arg13[%c0_139, %c0_140], %187 {strides = array<i32>} : memref<8x256xf32, #tpu.memory_space<vmem>>, vector<8x256xf32>,
    %c1_141 = arith.constant 1 : index
    %c8_142 = arith.constant 8 : index
    %c0_143 = arith.constant 0 : index
    %189 = vector.load %arg11[%c1_141, %c8_142, %c0_143] : memref<3x16x256xf32, #tpu.memory_space<vmem>>, vector<1x8x256xf32>
    %190 = vector.shape_cast %189 : vector<1x8x256xf32> to vector<8x256xf32>
    %c2_144 = arith.constant 2 : index
    %c0_145 = arith.constant 0 : index
    %c0_146 = arith.constant 0 : index
    %191 = vector.load %arg11[%c2_144, %c0_145, %c0_146] : memref<3x16x256xf32, #tpu.memory_space<vmem>>, vector<1x8x256xf32>
    %192 = vector.shape_cast %191 : vector<1x8x256xf32> to vector<8x256xf32>
    %cst_147 = arith.constant dense<0.000000e+00> : vector<256x256xf32>
    %193 = tpu.matmul %192, %190, %cst_147 {dimension_numbers = #tpu.dot_dimension_numbers<[0], [0], [1], [1], [0, 1, 1, 1], [], []>} : vector<8x256xf32>, vector<8x256xf32>, vector<256x256xf32> -> vector<256x256xf32>
    %cst_148 = arith.constant dense<0xFF800000> : vector<256xf32>
    %194 = vector.multi_reduction <maximumf>, %193, %cst_148 [1] : vector<256x256xf32> to vector<256xf32>
    %195 = vector.shape_cast %194 : vector<256xf32> to vector<256x1xf32>
    %196 = vector.broadcast %195 : vector<256x1xf32> to vector<256x256xf32>
    %197 = arith.subf %193, %196 : vector<256x256xf32>
    %198 = math.exp %197 : vector<256x256xf32>
    %cst_149 = arith.constant dense<0.000000e+00> : vector<256xf32>
    %199 = vector.multi_reduction <add>, %198, %cst_149 [1] : vector<256x256xf32> to vector<256xf32>
    %200 = vector.shape_cast %199 : vector<256xf32> to vector<256x1xf32>
    %cst_150 = arith.constant 1.000000e+00 : f32
    %201 = vector.broadcast %cst_150 : f32 to vector<256x1xf32>
    %202 = arith.divf %201, %200 : vector<256x1xf32>
    %203 = vector.broadcast %202 : vector<256x1xf32> to vector<256x256xf32>
    %204 = arith.mulf %198, %203 : vector<256x256xf32>
    %c0_151 = arith.constant 0 : index
    %c0_152 = arith.constant 0 : index
    %205 = vector.load %arg12[%c0_151, %c0_152] : memref<8x256xf32, #tpu.memory_space<vmem>>, vector<8x256xf32>
    %c0_153 = arith.constant 0 : index
    %c0_154 = arith.constant 0 : index
    %206 = vector.load %arg13[%c0_153, %c0_154] : memref<8x256xf32, #tpu.memory_space<vmem>>, vector<8x256xf32>
    %cst_155 = arith.constant dense<0.000000e+00> : vector<8x256xf32>
    %207 = tpu.matmul %205, %204, %cst_155 {dimension_numbers = #tpu.dot_dimension_numbers<[1], [0], [0], [1], [0, 0, 1, 1], [], []>} : vector<8x256xf32>, vector<256x256xf32>, vector<8x256xf32> -> vector<8x256xf32>
    %208 = arith.addf %206, %207 : vector<8x256xf32>
    %c0_156 = arith.constant 0 : index
    %c0_157 = arith.constant 0 : index
    %209 = vector.load %arg13[%c0_156, %c0_157] : memref<8x256xf32, #tpu.memory_space<vmem>>, vector<8x256xf32>
    tpu.vector_store %arg13[%c0_156, %c0_157], %208 {strides = array<i32>} : memref<8x256xf32, #tpu.memory_space<vmem>>, vector<8x256xf32>,
    %c0_158 = arith.constant 0 : index
    %c0_159 = arith.constant 0 : index
    %210 = vector.load %arg13[%c0_158, %c0_159] : memref<8x256xf32, #tpu.memory_space<vmem>>, vector<1x256xf32>
    %c1_160 = arith.constant 1 : index
    %c0_161 = arith.constant 0 : index
    %211 = vector.load %arg13[%c1_160, %c0_161] : memref<8x256xf32, #tpu.memory_space<vmem>>, vector<1x256xf32>
    %c0_162 = arith.constant 0 : index
    %c0_163 = arith.constant 0 : index
    %212 = vector.load %arg12[%c0_162, %c0_163] : memref<8x256xf32, #tpu.memory_space<vmem>>, vector<1x256xf32>
    tpu.vector_store %arg12[%c0_162, %c0_163], %210 {strides = array<i32>} : memref<8x256xf32, #tpu.memory_space<vmem>>, vector<1x256xf32>,
    %c1_164 = arith.constant 1 : index
    %c0_165 = arith.constant 0 : index
    %213 = vector.load %arg12[%c1_164, %c0_165] : memref<8x256xf32, #tpu.memory_space<vmem>>, vector<1x256xf32>
    tpu.vector_store %arg12[%c1_164, %c0_165], %131 {strides = array<i32>} : memref<8x256xf32, #tpu.memory_space<vmem>>, vector<1x256xf32>,
    %cst_166 = arith.constant 0.000000e+00 : f32
    %214 = vector.broadcast %cst_166 : f32 to vector<8x256xf32>
    %c0_167 = arith.constant 0 : index
    %c0_168 = arith.constant 0 : index
    %215 = vector.load %arg13[%c0_167, %c0_168] : memref<8x256xf32, #tpu.memory_space<vmem>>, vector<8x256xf32>
    tpu.vector_store %arg13[%c0_167, %c0_168], %214 {strides = array<i32>} : memref<8x256xf32, #tpu.memory_space<vmem>>, vector<8x256xf32>,
    %c0_169 = arith.constant 0 : index
    %c8_170 = arith.constant 8 : index
    %c0_171 = arith.constant 0 : index
    %216 = vector.load %arg11[%c0_169, %c8_170, %c0_171] : memref<3x16x256xf32, #tpu.memory_space<vmem>>, vector<1x8x256xf32>
    %217 = vector.shape_cast %216 : vector<1x8x256xf32> to vector<8x256xf32>
    %c1_172 = arith.constant 1 : index
    %c0_173 = arith.constant 0 : index
    %c0_174 = arith.constant 0 : index
    %218 = vector.load %arg11[%c1_172, %c0_173, %c0_174] : memref<3x16x256xf32, #tpu.memory_space<vmem>>, vector<1x8x256xf32>
    %219 = vector.shape_cast %218 : vector<1x8x256xf32> to vector<8x256xf32>
    %cst_175 = arith.constant dense<0.000000e+00> : vector<256x256xf32>
    %220 = tpu.matmul %219, %217, %cst_175 {dimension_numbers = #tpu.dot_dimension_numbers<[0], [0], [1], [1], [0, 1, 1, 1], [], []>} : vector<8x256xf32>, vector<8x256xf32>, vector<256x256xf32> -> vector<256x256xf32>
    %cst_176 = arith.constant dense<0xFF800000> : vector<256xf32>
    %221 = vector.multi_reduction <maximumf>, %220, %cst_176 [1] : vector<256x256xf32> to vector<256xf32>
    %222 = vector.shape_cast %221 : vector<256xf32> to vector<256x1xf32>
    %223 = vector.broadcast %222 : vector<256x1xf32> to vector<256x256xf32>
    %224 = arith.subf %220, %223 : vector<256x256xf32>
    %225 = math.exp %224 : vector<256x256xf32>
    %cst_177 = arith.constant dense<0.000000e+00> : vector<256xf32>
    %226 = vector.multi_reduction <add>, %225, %cst_177 [1] : vector<256x256xf32> to vector<256xf32>
    %227 = vector.shape_cast %226 : vector<256xf32> to vector<256x1xf32>
    %cst_178 = arith.constant 1.000000e+00 : f32
    %228 = vector.broadcast %cst_178 : f32 to vector<256x1xf32>
    %229 = arith.divf %228, %227 : vector<256x1xf32>
    %230 = vector.broadcast %229 : vector<256x1xf32> to vector<256x256xf32>
    %231 = arith.mulf %225, %230 : vector<256x256xf32>
    %c0_179 = arith.constant 0 : index
    %c0_180 = arith.constant 0 : index
    %232 = vector.load %arg12[%c0_179, %c0_180] : memref<8x256xf32, #tpu.memory_space<vmem>>, vector<8x256xf32>
    %c0_181 = arith.constant 0 : index
    %c0_182 = arith.constant 0 : index
    %233 = vector.load %arg13[%c0_181, %c0_182] : memref<8x256xf32, #tpu.memory_space<vmem>>, vector<8x256xf32>
    %cst_183 = arith.constant dense<0.000000e+00> : vector<8x256xf32>
    %234 = tpu.matmul %232, %231, %cst_183 {dimension_numbers = #tpu.dot_dimension_numbers<[1], [0], [0], [1], [0, 0, 1, 1], [], []>} : vector<8x256xf32>, vector<256x256xf32>, vector<8x256xf32> -> vector<8x256xf32>
    %235 = arith.addf %233, %234 : vector<8x256xf32>
    %c0_184 = arith.constant 0 : index
    %c0_185 = arith.constant 0 : index
    %236 = vector.load %arg13[%c0_184, %c0_185] : memref<8x256xf32, #tpu.memory_space<vmem>>, vector<8x256xf32>
    tpu.vector_store %arg13[%c0_184, %c0_185], %235 {strides = array<i32>} : memref<8x256xf32, #tpu.memory_space<vmem>>, vector<8x256xf32>,
    %c2_186 = arith.constant 2 : index
    %c0_187 = arith.constant 0 : index
    %237 = vector.load %arg13[%c2_186, %c0_187] : memref<8x256xf32, #tpu.memory_space<vmem>>, vector<1x256xf32>
    tpu.vector_store %arg13[%c2_186, %c0_187], %211 {strides = array<i32>} : memref<8x256xf32, #tpu.memory_space<vmem>>, vector<1x256xf32>,
    %c3 = arith.constant 3 : index
    %c0_188 = arith.constant 0 : index
    %238 = vector.load %arg13[%c3, %c0_188] : memref<8x256xf32, #tpu.memory_space<vmem>>, vector<1x256xf32>
    tpu.vector_store %arg13[%c3, %c0_188], %184 {strides = array<i32>} : memref<8x256xf32, #tpu.memory_space<vmem>>, vector<1x256xf32>,
    %c4 = arith.constant 4 : index
    %c0_189 = arith.constant 0 : index
    %239 = vector.load %arg13[%c4, %c0_189] : memref<8x256xf32, #tpu.memory_space<vmem>>, vector<1x256xf32>
    tpu.vector_store %arg13[%c4, %c0_189], %157 {strides = array<i32>} : memref<8x256xf32, #tpu.memory_space<vmem>>, vector<1x256xf32>,
    %c0_190 = arith.constant 0 : index
    %c0_191 = arith.constant 0 : index
    %240 = vector.load %arg13[%c0_190, %c0_191] : memref<8x256xf32, #tpu.memory_space<vmem>>, vector<8x256xf32>
    %c0_192 = arith.constant 0 : index
    %c0_193 = arith.constant 0 : index
    %c0_194 = arith.constant 0 : index
    %241 = vector.load %arg10[%c0_192, %c0_193, %c0_194] : memref<1x8x256xf32, #tpu.memory_space<vmem>>, vector<1x8x256xf32>
    %242 = vector.shape_cast %241 : vector<1x8x256xf32> to vector<8x256xf32>
    %243 = vector.shape_cast %240 : vector<8x256xf32> to vector<1x8x256xf32>
    tpu.vector_store %arg10[%c0_192, %c0_193, %c0_194], %243 {strides = array<i32>} : memref<1x8x256xf32, #tpu.memory_space<vmem>>, vector<1x8x256xf32>,
    return
  }
  func.func @transform_0(%arg0: i32) -> (i32, i32, i32) {
    %c0_i32 = arith.constant 0 : i32
    %c0_i32_0 = arith.constant 0 : i32
    %c0_i32_1 = arith.constant 0 : i32
    return %arg0, %c0_i32, %c0_i32_0 : i32, i32, i32
  }
  func.func @transform_1(%arg0: i32) -> (i32, i32, i32) {
    %c0_i32 = arith.constant 0 : i32
    %c0_i32_0 = arith.constant 0 : i32
    %c0_i32_1 = arith.constant 0 : i32
    return %arg0, %c0_i32, %c0_i32_0 : i32, i32, i32
  }
  func.func @transform_2(%arg0: i32) -> (i32, i32, i32) {
    %c0_i32 = arith.constant 0 : i32
    %c0_i32_0 = arith.constant 0 : i32
    %c0_i32_1 = arith.constant 0 : i32
    return %arg0, %c0_i32, %c0_i32_0 : i32, i32, i32
  }
  func.func @transform_3(%arg0: i32) -> (i32, i32) {
    %c0_i32 = arith.constant 0 : i32
    %c0_i32_0 = arith.constant 0 : i32
    %c0_i32_1 = arith.constant 0 : i32
    return %c0_i32, %c0_i32_0 : i32, i32
  }
  func.func @transform_4(%arg0: i32) -> (i32, i32) {
    %c0_i32 = arith.constant 0 : i32
    %c0_i32_0 = arith.constant 0 : i32
    %c0_i32_1 = arith.constant 0 : i32
    return %c0_i32, %c0_i32_0 : i32, i32
  }
  func.func @transform_5(%arg0: i32) -> (i32, i32) {
    %c0_i32 = arith.constant 0 : i32
    %c0_i32_0 = arith.constant 0 : i32
    %c0_i32_1 = arith.constant 0 : i32
    return %c0_i32, %c0_i32_0 : i32, i32
  }
  func.func @transform_6(%arg0: i32) -> (i32, i32, i32) {
    %c0_i32 = arith.constant 0 : i32
    %c0_i32_0 = arith.constant 0 : i32
    %c0_i32_1 = arith.constant 0 : i32
    return %arg0, %c0_i32, %c0_i32_0 : i32, i32, i32
  }
  func.func @transform_7(%arg0: i32) -> (i32, i32, i32) {
    %c0_i32 = arith.constant 0 : i32
    %c0_i32_0 = arith.constant 0 : i32
    %c0_i32_1 = arith.constant 0 : i32
    return %arg0, %c0_i32, %c0_i32_0 : i32, i32, i32
  }
  func.func @transform_8(%arg0: i32) -> (i32, i32, i32) {
    %c0_i32 = arith.constant 0 : i32
    %c0_i32_0 = arith.constant 0 : i32
    %c0_i32_1 = arith.constant 0 : i32
    return %arg0, %c0_i32, %c0_i32_0 : i32, i32, i32
  }
  func.func @transform_9(%arg0: i32) -> (i32, i32, i32) {
    %c0_i32 = arith.constant 0 : i32
    %c0_i32_0 = arith.constant 0 : i32
    %c0_i32_1 = arith.constant 0 : i32
    return %arg0, %c0_i32, %c0_i32_0 : i32, i32, i32
  }
}

</mosaic_0001>

<bundles_post_ra>
// kernel: contrastive_module.1
= control target key start
LH: loop header
LB: loop body
LE: loop exit
PB: predicated region body
PF: predicated region fallthrough
CT: control target
= control target key end

     0   :  { %s7505_s30 = smov 0   ;;  %s10764_s0 = inlined_call_operand.vmem [shape: f32[2,32,256], index: 0, kind: input, shape index: {}]   ;;  %s10765_s1 = inlined_call_operand.vmem [shape: f32[2,32,256], index: 1, kind: input, shape index: {}]   ;;  %s10766_s2 = inlined_call_operand.vmem [shape: f32[2,32,256], index: 2, kind: input, shape index: {}]   ;;  %s10767_s3 = inlined_call_operand.vmem [shape: f32[24,32], index: 3, kind: input, shape index: {}]   ;;  %s10768_s4 = inlined_call_operand.vmem [shape: f32[24,1], index: 4, kind: input, shape index: {}]   ;;  %s10769_s5 = inlined_call_operand.vmem [shape: f32[24,1], index: 5, kind: input, shape index: {}]   ;;  %s10770_s6 = inlined_call_operand.vmem [shape: f32[2,8,256], index: 6, kind: output, shape index: {0}]   ;;  %s10771_s7 = inlined_call_operand.vmem [shape: f32[2,8,256], index: 7, kind: output, shape index: {1}]   ;;  %s10772_s8 = inlined_call_operand.vmem [shape: f32[2,8,256], index: 8, kind: output, shape index: {2}]   ;;  %s10773_s9 = inlined_call_operand.vmem [shape: f32[2,8,256], index: 9, kind: output, shape index: {3}]  }
   0x1 LB: > { %s6246_s10 = sadd.s32 4294967295, %s7450_s30   ;;  %p6250_p0 = scmp.ge.s32.totalorder %s7450_s30, 1  ;;  %s7450_s30 = sphi %s7505_s30, %s20_s30  }
   0x2   : > { %p314_p1 = scmp.lt.s32.totalorder %s7450_s30, 3 }
   0x4   : > { %p315_p2 = pnand %p6250_p0, %p314_p1 }
   0x6   : > { %318 = sbr.rel (%p315_p2) target bundleno = 4383 (0x111f), region = 44 }
   0xb   : > { %p375_p3 = scmp.lt.s32.totalorder %s6246_s10, 1  ;;  %v10776_v0 = vmov 0.0   ;;  %v7533_v17 = vld [vmem:[%s10767_s3] sm:$0xff]  ;;  %vm427_vm0 = vcmask 261120   ;;  %v7543_v18 = vld [vmem:[%s10767_s3 + $0x8] sm:$0xff]  ;;  %v7453_v27 = vmov 0  }
   0xc   : > { %501 = vmatprep.mubr.f32.mxu0 %v10776_v0  ;;  %950 = vst [vmem:[#allocation3] sm:$0xff] %v10776_v0  ;;  %951 = vst [vmem:[#allocation3 + $0x8] sm:$0xff] %v10776_v0  ;;  %694 = vmatprep.mubr.f32.mxu1 %v10776_v0  ;;  %v416_v28 = vld [vmem:[%s10769_s5] sm:$0xff]  ;;  %v414_v29 = vld [vmem:[%s10768_s4 + $0x8] sm:$0xff]  ;;  %vm1031_vm1 = vcmask 64512  }
   0xd   : > { %s11398_s10 = smov (!%p375_p3, %s6246_s10), 1  ;;  %6464 = vset.pattern.permute.xlu1 %v7453_v27  ;;  %6465 = vset.pattern.permute.xlu0 %v7453_v27  ;;  %v417_v30 = vld [vmem:[%s10769_s5 + $0x8] sm:$0xff]  ;;  %v413_v38 = vld [vmem:[%s10768_s4] sm:$0xff]  ;;  %v412_v46 = vld [vmem:[%s10767_s3 + $0x10] sm:$0xff] }
   0xe   : > { %s7520_s11 = sshll.u32 %s11398_s10, 6  ;;  %s10731_s20 = sshll.u32 %s11398_s10, 4 }
   0xf   : > { %s379_s14 = scalar_lea.vmem %s10764_s0, %s7520_s11  ;;  %s384_s17 = scalar_lea.vmem %s10765_s1, %s7520_s11 }
  0x10   : > { %v426_v1 = vld [vmem:[%s379_s14 + $0x38] sm:$0xff]  ;;  %v425_v3 = vld [vmem:[%s379_s14 + $0x30] sm:$0xff]  ;;  %v424_v5 = vld [vmem:[%s379_s14 + $0x28] sm:$0xff]  ;;  %s399_s23 = scalar_lea.vmem %s10771_s7, %s10731_s20  ;;  %s394_s25 = scalar_lea.vmem %s10770_s6, %s10731_s20 }
  0x11   : > { %v629_v2 = vld [vmem:[%s384_s17 + $0x38] sm:$0xff]  ;;  %461 = vmatprep.subr.mxu0 %v426_v1  ;;  %v628_v4 = vld [vmem:[%s384_s17 + $0x30] sm:$0xff]  ;;  %v627_v6 = vld [vmem:[%s384_s17 + $0x28] sm:$0xff]  ;;  %s404_s28 = scalar_lea.vmem %s10772_s8, %s10731_s20  ;;  %s409_s13 = scalar_lea.vmem %s10773_s9, %s10731_s20 }
  0x12   : > { %654 = vmatprep.subr.mxu1 %v629_v2  ;;  %462 = vmatpush1.msra.mxu0 %v425_v3  ;;  %v423_v7 = vld [vmem:[%s379_s14 + $0x20] sm:$0xff]  ;;  %v422_v9 = vld [vmem:[%s379_s14 + $0x18] sm:$0xff]  ;;  %v421_v11 = vld [vmem:[%s379_s14 + $0x10] sm:$0xff] }
  0x13   : > { %655 = vmatpush1.msra.mxu1 %v628_v4  ;;  %v626_v8 = vld [vmem:[%s384_s17 + $0x20] sm:$0xff]  ;;  %463 = vmatprep.subr.mxu0 %v424_v5  ;;  %v625_v10 = vld [vmem:[%s384_s17 + $0x18] sm:$0xff]  ;;  %v624_v12 = vld [vmem:[%s384_s17 + $0x10] sm:$0xff] }
  0x14   : > { %656 = vmatprep.subr.mxu1 %v627_v6  ;;  %464 = vmatpush1.msra.mxu0 %v423_v7  ;;  %v420_v13 = vld [vmem:[%s379_s14 + $0x8] sm:$0xff]  ;;  %v419_v15 = vld [vmem:[%s379_s14] sm:$0xff]  ;;  %s389_s14 = scalar_lea.vmem %s10766_s2, %s7520_s11 }
  0x15   : > { %657 = vmatpush1.msra.mxu1 %v626_v8  ;;  %v623_v14 = vld [vmem:[%s384_s17 + $0x8] sm:$0xff]  ;;  %465 = vmatprep.subr.mxu0 %v422_v9  ;;  %v622_v16 = vld [vmem:[%s384_s17] sm:$0xff]  ;;  %v793_v47 = vld [vmem:[%s389_s14 + $0x38] sm:$0xff] }
  0x16   : > { %658 = vmatprep.subr.mxu1 %v625_v10  ;;  %466 = vmatpush1.msra.mxu0 %v421_v11  ;;  %v792_v48 = vld [vmem:[%s389_s14 + $0x30] sm:$0xff]  ;;  %v791_v49 = vld [vmem:[%s389_s14 + $0x28] sm:$0xff]  ;;  %v790_v50 = vld [vmem:[%s389_s14 + $0x20] sm:$0xff] }
  0x17   : > { %659 = vmatpush1.msra.mxu1 %v624_v12  ;;  %467 = vmatprep.subr.mxu0 %v420_v13  ;;  %v789_v51 = vld [vmem:[%s389_s14 + $0x18] sm:$0xff]  ;;  %v788_v52 = vld [vmem:[%s389_s14 + $0x10] sm:$0xff]  ;;  %v787_v53 = vld [vmem:[%s389_s14 + $0x8] sm:$0xff] }
  0x18   : > { %660 = vmatprep.subr.mxu1 %v623_v14  ;;  %468 = vmatpush1.msra.mxu0 %v419_v15  ;;  %v786_v54 = vld [vmem:[%s389_s14] sm:$0xff] }
  0x19   : > { %661 = vmatpush1.msra.mxu1 %v622_v16  ;;  %6265 = vmatmul.mubr.msk.f32.vlgmr.msra.gmra.mxu0 %vm427_vm0, %v7533_v17 }
  0x1a   : > { %6268 = vmatmul.mubr.msk.f32.vlgmr.msra.gmra.mxu1 %vm427_vm0, %v7533_v17  ;;  %507 = vmatprep.mubr.f32.mxu0 %v10776_v0 }
  0x1b   : > { %700 = vmatprep.mubr.f32.mxu1 %v10776_v0  ;;  %818 = vmatprep.subr.mxu0 %v793_v47 }
  0x1c   : > { %6443 = vmatprep.subr.mxu1 %v793_v47  ;;  %819 = vmatpush1.msra.mxu0 %v792_v48 }
  0x1d   : > { %6266 = vmatmul.mubr.msk.f32.gmra.mxu0 %vm427_vm0, %v7543_v18  ;;  %6447 = vmatpush1.msra.mxu1 %v792_v48 }
  0x1e   : > { %6269 = vmatmul.mubr.msk.f32.gmra.mxu1 %vm427_vm0, %v7543_v18  ;;  %513 = vmatprep.mubr.f32.mxu0 %v10776_v0 }
  0x1f   : > { %706 = vmatprep.mubr.f32.mxu1 %v10776_v0  ;;  %820 = vmatprep.subr.mxu0 %v791_v49 }
  0x20   : > { %6444 = vmatprep.subr.mxu1 %v791_v49  ;;  %821 = vmatpush1.msra.mxu0 %v790_v50 }
  0x21   : > { %6267 = vmatmul.mubr.msk.f32.gmra.mxu0 %vm427_vm0, %v412_v46  ;;  %6448 = vmatpush1.msra.mxu1 %v790_v50 }
  0x22   : > { %6270 = vmatmul.mubr.msk.f32.gmra.mxu1 %vm427_vm0, %v412_v46  ;;  %822 = vmatprep.subr.mxu0 %v789_v51 }
  0x23   : > { %6445 = vmatprep.subr.mxu1 %v789_v51  ;;  %823 = vmatpush1.msra.mxu0 %v788_v52 }
  0x24   : > { %6449 = vmatpush1.msra.mxu1 %v788_v52  ;;  %824 = vmatprep.subr.mxu0 %v787_v53 }
  0x25   : > { %6446 = vmatprep.subr.mxu1 %v787_v53  ;;  %825 = vmatpush1.msra.mxu0 %v786_v54 }
  0x26   : > { %6450 = vmatpush1.msra.mxu1 %v786_v54  ;;  %858 = vmatprep.mubr.f32.mxu0 %v10776_v0 }
  0x27   : > { %864 = vmatprep.mubr.f32.mxu1 %v10776_v0  ;;  %6271 = vmatmul.mubr.msk.f32.vlgmr.msra.gmra.mxu0 %vm427_vm0, %v7533_v17 }
  0x28   : > { %6272 = vmatmul.mubr.msk.f32.vlgmr.msra.gmra.mxu1 %vm427_vm0, %v7543_v18  ;;  %1192 = vmatprep.mubr.f32.mxu0 %v10776_v0 }
  0x29   : > { %870 = vmatprep.mubr.f32.mxu1 %v10776_v0 }
  0x2c   : > { %6273 = vmatmul.mubr.msk.f32.gmra.mxu1 %vm427_vm0, %v412_v46 }
  0x2d   : > { %1288 = vmatprep.mubr.f32.mxu1 %v10776_v0 }
  0xd9   : > { %v503_v19 = vpop.f32.mrf.mxu0 }
  0xda   : > { %v7552_v20 = vpop.f32.mrf.mxu1 }
  0xdb   : > { %10987 = vst [vmem:[#allocation5_spill] sm:$0xff] %v7552_v20  ;;  %v505_v21 = vpop.f32.mrf.mxu0 }
  0xdc   : > { %v7554_v22 = vpop.f32.mrf.mxu1  ;;  %v520_v23 = vadd.f32 %v505_v21, %v503_v19 }
  0xdd   : > { %10988 = vst [vmem:[#allocation6_spill] sm:$0xff] %v7554_v22 }
  0xde   : > { %v702_v24 = vpop.f32.mrf.mxu1  ;;  %521 = vadd.xlane.f32.xlu0 %v520_v23 }
  0xe0   : > { %v704_v25 = vpop.f32.mrf.mxu1 }
  0xe1   : > { %v716_v26 = vadd.f32 %v704_v25, %v702_v24 }
  0xe2   : > { %v7693_v54 = vpop.f32.mrf.mxu1 }
  0xe3   : > { %717 = vadd.xlane.f32.xlu0 %v716_v26  ;;  %10997 = vst [vmem:[#allocation15_spill] sm:$0xff] %v7693_v54 }
  0xf9   : > { %591 = vperm.xlu0 %6465, %v416_v28  }
  0xfd   : > { %575 = vperm.xlu0 %6465, %v414_v29  }
 0x101   : > { %596 = vperm.xlu0 %6465, %v417_v30  }
 0x167   : > { %v522_v31 = vpop.xlane.xlu0 %521 }
 0x168   : > { %v529_v32 = vmul.f32 0.00390625, %v522_v31 }
 0x16a   : > { %v532_v33 = vsub.f32 %v503_v19, %v529_v32  ;;  %v533_v34 = vsub.f32 %v505_v21, %v529_v32 }
 0x16c   : > { %v538_v35 = vmul.f32 %v532_v33, %v532_v33  ;;  %v539_v36 = vmul.f32 %v533_v34, %v533_v34  ;;  %v718_v39 = vpop.xlane.xlu0 %717 }
 0x16d   : > { %v723_v40 = vmul.f32 0.00390625, %v718_v39 }
 0x16e   : > { %v544_v37 = vadd.f32 %v539_v36, %v538_v35 }
 0x16f   : > { %v7568_v41 = vsub.f32 %v702_v24, %v723_v40  ;;  %v7570_v42 = vsub.f32 %v704_v25, %v723_v40 }
 0x170   : > { %545 = vadd.xlane.f32.xlu1 %v544_v37 }
 0x171   : > { %v733_v43 = vmul.f32 %v7568_v41, %v7568_v41  ;;  %v734_v44 = vmul.f32 %v7570_v42, %v7570_v42 }
 0x173   : > { %v740_v45 = vadd.f32 %v734_v44, %v733_v43 }
 0x174   : > { %v7599_v1 = vpop.permute.xlu0 %591 }
 0x175   : > { %10990 = vst [vmem:[#allocation8_spill] sm:$0xff] %v7599_v1 }
 0x178   : > { %v7613_v9 = vpop.permute.xlu0 %575 }
 0x179   : > { %10993 = vst [vmem:[#allocation11_spill] sm:$0xff] %v7613_v9 }
 0x17c   : > { %v7619_v15 = vpop.permute.xlu0 %596 }
 0x17d   : > { %10994 = vst [vmem:[#allocation12_spill] sm:$0xff] %v7619_v15 }
 0x181   : > { %570 = vperm.xlu1 %6464, %v413_v38  }
 0x1a5   : > { %741 = vadd.xlane.f32.xlu1 %v740_v45 }
 0x1f9   : > { %v546_v55 = vpop.xlane.xlu1 %545 }
 0x1fa   : > { %v553_v56 = vmul.f32 0.00390625, %v546_v55  ;;  %v7695_v55 = vpop.f32.mrf.mxu0 }
 0x1fb   : > { %10998 = vst [vmem:[#allocation16_spill] sm:$0xff] %v7695_v55 }
 0x1fc   : > { %v556_v57 = vadd.f32 1e-05, %v553_v56  ;;  %v7697_v56 = vpop.f32.mrf.mxu1 }
 0x1fd   : > { %v7595_v59 = vpop.permute.xlu1 %570  ;;  %10999 = vst [vmem:[#allocation17_spill] sm:$0xff] %v7697_v56 }
 0x1fe   : > { %6466 = vrsqrt.f32 %v556_v57  ;;  %10989 = vst [vmem:[#allocation7_spill] sm:$0xff] %v7595_v59  ;;  %v7699_v57 = vpop.f32.mrf.mxu0 }
 0x1ff   : > { %11000 = vst [vmem:[#allocation18_spill] sm:$0xff] %v7699_v57 }
 0x20b   : > { %v6467_v58 = vpop.eup %6466 }
 0x20c   : > { %v563_v60 = vmul.f32 %v6467_v58, %v533_v34  ;;  %v562_v61 = vmul.f32 %v6467_v58, %v532_v33  ;;  %v7701_v58 = vpop.f32.mrf.mxu1 }
 0x20d   : > { %11001 = vst [vmem:[#allocation19_spill] sm:$0xff] %v7701_v58 }
 0x20e   : > { %v584_v62 = vmul.f32 %v7595_v59, %v563_v60  ;;  %v583_v63 = vmul.f32 %v7595_v59, %v562_v61  ;;  %v7703_v60 = vpop.f32.mrf.mxu0  ;;  %v7705_v61 = vpop.f32.mrf.mxu1 }
 0x20f   : > { %11002 = vst [vmem:[#allocation20_spill] sm:$0xff] %v7703_v60  ;;  %11003 = vst [vmem:[#allocation21_spill] sm:$0xff] %v7705_v61 }
 0x210   : > { %v7602_v2 = vadd.f32 %v7599_v1, %v584_v62  ;;  %v7605_v3 = vadd.f32 %v7599_v1, %v583_v63  ;;  %v7707_v62 = vpop.f32.mrf.mxu0  ;;  %v7709_v63 = vpop.f32.mrf.mxu1 }
 0x211   : > { %11004 = vst [vmem:[#allocation22_spill] sm:$0xff] %v7707_v62  ;;  %11005 = vst [vmem:[#allocation23_spill] sm:$0xff] %v7709_v63 }
 0x212   : > { %10991 = vst [vmem:[#allocation9_spill] sm:$0xff] %v7602_v2  ;;  %10992 = vst [vmem:[#allocation10_spill] sm:$0xff] %v7605_v3  ;;  %v10775_v4 = vmax.f32 %v7602_v2, 0.0  ;;  %v10774_v5 = vmax.f32 %v7605_v3, 0.0 }
 0x214   : > { %999 = vxpose.xlu0.b32.start.end [1/1] (short) %v10775_v4, 128  ;;  %967 = vxpose.xlu1.b32.start.end [1/1] (short) %v10774_v5, 128 }
 0x22e   : > { %v742_v6 = vpop.xlane.xlu1 %741 }
 0x22f   : > { %v747_v7 = vmul.f32 0.00390625, %v742_v6  ;;  %v7711_v6 = vpop.f32.mrf.mxu0 }
 0x230   : > { %11006 = vst [vmem:[#allocation24_spill] sm:$0xff] %v7711_v6 }
 0x231   : > { %v750_v8 = vadd.f32 1e-05, %v747_v7  ;;  %v7713_v7 = vpop.f32.mrf.mxu1 }
 0x232   : > { %11007 = vst [vmem:[#allocation25_spill] sm:$0xff] %v7713_v7 }
 0x233   : > { %6468 = vrsqrt.f32 %v750_v8  ;;  %v7715_v8 = vpop.f32.mrf.mxu0 }
 0x234   : > { %11008 = vst [vmem:[#allocation26_spill] sm:$0xff] %v7715_v8 }
 0x240   : > { %v6469_v10 = vpop.eup %6468 }
 0x241   : > { %v758_v11 = vmul.f32 %v6469_v10, %v7570_v42  ;;  %v757_v12 = vmul.f32 %v6469_v10, %v7568_v41 }
 0x243   : > { %v764_v13 = vmul.f32 %v758_v11, %v7613_v9  ;;  %v763_v14 = vmul.f32 %v757_v12, %v7613_v9 }
 0x245   : > { %v770_v16 = vadd.f32 %v764_v13, %v7619_v15  ;;  %v769_v17 = vadd.f32 %v763_v14, %v7619_v15 }
 0x247   : > { %v7623_v18 = vmax.f32 %v770_v16, 0.0  ;;  %v7625_v19 = vmax.f32 %v769_v17, 0.0 }
 0x249   : > { %10995 = vst [vmem:[#allocation13_spill] sm:$0xff] %v7623_v18  ;;  %10996 = vst [vmem:[#allocation14_spill] sm:$0xff] %v7625_v19  ;;  %1158 = vmatprep.subr.mxu0 %v7623_v18  ;;  %6451 = vmatprep.subr.mxu1 %v7623_v18 }
 0x24a   : > { %1159 = vmatpush1.msra.mxu0 %v7625_v19  ;;  %6452 = vmatpush1.msra.mxu1 %v7625_v19 }
 0x290   : > { %v983_v21 = vpop.trf.xlu1  ;;  %v1015_v23 = vpop.trf.xlu0 }
 0x291   : > { %6274 = vmatmul.mubr.msk.f32.vlgmr.msra.gmra.mxu0 %vm1031_vm1, %v983_v21  ;;  %6290 = vmatmul.mubr.msk.f32.vlgmr.msra.gmra.mxu1 %vm1031_vm1, %v1015_v23 }
 0x292   : > { %1198 = vmatprep.mubr.f32.mxu0 %v10776_v0  ;;  %1294 = vmatprep.mubr.f32.mxu1 %v10776_v0 }
 0x294   : > { %v984_v24 = vpop.trf.xlu1  ;;  %v1016_v25 = vpop.trf.xlu0 }
 0x295   : > { %6275 = vmatmul.mubr.msk.f32.gmra.mxu0 %vm1031_vm1, %v984_v24  ;;  %6291 = vmatmul.mubr.msk.f32.gmra.mxu1 %vm1031_vm1, %v1016_v25 }
 0x296   : > { %1204 = vmatprep.mubr.f32.mxu0 %v10776_v0  ;;  %1300 = vmatprep.mubr.f32.mxu1 %v10776_v0 }
 0x298   : > { %v985_v26 = vpop.trf.xlu1  ;;  %v1017_v27 = vpop.trf.xlu0 }
 0x299   : > { %6276 = vmatmul.mubr.msk.f32.gmra.mxu0 %vm1031_vm1, %v985_v26  ;;  %6292 = vmatmul.mubr.msk.f32.gmra.mxu1 %vm1031_vm1, %v1017_v27 }
 0x29a   : > { %1210 = vmatprep.mubr.f32.mxu0 %v10776_v0  ;;  %1306 = vmatprep.mubr.f32.mxu1 %v10776_v0 }
 0x29c   : > { %v986_v28 = vpop.trf.xlu1  ;;  %v1018_v29 = vpop.trf.xlu0 }
 0x29d   : > { %6277 = vmatmul.mubr.msk.f32.gmra.mxu0 %vm1031_vm1, %v986_v28  ;;  %6293 = vmatmul.mubr.msk.f32.gmra.mxu1 %vm1031_vm1, %v1018_v29 }
 0x29e   : > { %1216 = vmatprep.mubr.f32.mxu0 %v10776_v0  ;;  %1312 = vmatprep.mubr.f32.mxu1 %v10776_v0 }
 0x2a0   : > { %v987_v30 = vpop.trf.xlu1  ;;  %v1019_v31 = vpop.trf.xlu0 }
 0x2a1   : > { %6278 = vmatmul.mubr.msk.f32.gmra.mxu0 %vm1031_vm1, %v987_v30  ;;  %6294 = vmatmul.mubr.msk.f32.gmra.mxu1 %vm1031_vm1, %v1019_v31 }
 0x2a2   : > { %1222 = vmatprep.mubr.f32.mxu0 %v10776_v0  ;;  %1318 = vmatprep.mubr.f32.mxu1 %v10776_v0 }
 0x2a4   : > { %v988_v32 = vpop.trf.xlu1  ;;  %v1020_v33 = vpop.trf.xlu0 }
 0x2a5   : > { %6279 = vmatmul.mubr.msk.f32.gmra.mxu0 %vm1031_vm1, %v988_v32  ;;  %6295 = vmatmul.mubr.msk.f32.gmra.mxu1 %vm1031_vm1, %v1020_v33 }
 0x2a6   : > { %1228 = vmatprep.mubr.f32.mxu0 %v10776_v0  ;;  %1324 = vmatprep.mubr.f32.mxu1 %v10776_v0 }
 0x2a8   : > { %v989_v34 = vpop.trf.xlu1  ;;  %v1021_v35 = vpop.trf.xlu0 }
 0x2a9   : > { %6280 = vmatmul.mubr.msk.f32.gmra.mxu0 %vm1031_vm1, %v989_v34  ;;  %6296 = vmatmul.mubr.msk.f32.gmra.mxu1 %vm1031_vm1, %v1021_v35 }
 0x2aa   : > { %1234 = vmatprep.mubr.f32.mxu0 %v10776_v0  ;;  %1330 = vmatprep.mubr.f32.mxu1 %v10776_v0 }
 0x2ac   : > { %v990_v36 = vpop.trf.xlu1  ;;  %v1022_v37 = vpop.trf.xlu0 }
 0x2ad   : > { %6281 = vmatmul.mubr.msk.f32.gmra.mxu0 %vm1031_vm1, %v990_v36  ;;  %6297 = vmatmul.mubr.msk.f32.gmra.mxu1 %vm1031_vm1, %v1022_v37 }
 0x2ae   : > { %1240 = vmatprep.mubr.f32.mxu0 %v10776_v0  ;;  %1336 = vmatprep.mubr.f32.mxu1 %v10776_v0 }
 0x2b0   : > { %v991_v38 = vpop.trf.xlu1  ;;  %v1023_v39 = vpop.trf.xlu0 }
 0x2b1   : > { %6282 = vmatmul.mubr.msk.f32.gmra.mxu0 %vm1031_vm1, %v991_v38  ;;  %6298 = vmatmul.mubr.msk.f32.gmra.mxu1 %vm1031_vm1, %v1023_v39 }
 0x2b2   : > { %1246 = vmatprep.mubr.f32.mxu0 %v10776_v0  ;;  %1342 = vmatprep.mubr.f32.mxu1 %v10776_v0 }
 0x2b4   : > { %v992_v40 = vpop.trf.xlu1  ;;  %v1024_v41 = vpop.trf.xlu0 }
 0x2b5   : > { %6283 = vmatmul.mubr.msk.f32.gmra.mxu0 %vm1031_vm1, %v992_v40  ;;  %6299 = vmatmul.mubr.msk.f32.gmra.mxu1 %vm1031_vm1, %v1024_v41 }
 0x2b6   : > { %1252 = vmatprep.mubr.f32.mxu0 %v10776_v0  ;;  %1348 = vmatprep.mubr.f32.mxu1 %v10776_v0 }
 0x2b8   : > { %v993_v42 = vpop.trf.xlu1  ;;  %v1025_v43 = vpop.trf.xlu0 }
 0x2b9   : > { %6284 = vmatmul.mubr.msk.f32.gmra.mxu0 %vm1031_vm1, %v993_v42  ;;  %6300 = vmatmul.mubr.msk.f32.gmra.mxu1 %vm1031_vm1, %v1025_v43 }
 0x2ba   : > { %1258 = vmatprep.mubr.f32.mxu0 %v10776_v0  ;;  %1354 = vmatprep.mubr.f32.mxu1 %v10776_v0 }
 0x2bc   : > { %v994_v44 = vpop.trf.xlu1  ;;  %v1026_v45 = vpop.trf.xlu0 }
 0x2bd   : > { %6285 = vmatmul.mubr.msk.f32.gmra.mxu0 %vm1031_vm1, %v994_v44  ;;  %6301 = vmatmul.mubr.msk.f32.gmra.mxu1 %vm1031_vm1, %v1026_v45 }
 0x2be   : > { %1264 = vmatprep.mubr.f32.mxu0 %v10776_v0  ;;  %1360 = vmatprep.mubr.f32.mxu1 %v10776_v0 }
 0x2c0   : > { %v995_v46 = vpop.trf.xlu1  ;;  %v1027_v47 = vpop.trf.xlu0 }
 0x2c1   : > { %6286 = vmatmul.mubr.msk.f32.gmra.mxu0 %vm1031_vm1, %v995_v46  ;;  %6302 = vmatmul.mubr.msk.f32.gmra.mxu1 %vm1031_vm1, %v1027_v47 }
 0x2c2   : > { %1270 = vmatprep.mubr.f32.mxu0 %v10776_v0  ;;  %1366 = vmatprep.mubr.f32.mxu1 %v10776_v0 }
 0x2c4   : > { %v996_v48 = vpop.trf.xlu1  ;;  %v1028_v49 = vpop.trf.xlu0 }
 0x2c5   : > { %6287 = vmatmul.mubr.msk.f32.gmra.mxu0 %vm1031_vm1, %v996_v48  ;;  %6303 = vmatmul.mubr.msk.f32.gmra.mxu1 %vm1031_vm1, %v1028_v49 }
 0x2c6   : > { %1276 = vmatprep.mubr.f32.mxu0 %v10776_v0  ;;  %1372 = vmatprep.mubr.f32.mxu1 %v10776_v0 }
 0x2c8   : > { %v997_v50 = vpop.trf.xlu1  ;;  %v1029_v51 = vpop.trf.xlu0 }
 0x2c9   : > { %6288 = vmatmul.mubr.msk.f32.gmra.mxu0 %vm1031_vm1, %v997_v50  ;;  %6304 = vmatmul.mubr.msk.f32.gmra.mxu1 %vm1031_vm1, %v1029_v51 }
 0x2ca   : > { %1282 = vmatprep.mubr.f32.mxu0 %v10776_v0  ;;  %1378 = vmatprep.mubr.f32.mxu1 %v10776_v0 }
 0x2cc   : > { %v998_v52 = vpop.trf.xlu1  ;;  %v1030_v53 = vpop.trf.xlu0 }
 0x2cd   : > { %6289 = vmatmul.mubr.msk.f32.gmra.mxu0 %vm1031_vm1, %v998_v52  ;;  %6305 = vmatmul.mubr.msk.f32.gmra.mxu1 %vm1031_vm1, %v1030_v53 }
 0x351   : > { %v7717_v10 = vpop.f32.mrf.mxu0  ;;  %v7719_v11 = vpop.f32.mrf.mxu1 }
 0x352   : > { %11009 = vst [vmem:[#allocation27_spill] sm:$0xff] %v7719_v11 }
 0x353   : > { %v7721_v12 = vpop.f32.mrf.mxu0  ;;  %v7723_v13 = vpop.f32.mrf.mxu1 }
 0x354   : > { %11010 = vst [vmem:[#allocation28_spill] sm:$0xff] %v7723_v13 }
 0x355   : > { %v7725_v14 = vpop.f32.mrf.mxu0  ;;  %v7727_v16 = vpop.f32.mrf.mxu1 }
 0x356   : > { %11011 = vst [vmem:[#allocation29_spill] sm:$0xff] %v7727_v16 }
 0x357   : > { %v7729_v17 = vpop.f32.mrf.mxu0  ;;  %v7731_v21 = vpop.f32.mrf.mxu1 }
 0x358   : > { %11012 = vst [vmem:[#allocation30_spill] sm:$0xff] %v7731_v21 }
 0x359   : > { %v7733_v23 = vpop.f32.mrf.mxu0  ;;  %v7735_v24 = vpop.f32.mrf.mxu1 }
 0x35a   : > { %11013 = vst [vmem:[#allocation31_spill] sm:$0xff] %v7735_v24 }
 0x35b   : > { %v7737_v25 = vpop.f32.mrf.mxu0  ;;  %v7739_v26 = vpop.f32.mrf.mxu1 }
 0x35c   : > { %11014 = vst [vmem:[#allocation32_spill] sm:$0xff] %v7739_v26 }
 0x35d   : > { %v7741_v27 = vpop.f32.mrf.mxu0  ;;  %v7743_v28 = vpop.f32.mrf.mxu1 }
 0x35e   : > { %11015 = vst [vmem:[#allocation33_spill] sm:$0xff] %v7743_v28 }
 0x35f   : > { %v7745_v29 = vpop.f32.mrf.mxu0  ;;  %v7747_v30 = vpop.f32.mrf.mxu1 }
 0x360   : > { %11016 = vst [vmem:[#allocation34_spill] sm:$0xff] %v7747_v30 }
 0x361   : > { %v7749_v31 = vpop.f32.mrf.mxu0  ;;  %v7751_v32 = vpop.f32.mrf.mxu1 }
 0x362   : > { %11017 = vst [vmem:[#allocation35_spill] sm:$0xff] %v7751_v32 }
 0x363   : > { %v7753_v33 = vpop.f32.mrf.mxu0  ;;  %v7755_v34 = vpop.f32.mrf.mxu1 }
 0x364   : > { %11018 = vst [vmem:[#allocation36_spill] sm:$0xff] %v7755_v34 }
 0x365   : > { %v7757_v35 = vpop.f32.mrf.mxu0  ;;  %v7759_v36 = vpop.f32.mrf.mxu1 }
 0x367   : > { %v7761_v37 = vpop.f32.mrf.mxu0  ;;  %v7763_v38 = vpop.f32.mrf.mxu1 }
 0x369   : > { %v7765_v39 = vpop.f32.mrf.mxu0  ;;  %v7767_v40 = vpop.f32.mrf.mxu1 }
 0x36a   : > { %11019 = vst [vmem:[#allocation37_spill] sm:$0xff] %v7767_v40 }
 0x36b   : > { %v7769_v41 = vpop.f32.mrf.mxu0  ;;  %v7771_v42 = vpop.f32.mrf.mxu1 }
 0x36c   : > { %11020 = vst [vmem:[#allocation38_spill] sm:$0xff] %v7771_v42 }
 0x36d   : > { %v7773_v43 = vpop.f32.mrf.mxu0  ;;  %v7775_v44 = vpop.f32.mrf.mxu1 }
 0x36f   : > { %v7777_v45 = vpop.f32.mrf.mxu0  ;;  %v7779_v46 = vpop.f32.mrf.mxu1 }
 0x371   : > { %v7781_v47 = vpop.f32.mrf.mxu0  ;;  %v7783_v48 = vpop.f32.mrf.mxu1 }
 0x373   : > { %v7785_v49 = vpop.f32.mrf.mxu0  ;;  %v7787_v50 = vpop.f32.mrf.mxu1 }
 0x375   : > { %v7789_v51 = vpop.f32.mrf.mxu0  ;;  %v7791_v52 = vpop.f32.mrf.mxu1 }
 0x377   : > { %v7793_v53 = vpop.f32.mrf.mxu0  ;;  %v7795_v5 = vpop.f32.mrf.mxu1 }
 0x378   : > { %11021 = vst [vmem:[#allocation39_spill] sm:$0xff] %v7793_v53 }
 0x379   : > { %v7797_v4 = vpop.f32.mrf.mxu0  ;;  %v7799_v0 = vpop.f32.mrf.mxu1 }
 0x37b   : > { %v7801_v7 = vpop.f32.mrf.mxu0  ;;  %v7803_v63 = vpop.f32.mrf.mxu1 }
 0x37d   : > { %v7805_v62 = vpop.f32.mrf.mxu0  ;;  %v7807_v60 = vpop.f32.mrf.mxu1 }
 0x37f   : > { %v7809_v56 = vpop.f32.mrf.mxu0  ;;  %v7811_v54 = vpop.f32.mrf.mxu1 }
 0x380   : > { %11022 = vst [vmem:[#allocation40_spill] sm:$0xff] %v7809_v56 }
 0x381   : > { %v7813_v57 = vpop.f32.mrf.mxu0  ;;  %v7817_v19 = vpop.f32.mrf.mxu1 }
 0x383   : > { %v7815_v55 = vpop.f32.mrf.mxu0  ;;  %v7823_v6 = vpop.f32.mrf.mxu1 }
 0x384   : > { %11023 = vst [vmem:[#allocation41_spill] sm:$0xff] %v7815_v55 }
 0x385   : > { %v7819_v18 = vpop.f32.mrf.mxu0  ;;  %v7831_v20 = vpop.f32.mrf.mxu1 }
 0x386   : > { %11024 = vst [vmem:[#allocation42_spill] sm:$0xff] %v7819_v18 }
 0x387   : > { %v7821_v8 = vpop.f32.mrf.mxu0  ;;  %v7839_v2 = vpop.f32.mrf.mxu1 }
 0x388   : > { %11025 = vst [vmem:[#allocation43_spill] sm:$0xff] %v7821_v8  ;;  %v1424_v1 = vmax.f32 %v7819_v18, %v7821_v8  ;;  %v1412_v8 = vmax.f32 %v7789_v51, %v7793_v53  ;;  %v1400_v53 = vmax.f32 %v7757_v35, %v7761_v37 }
 0x389   : > { %v7827_v59 = vpop.f32.mrf.mxu0  ;;  %v7845_v18 = vpop.f32.mrf.mxu1 }
 0x38a   : > { %11026 = vst [vmem:[#allocation44_spill] sm:$0xff] %v7827_v59  ;;  %1425 = vmax.xlane.f32.xlu0 %v1424_v1 }
 0x38b   : > { %v7829_v22 = vpop.f32.mrf.mxu0 }
 0x38c   : > { %11027 = vst [vmem:[#allocation45_spill] sm:$0xff] %v7829_v22  ;;  %v1427_v15 = vmax.f32 %v7827_v59, %v7829_v22  ;;  %v1406_v22 = vmax.f32 %v7773_v43, %v7777_v45  ;;  %v7851_v59 = vpop.f32.mrf.mxu1 }
 0x38d   : > { %v7835_v9 = vpop.f32.mrf.mxu0 }
 0x38e   : > { %1428 = vmax.xlane.f32.xlu1 %v1427_v15  ;;  %v1421_v15 = vmax.f32 %v7813_v57, %v7815_v55  ;;  %v1415_v55 = vmax.f32 %v7797_v4, %v7801_v7 }
 0x38f   : > { %v7837_v3 = vpop.f32.mrf.mxu0 }
 0x390   : > { %11028 = vst [vmem:[#allocation46_spill] sm:$0xff] %v7837_v3  ;;  %v1430_v1 = vmax.f32 %v7835_v9, %v7837_v3  ;;  %v1418_v3 = vmax.f32 %v7805_v62, %v7809_v56  ;;  %v1409_v56 = vmax.f32 %v7781_v47, %v7785_v49 }
 0x392   : > { %1413 = vmax.xlane.f32.xlu1 %v1412_v8  ;;  %1431 = vmax.xlane.f32.xlu0 %v1430_v1  ;;  %v7857_v8 = vpop.f32.mrf.mxu1  ;;  %v1394_v1 = vmax.f32 %v7741_v27, %v7745_v29 }
 0x396   : > { %1407 = vmax.xlane.f32.xlu1 %v1406_v22  ;;  %1422 = vmax.xlane.f32.xlu0 %v1421_v15  ;;  %v7863_v22 = vpop.f32.mrf.mxu1  ;;  %v1388_v15 = vmax.f32 %v7725_v14, %v7729_v17 }
 0x39a   : > { %1401 = vmax.xlane.f32.xlu1 %v1400_v53  ;;  %1419 = vmax.xlane.f32.xlu0 %v1418_v3  ;;  %v1478_v3 = vmax.f32 %v7857_v8, %v7863_v22  ;;  %v1403_v53 = vmax.f32 %v7765_v39, %v7769_v41 }
 0x39e   : > { %1395 = vmax.xlane.f32.xlu1 %v1394_v1  ;;  %1416 = vmax.xlane.f32.xlu0 %v1415_v55  ;;  %v1472_v55 = vmax.f32 %v7831_v20, %v7839_v2  ;;  %v1397_v1 = vmax.f32 %v7749_v31, %v7753_v33 }
 0x3a2   : > { %1389 = vmax.xlane.f32.xlu1 %v1388_v15  ;;  %1410 = vmax.xlane.f32.xlu0 %v1409_v56  ;;  %v1466_v15 = vmax.f32 %v7807_v60, %v7811_v54  ;;  %v1391_v56 = vmax.f32 %v7733_v23, %v7737_v25 }
 0x3a6   : > { %1479 = vmax.xlane.f32.xlu1 %v1478_v3  ;;  %1404 = vmax.xlane.f32.xlu0 %v1403_v53  ;;  %v1460_v3 = vmax.f32 %v7791_v52, %v7795_v5  ;;  %v1385_v53 = vmax.f32 %v7717_v10, %v7721_v12 }
 0x3aa   : > { %1473 = vmax.xlane.f32.xlu1 %v1472_v55  ;;  %1398 = vmax.xlane.f32.xlu0 %v1397_v1  ;;  %v1454_v55 = vmax.f32 %v7775_v44, %v7779_v46  ;;  %v1475_v1 = vmax.f32 %v7845_v18, %v7851_v59 }
 0x3ae   : > { %1467 = vmax.xlane.f32.xlu1 %v1466_v15  ;;  %1392 = vmax.xlane.f32.xlu0 %v1391_v56  ;;  %v1448_v15 = vmax.f32 %v7759_v36, %v7763_v38  ;;  %v1469_v56 = vmax.f32 %v7817_v19, %v7823_v6 }
 0x3b2   : > { %1461 = vmax.xlane.f32.xlu1 %v1460_v3  ;;  %1386 = vmax.xlane.f32.xlu0 %v1385_v53  ;;  %v1442_v3 = vmax.f32 %v7743_v28, %v7747_v30  ;;  %v1463_v53 = vmax.f32 %v7799_v0, %v7803_v63  ;;  %v11032_v28 = vld [vmem:[#allocation45_spill] sm:$0xff] }
 0x3b6   : > { %1455 = vmax.xlane.f32.xlu1 %v1454_v55  ;;  %1476 = vmax.xlane.f32.xlu0 %v1475_v1  ;;  %v1436_v55 = vmax.f32 %v7727_v16, %v7731_v21  ;;  %v1457_v1 = vmax.f32 %v7783_v48, %v7787_v50  ;;  %v11029_v21 = vld [vmem:[#allocation42_spill] sm:$0xff] }
 0x3ba   : > { %1449 = vmax.xlane.f32.xlu1 %v1448_v15  ;;  %1470 = vmax.xlane.f32.xlu0 %v1469_v56  ;;  %v880_v15 = vadd.f32 %v7705_v61, %v7701_v58  ;;  %v1451_v56 = vmax.f32 %v7767_v40, %v7771_v42  ;;  %v11030_v58 = vld [vmem:[#allocation43_spill] sm:$0xff] }
 0x3be   : > { %1443 = vmax.xlane.f32.xlu1 %v1442_v3  ;;  %1464 = vmax.xlane.f32.xlu0 %v1463_v53  ;;  %v1445_v3 = vmax.f32 %v7751_v32, %v7755_v34  ;;  %v1439_v53 = vmax.f32 %v7735_v24, %v7739_v26 }
 0x3c2   : > { %1437 = vmax.xlane.f32.xlu1 %v1436_v55  ;;  %1458 = vmax.xlane.f32.xlu0 %v1457_v1  ;;  %v1433_v55 = vmax.f32 %v7719_v11, %v7723_v13 }
 0x3c6   : > { %881 = vadd.xlane.f32.xlu1 %v880_v15  ;;  %1452 = vmax.xlane.f32.xlu0 %v1451_v56  ;;  %v11031_v15 = vld [vmem:[#allocation44_spill] sm:$0xff] }
 0x3ca   : > { %1446 = vmax.xlane.f32.xlu0 %v1445_v3 }
 0x3ce   : > { %1440 = vmax.xlane.f32.xlu0 %v1439_v53 }
 0x3d2   : > { %1434 = vmax.xlane.f32.xlu0 %v1433_v55  ;;  %v11033_v55 = vld [vmem:[#allocation39_spill] sm:$0xff] }
 0x413   : > { %v1426_v1 = vpop.xlane.xlu0 %1425 }
 0x414   : > { %v1507_v61 = vsub.f32 %v11029_v21, %v1426_v1  ;;  %v1508_v16 = vsub.f32 %v11030_v58, %v1426_v1  ;;  %v11034_v58 = vld [vmem:[#allocation46_spill] sm:$0xff] }
 0x416   : > { %v1597_v34 = vmul.f32 1.442695, %v1507_v61  ;;  %v1599_v40 = vmul.f32 1.442695, %v1508_v16 }
 0x417   : > { %v1429_v30 = vpop.xlane.xlu1 %1428 }
 0x418   : > { %v1509_v56 = vsub.f32 %v11031_v15, %v1429_v30  ;;  %v1510_v42 = vsub.f32 %v11032_v28, %v1429_v30 }
 0x41a   : > { %v1601_v3 = vmul.f32 1.442695, %v1509_v56  ;;  %v1603_v32 = vmul.f32 1.442695, %v1510_v42 }
 0x41b   : > { %v1414_v26 = vpop.xlane.xlu1 %1413  ;;  %v1432_v53 = vpop.xlane.xlu0 %1431 }
 0x41c   : > { %6470 = vpow2.f32 %v1601_v3  ;;  %v1499_v13 = vsub.f32 %v7789_v51, %v1414_v26  ;;  %v1500_v11 = vsub.f32 %v11033_v55, %v1414_v26  ;;  %v1511_v21 = vsub.f32 %v7835_v9, %v1432_v53  ;;  %v11035_v9 = vld [vmem:[#allocation41_spill] sm:$0xff] }
 0x41d   : > { %6472 = vpow2.f32 %v1603_v32  ;;  %v1512_v1 = vsub.f32 %v11034_v58, %v1432_v53 }
 0x41e   : > { %6474 = vpow2.f32 %v1597_v34  ;;  %v1581_v15 = vmul.f32 1.442695, %v1499_v13  ;;  %v1583_v24 = vmul.f32 1.442695, %v1500_v11  ;;  %v1605_v28 = vmul.f32 1.442695, %v1511_v21 }
 0x41f   : > { %6476 = vpow2.f32 %v1599_v40  ;;  %v1607_v61 = vmul.f32 1.442695, %v1512_v1  ;;  %v1408_v30 = vpop.xlane.xlu1 %1407  ;;  %v1423_v16 = vpop.xlane.xlu0 %1422 }
 0x420   : > { %6478 = vpow2.f32 %v1581_v15  ;;  %v1495_v42 = vsub.f32 %v7773_v43, %v1408_v30  ;;  %v1496_v51 = vsub.f32 %v7777_v45, %v1408_v30  ;;  %v1505_v26 = vsub.f32 %v7813_v57, %v1423_v16  ;;  %v11036_v57 = vld [vmem:[#allocation40_spill] sm:$0xff] }
 0x421   : > { %6480 = vpow2.f32 %v1583_v24  ;;  %v1506_v32 = vsub.f32 %v11035_v9, %v1423_v16 }
 0x422   : > { %6482 = vpow2.f32 %v1605_v28  ;;  %v1573_v56 = vmul.f32 1.442695, %v1495_v42  ;;  %v1575_v34 = vmul.f32 1.442695, %v1496_v51  ;;  %v1593_v13 = vmul.f32 1.442695, %v1505_v26 }
 0x423   : > { %6484 = vpow2.f32 %v1607_v61  ;;  %v1595_v11 = vmul.f32 1.442695, %v1506_v32  ;;  %v1402_v40 = vpop.xlane.xlu1 %1401  ;;  %v1420_v3 = vpop.xlane.xlu0 %1419 }
 0x424   : > { %6486 = vpow2.f32 %v1573_v56  ;;  %v1491_v53 = vsub.f32 %v7757_v35, %v1402_v40  ;;  %v1492_v43 = vsub.f32 %v7761_v37, %v1402_v40  ;;  %v1503_v45 = vsub.f32 %v7805_v62, %v1420_v3 }
 0x425   : > { %6488 = vpow2.f32 %v1575_v34  ;;  %v1504_v24 = vsub.f32 %v11036_v57, %v1420_v3 }
 0x426   : > { %6490 = vpow2.f32 %v1593_v13  ;;  %v1565_v55 = vmul.f32 1.442695, %v1491_v53  ;;  %v1589_v21 = vmul.f32 1.442695, %v1503_v45  ;;  %v1567_v28 = vmul.f32 1.442695, %v1492_v43 }
 0x427   : > { %6492 = vpow2.f32 %v1595_v11  ;;  %v1591_v58 = vmul.f32 1.442695, %v1504_v24  ;;  %v1396_v1 = vpop.xlane.xlu1 %1395  ;;  %v1417_v15 = vpop.xlane.xlu0 %1416 }
 0x428   : > { %v1487_v61 = vsub.f32 %v7741_v27, %v1396_v1  ;;  %v1488_v30 = vsub.f32 %v7745_v29, %v1396_v1  ;;  %v1501_v35 = vsub.f32 %v7797_v4, %v1417_v15  ;;  %6494 = vpow2.f32 %v1565_v55 }
 0x429   : > { %v7930_v37 = vpop.eup %6470  ;;  %v1502_v62 = vsub.f32 %v7801_v7, %v1417_v15  ;;  %6496 = vpow2.f32 %v1589_v21 }
 0x42a   : > { %v7933_v16 = vpop.eup %6472  ;;  %v1557_v42 = vmul.f32 1.442695, %v1487_v61  ;;  %v1585_v51 = vmul.f32 1.442695, %v1501_v35  ;;  %6498 = vpow2.f32 %v1591_v58  ;;  %v1559_v56 = vmul.f32 1.442695, %v1488_v30 }
 0x42b   : > { %v7935_v26 = vpop.eup %6474  ;;  %v1587_v9 = vmul.f32 1.442695, %v1502_v62  ;;  %v1390_v32 = vpop.xlane.xlu1 %1389  ;;  %v1715_v29 = vadd.f32 %v7933_v16, %v7930_v37  ;;  %6500 = vpow2.f32 %v1567_v28 }
 0x42c   : > { %v1411_v27 = vpop.xlane.xlu0 %1410  ;;  %v7939_v4 = vpop.eup %6476  ;;  %v1483_v7 = vsub.f32 %v7725_v14, %v1390_v32  ;;  %6502 = vpow2.f32 %v1557_v42  ;;  %v1484_v11 = vsub.f32 %v7729_v17, %v1390_v32 }
 0x42d   : > { %v1497_v34 = vsub.f32 %v7781_v47, %v1411_v27  ;;  %v7943_v13 = vpop.eup %6478  ;;  %v1498_v40 = vsub.f32 %v7785_v49, %v1411_v27  ;;  %1716 = vadd.xlane.f32.xlu1 %v1715_v29  ;;  %6504 = vpow2.f32 %v1585_v51  ;;  %v1712_v62 = vadd.f32 %v7939_v4, %v7935_v26 }
 0x42e   : > { %v7947_v3 = vpop.eup %6480  ;;  %6506 = vpow2.f32 %v1587_v9  ;;  %v1549_v47 = vmul.f32 1.442695, %v1483_v7  ;;  %v1551_v21 = vmul.f32 1.442695, %v1484_v11 }
 0x42f   : > { %v1577_v53 = vmul.f32 1.442695, %v1497_v34  ;;  %v7949_v43 = vpop.eup %6482  ;;  %v1579_v45 = vmul.f32 1.442695, %v1498_v40  ;;  %v1480_v57 = vpop.xlane.xlu1 %1479  ;;  %6508 = vpow2.f32 %v1559_v56 }
 0x430   : > { %v1405_v14 = vpop.xlane.xlu0 %1404  ;;  %v7951_v24 = vpop.eup %6484  ;;  %v1543_v55 = vsub.f32 %v7857_v8, %v1480_v57  ;;  %v1544_v58 = vsub.f32 %v7863_v22, %v1480_v57 }
 0x431   : > { %v1493_v17 = vsub.f32 %v7765_v39, %v1405_v14  ;;  %v7955_v49 = vpop.eup %6486  ;;  %v1494_v1 = vsub.f32 %v7769_v41, %v1405_v14  ;;  %v1718_v15 = vadd.f32 %v7951_v24, %v7949_v43  ;;  %6510 = vpow2.f32 %v1577_v53 }
 0x432   : > { %v7961_v28 = vpop.eup %6488  ;;  %6512 = vpow2.f32 %v1579_v45  ;;  %v1669_v41 = vmul.f32 1.442695, %v1543_v55  ;;  %v1671_v9 = vmul.f32 1.442695, %v1544_v58 }
 0x433   : > { %v1569_v61 = vmul.f32 1.442695, %v1493_v17  ;;  %v7963_v30 = vpop.eup %6490  ;;  %v1571_v8 = vmul.f32 1.442695, %v1494_v1  ;;  %1719 = vadd.xlane.f32.xlu0 %v1718_v15  ;;  %v1474_v39 = vpop.xlane.xlu1 %1473  ;;  %6514 = vpow2.f32 %v1549_v47  ;;  %v1700_v1 = vadd.f32 %v7947_v3, %v7943_v13 }
 0x434   : > { %v1399_v35 = vpop.xlane.xlu0 %1398  ;;  %v7967_v22 = vpop.eup %6492  ;;  %v1539_v42 = vsub.f32 %v7831_v20, %v1474_v39  ;;  %6516 = vpow2.f32 %v1551_v21 }
 0x435   : > { %v1489_v51 = vsub.f32 %v7749_v31, %v1399_v35  ;;  %v1490_v32 = vsub.f32 %v7753_v33, %v1399_v35  ;;  %v1709_v27 = vadd.f32 %v7967_v22, %v7963_v30  ;;  %v7974_v29 = vpop.eup %6494  ;;  %6518 = vpow2.f32 %v1569_v61 }
 0x436   : > { %v7976_v7 = vpop.eup %6496  ;;  %6520 = vpow2.f32 %v1571_v8  ;;  %v1540_v33 = vsub.f32 %v7839_v2, %v1474_v39  ;;  %v1661_v40 = vmul.f32 1.442695, %v1539_v42 }
 0x437   : > { %v1561_v56 = vmul.f32 1.442695, %v1489_v51  ;;  %v1563_v34 = vmul.f32 1.442695, %v1490_v32  ;;  %1713 = vadd.xlane.f32.xlu0 %v1712_v62  ;;  %1710 = vadd.xlane.f32.xlu1 %v1709_v27  ;;  %v1468_v20 = vpop.xlane.xlu1 %1467  ;;  %v7978_v31 = vpop.eup %6498  ;;  %6522 = vpow2.f32 %v1669_v41  ;;  %v1694_v32 = vadd.f32 %v7961_v28, %v7955_v49 }
 0x438   : > { %v1393_v11 = vpop.xlane.xlu0 %1392  ;;  %v7982_v45 = vpop.eup %6500  ;;  %6524 = vpow2.f32 %v1671_v9  ;;  %v1535_v57 = vsub.f32 %v7807_v60, %v1468_v20  ;;  %v1706_v47 = vadd.f32 %v7978_v31, %v7976_v7  ;;  %v1536_v15 = vsub.f32 %v7811_v54, %v1468_v20 }
 0x439   : > { %v1485_v53 = vsub.f32 %v7733_v23, %v1393_v11  ;;  %v1486_v14 = vsub.f32 %v7737_v25, %v1393_v11  ;;  %v7988_v55 = vpop.eup %6502  ;;  %6526 = vpow2.f32 %v1561_v56  ;;  %v1663_v25 = vmul.f32 1.442695, %v1540_v33 }
 0x43a   : > { %v7990_v21 = vpop.eup %6504  ;;  %6528 = vpow2.f32 %v1563_v34  ;;  %v1653_v39 = vmul.f32 1.442695, %v1535_v57 }
 0x43b   : > { %v1553_v17 = vmul.f32 1.442695, %v1485_v53  ;;  %v1555_v2 = vmul.f32 1.442695, %v1486_v14  ;;  %1707 = vadd.xlane.f32.xlu0 %v1706_v47  ;;  %v1462_v23 = vpop.xlane.xlu1 %1461  ;;  %v7994_v60 = vpop.eup %6506  ;;  %6530 = vpow2.f32 %v1661_v40 }
 0x43c   : > { %v1387_v58 = vpop.xlane.xlu0 %1386  ;;  %v7998_v8 = vpop.eup %6508  ;;  %v1531_v35 = vsub.f32 %v7791_v52, %v1462_v23  ;;  %v1703_v41 = vadd.f32 %v7994_v60, %v7990_v21  ;;  %v1532_v52 = vsub.f32 %v7795_v5, %v1462_v23 }
 0x43d   : > { %v1481_v61 = vsub.f32 %v7717_v10, %v1387_v58  ;;  %v1482_v62 = vsub.f32 %v7721_v12, %v1387_v58  ;;  %6532 = vpow2.f32 %v1553_v17  ;;  %v1655_v12 = vmul.f32 1.442695, %v1536_v15 }
 0x43e   : > { %v8004_v51 = vpop.eup %6510  ;;  %6534 = vpow2.f32 %v1555_v2  ;;  %1704 = vadd.xlane.f32.xlu1 %v1703_v41  ;;  %v1645_v20 = vmul.f32 1.442695, %v1531_v35 }
 0x43f   : > { %v1545_v42 = vmul.f32 1.442695, %v1481_v61  ;;  %v1547_v9 = vmul.f32 1.442695, %v1482_v62  ;;  %1701 = vadd.xlane.f32.xlu0 %v1700_v1  ;;  %v1456_v54 = vpop.xlane.xlu1 %1455  ;;  %v8008_v27 = vpop.eup %6512  ;;  %6536 = vpow2.f32 %v1663_v25 }
 0x440   : > { %v1477_v10 = vpop.xlane.xlu0 %1476  ;;  %v8012_v34 = vpop.eup %6514  ;;  %6538 = vpow2.f32 %v1653_v39  ;;  %v1697_v33 = vadd.f32 %v8008_v27, %v8004_v51  ;;  %v1527_v17 = vsub.f32 %v7775_v44, %v1456_v54  ;;  %v1528_v58 = vsub.f32 %v7779_v46, %v1456_v54 }
 0x441   : > { %v1541_v56 = vsub.f32 %v7845_v18, %v1477_v10  ;;  %v1542_v11 = vsub.f32 %v7851_v59, %v1477_v10  ;;  %v8017_v40 = vpop.eup %6516  ;;  %6540 = vpow2.f32 %v1545_v42  ;;  %v1688_v18 = vadd.f32 %v7982_v45, %v7974_v29 }
 0x442   : > { %v8019_v57 = vpop.eup %6518  ;;  %6542 = vpow2.f32 %v1547_v9  ;;  %1698 = vadd.xlane.f32.xlu1 %v1697_v33  ;;  %v1647_v59 = vmul.f32 1.442695, %v1532_v52  ;;  %v1682_v46 = vadd.f32 %v7998_v8, %v7988_v55  ;;  %v1639_v54 = vmul.f32 1.442695, %v1528_v58 }
 0x443   : > { %v1665_v53 = vmul.f32 1.442695, %v1541_v56  ;;  %v1667_v14 = vmul.f32 1.442695, %v1542_v11  ;;  %1695 = vadd.xlane.f32.xlu0 %v1694_v32  ;;  %v8023_v47 = vpop.eup %6520  ;;  %6544 = vpow2.f32 %v1655_v12  ;;  %v1450_v1 = vpop.xlane.xlu1 %1449 }
 0x444   : > { %v1471_v5 = vpop.xlane.xlu0 %1470  ;;  %v8027_v23 = vpop.eup %6522  ;;  %6546 = vpow2.f32 %v1645_v20  ;;  %v1691_v15 = vadd.f32 %v8023_v47, %v8019_v57  ;;  %v1523_v41 = vsub.f32 %v7759_v36, %v1450_v1  ;;  %v1524_v10 = vsub.f32 %v7763_v38, %v1450_v1 }
 0x445   : > { %v1537_v2 = vsub.f32 %v7817_v19, %v1471_v5  ;;  %v1538_v25 = vsub.f32 %v7823_v6, %v1471_v5  ;;  %v8033_v61 = vpop.eup %6524  ;;  %6548 = vpow2.f32 %v1665_v53  ;;  %v1637_v6 = vmul.f32 1.442695, %v1527_v17 }
 0x446   : > { %v8035_v35 = vpop.eup %6526  ;;  %6550 = vpow2.f32 %v1667_v14  ;;  %1692 = vadd.xlane.f32.xlu1 %v1691_v15  ;;  %v1629_v11 = vmul.f32 1.442695, %v1523_v41  ;;  %v1631_v53 = vmul.f32 1.442695, %v1524_v10  ;;  %v11041_v41 = vld [vmem:[#allocation33_spill] sm:$0xff] }
 0x447   : > { %v1657_v39 = vmul.f32 1.442695, %v1537_v2  ;;  %v1659_v44 = vmul.f32 1.442695, %v1538_v25  ;;  %1689 = vadd.xlane.f32.xlu0 %v1688_v18  ;;  %v8039_v62 = vpop.eup %6528  ;;  %6552 = vpow2.f32 %v1647_v59  ;;  %v1444_v14 = vpop.xlane.xlu1 %1443  ;;  %v11038_v25 = vld [vmem:[#allocation37_spill] sm:$0xff] }
 0x448   : > { %v1465_v19 = vpop.xlane.xlu0 %1464  ;;  %v8043_v9 = vpop.eup %6530  ;;  %v1685_v12 = vadd.f32 %v8039_v62, %v8035_v35 }
 0x449   : > { %v1533_v42 = vsub.f32 %v7799_v0, %v1465_v19  ;;  %v1534_v32 = vsub.f32 %v7803_v63, %v1465_v19  ;;  %6554 = vpow2.f32 %v1657_v39  ;;  %v1676_v63 = vadd.f32 %v8017_v40, %v8012_v34 }
 0x44a   : > { %v8049_v56 = vpop.eup %6532  ;;  %6556 = vpow2.f32 %v1659_v44  ;;  %1686 = vadd.xlane.f32.xlu1 %v1685_v12  ;;  %v1766_v19 = vadd.f32 %v8033_v61, %v8027_v23 }
 0x44b   : > { %v1649_v52 = vmul.f32 1.442695, %v1533_v42  ;;  %v1651_v20 = vmul.f32 1.442695, %v1534_v32  ;;  %1683 = vadd.xlane.f32.xlu0 %v1682_v46  ;;  %v8051_v0 = vpop.eup %6534  ;;  %6558 = vpow2.f32 %v1637_v6  ;;  %v1519_v42 = vsub.f32 %v11041_v41, %v1444_v14  ;;  %v11042_v32 = vld [vmem:[#allocation34_spill] sm:$0xff] }
 0x44c   : > { %v1459_v36 = vpop.xlane.xlu0 %1458  ;;  %v8056_v33 = vpop.eup %6536  ;;  %6560 = vpow2.f32 %v1639_v54  ;;  %v1679_v18 = vadd.f32 %v8051_v0, %v8049_v56  ;;  %v1520_v12 = vsub.f32 %v11042_v32, %v1444_v14 }
 0x44d   : > { %v1529_v38 = vsub.f32 %v7783_v48, %v1459_v36  ;;  %v1530_v5 = vsub.f32 %v7787_v50, %v1459_v36  ;;  %v8061_v59 = vpop.eup %6538  ;;  %6562 = vpow2.f32 %v1649_v52  ;;  %v11039_v50 = vld [vmem:[#allocation38_spill] sm:$0xff]  ;;  %v1438_v52 = vpop.xlane.xlu1 %1437 }
 0x44e   : > { %11037 = vst [vmem:[#allocation42_spill] sm:$0xff] %v8061_v59  ;;  %v8063_v2 = vpop.eup %6540  ;;  %6564 = vpow2.f32 %v1651_v20  ;;  %1680 = vadd.xlane.f32.xlu1 %v1679_v18 }
 0x44f   : > { %v1641_v17 = vmul.f32 1.442695, %v1529_v38  ;;  %v1643_v48 = vmul.f32 1.442695, %v1530_v5  ;;  %1677 = vadd.xlane.f32.xlu0 %v1676_v63  ;;  %v8065_v1 = vpop.eup %6542  ;;  %6566 = vpow2.f32 %v1629_v11  ;;  %v11043_v38 = vld [vmem:[#allocation35_spill] sm:$0xff]  ;;  %v11044_v5 = vld [vmem:[#allocation36_spill] sm:$0xff] }
 0x450   : > { %v1453_v58 = vpop.xlane.xlu0 %1452  ;;  %v8069_v44 = vpop.eup %6544  ;;  %6568 = vpow2.f32 %v1631_v53  ;;  %v1673_v46 = vadd.f32 %v8065_v1, %v8063_v2 }
 0x451   : > { %v1525_v15 = vsub.f32 %v11038_v25, %v1453_v58  ;;  %v1526_v39 = vsub.f32 %v11039_v50, %v1453_v58  ;;  %11040 = vst [vmem:[#allocation43_spill] sm:$0xff] %v8069_v44  ;;  %v8075_v6 = vpop.eup %6546  ;;  %6570 = vpow2.f32 %v1641_v17  ;;  %v1760_v17 = vadd.f32 %v8056_v33, %v8043_v9  ;;  %v11045_v58 = vld [vmem:[#allocation29_spill] sm:$0xff] }
 0x452   : > { %v8078_v10 = vpop.eup %6548  ;;  %6572 = vpow2.f32 %v1643_v48  ;;  %1674 = vadd.xlane.f32.xlu1 %v1673_v46  ;;  %v1621_v48 = vmul.f32 1.442695, %v1519_v42  ;;  %v1515_v25 = vsub.f32 %v11045_v58, %v1438_v52  ;;  %v882_v58 = vpop.xlane.xlu1 %881 }
 0x453   : > { %v1633_v54 = vmul.f32 1.442695, %v1525_v15  ;;  %v1635_v20 = vmul.f32 1.442695, %v1526_v39  ;;  %1767 = vadd.xlane.f32.xlu0 %v1766_v19  ;;  %v8081_v11 = vpop.eup %6550  ;;  %v1623_v39 = vmul.f32 1.442695, %v1520_v12  ;;  %v1754_v12 = vadd.f32 %v8069_v44, %v8061_v59 }
 0x454   : > { %v1447_v36 = vpop.xlane.xlu0 %1446  ;;  %v8084_v53 = vpop.eup %6552  ;;  %v1763_v14 = vadd.f32 %v8081_v11, %v8078_v10  ;;  %v11047_v19 = vld [vmem:[#allocation30_spill] sm:$0xff]  ;;  %v11052_v44 = vld [vmem:[#allocation28_spill] sm:$0xff] }
 0x455   : > { %6574 = vpow2.f32 %v1633_v54  ;;  %v1521_v63 = vsub.f32 %v11043_v38, %v1447_v36  ;;  %v1522_v18 = vsub.f32 %v11044_v5, %v1447_v36  ;;  %v1516_v46 = vsub.f32 %v11047_v19, %v1438_v52  ;;  %v11050_v38 = vld [vmem:[#allocation32_spill] sm:$0xff] }
 0x456   : > { %6576 = vpow2.f32 %v1635_v20  ;;  %v8092_v50 = vpop.eup %6554  ;;  %1764 = vadd.xlane.f32.xlu1 %v1763_v14  ;;  %v11049_v20 = vld [vmem:[#allocation31_spill] sm:$0xff] }
 0x457   : > { %v1625_v15 = vmul.f32 1.442695, %v1521_v63  ;;  %11046 = vst [vmem:[#allocation44_spill] sm:$0xff] %v8092_v50  ;;  %v1627_v41 = vmul.f32 1.442695, %v1522_v18  ;;  %1761 = vadd.xlane.f32.xlu0 %v1760_v17  ;;  %v8095_v32 = vpop.eup %6556 }
 0x458   : > { %v1441_v54 = vpop.xlane.xlu0 %1440  ;;  %11048 = vst [vmem:[#allocation45_spill] sm:$0xff] %v8095_v32  ;;  %v8099_v42 = vpop.eup %6558  ;;  %v1757_v52 = vadd.f32 %v8095_v32, %v8092_v50  ;;  %v1613_v18 = vmul.f32 1.442695, %v1515_v25  ;;  %v1615_v19 = vmul.f32 1.442695, %v1516_v46 }
 0x459   : > { %6578 = vpow2.f32 %v1625_v15  ;;  %v1517_v36 = vsub.f32 %v11049_v20, %v1441_v54  ;;  %v1518_v5 = vsub.f32 %v11050_v38, %v1441_v54  ;;  %v8105_v63 = vpop.eup %6560  ;;  %v887_v20 = vmul.f32 0.00390625, %v882_v58  ;;  %v11051_v38 = vld [vmem:[#allocation27_spill] sm:$0xff] }
 0x45a   : > { %6580 = vpow2.f32 %v1627_v41  ;;  %v8107_v15 = vpop.eup %6562  ;;  %1758 = vadd.xlane.f32.xlu1 %v1757_v52  ;;  %v11054_v58 = vld [vmem:[#allocation19_spill] sm:$0xff] }
 0x45b   : > { %6582 = vpow2.f32 %v1621_v48  ;;  %v1617_v17 = vmul.f32 1.442695, %v1517_v36  ;;  %v1619_v14 = vmul.f32 1.442695, %v1518_v5  ;;  %1755 = vadd.xlane.f32.xlu0 %v1754_v12  ;;  %v8109_v41 = vpop.eup %6564  ;;  %v1748_v48 = vadd.f32 %v8084_v53, %v8075_v6 }
 0x45c   : > { %6584 = vpow2.f32 %v1623_v39  ;;  %v1435_v54 = vpop.xlane.xlu0 %1434  ;;  %v8113_v32 = vpop.eup %6566  ;;  %v1751_v25 = vadd.f32 %v8109_v41, %v8107_v15  ;;  %v8126_v12 = vsub.f32 %v11054_v58, %v887_v20 }
 0x45d   : > { %6586 = vpow2.f32 %v1617_v17  ;;  %v1513_v59 = vsub.f32 %v11051_v38, %v1435_v54  ;;  %v1514_v50 = vsub.f32 %v11052_v44, %v1435_v54  ;;  %11053 = vst [vmem:[#allocation39_spill] sm:$0xff] %v8113_v32  ;;  %v8119_v39 = vpop.eup %6568  ;;  %v11056_v17 = vld [vmem:[#allocation21_spill] sm:$0xff] }
 0x45e   : > { %6588 = vpow2.f32 %v1619_v14  ;;  %v8121_v5 = vpop.eup %6570  ;;  %1752 = vadd.xlane.f32.xlu1 %v1751_v25  ;;  %11055 = vst [vmem:[#allocation46_spill] sm:$0xff] %v8126_v12  ;;  %v8131_v14 = vsub.f32 %v11056_v17, %v887_v20  ;;  %v897_v20 = vmul.f32 %v8126_v12, %v8126_v12 }
 0x45f   : > { %6590 = vpow2.f32 %v1613_v18  ;;  %v1609_v46 = vmul.f32 1.442695, %v1513_v59  ;;  %v1611_v36 = vmul.f32 1.442695, %v1514_v50  ;;  %1749 = vadd.xlane.f32.xlu0 %v1748_v48  ;;  %v8123_v44 = vpop.eup %6572  ;;  %v1742_v59 = vadd.f32 %v8105_v63, %v8099_v42 }
 0x460   : > { %6592 = vpow2.f32 %v1615_v19  ;;  %11057 = vst [vmem:[#allocation41_spill] sm:$0xff] %v8131_v14  ;;  %v1745_v50 = vadd.f32 %v8123_v44, %v8121_v5  ;;  %v898_v38 = vmul.f32 %v8131_v14, %v8131_v14  ;;  %v1736_v48 = vadd.f32 %v8119_v39, %v8113_v32 }
 0x461   : > { %6594 = vpow2.f32 %v1609_v46 }
 0x462   : > { %v8128_v52 = vpop.eup %6574  ;;  %6596 = vpow2.f32 %v1611_v36  ;;  %1746 = vadd.xlane.f32.xlu1 %v1745_v50 }
 0x463   : > { %v8137_v18 = vpop.eup %6576  ;;  %1743 = vadd.xlane.f32.xlu0 %v1742_v59  ;;  %v904_v59 = vadd.f32 %v898_v38, %v897_v20 }
 0x464   : > { %v1739_v19 = vadd.f32 %v8137_v18, %v8128_v52 }
 0x466   : > { %v8141_v54 = vpop.eup %6578  ;;  %1740 = vadd.xlane.f32.xlu1 %v1739_v19 }
 0x467   : > { %11058 = vst [vmem:[#allocation40_spill] sm:$0xff] %v8141_v54  ;;  %v8149_v25 = vpop.eup %6580  ;;  %1737 = vadd.xlane.f32.xlu0 %v1736_v48 }
 0x468   : > { %v8151_v46 = vpop.eup %6582  ;;  %v1733_v36 = vadd.f32 %v8149_v25, %v8141_v54 }
 0x469   : > { %11059 = vst [vmem:[#allocation37_spill] sm:$0xff] %v8151_v46  ;;  %v8155_v58 = vpop.eup %6584 }
 0x46a   : > { %v8157_v17 = vpop.eup %6586  ;;  %1734 = vadd.xlane.f32.xlu1 %v1733_v36  ;;  %v1730_v48 = vadd.f32 %v8155_v58, %v8151_v46  ;;  %v952_v36 = vlaneseq }
 0x46b   : > { %11060 = vst [vmem:[#allocation38_spill] sm:$0xff] %v8157_v17  ;;  %v8159_v50 = vpop.eup %6588  ;;  %905 = vadd.xlane.f32.xlu0 %v904_v59  ;;  %v11066_v59 = vmov 0 }
 0x46c   : > { %11061 = vst [vmem:[#allocation33_spill] sm:$0xff] %v8159_v50  ;;  %v8161_v12 = vpop.eup %6590  ;;  %v1727_v14 = vadd.f32 %v8159_v50, %v8157_v17  ;;  %vm8177_vm2 = vcmp.lt.s32.totalorder %v952_v36, 256  ;;  %v10838_v17 = vmov 1.0   ;;  %v11073_v36 = vld [vmem:[#allocation10_spill] sm:$0xff] }
 0x46d   : > { %11062 = vst [vmem:[#allocation34_spill] sm:$0xff] %v8161_v12  ;;  %v8165_v32 = vpop.eup %6592  ;;  %v11067_v59 = vsel %vm8177_vm2, 4294967295, %v11066_v59  ;;  %956 = vst.msk [vmem:[#allocation3] ss:$8 sm:$0x3] %vm8177_vm2, %v10838_v17 }
 0x46e   : > { %11063 = vst [vmem:[#allocation35_spill] sm:$0xff] %v8165_v32  ;;  %v8167_v19 = vpop.eup %6594  ;;  %1731 = vadd.xlane.f32.xlu1 %v1730_v48  ;;  %v1724_v38 = vadd.f32 %v8165_v32, %v8161_v12  ;;  %11068 = vst [vmem:[#allocation30_spill] sm:$0xff] %v11067_v59  ;;  %v11069_v48 = vmov 0.0  }
 0x46f   : > { %11064 = vst [vmem:[#allocation36_spill] sm:$0xff] %v8167_v19  ;;  %v8171_v54 = vpop.eup %6596  ;;  %1728 = vadd.xlane.f32.xlu0 %v1727_v14  ;;  %959 = vst.msk [vmem:[#allocation3 + $0x1] ss:$8 sm:$0x3] %vm8177_vm2, %v11069_v48 }
 0x470   : > { %11065 = vst [vmem:[#allocation29_spill] sm:$0xff] %v8171_v54  ;;  %v1721_v20 = vadd.f32 %v8171_v54, %v8167_v19  ;;  %v11074_v54 = vmax.f32 %v11073_v36, 0.0 }
 0x472   : > { %1725 = vadd.xlane.f32.xlu1 %v1724_v38 }
 0x473   : > { %1722 = vadd.xlane.f32.xlu0 %v1721_v20  ;;  %v11071_v20 = vld [vmem:[#allocation9_spill] sm:$0xff] }
 0x474   : > { %v11072_v38 = vmax.f32 %v11071_v20, 0.0 }
 0x476   : > { %v1898_v14 = vld [vmem:[#allocation3 + $0x8] sm:$0xff]  ;;  %v8187_v19 = vld [vmem:[#allocation3] sm:$0xff] }
 0x477   : > { %11070 = vst [vmem:[#allocation31_spill] sm:$0xff] %v8187_v19  ;;  %1965 = vmatprep.mubr.f32.mxu0 %v1898_v14  ;;  %1977 = vst.msk [vmem:[#allocation3] ss:$8 sm:$0x3] %vm8177_vm2, %v10838_v17 }
 0x478   : > { %1979 = vst.msk [vmem:[#allocation3 + $0x1] ss:$8 sm:$0x3] %vm8177_vm2, %v11069_v48 }
 0x4a0   : > { %2019 = vxpose.xlu0.b32.start.end [1/1] (short) %v11072_v38, 128 }
 0x4a5   : > { %1987 = vxpose.xlu1.b32.start.end [1/1] (short) %v11074_v54, 128 }
 0x4b6   : > { %v1717_v12 = vpop.xlane.xlu1 %1716 }
 0x4b7   : > { %6598 = vrcp.f32 %v1717_v12 }
 0x4bc   : > { %v1720_v32 = vpop.xlane.xlu0 %1719 }
 0x4bd   : > { %6600 = vrcp.f32 %v1720_v32 }
 0x4c0   : > { %v1711_v19 = vpop.xlane.xlu1 %1710  ;;  %v1714_v14 = vpop.xlane.xlu0 %1713 }
 0x4c1   : > { %6602 = vrcp.f32 %v1711_v19 }
 0x4c2   : > { %6604 = vrcp.f32 %v1714_v14 }
 0x4c4   : > { %v1708_v50 = vpop.xlane.xlu0 %1707  ;;  %v6599_v59 = vpop.eup %6598 }
 0x4c5   : > { %6606 = vrcp.f32 %v1708_v50  ;;  %v1862_v32 = vmul.f32 %v6599_v59, %v7933_v16  ;;  %v1861_v50 = vmul.f32 %v6599_v59, %v7930_v37 }
 0x4c7   : > { %v1705_v17 = vpop.xlane.xlu1 %1704 }
 0x4c8   : > { %v1702_v46 = vpop.xlane.xlu0 %1701  ;;  %6608 = vrcp.f32 %v1705_v17 }
 0x4c9   : > { %6610 = vrcp.f32 %v1702_v46 }
 0x4ca   : > { %v6601_v48 = vpop.eup %6600 }
 0x4cb   : > { %v1864_v20 = vmul.f32 %v6601_v48, %v7951_v24  ;;  %v1863_v54 = vmul.f32 %v6601_v48, %v7949_v43  ;;  %v1699_v38 = vpop.xlane.xlu1 %1698 }
 0x4cc   : > { %v1696_v12 = vpop.xlane.xlu0 %1695  ;;  %6612 = vrcp.f32 %v1699_v38 }
 0x4cd   : > { %1901 = vmatprep.subr.mxu0 %v1864_v20  ;;  %6614 = vrcp.f32 %v1696_v12 }
 0x4ce   : > { %v6603_v19 = vpop.eup %6602  ;;  %1902 = vmatpush1.msra.mxu0 %v1863_v54 }
 0x4cf   : > { %v6605_v36 = vpop.eup %6604  ;;  %1903 = vmatprep.subr.mxu0 %v1862_v32  ;;  %v1693_v17 = vpop.xlane.xlu1 %1692  ;;  %v1858_v16 = vmul.f32 %v6603_v19, %v7967_v22  ;;  %v1857_v14 = vmul.f32 %v6603_v19, %v7963_v30 }
 0x4d0   : > { %1904 = vmatpush1.msra.mxu0 %v1861_v50  ;;  %v1690_v46 = vpop.xlane.xlu0 %1689  ;;  %v1860_v24 = vmul.f32 %v6605_v36, %v7939_v4  ;;  %v1859_v43 = vmul.f32 %v6605_v36, %v7935_v26  ;;  %6616 = vrcp.f32 %v1693_v17 }
 0x4d1   : > { %6618 = vrcp.f32 %v1690_v46 }
 0x4d2   : > { %v6607_v48 = vpop.eup %6606  ;;  %1905 = vmatprep.subr.mxu0 %v1860_v24 }
 0x4d3   : > { %1906 = vmatpush1.msra.mxu0 %v1859_v43  ;;  %v1856_v37 = vmul.f32 %v6607_v48, %v7978_v31  ;;  %v1855_v59 = vmul.f32 %v6607_v48, %v7976_v7  ;;  %v1687_v20 = vpop.xlane.xlu1 %1686 }
 0x4d4   : > { %1907 = vmatprep.subr.mxu0 %v1858_v16  ;;  %v1684_v54 = vpop.xlane.xlu0 %1683  ;;  %6620 = vrcp.f32 %v1687_v20 }
 0x4d5   : > { %1908 = vmatpush1.msra.mxu0 %v1857_v14  ;;  %v6609_v4 = vpop.eup %6608  ;;  %6622 = vrcp.f32 %v1684_v54 }
 0x4d6   : > { %1909 = vmatprep.subr.mxu0 %v1856_v37  ;;  %v6611_v26 = vpop.eup %6610  ;;  %v1854_v38 = vmul.f32 %v6609_v4, %v7994_v60  ;;  %v1853_v22 = vmul.f32 %v6609_v4, %v7990_v21 }
 0x4d7   : > { %1910 = vmatpush1.msra.mxu0 %v1855_v59  ;;  %v1681_v12 = vpop.xlane.xlu1 %1680  ;;  %v1852_v7 = vmul.f32 %v6611_v26, %v7947_v3  ;;  %v1851_v32 = vmul.f32 %v6611_v26, %v7943_v13 }
 0x4d8   : > { %v1678_v30 = vpop.xlane.xlu0 %1677  ;;  %6624 = vrcp.f32 %v1681_v12  ;;  %1911 = vmatprep.subr.mxu0 %v1854_v38 }
 0x4d9   : > { %v6613_v31 = vpop.eup %6612  ;;  %6626 = vrcp.f32 %v1678_v30  ;;  %1912 = vmatpush1.msra.mxu0 %v1853_v22 }
 0x4da   : > { %v6615_v19 = vpop.eup %6614  ;;  %1913 = vmatprep.subr.mxu0 %v1852_v7  ;;  %v1850_v50 = vmul.f32 %v6613_v31, %v8008_v27  ;;  %v1849_v36 = vmul.f32 %v6613_v31, %v8004_v51 }
 0x4db   : > { %v1675_v60 = vpop.xlane.xlu1 %1674  ;;  %1914 = vmatpush1.msra.mxu0 %v1851_v32  ;;  %v1848_v17 = vmul.f32 %v6615_v19, %v7961_v28  ;;  %v1847_v3 = vmul.f32 %v6615_v19, %v7955_v49 }
 0x4dc   : > { %v1768_v21 = vpop.xlane.xlu0 %1767  ;;  %6628 = vrcp.f32 %v1675_v60  ;;  %1915 = vmatprep.subr.mxu0 %v1850_v50 }
 0x4dd   : > { %v6617_v46 = vpop.eup %6616  ;;  %6630 = vrcp.f32 %v1768_v21  ;;  %1916 = vmatpush1.msra.mxu0 %v1849_v36  ;;  %v11076_v21 = vld [vmem:[#allocation44_spill] sm:$0xff] }
 0x4de   : > { %v6619_v24 = vpop.eup %6618  ;;  %1917 = vmatprep.subr.mxu0 %v1848_v17  ;;  %v1846_v13 = vmul.f32 %v6617_v46, %v8023_v47  ;;  %v1845_v27 = vmul.f32 %v6617_v46, %v8019_v57 }
 0x4df   : > { %v1765_v43 = vpop.xlane.xlu1 %1764  ;;  %1918 = vmatpush1.msra.mxu0 %v1847_v3  ;;  %v1844_v48 = vmul.f32 %v6619_v24, %v7982_v45  ;;  %v1843_v28 = vmul.f32 %v6619_v24, %v7974_v29  ;;  %v11077_v3 = vld [vmem:[#allocation43_spill] sm:$0xff] }
 0x4e0   : > { %v1762_v51 = vpop.xlane.xlu0 %1761  ;;  %6632 = vrcp.f32 %v1765_v43  ;;  %1919 = vmatprep.subr.mxu0 %v1846_v13  ;;  %v11078_v13 = vld [vmem:[#allocation42_spill] sm:$0xff] }
 0x4e1   : > { %v6621_v16 = vpop.eup %6620  ;;  %6634 = vrcp.f32 %v1762_v51  ;;  %1920 = vmatpush1.msra.mxu0 %v1845_v27 }
 0x4e2   : > { %v6623_v14 = vpop.eup %6622  ;;  %1921 = vmatprep.subr.mxu0 %v1844_v48  ;;  %v1842_v49 = vmul.f32 %v6621_v16, %v8039_v62  ;;  %v1841_v47 = vmul.f32 %v6621_v16, %v8035_v35 }
 0x4e3   : > { %v1759_v37 = vpop.xlane.xlu1 %1758  ;;  %1922 = vmatpush1.msra.mxu0 %v1843_v28  ;;  %v1840_v59 = vmul.f32 %v6623_v14, %v7998_v8  ;;  %v1839_v45 = vmul.f32 %v6623_v14, %v7988_v55 }
 0x4e4   : > { %v1756_v57 = vpop.xlane.xlu0 %1755  ;;  %6636 = vrcp.f32 %v1759_v37  ;;  %1923 = vmatprep.subr.mxu0 %v1842_v49 }
 0x4e5   : > { %v6625_v20 = vpop.eup %6624  ;;  %6638 = vrcp.f32 %v1756_v57  ;;  %1924 = vmatpush1.msra.mxu0 %v1841_v47 }
 0x4e6   : > { %v6627_v54 = vpop.eup %6626  ;;  %1925 = vmatprep.subr.mxu0 %v1840_v59  ;;  %v1838_v29 = vmul.f32 %v6625_v20, %v8051_v0  ;;  %v1837_v62 = vmul.f32 %v6625_v20, %v8049_v56 }
 0x4e7   : > { %v1753_v4 = vpop.xlane.xlu1 %1752  ;;  %1926 = vmatpush1.msra.mxu0 %v1839_v45  ;;  %v1836_v26 = vmul.f32 %v6627_v54, %v8017_v40  ;;  %v1835_v8 = vmul.f32 %v6627_v54, %v8012_v34 }
 0x4e8   : > { %v1750_v35 = vpop.xlane.xlu0 %1749  ;;  %6640 = vrcp.f32 %v1753_v4  ;;  %1927 = vmatprep.subr.mxu0 %v1838_v29 }
 0x4e9   : > { %v6629_v38 = vpop.eup %6628  ;;  %6642 = vrcp.f32 %v1750_v35  ;;  %1928 = vmatpush1.msra.mxu0 %v1837_v62  ;;  %v11079_v62 = vld [vmem:[#allocation39_spill] sm:$0xff]  ;;  %v11080_v35 = vld [vmem:[#allocation40_spill] sm:$0xff] }
 0x4ea   : > { %v6631_v22 = vpop.eup %6630  ;;  %1929 = vmatprep.subr.mxu0 %v1836_v26  ;;  %v1834_v55 = vmul.f32 %v6629_v38, %v8065_v1  ;;  %v1833_v0 = vmul.f32 %v6629_v38, %v8063_v2  ;;  %v11081_v38 = vld [vmem:[#allocation41_spill] sm:$0xff] }
 0x4eb   : > { %v1747_v12 = vpop.xlane.xlu1 %1746  ;;  %1930 = vmatpush1.msra.mxu0 %v1835_v8  ;;  %v1896_v30 = vmul.f32 %v6631_v22, %v8033_v61  ;;  %v1895_v40 = vmul.f32 %v6631_v22, %v8027_v23  ;;  %v11075_v23 = vld [vmem:[#allocation45_spill] sm:$0xff]  ;;  %v11082_v8 = vld [vmem:[#allocation46_spill] sm:$0xff] }
 0x4ec   : > { %v1744_v56 = vpop.xlane.xlu0 %1743  ;;  %6644 = vrcp.f32 %v1747_v12  ;;  %1931 = vmatprep.subr.mxu0 %v1834_v55 }
 0x4ed   : > { %v6633_v7 = vpop.eup %6632  ;;  %6646 = vrcp.f32 %v1744_v56  ;;  %1932 = vmatpush1.msra.mxu0 %v1833_v0  ;;  %v11083_v0 = vld [vmem:[#allocation37_spill] sm:$0xff]  ;;  %v11084_v56 = vld [vmem:[#allocation11_spill] sm:$0xff] }
 0x4ee   : > { %v6635_v31 = vpop.eup %6634  ;;  %1933 = vmatprep.subr.mxu0 %v1896_v30  ;;  %v1894_v34 = vmul.f32 %v6633_v7, %v8081_v11  ;;  %v1893_v1 = vmul.f32 %v6633_v7, %v8078_v10 }
 0x4ef   : > { %v1741_v32 = vpop.xlane.xlu1 %1740  ;;  %1934 = vmatpush2.msra.mxu0 %v1895_v40  ;;  %v1892_v19 = vmul.f32 %v6635_v31, %v8056_v33  ;;  %v1891_v61 = vmul.f32 %v6635_v31, %v8043_v9  ;;  %v11085_v40 = vld [vmem:[#allocation33_spill] sm:$0xff] }
 0x4f0   : > { %v1738_v2 = vpop.xlane.xlu0 %1737  ;;  %6648 = vrcp.f32 %v1741_v32  ;;  %1935 = vmatprep.subr.mxu0 %v1894_v34 }
 0x4f1   : > { %v6637_v50 = vpop.eup %6636  ;;  %6650 = vrcp.f32 %v1738_v2  ;;  %1936 = vmatpush2.msra.mxu0 %v1893_v1  ;;  %v11086_v1 = vld [vmem:[#allocation38_spill] sm:$0xff]  ;;  %v11087_v2 = vld [vmem:[#allocation35_spill] sm:$0xff] }
 0x4f2   : > { %v6639_v36 = vpop.eup %6638  ;;  %1937 = vmatprep.subr.mxu0 %v1892_v19  ;;  %v1890_v60 = vmul.f32 %v6637_v50, %v11075_v23  ;;  %v1889_v11 = vmul.f32 %v6637_v50, %v11076_v21  ;;  %v11088_v50 = vld [vmem:[#allocation34_spill] sm:$0xff] }
 0x4f3   : > { %v1735_v17 = vpop.xlane.xlu1 %1734  ;;  %1938 = vmatpush2.msra.mxu0 %v1891_v61  ;;  %v1888_v24 = vmul.f32 %v6639_v36, %v11077_v3  ;;  %v1887_v27 = vmul.f32 %v6639_v36, %v11078_v13  ;;  %v11094_v3 = vld [vmem:[#allocation31_spill] sm:$0xff] }
 0x4f4   : > { %v906_v10 = vpop.xlane.xlu0 %905  ;;  %6652 = vrcp.f32 %v1735_v17  ;;  %1939 = vmatprep.subr.mxu0 %v1890_v60  ;;  %v11092_v60 = vld [vmem:[#allocation29_spill] sm:$0xff] }
 0x4f5   : > { %v911_v46 = vmul.f32 0.00390625, %v906_v10  ;;  %v6641_v33 = vpop.eup %6640  ;;  %1940 = vmatpush2.msra.mxu0 %v1889_v11  ;;  %v11093_v11 = vld [vmem:[#allocation36_spill] sm:$0xff] }
 0x4f6   : > { %v6643_v43 = vpop.eup %6642  ;;  %1941 = vmatprep.subr.mxu0 %v1888_v24  ;;  %v1886_v51 = vmul.f32 %v6641_v33, %v8109_v41  ;;  %v1885_v48 = vmul.f32 %v6641_v33, %v8107_v15  ;;  %v11095_v24 = vmov 0.0  }
 0x4f7   : > { %v914_v9 = vadd.f32 1e-05, %v911_v46  ;;  %v1732_v16 = vpop.xlane.xlu1 %1731  ;;  %1942 = vmatpush2.msra.mxu0 %v1887_v27  ;;  %v1884_v14 = vmul.f32 %v6643_v43, %v8084_v53  ;;  %v1883_v47 = vmul.f32 %v6643_v43, %v8075_v6 }
 0x4f8   : > { %v1729_v28 = vpop.xlane.xlu0 %1728  ;;  %1943 = vmatprep.subr.mxu0 %v1886_v51 }
 0x4f9   : > { %6654 = vrsqrt.f32 %v914_v9  ;;  %v6645_v49 = vpop.eup %6644  ;;  %1944 = vmatpush2.msra.mxu0 %v1885_v48 }
 0x4fa   : > { %6656 = vrcp.f32 %v1732_v16  ;;  %v6647_v37 = vpop.eup %6646  ;;  %1945 = vmatprep.subr.mxu0 %v1884_v14  ;;  %v1882_v57 = vmul.f32 %v6645_v49, %v8123_v44  ;;  %v1881_v41 = vmul.f32 %v6645_v49, %v8121_v5 }
 0x4fb   : > { %6658 = vrcp.f32 %v1729_v28  ;;  %v1726_v15 = vpop.xlane.xlu1 %1725  ;;  %1946 = vmatpush2.msra.mxu0 %v1883_v47  ;;  %v1880_v20 = vmul.f32 %v6647_v37, %v8105_v63  ;;  %v1879_v45 = vmul.f32 %v6647_v37, %v8099_v42 }
 0x4fc   : > { %v1723_v59 = vpop.xlane.xlu0 %1722  ;;  %6660 = vrcp.f32 %v1726_v15  ;;  %1947 = vmatprep.subr.mxu0 %v1882_v57 }
 0x4fd   : > { %v6649_v53 = vpop.eup %6648  ;;  %6662 = vrcp.f32 %v1723_v59  ;;  %1948 = vmatpush2.msra.mxu0 %v1881_v41 }
 0x4fe   : > { %v6651_v6 = vpop.eup %6650  ;;  %1949 = vmatprep.subr.mxu0 %v1880_v20  ;;  %v1878_v54 = vmul.f32 %v6649_v53, %v8137_v18  ;;  %v1877_v44 = vmul.f32 %v6649_v53, %v8128_v52 }
 0x4ff   : > { %1950 = vmatpush2.msra.mxu0 %v1879_v45  ;;  %v1876_v5 = vmul.f32 %v6651_v6, %v8119_v39  ;;  %v1875_v4 = vmul.f32 %v6651_v6, %v11079_v62 }
 0x500   : > { %1951 = vmatprep.subr.mxu0 %v1878_v54 }
 0x501   : > { %v6653_v29 = vpop.eup %6652  ;;  %1952 = vmatpush2.msra.mxu0 %v1877_v44 }
 0x502   : > { %1953 = vmatprep.subr.mxu0 %v1876_v5  ;;  %v1874_v63 = vmul.f32 %v6653_v29, %v8149_v25  ;;  %v1873_v26 = vmul.f32 %v6653_v29, %v11080_v35  ;;  %v8318_v5 = vld [vmem:[#allocation3] sm:$0xff]  ;;  %v2917_v29 = vld [vmem:[#allocation3 + $0x8] sm:$0xff] }
 0x503   : > { %1954 = vmatpush2.msra.mxu0 %v1875_v4  ;;  %11096 = vst [vmem:[#allocation28_spill] sm:$0xff] %v8318_v5  ;;  %v11097_v4 = vmov 1.0   ;;  %2984 = vmatprep.mubr.f32.mxu1 %v2917_v29 }
 0x504   : > { %1955 = vmatprep.subr.mxu0 %v1874_v63  ;;  %2996 = vst.msk [vmem:[#allocation3] ss:$8 sm:$0x3] %vm8177_vm2, %v11097_v4 }
 0x505   : > { %1956 = vmatpush2.msra.mxu0 %v1873_v26 }
 0x506   : > { %v6655_v42 = vpop.eup %6654 }
 0x507   : > { %v6657_v18 = vpop.eup %6656  ;;  %v922_v52 = vmul.f32 %v6655_v42, %v11081_v38  ;;  %v921_v22 = vmul.f32 %v6655_v42, %v11082_v8 }
 0x508   : > { %v6659_v55 = vpop.eup %6658  ;;  %v1872_v39 = vmul.f32 %v6657_v18, %v8155_v58  ;;  %v1871_v12 = vmul.f32 %v6657_v18, %v11083_v0  ;;  %v11089_v58 = vld [vmem:[#allocation12_spill] sm:$0xff] }
 0x509   : > { %v928_v30 = vmul.f32 %v922_v52, %v11084_v56  ;;  %v927_v25 = vmul.f32 %v921_v22, %v11084_v56  ;;  %v6661_v7 = vpop.eup %6660  ;;  %v1870_v31 = vmul.f32 %v6659_v55, %v11085_v40  ;;  %v1869_v32 = vmul.f32 %v6659_v55, %v11086_v1 }
 0x50a   : > { %1957 = vmatprep.subr.mxu0 %v1872_v39  ;;  %v6663_v34 = vpop.eup %6662  ;;  %v1868_v19 = vmul.f32 %v6661_v7, %v11087_v2  ;;  %v1867_v61 = vmul.f32 %v6661_v7, %v11088_v50 }
 0x50b   : > { %1958 = vmatpush2.msra.mxu0 %v1871_v12  ;;  %v8266_v36 = vadd.f32 %v928_v30, %v11089_v58  ;;  %v8269_v23 = vadd.f32 %v927_v25, %v11089_v58  ;;  %v1866_v21 = vmul.f32 %v6663_v34, %v11092_v60  ;;  %v1865_v17 = vmul.f32 %v6663_v34, %v11093_v11 }
 0x50c   : > { %1959 = vmatprep.subr.mxu0 %v1870_v31 }
 0x50d   : > { %11090 = vst [vmem:[#allocation32_spill] sm:$0xff] %v8266_v36  ;;  %1960 = vmatpush2.msra.mxu0 %v1869_v32  ;;  %11091 = vst [vmem:[#allocation27_spill] sm:$0xff] %v8269_v23  ;;  %v10844_v10 = vmax.f32 %v8266_v36, 0.0  ;;  %v10843_v46 = vmax.f32 %v8269_v23, 0.0 }
 0x50e   : > { %1961 = vmatprep.subr.mxu0 %v1868_v19 }
 0x50f   : > { %1962 = vmatpush2.msra.mxu0 %v1867_v61 }
 0x510   : > { %1963 = vmatprep.subr.mxu0 %v1866_v21 }
 0x511   : > { %1964 = vmatpush2.msra.mxu0 %v1865_v17 }
 0x512   : > { %2177 = vmatprep.subr.mxu0 %v10844_v10  ;;  %1966 = vmatmul.mubr.f32.vlgmr.msra.gmra.mxu0 %v11094_v3 }
 0x513   : > { %2178 = vmatpush1.msra.mxu0 %v10843_v46  ;;  %2211 = vmatprep.mubr.f32.mxu0 %v11095_v24 }
 0x51c   : > { %v2035_v14 = vpop.trf.xlu0 }
 0x520   : > { %v2036_v47 = vpop.trf.xlu0 }
 0x521   : > { %v2003_v33 = vpop.trf.xlu1 }
 0x522   : > { %6306 = vmatmul.mubr.msk.f32.vlgmr.msra.gmra.mxu0 %vm1031_vm1, %v2003_v33 }
 0x523   : > { %2217 = vmatprep.mubr.f32.mxu0 %v11095_v24 }
 0x524   : > { %v2037_v41 = vpop.trf.xlu0 }
 0x525   : > { %v2004_v13 = vpop.trf.xlu1 }
 0x526   : > { %6307 = vmatmul.mubr.msk.f32.gmra.mxu0 %vm1031_vm1, %v2004_v13 }
 0x527   : > { %2223 = vmatprep.mubr.f32.mxu0 %v11095_v24 }
 0x528   : > { %v2038_v59 = vpop.trf.xlu0 }
 0x529   : > { %v2005_v27 = vpop.trf.xlu1 }
 0x52a   : > { %6308 = vmatmul.mubr.msk.f32.gmra.mxu0 %vm1031_vm1, %v2005_v27 }
 0x52b   : > { %2229 = vmatprep.mubr.f32.mxu0 %v11095_v24 }
 0x52c   : > { %v2039_v45 = vpop.trf.xlu0 }
 0x52d   : > { %v2006_v43 = vpop.trf.xlu1 }
 0x52e   : > { %6309 = vmatmul.mubr.msk.f32.gmra.mxu0 %vm1031_vm1, %v2006_v43 }
 0x52f   : > { %2235 = vmatprep.mubr.f32.mxu0 %v11095_v24 }
 0x530   : > { %v2040_v54 = vpop.trf.xlu0 }
 0x531   : > { %v2007_v9 = vpop.trf.xlu1 }
 0x532   : > { %6310 = vmatmul.mubr.msk.f32.gmra.mxu0 %vm1031_vm1, %v2007_v9 }
 0x533   : > { %2241 = vmatprep.mubr.f32.mxu0 %v11095_v24 }
 0x534   : > { %v2041_v44 = vpop.trf.xlu0 }
 0x535   : > { %v2008_v51 = vpop.trf.xlu1 }
 0x536   : > { %6311 = vmatmul.mubr.msk.f32.gmra.mxu0 %vm1031_vm1, %v2008_v51 }
 0x537   : > { %2247 = vmatprep.mubr.f32.mxu0 %v11095_v24 }
 0x538   : > { %v2042_v62 = vpop.trf.xlu0 }
 0x539   : > { %v2009_v48 = vpop.trf.xlu1 }
 0x53a   : > { %6312 = vmatmul.mubr.msk.f32.gmra.mxu0 %vm1031_vm1, %v2009_v48 }
 0x53b   : > { %2253 = vmatprep.mubr.f32.mxu0 %v11095_v24 }
 0x53c   : > { %v2043_v35 = vpop.trf.xlu0 }
 0x53d   : > { %v2010_v16 = vpop.trf.xlu1 }
 0x53e   : > { %6313 = vmatmul.mubr.msk.f32.gmra.mxu0 %vm1031_vm1, %v2010_v16 }
 0x53f   : > { %2259 = vmatprep.mubr.f32.mxu0 %v11095_v24 }
 0x540   : > { %v2044_v26 = vpop.trf.xlu0 }
 0x541   : > { %v2011_v28 = vpop.trf.xlu1 }
 0x542   : > { %6314 = vmatmul.mubr.msk.f32.gmra.mxu0 %vm1031_vm1, %v2011_v28 }
 0x543   : > { %2265 = vmatprep.mubr.f32.mxu0 %v11095_v24 }
 0x544   : > { %v2045_v42 = vpop.trf.xlu0 }
 0x545   : > { %v2012_v49 = vpop.trf.xlu1 }
 0x546   : > { %6315 = vmatmul.mubr.msk.f32.gmra.mxu0 %vm1031_vm1, %v2012_v49 }
 0x547   : > { %2271 = vmatprep.mubr.f32.mxu0 %v11095_v24 }
 0x548   : > { %v2046_v18 = vpop.trf.xlu0 }
 0x549   : > { %v2013_v37 = vpop.trf.xlu1 }
 0x54a   : > { %6316 = vmatmul.mubr.msk.f32.gmra.mxu0 %vm1031_vm1, %v2013_v37 }
 0x54b   : > { %2277 = vmatprep.mubr.f32.mxu0 %v11095_v24 }
 0x54c   : > { %v2047_v38 = vpop.trf.xlu0 }
 0x54d   : > { %v2014_v57 = vpop.trf.xlu1 }
 0x54e   : > { %6317 = vmatmul.mubr.msk.f32.gmra.mxu0 %vm1031_vm1, %v2014_v57 }
 0x54f   : > { %2283 = vmatprep.mubr.f32.mxu0 %v11095_v24 }
 0x550   : > { %v2048_v52 = vpop.trf.xlu0 }
 0x551   : > { %v2015_v15 = vpop.trf.xlu1 }
 0x552   : > { %6318 = vmatmul.mubr.msk.f32.gmra.mxu0 %vm1031_vm1, %v2015_v15 }
 0x553   : > { %2289 = vmatprep.mubr.f32.mxu0 %v11095_v24 }
 0x554   : > { %v2049_v8 = vpop.trf.xlu0 }
 0x555   : > { %v2016_v20 = vpop.trf.xlu1 }
 0x556   : > { %6319 = vmatmul.mubr.msk.f32.gmra.mxu0 %vm1031_vm1, %v2016_v20 }
 0x557   : > { %2295 = vmatprep.mubr.f32.mxu0 %v11095_v24 }
 0x558   : > { %v2050_v22 = vpop.trf.xlu0 }
 0x559   : > { %v2017_v53 = vpop.trf.xlu1 }
 0x55a   : > { %6320 = vmatmul.mubr.msk.f32.gmra.mxu0 %vm1031_vm1, %v2017_v53 }
 0x55b   : > { %2301 = vmatprep.mubr.f32.mxu0 %v11095_v24 }
 0x55d   : > { %v2018_v6 = vpop.trf.xlu1 }
 0x55e   : > { %6321 = vmatmul.mubr.msk.f32.gmra.mxu0 %vm1031_vm1, %v2018_v6 }
 0x55f   : > { %2307 = vmatprep.mubr.f32.mxu0 %v11095_v24 }
 0x562   : > { %6322 = vmatmul.mubr.msk.f32.gmra.mxu0 %vm1031_vm1, %v2035_v14 }
 0x563   : > { %2313 = vmatprep.mubr.f32.mxu0 %v11095_v24 }
 0x566   : > { %6323 = vmatmul.mubr.msk.f32.gmra.mxu0 %vm1031_vm1, %v2036_v47 }
 0x567   : > { %2319 = vmatprep.mubr.f32.mxu0 %v11095_v24 }
 0x56a   : > { %6324 = vmatmul.mubr.msk.f32.gmra.mxu0 %vm1031_vm1, %v2037_v41 }
 0x56b   : > { %2325 = vmatprep.mubr.f32.mxu0 %v11095_v24 }
 0x56e   : > { %6325 = vmatmul.mubr.msk.f32.gmra.mxu0 %vm1031_vm1, %v2038_v59 }
 0x56f   : > { %2331 = vmatprep.mubr.f32.mxu0 %v11095_v24 }
 0x572   : > { %6326 = vmatmul.mubr.msk.f32.gmra.mxu0 %vm1031_vm1, %v2039_v45 }
 0x573   : > { %2337 = vmatprep.mubr.f32.mxu0 %v11095_v24 }
 0x576   : > { %6327 = vmatmul.mubr.msk.f32.gmra.mxu0 %vm1031_vm1, %v2040_v54 }
 0x577   : > { %2343 = vmatprep.mubr.f32.mxu0 %v11095_v24 }
 0x57a   : > { %6328 = vmatmul.mubr.msk.f32.gmra.mxu0 %vm1031_vm1, %v2041_v44 }
 0x57b   : > { %2349 = vmatprep.mubr.f32.mxu0 %v11095_v24 }
 0x57e   : > { %6329 = vmatmul.mubr.msk.f32.gmra.mxu0 %vm1031_vm1, %v2042_v62 }
 0x57f   : > { %2355 = vmatprep.mubr.f32.mxu0 %v11095_v24 }
 0x582   : > { %6330 = vmatmul.mubr.msk.f32.gmra.mxu0 %vm1031_vm1, %v2043_v35 }
 0x583   : > { %2361 = vmatprep.mubr.f32.mxu0 %v11095_v24 }
 0x586   : > { %6331 = vmatmul.mubr.msk.f32.gmra.mxu0 %vm1031_vm1, %v2044_v26 }
 0x587   : > { %2367 = vmatprep.mubr.f32.mxu0 %v11095_v24 }
 0x58a   : > { %6332 = vmatmul.mubr.msk.f32.gmra.mxu0 %vm1031_vm1, %v2045_v42 }
 0x58b   : > { %2373 = vmatprep.mubr.f32.mxu0 %v11095_v24 }
 0x58e   : > { %6333 = vmatmul.mubr.msk.f32.gmra.mxu0 %vm1031_vm1, %v2046_v18 }
 0x58f   : > { %2379 = vmatprep.mubr.f32.mxu0 %v11095_v24 }
 0x592   : > { %6334 = vmatmul.mubr.msk.f32.gmra.mxu0 %vm1031_vm1, %v2047_v38 }
 0x593   : > { %2385 = vmatprep.mubr.f32.mxu0 %v11095_v24 }
 0x596   : > { %6335 = vmatmul.mubr.msk.f32.gmra.mxu0 %vm1031_vm1, %v2048_v52 }
 0x597   : > { %2391 = vmatprep.mubr.f32.mxu0 %v11095_v24 }
 0x59a   : > { %6336 = vmatmul.mubr.msk.f32.gmra.mxu0 %vm1031_vm1, %v2049_v8 }
 0x59b   : > { %2397 = vmatprep.mubr.f32.mxu0 %v11095_v24 }
 0x59e   : > { %6337 = vmatmul.mubr.msk.f32.gmra.mxu0 %vm1031_vm1, %v2050_v22 }
 0x5d2   : > { %v1967_v55 = vpop.f32.mrf.mxu0 }
 0x5d3   : > { %1974 = vst [vmem:[#allocation4] sm:$0xff] %v1967_v55 }
 0x5d4   : > { %v1969_v39 = vpop.f32.mrf.mxu0 }
 0x5d5   : > { %1975 = vst [vmem:[#allocation4 + $0x8] sm:$0xff] %v1969_v39 }
 0x5dc   : > { %v8349_v0 = vld [vmem:[#allocation4] ss:$8 sm:$0x3] }
 0x5dd   : > { %11099 = vst [vmem:[#allocation19_spill] sm:$0xff] %v8349_v0  ;;  %2998 = vst.msk [vmem:[#allocation3 + $0x1] ss:$8 sm:$0x3] %vm8177_vm2, %v8349_v0 }
 0x5e2   : > { %v8354_v12 = vpop.f32.mrf.mxu0 }
 0x5e3   : > { %11100 = vst [vmem:[#allocation21_spill] sm:$0xff] %v8354_v12 }
 0x5e4   : > { %v8356_v30 = vpop.f32.mrf.mxu0  ;;  %v3936_v25 = vld [vmem:[#allocation3 + $0x8] sm:$0xff] }
 0x5e5   : > { %11101 = vst [vmem:[#allocation9_spill] sm:$0xff] %v8356_v30  ;;  %4003 = vmatprep.mubr.f32.mxu0 %v3936_v25 }
 0x5e6   : > { %v8358_v7 = vpop.f32.mrf.mxu0 }
 0x5e7   : > { %11102 = vst [vmem:[#allocation10_spill] sm:$0xff] %v8358_v7 }
 0x5e8   : > { %v8360_v40 = vpop.f32.mrf.mxu0 }
 0x5e9   : > { %11103 = vst [vmem:[#allocation45_spill] sm:$0xff] %v8360_v40 }
 0x5ea   : > { %v8362_v31 = vpop.f32.mrf.mxu0 }
 0x5eb   : > { %11104 = vst [vmem:[#allocation44_spill] sm:$0xff] %v8362_v31 }
 0x5ec   : > { %v8364_v34 = vpop.f32.mrf.mxu0 }
 0x5ed   : > { %11105 = vst [vmem:[#allocation43_spill] sm:$0xff] %v8364_v34 }
 0x5ee   : > { %v8366_v1 = vpop.f32.mrf.mxu0 }
 0x5f0   : > { %v8368_v32 = vpop.f32.mrf.mxu0 }
 0x5f1   : > { %v2413_v22 = vmax.f32 %v8366_v1, %v8368_v32 }
 0x5f2   : > { %v8370_v2 = vpop.f32.mrf.mxu0 }
 0x5f4   : > { %v8372_v19 = vpop.f32.mrf.mxu0 }
 0x5f5   : > { %11106 = vst [vmem:[#allocation42_spill] sm:$0xff] %v8372_v19 }
 0x5f6   : > { %v8374_v50 = vpop.f32.mrf.mxu0 }
 0x5f8   : > { %v8376_v61 = vpop.f32.mrf.mxu0 }
 0x5f9   : > { %v2419_v18 = vmax.f32 %v8374_v50, %v8376_v61 }
 0x5fa   : > { %v8378_v60 = vpop.f32.mrf.mxu0 }
 0x5fc   : > { %v8380_v21 = vpop.f32.mrf.mxu0 }
 0x5fd   : > { %v2422_v55 = vmax.f32 %v8378_v60, %v8380_v21 }
 0x5fe   : > { %v8382_v11 = vpop.f32.mrf.mxu0 }
 0x600   : > { %v8384_v17 = vpop.f32.mrf.mxu0 }
 0x601   : > { %v2425_v4 = vmax.f32 %v8382_v11, %v8384_v17 }
 0x602   : > { %v8386_v3 = vpop.f32.mrf.mxu0 }
 0x604   : > { %v8388_v33 = vpop.f32.mrf.mxu0 }
 0x605   : > { %v2428_v38 = vmax.f32 %v8386_v3, %v8388_v33 }
 0x606   : > { %v8390_v13 = vpop.f32.mrf.mxu0 }
 0x608   : > { %v8392_v27 = vpop.f32.mrf.mxu0 }
 0x609   : > { %v2431_v54 = vmax.f32 %v8390_v13, %v8392_v27 }
 0x60a   : > { %v8394_v43 = vpop.f32.mrf.mxu0 }
 0x60c   : > { %v8396_v9 = vpop.f32.mrf.mxu0 }
 0x60d   : > { %v2434_v35 = vmax.f32 %v8394_v43, %v8396_v9 }
 0x60e   : > { %v8398_v51 = vpop.f32.mrf.mxu0 }
 0x610   : > { %v8400_v48 = vpop.f32.mrf.mxu0 }
 0x611   : > { %v2437_v20 = vmax.f32 %v8398_v51, %v8400_v48 }
 0x612   : > { %v8402_v16 = vpop.f32.mrf.mxu0 }
 0x614   : > { %v8404_v28 = vpop.f32.mrf.mxu0 }
 0x615   : > { %v2440_v44 = vmax.f32 %v8402_v16, %v8404_v28 }
 0x616   : > { %v8406_v14 = vpop.f32.mrf.mxu0 }
 0x618   : > { %v8408_v49 = vpop.f32.mrf.mxu0 }
 0x619   : > { %v2443_v47 = vmax.f32 %v8406_v14, %v8408_v49 }
 0x61a   : > { %v8412_v37 = vpop.f32.mrf.mxu0 }
 0x61b   : > { %2444 = vmax.xlane.f32.xlu1 %v2443_v47  ;;  %v2407_v47 = vmax.f32 %v8358_v7, %v8360_v40  ;;  %v11117_v7 = vld [vmem:[#allocation5_spill] sm:$0xff] }
 0x61c   : > { %v8414_v57 = vpop.f32.mrf.mxu0 }
 0x61d   : > { %v2446_v41 = vmax.f32 %v8412_v37, %v8414_v57 }
 0x61e   : > { %v8418_v15 = vpop.f32.mrf.mxu0 }
 0x61f   : > { %2447 = vmax.xlane.f32.xlu1 %v2446_v41  ;;  %v2416_v41 = vmax.f32 %v8370_v2, %v8372_v19 }
 0x620   : > { %v8420_v59 = vpop.f32.mrf.mxu0 }
 0x621   : > { %v2449_v53 = vmax.f32 %v8418_v15, %v8420_v59 }
 0x622   : > { %v8426_v45 = vpop.f32.mrf.mxu0 }
 0x623   : > { %11107 = vst [vmem:[#allocation39_spill] sm:$0xff] %v8426_v45  ;;  %2438 = vmax.xlane.f32.xlu1 %v2437_v20  ;;  %2450 = vmax.xlane.f32.xlu0 %v2449_v53 }
 0x624   : > { %v8428_v6 = vpop.f32.mrf.mxu0 }
 0x625   : > { %11108 = vst [vmem:[#allocation40_spill] sm:$0xff] %v8428_v6 }
 0x626   : > { %v8434_v29 = vpop.f32.mrf.mxu0 }
 0x627   : > { %11109 = vst [vmem:[#allocation41_spill] sm:$0xff] %v8434_v29  ;;  %2432 = vmax.xlane.f32.xlu1 %v2431_v54  ;;  %2441 = vmax.xlane.f32.xlu0 %v2440_v44  ;;  %v2410_v54 = vmax.f32 %v8362_v31, %v8364_v34 }
 0x628   : > { %v8436_v62 = vpop.f32.mrf.mxu0 }
 0x629   : > { %11110 = vst [vmem:[#allocation46_spill] sm:$0xff] %v8436_v62 }
 0x62a   : > { %v8442_v26 = vpop.f32.mrf.mxu0 }
 0x62b   : > { %2426 = vmax.xlane.f32.xlu1 %v2425_v4  ;;  %2435 = vmax.xlane.f32.xlu0 %v2434_v35  ;;  %v2404_v35 = vmax.f32 %v8354_v12, %v8356_v30  ;;  %v11118_v30 = vld [vmem:[#allocation6_spill] sm:$0xff] }
 0x62c   : > { %v8444_v42 = vpop.f32.mrf.mxu0  ;;  %v713_v12 = vadd.f32 %v11118_v30, %v11117_v7 }
 0x62d   : > { %11111 = vst [vmem:[#allocation37_spill] sm:$0xff] %v8444_v42 }
 0x62e   : > { %v8450_v52 = vpop.f32.mrf.mxu0 }
 0x62f   : > { %11112 = vst [vmem:[#allocation33_spill] sm:$0xff] %v8450_v52  ;;  %2420 = vmax.xlane.f32.xlu1 %v2419_v18  ;;  %2429 = vmax.xlane.f32.xlu0 %v2428_v38 }
 0x630   : > { %v8452_v8 = vpop.f32.mrf.mxu0 }
 0x631   : > { %11113 = vst [vmem:[#allocation38_spill] sm:$0xff] %v8452_v8 }
 0x632   : > { %v8458_v39 = vpop.f32.mrf.mxu0 }
 0x633   : > { %11114 = vst [vmem:[#allocation35_spill] sm:$0xff] %v8458_v39  ;;  %2414 = vmax.xlane.f32.xlu1 %v2413_v22  ;;  %2423 = vmax.xlane.f32.xlu0 %v2422_v55 }
 0x634   : > { %v8460_v25 = vpop.f32.mrf.mxu0 }
 0x635   : > { %11115 = vst [vmem:[#allocation34_spill] sm:$0xff] %v8460_v25 }
 0x636   : > { %v8466_v20 = vpop.f32.mrf.mxu0 }
 0x637   : > { %2408 = vmax.xlane.f32.xlu1 %v2407_v47  ;;  %2417 = vmax.xlane.f32.xlu0 %v2416_v41 }
 0x638   : > { %v8468_v53 = vpop.f32.mrf.mxu0 }
 0x63a   : > { %v8472_v44 = vpop.f32.mrf.mxu0 }
 0x63b   : > { %2411 = vmax.xlane.f32.xlu0 %v2410_v54 }
 0x63c   : > { %v8474_v4 = vpop.f32.mrf.mxu0 }
 0x63e   : > { %v8478_v18 = vpop.f32.mrf.mxu0 }
 0x63f   : > { %2405 = vmax.xlane.f32.xlu0 %v2404_v35 }
 0x640   : > { %v8480_v38 = vpop.f32.mrf.mxu0 }
 0x642   : > { %v8482_v22 = vpop.f32.mrf.mxu0 }
 0x644   : > { %v8484_v55 = vpop.f32.mrf.mxu0 }
 0x646   : > { %v8486_v47 = vpop.f32.mrf.mxu0 }
 0x648   : > { %v8488_v41 = vpop.f32.mrf.mxu0 }
 0x64a   : > { %v8490_v46 = vpop.f32.mrf.mxu0 }
 0x64c   : > { %v8492_v54 = vpop.f32.mrf.mxu0 }
 0x64e   : > { %v8494_v10 = vpop.f32.mrf.mxu0 }
 0x650   : > { %v8496_v58 = vpop.f32.mrf.mxu0 }
 0x651   : > { %v2485_v31 = vmax.f32 %v8494_v10, %v8496_v58 }
 0x652   : > { %v8498_v56 = vpop.f32.mrf.mxu0 }
 0x654   : > { %v8500_v35 = vpop.f32.mrf.mxu0 }
 0x656   : > { %v8502_v0 = vpop.f32.mrf.mxu0 }
 0x658   : > { %v8504_v63 = vpop.f32.mrf.mxu0 }
 0x659   : > { %v2491_v19 = vmax.f32 %v8502_v0, %v8504_v63 }
 0x65a   : > { %v8506_v24 = vpop.f32.mrf.mxu0 }
 0x65c   : > { %v8508_v23 = vpop.f32.mrf.mxu0 }
 0x65d   : > { %11116 = vst [vmem:[#allocation29_spill] sm:$0xff] %v8508_v23  ;;  %v2494_v5 = vmax.f32 %v8506_v24, %v8508_v23  ;;  %v2488_v23 = vmax.f32 %v8498_v56, %v8500_v35 }
 0x65e   : > { %v8512_v36 = vpop.f32.mrf.mxu0 }
 0x65f   : > { %2495 = vmax.xlane.f32.xlu0 %v2494_v5  ;;  %v2479_v5 = vmax.f32 %v8486_v47, %v8488_v41 }
 0x660   : > { %v8514_v40 = vpop.f32.mrf.mxu0 }
 0x661   : > { %v2497_v34 = vmax.f32 %v8512_v36, %v8514_v40 }
 0x663   : > { %714 = vadd.xlane.f32.xlu0 %v713_v12  ;;  %2498 = vmax.xlane.f32.xlu1 %v2497_v34  ;;  %v2473_v12 = vmax.f32 %v8478_v18, %v8480_v38  ;;  %v2482_v34 = vmax.f32 %v8490_v46, %v8492_v54 }
 0x667   : > { %2486 = vmax.xlane.f32.xlu0 %v2485_v31  ;;  %2492 = vmax.xlane.f32.xlu1 %v2491_v19  ;;  %v2467_v31 = vmax.f32 %v8466_v20, %v8468_v53  ;;  %v2476_v19 = vmax.f32 %v8482_v22, %v8484_v55 }
 0x66b   : > { %2480 = vmax.xlane.f32.xlu0 %v2479_v5  ;;  %2489 = vmax.xlane.f32.xlu1 %v2488_v23  ;;  %v2461_v5 = vmax.f32 %v8450_v52, %v8452_v8  ;;  %v2470_v23 = vmax.f32 %v8472_v44, %v8474_v4 }
 0x66f   : > { %2474 = vmax.xlane.f32.xlu0 %v2473_v12  ;;  %2483 = vmax.xlane.f32.xlu1 %v2482_v34  ;;  %v2455_v12 = vmax.f32 %v8434_v29, %v8436_v62  ;;  %v2464_v34 = vmax.f32 %v8458_v39, %v8460_v25 }
 0x673   : > { %2468 = vmax.xlane.f32.xlu0 %v2467_v31  ;;  %2477 = vmax.xlane.f32.xlu1 %v2476_v19  ;;  %v2458_v31 = vmax.f32 %v8442_v26, %v8444_v42  ;;  %v2452_v19 = vmax.f32 %v8426_v45, %v8428_v6 }
 0x677   : > { %2462 = vmax.xlane.f32.xlu0 %v2461_v5  ;;  %2471 = vmax.xlane.f32.xlu1 %v2470_v23 }
 0x67b   : > { %2456 = vmax.xlane.f32.xlu0 %v2455_v12  ;;  %2465 = vmax.xlane.f32.xlu1 %v2464_v34 }
 0x67f   : > { %2459 = vmax.xlane.f32.xlu1 %v2458_v31 }
 0x683   : > { %2453 = vmax.xlane.f32.xlu1 %v2452_v19 }
 0x6a4   : > { %v2445_v8 = vpop.xlane.xlu1 %2444 }
 0x6a5   : > { %v2526_v62 = vsub.f32 %v8406_v14, %v2445_v8  ;;  %v2527_v39 = vsub.f32 %v8408_v49, %v2445_v8 }
 0x6a7   : > { %v2616_v42 = vmul.f32 1.442695, %v2526_v62  ;;  %v2618_v14 = vmul.f32 1.442695, %v2527_v39 }
 0x6a8   : > { %v2448_v52 = vpop.xlane.xlu1 %2447 }
 0x6a9   : > { %v2528_v5 = vsub.f32 %v8412_v37, %v2448_v52  ;;  %v2529_v23 = vsub.f32 %v8414_v57, %v2448_v52 }
 0x6ab   : > { %v2620_v29 = vmul.f32 1.442695, %v2528_v5  ;;  %v2622_v25 = vmul.f32 1.442695, %v2529_v23 }
 0x6ac   : > { %v2439_v12 = vpop.xlane.xlu1 %2438  ;;  %v2451_v34 = vpop.xlane.xlu0 %2450 }
 0x6ad   : > { %6664 = vpow2.f32 %v2620_v29  ;;  %v2530_v31 = vsub.f32 %v8418_v15, %v2451_v34  ;;  %v2522_v19 = vsub.f32 %v8398_v51, %v2439_v12  ;;  %v2531_v6 = vsub.f32 %v8420_v59, %v2451_v34 }
 0x6ae   : > { %6666 = vpow2.f32 %v2622_v25  ;;  %v2523_v5 = vsub.f32 %v8400_v48, %v2439_v12 }
 0x6af   : > { %v2624_v37 = vmul.f32 1.442695, %v2530_v31  ;;  %v2626_v45 = vmul.f32 1.442695, %v2531_v6  ;;  %6668 = vpow2.f32 %v2616_v42  ;;  %v2608_v49 = vmul.f32 1.442695, %v2522_v19 }
 0x6b0   : > { %v2433_v57 = vpop.xlane.xlu1 %2432  ;;  %v2442_v52 = vpop.xlane.xlu0 %2441  ;;  %v2610_v6 = vmul.f32 1.442695, %v2523_v5 }
 0x6b1   : > { %v2524_v23 = vsub.f32 %v8402_v16, %v2442_v52  ;;  %v2518_v29 = vsub.f32 %v8390_v13, %v2433_v57  ;;  %v2525_v15 = vsub.f32 %v8404_v28, %v2442_v52  ;;  %6670 = vpow2.f32 %v2624_v37 }
 0x6b2   : > { %6672 = vpow2.f32 %v2626_v45  ;;  %v2519_v39 = vsub.f32 %v8392_v27, %v2433_v57 }
 0x6b3   : > { %v2612_v62 = vmul.f32 1.442695, %v2524_v23  ;;  %v2614_v51 = vmul.f32 1.442695, %v2525_v15  ;;  %6674 = vpow2.f32 %v2618_v14  ;;  %v2600_v16 = vmul.f32 1.442695, %v2518_v29 }
 0x6b4   : > { %v2427_v59 = vpop.xlane.xlu1 %2426  ;;  %v2436_v8 = vpop.xlane.xlu0 %2435  ;;  %6676 = vpow2.f32 %v2608_v49  ;;  %v2602_v34 = vmul.f32 1.442695, %v2519_v39 }
 0x6b5   : > { %v2520_v48 = vsub.f32 %v8394_v43, %v2436_v8  ;;  %v2514_v42 = vsub.f32 %v8382_v11, %v2427_v59  ;;  %v2521_v13 = vsub.f32 %v8396_v9, %v2436_v8  ;;  %6678 = vpow2.f32 %v2612_v62 }
 0x6b6   : > { %6680 = vpow2.f32 %v2614_v51  ;;  %v2515_v31 = vsub.f32 %v8384_v17, %v2427_v59 }
 0x6b7   : > { %v2604_v28 = vmul.f32 1.442695, %v2520_v48  ;;  %v2606_v25 = vmul.f32 1.442695, %v2521_v13  ;;  %6682 = vpow2.f32 %v2610_v6  ;;  %v2592_v43 = vmul.f32 1.442695, %v2514_v42 }
 0x6b8   : > { %v2421_v45 = vpop.xlane.xlu1 %2420  ;;  %v2430_v12 = vpop.xlane.xlu0 %2429  ;;  %6684 = vpow2.f32 %v2600_v16  ;;  %v2594_v17 = vmul.f32 1.442695, %v2515_v31  ;;  %v11119_v48 = vld [vmem:[#allocation42_spill] sm:$0xff] }
 0x6b9   : > { %v2516_v27 = vsub.f32 %v8386_v3, %v2430_v12  ;;  %v2517_v11 = vsub.f32 %v8388_v33, %v2430_v12  ;;  %6686 = vpow2.f32 %v2604_v28  ;;  %v2510_v3 = vsub.f32 %v8374_v50, %v2421_v45 }
 0x6ba   : > { %v8565_v19 = vpop.eup %6664  ;;  %6688 = vpow2.f32 %v2606_v25  ;;  %v2511_v23 = vsub.f32 %v8376_v61, %v2421_v45 }
 0x6bb   : > { %v8568_v37 = vpop.eup %6666  ;;  %v2596_v9 = vmul.f32 1.442695, %v2516_v27  ;;  %v2598_v57 = vmul.f32 1.442695, %v2517_v11  ;;  %6690 = vpow2.f32 %v2602_v34  ;;  %v2584_v50 = vmul.f32 1.442695, %v2510_v3 }
 0x6bc   : > { %v2424_v52 = vpop.xlane.xlu0 %2423  ;;  %v2734_v14 = vadd.f32 %v8568_v37, %v8565_v19  ;;  %6692 = vpow2.f32 %v2592_v43  ;;  %v2415_v33 = vpop.xlane.xlu1 %2414  ;;  %v11121_v11 = vld [vmem:[#allocation43_spill] sm:$0xff] }
 0x6bd   : > { %v2512_v5 = vsub.f32 %v8378_v60, %v2424_v52  ;;  %v2513_v49 = vsub.f32 %v8380_v21, %v2424_v52  ;;  %v8576_v29 = vpop.eup %6668  ;;  %6694 = vpow2.f32 %v2596_v9  ;;  %v2506_v60 = vsub.f32 %v8366_v1, %v2415_v33 }
 0x6be   : > { %2735 = vadd.xlane.f32.xlu1 %v2734_v14  ;;  %v8578_v62 = vpop.eup %6670  ;;  %6696 = vpow2.f32 %v2598_v57  ;;  %v2586_v21 = vmul.f32 1.442695, %v2511_v23  ;;  %v2507_v39 = vsub.f32 %v8368_v32, %v2415_v33  ;;  %v11120_v32 = vld [vmem:[#allocation44_spill] sm:$0xff]  ;;  %v11122_v23 = vld [vmem:[#allocation21_spill] sm:$0xff] }
 0x6bf   : > { %v2588_v15 = vmul.f32 1.442695, %v2512_v5  ;;  %v2590_v51 = vmul.f32 1.442695, %v2513_v49  ;;  %v8580_v8 = vpop.eup %6672  ;;  %6698 = vpow2.f32 %v2594_v17  ;;  %v2576_v12 = vmul.f32 1.442695, %v2506_v60 }
 0x6c0   : > { %v2418_v59 = vpop.xlane.xlu0 %2417  ;;  %v8584_v6 = vpop.eup %6674  ;;  %v2737_v42 = vadd.f32 %v8580_v8, %v8578_v62  ;;  %v2578_v43 = vmul.f32 1.442695, %v2507_v39 }
 0x6c1   : > { %v2508_v61 = vsub.f32 %v8370_v2, %v2418_v59  ;;  %v2509_v16 = vsub.f32 %v11119_v48, %v2418_v59  ;;  %v8590_v13 = vpop.eup %6676  ;;  %6700 = vpow2.f32 %v2588_v15  ;;  %v2731_v31 = vadd.f32 %v8584_v6, %v8576_v29  ;;  %v11123_v59 = vld [vmem:[#allocation9_spill] sm:$0xff] }
 0x6c2   : > { %v8592_v25 = vpop.eup %6678  ;;  %6702 = vpow2.f32 %v2590_v51  ;;  %2738 = vadd.xlane.f32.xlu0 %v2737_v42 }
 0x6c3   : > { %v2580_v28 = vmul.f32 1.442695, %v2508_v61  ;;  %v2582_v1 = vmul.f32 1.442695, %v2509_v16  ;;  %v8594_v45 = vpop.eup %6680  ;;  %6704 = vpow2.f32 %v2584_v50 }
 0x6c4   : > { %v2412_v2 = vpop.xlane.xlu0 %2411  ;;  %v8599_v27 = vpop.eup %6682  ;;  %6706 = vpow2.f32 %v2586_v21  ;;  %v2728_v57 = vadd.f32 %v8594_v45, %v8592_v25 }
 0x6c5   : > { %v2504_v34 = vsub.f32 %v11120_v32, %v2412_v2  ;;  %v2505_v9 = vsub.f32 %v11121_v11, %v2412_v2  ;;  %v8604_v52 = vpop.eup %6684  ;;  %6708 = vpow2.f32 %v2580_v28  ;;  %v2725_v49 = vadd.f32 %v8599_v27, %v8590_v13 }
 0x6c6   : > { %v8606_v14 = vpop.eup %6686  ;;  %6710 = vpow2.f32 %v2582_v1  ;;  %2732 = vadd.xlane.f32.xlu0 %v2731_v31  ;;  %2729 = vadd.xlane.f32.xlu1 %v2728_v57 }
 0x6c7   : > { %v8608_v3 = vpop.eup %6688  ;;  %6712 = vpow2.f32 %v2576_v12  ;;  %v2572_v5 = vmul.f32 1.442695, %v2504_v34  ;;  %v2574_v51 = vmul.f32 1.442695, %v2505_v9 }
 0x6c8   : > { %v2406_v17 = vpop.xlane.xlu0 %2405  ;;  %v8613_v15 = vpop.eup %6690  ;;  %6714 = vpow2.f32 %v2578_v43  ;;  %v2722_v60 = vadd.f32 %v8608_v3, %v8606_v14 }
 0x6c9   : > { %v2500_v33 = vsub.f32 %v11122_v23, %v2406_v17  ;;  %v2501_v50 = vsub.f32 %v11123_v59, %v2406_v17  ;;  %v8618_v61 = vpop.eup %6692  ;;  %6716 = vpow2.f32 %v2572_v5  ;;  %v2719_v28 = vadd.f32 %v8613_v15, %v8604_v52 }
 0x6ca   : > { %v8620_v21 = vpop.eup %6694  ;;  %2726 = vadd.xlane.f32.xlu0 %v2725_v49  ;;  %2723 = vadd.xlane.f32.xlu1 %v2722_v60  ;;  %6718 = vpow2.f32 %v2574_v51  ;;  %v2409_v49 = vpop.xlane.xlu1 %2408 }
 0x6cb   : > { %v8622_v39 = vpop.eup %6696  ;;  %v2564_v48 = vmul.f32 1.442695, %v2500_v33  ;;  %v2566_v42 = vmul.f32 1.442695, %v2501_v50  ;;  %v11128_v50 = vld [vmem:[#allocation10_spill] sm:$0xff] }
 0x6cc   : > { %v8624_v16 = vpop.eup %6698  ;;  %v2716_v1 = vadd.f32 %v8622_v39, %v8620_v21  ;;  %v2502_v60 = vsub.f32 %v11128_v50, %v2409_v49 }
 0x6cd   : > { %6720 = vpow2.f32 %v2564_v48  ;;  %v2713_v34 = vadd.f32 %v8624_v16, %v8618_v61 }
 0x6ce   : > { %v8630_v2 = vpop.eup %6700  ;;  %2720 = vadd.xlane.f32.xlu0 %v2719_v28  ;;  %2717 = vadd.xlane.f32.xlu1 %v2716_v1  ;;  %6722 = vpow2.f32 %v2566_v42  ;;  %v11130_v42 = vld [vmem:[#allocation45_spill] sm:$0xff] }
 0x6cf   : > { %v8632_v12 = vpop.eup %6702  ;;  %v2503_v28 = vsub.f32 %v11130_v42, %v2409_v49 }
 0x6d0   : > { %v8634_v32 = vpop.eup %6704  ;;  %v2710_v31 = vadd.f32 %v8632_v12, %v8630_v2 }
 0x6d1   : > { %v8640_v43 = vpop.eup %6706 }
 0x6d2   : > { %v8642_v11 = vpop.eup %6708  ;;  %2714 = vadd.xlane.f32.xlu0 %v2713_v34  ;;  %2711 = vadd.xlane.f32.xlu1 %v2710_v31  ;;  %v2707_v17 = vadd.f32 %v8640_v43, %v8634_v32  ;;  %v2568_v31 = vmul.f32 1.442695, %v2502_v60 }
 0x6d3   : > { %11124 = vst [vmem:[#allocation36_spill] sm:$0xff] %v8642_v11  ;;  %v8644_v9 = vpop.eup %6710 }
 0x6d4   : > { %v8646_v57 = vpop.eup %6712  ;;  %v2704_v5 = vadd.f32 %v8644_v9, %v8642_v11  ;;  %6724 = vpow2.f32 %v2568_v31 }
 0x6d5   : > { %11125 = vst [vmem:[#allocation31_spill] sm:$0xff] %v8646_v57  ;;  %v8652_v23 = vpop.eup %6714 }
 0x6d6   : > { %11126 = vst [vmem:[#allocation5_spill] sm:$0xff] %v8652_v23  ;;  %2708 = vadd.xlane.f32.xlu0 %v2707_v17  ;;  %2705 = vadd.xlane.f32.xlu1 %v2704_v5  ;;  %v8654_v33 = vpop.eup %6716  ;;  %v2701_v51 = vadd.f32 %v8652_v23, %v8646_v57  ;;  %v2570_v17 = vmul.f32 1.442695, %v2503_v28  ;;  %v11131_v57 = vld [vmem:[#allocation29_spill] sm:$0xff] }
 0x6d7   : > { %11127 = vst [vmem:[#allocation6_spill] sm:$0xff] %v8654_v33  ;;  %v8658_v59 = vpop.eup %6718 }
 0x6d8   : > { %v2698_v1 = vadd.f32 %v8658_v59, %v8654_v33  ;;  %6726 = vpow2.f32 %v2570_v17 }
 0x6da   : > { %2702 = vadd.xlane.f32.xlu0 %v2701_v51  ;;  %v8661_v48 = vpop.eup %6720 }
 0x6db   : > { %11129 = vst [vmem:[#allocation42_spill] sm:$0xff] %v8661_v48  ;;  %v8666_v34 = vpop.eup %6722 }
 0x6dc   : > { %v2692_v5 = vadd.f32 %v8666_v34, %v8661_v48 }
 0x6de   : > { %2699 = vadd.xlane.f32.xlu0 %v2698_v1 }
 0x6e2   : > { %2693 = vadd.xlane.f32.xlu0 %v2692_v5 }
 0x6e8   : > { %v2496_v51 = vpop.xlane.xlu0 %2495 }
 0x6e9   : > { %v2560_v50 = vsub.f32 %v8506_v24, %v2496_v51  ;;  %v2561_v23 = vsub.f32 %v11131_v57, %v2496_v51 }
 0x6eb   : > { %v2684_v49 = vmul.f32 1.442695, %v2560_v50  ;;  %v2686_v42 = vmul.f32 1.442695, %v2561_v23 }
 0x6ec   : > { %v2499_v11 = vpop.xlane.xlu1 %2498  ;;  %v715_v33 = vpop.xlane.xlu0 %714 }
 0x6ed   : > { %6728 = vpow2.f32 %v2684_v49  ;;  %v2562_v1 = vsub.f32 %v8512_v36, %v2499_v11  ;;  %v2563_v60 = vsub.f32 %v8514_v40, %v2499_v11  ;;  %v722_v28 = vmul.f32 0.00390625, %v715_v33  ;;  %v8685_v11 = vpop.eup %6724 }
 0x6ee   : > { %6730 = vpow2.f32 %v2686_v42  ;;  %v8690_v51 = vpop.eup %6726 }
 0x6ef   : > { %v2688_v48 = vmul.f32 1.442695, %v2562_v1  ;;  %v2690_v5 = vmul.f32 1.442695, %v2563_v60  ;;  %v8675_v31 = vsub.f32 %v11117_v7, %v722_v28  ;;  %v8678_v24 = vsub.f32 %v11118_v30, %v722_v28 }
 0x6f0   : > { %v2493_v57 = vpop.xlane.xlu1 %2492  ;;  %v2487_v17 = vpop.xlane.xlu0 %2486 }
 0x6f1   : > { %6732 = vpow2.f32 %v2688_v48  ;;  %v731_v23 = vmul.f32 %v8675_v31, %v8675_v31  ;;  %v732_v36 = vmul.f32 %v8678_v24, %v8678_v24  ;;  %v2558_v40 = vsub.f32 %v8502_v0, %v2493_v57 }
 0x6f2   : > { %6734 = vpow2.f32 %v2690_v5  ;;  %v2559_v7 = vsub.f32 %v8504_v63, %v2493_v57  ;;  %v2554_v33 = vsub.f32 %v8494_v10, %v2487_v17  ;;  %v2555_v30 = vsub.f32 %v8496_v58, %v2487_v17 }
 0x6f3   : > { %v2680_v48 = vmul.f32 1.442695, %v2558_v40  ;;  %v737_v50 = vadd.f32 %v732_v36, %v731_v23  ;;  %v2695_v10 = vadd.f32 %v8690_v51, %v8685_v11 }
 0x6f4   : > { %v2682_v49 = vmul.f32 1.442695, %v2559_v7  ;;  %v2672_v42 = vmul.f32 1.442695, %v2554_v33  ;;  %v2674_v1 = vmul.f32 1.442695, %v2555_v30  ;;  %v2490_v60 = vpop.xlane.xlu1 %2489  ;;  %v2481_v28 = vpop.xlane.xlu0 %2480 }
 0x6f5   : > { %6736 = vpow2.f32 %v2680_v48  ;;  %v2556_v0 = vsub.f32 %v8498_v56, %v2490_v60  ;;  %v2557_v5 = vsub.f32 %v8500_v35, %v2490_v60  ;;  %v2550_v63 = vsub.f32 %v8486_v47, %v2481_v28  ;;  %738 = vadd.xlane.f32.xlu1 %v737_v50 }
 0x6f6   : > { %6738 = vpow2.f32 %v2682_v49  ;;  %v2551_v58 = vsub.f32 %v8488_v41, %v2481_v28 }
 0x6f7   : > { %6740 = vpow2.f32 %v2672_v42  ;;  %v2676_v57 = vmul.f32 1.442695, %v2556_v0  ;;  %v2678_v17 = vmul.f32 1.442695, %v2557_v5  ;;  %v2664_v23 = vmul.f32 1.442695, %v2550_v63 }
 0x6f8   : > { %6742 = vpow2.f32 %v2674_v1  ;;  %v2666_v36 = vmul.f32 1.442695, %v2551_v58  ;;  %v2484_v40 = vpop.xlane.xlu1 %2483  ;;  %v2475_v7 = vpop.xlane.xlu0 %2474 }
 0x6f9   : > { %6744 = vpow2.f32 %v2676_v57  ;;  %v2552_v56 = vsub.f32 %v8490_v46, %v2484_v40  ;;  %v2553_v47 = vsub.f32 %v8492_v54, %v2484_v40  ;;  %v2546_v35 = vsub.f32 %v8478_v18, %v2475_v7  ;;  %2696 = vadd.xlane.f32.xlu1 %v2695_v10 }
 0x6fa   : > { %v8701_v41 = vpop.eup %6728  ;;  %6746 = vpow2.f32 %v2678_v17  ;;  %v2547_v33 = vsub.f32 %v8480_v38, %v2475_v7  ;;  %v11133_v7 = vld [vmem:[#allocation38_spill] sm:$0xff] }
 0x6fb   : > { %v8704_v30 = vpop.eup %6730  ;;  %6748 = vpow2.f32 %v2664_v23  ;;  %v2668_v48 = vmul.f32 1.442695, %v2552_v56  ;;  %v2670_v50 = vmul.f32 1.442695, %v2553_v47  ;;  %v2656_v49 = vmul.f32 1.442695, %v2546_v35 }
 0x6fc   : > { %6750 = vpow2.f32 %v2666_v36  ;;  %v2658_v42 = vmul.f32 1.442695, %v2547_v33  ;;  %v2478_v1 = vpop.xlane.xlu1 %2477  ;;  %v2469_v46 = vpop.xlane.xlu0 %2468  ;;  %v2782_v54 = vadd.f32 %v8704_v30, %v8701_v41 }
 0x6fd   : > { %6752 = vpow2.f32 %v2668_v48  ;;  %v2548_v18 = vsub.f32 %v8482_v22, %v2478_v1  ;;  %v2549_v60 = vsub.f32 %v8484_v55, %v2478_v1  ;;  %v2542_v38 = vsub.f32 %v8466_v20, %v2469_v46 }
 0x6fe   : > { %v8711_v28 = vpop.eup %6732  ;;  %6754 = vpow2.f32 %v2670_v50  ;;  %v2543_v0 = vsub.f32 %v8468_v53, %v2469_v46  ;;  %2783 = vadd.xlane.f32.xlu0 %v2782_v54  ;;  %v11132_v53 = vld [vmem:[#allocation33_spill] sm:$0xff]  ;;  %v11134_v46 = vld [vmem:[#allocation35_spill] sm:$0xff] }
 0x6ff   : > { %v8714_v5 = vpop.eup %6734  ;;  %6756 = vpow2.f32 %v2656_v49  ;;  %v2660_v63 = vmul.f32 1.442695, %v2548_v18  ;;  %v2662_v58 = vmul.f32 1.442695, %v2549_v60  ;;  %v2648_v10 = vmul.f32 1.442695, %v2542_v38 }
 0x700   : > { %6758 = vpow2.f32 %v2658_v42  ;;  %v2650_v57 = vmul.f32 1.442695, %v2543_v0  ;;  %v2472_v17 = vpop.xlane.xlu1 %2471  ;;  %v2463_v22 = vpop.xlane.xlu0 %2462  ;;  %v2785_v55 = vadd.f32 %v8714_v5, %v8711_v28  ;;  %v11135_v18 = vld [vmem:[#allocation34_spill] sm:$0xff]  ;;  %v11136_v38 = vld [vmem:[#allocation41_spill] sm:$0xff] }
 0x701   : > { %6760 = vpow2.f32 %v2660_v63  ;;  %v2544_v20 = vsub.f32 %v8472_v44, %v2472_v17  ;;  %v2545_v23 = vsub.f32 %v8474_v4, %v2472_v17  ;;  %v2538_v36 = vsub.f32 %v11132_v53, %v2463_v22 }
 0x702   : > { %v8721_v40 = vpop.eup %6736  ;;  %6762 = vpow2.f32 %v2662_v58  ;;  %v2539_v56 = vsub.f32 %v11133_v7, %v2463_v22  ;;  %2786 = vadd.xlane.f32.xlu1 %v2785_v55  ;;  %v11137_v58 = vld [vmem:[#allocation46_spill] sm:$0xff] }
 0x703   : > { %v8724_v47 = vpop.eup %6738  ;;  %6764 = vpow2.f32 %v2648_v10  ;;  %v2652_v35 = vmul.f32 1.442695, %v2544_v20  ;;  %v2654_v33 = vmul.f32 1.442695, %v2545_v23  ;;  %v2640_v48 = vmul.f32 1.442695, %v2538_v36 }
 0x704   : > { %v8726_v50 = vpop.eup %6740  ;;  %6766 = vpow2.f32 %v2650_v57  ;;  %v2642_v44 = vmul.f32 1.442695, %v2539_v56  ;;  %v2466_v49 = vpop.xlane.xlu1 %2465  ;;  %v2779_v42 = vadd.f32 %v8724_v47, %v8721_v40 }
 0x705   : > { %v2457_v4 = vpop.xlane.xlu0 %2456  ;;  %v8730_v1 = vpop.eup %6742  ;;  %6768 = vpow2.f32 %v2652_v35  ;;  %v2540_v54 = vsub.f32 %v11134_v46, %v2466_v49  ;;  %v2541_v60 = vsub.f32 %v11135_v18, %v2466_v49 }
 0x706   : > { %v2534_v0 = vsub.f32 %v11136_v38, %v2457_v4  ;;  %v8735_v63 = vpop.eup %6744  ;;  %6770 = vpow2.f32 %v2654_v33  ;;  %v2535_v10 = vsub.f32 %v11137_v58, %v2457_v4  ;;  %2780 = vadd.xlane.f32.xlu1 %v2779_v42  ;;  %v2773_v7 = vadd.f32 %v8730_v1, %v8726_v50  ;;  %v11138_v33 = vld [vmem:[#allocation37_spill] sm:$0xff]  ;;  %v11139_v38 = vld [vmem:[#allocation39_spill] sm:$0xff]  ;;  %v11140_v58 = vld [vmem:[#allocation40_spill] sm:$0xff] }
 0x707   : > { %v8738_v57 = vpop.eup %6746  ;;  %6772 = vpow2.f32 %v2640_v48  ;;  %v2644_v17 = vmul.f32 1.442695, %v2540_v54  ;;  %v2646_v22 = vmul.f32 1.442695, %v2541_v60 }
 0x708   : > { %v2632_v55 = vmul.f32 1.442695, %v2534_v0  ;;  %v8740_v20 = vpop.eup %6748  ;;  %6774 = vpow2.f32 %v2642_v44  ;;  %v2634_v23 = vmul.f32 1.442695, %v2535_v10  ;;  %v2460_v53 = vpop.xlane.xlu1 %2459  ;;  %v2776_v36 = vadd.f32 %v8738_v57, %v8735_v63 }
 0x709   : > { %v8746_v56 = vpop.eup %6750  ;;  %6776 = vpow2.f32 %v2644_v17  ;;  %v2536_v35 = vsub.f32 %v8442_v26, %v2460_v53  ;;  %v2537_v48 = vsub.f32 %v11138_v33, %v2460_v53 }
 0x70a   : > { %v8750_v49 = vpop.eup %6752  ;;  %6778 = vpow2.f32 %v2646_v22  ;;  %2777 = vadd.xlane.f32.xlu0 %v2776_v36  ;;  %2774 = vadd.xlane.f32.xlu1 %v2773_v7  ;;  %v2767_v26 = vadd.f32 %v8746_v56, %v8740_v20 }
 0x70b   : > { %v8752_v44 = vpop.eup %6754  ;;  %6780 = vpow2.f32 %v2632_v55  ;;  %v2636_v4 = vmul.f32 1.442695, %v2536_v35  ;;  %v2638_v42 = vmul.f32 1.442695, %v2537_v48 }
 0x70c   : > { %v8754_v46 = vpop.eup %6756  ;;  %6782 = vpow2.f32 %v2634_v23  ;;  %v2454_v54 = vpop.xlane.xlu1 %2453  ;;  %v2770_v18 = vadd.f32 %v8752_v44, %v8750_v49 }
 0x70d   : > { %v8760_v60 = vpop.eup %6758  ;;  %6784 = vpow2.f32 %v2636_v4  ;;  %v2532_v0 = vsub.f32 %v11139_v38, %v2454_v54  ;;  %v2533_v10 = vsub.f32 %v11140_v58, %v2454_v54 }
 0x70e   : > { %v8764_v17 = vpop.eup %6760  ;;  %6786 = vpow2.f32 %v2638_v42  ;;  %2771 = vadd.xlane.f32.xlu0 %v2770_v18  ;;  %2768 = vadd.xlane.f32.xlu1 %v2767_v26  ;;  %v2761_v7 = vadd.f32 %v8760_v60, %v8754_v46 }
 0x70f   : > { %v8766_v22 = vpop.eup %6762  ;;  %v2628_v55 = vmul.f32 1.442695, %v2532_v0  ;;  %v2630_v23 = vmul.f32 1.442695, %v2533_v10 }
 0x710   : > { %v8768_v53 = vpop.eup %6764  ;;  %v2764_v36 = vadd.f32 %v8766_v22, %v8764_v17 }
 0x711   : > { %v8774_v35 = vpop.eup %6766  ;;  %6788 = vpow2.f32 %v2628_v55 }
 0x712   : > { %v8776_v33 = vpop.eup %6768  ;;  %6790 = vpow2.f32 %v2630_v23  ;;  %2765 = vadd.xlane.f32.xlu0 %v2764_v36  ;;  %2762 = vadd.xlane.f32.xlu1 %v2761_v7  ;;  %v2755_v54 = vadd.f32 %v8774_v35, %v8768_v53 }
 0x713   : > { %v8778_v48 = vpop.eup %6770 }
 0x714   : > { %v8780_v4 = vpop.eup %6772  ;;  %v2758_v42 = vadd.f32 %v8778_v48, %v8776_v33 }
 0x715   : > { %11141 = vst [vmem:[#allocation44_spill] sm:$0xff] %v8780_v4  ;;  %v8786_v18 = vpop.eup %6774 }
 0x716   : > { %11142 = vst [vmem:[#allocation43_spill] sm:$0xff] %v8786_v18  ;;  %v8788_v26 = vpop.eup %6776  ;;  %2759 = vadd.xlane.f32.xlu0 %v2758_v42  ;;  %2756 = vadd.xlane.f32.xlu1 %v2755_v54  ;;  %v2749_v10 = vadd.f32 %v8786_v18, %v8780_v4 }
 0x717   : > { %11143 = vst [vmem:[#allocation21_spill] sm:$0xff] %v8788_v26  ;;  %v8790_v38 = vpop.eup %6778 }
 0x718   : > { %11144 = vst [vmem:[#allocation9_spill] sm:$0xff] %v8790_v38  ;;  %v8792_v0 = vpop.eup %6780  ;;  %v2752_v58 = vadd.f32 %v8790_v38, %v8788_v26 }
 0x719   : > { %11145 = vst [vmem:[#allocation10_spill] sm:$0xff] %v8792_v0  ;;  %v8798_v55 = vpop.eup %6782 }
 0x71a   : > { %11146 = vst [vmem:[#allocation45_spill] sm:$0xff] %v8798_v55  ;;  %v8800_v23 = vpop.eup %6784  ;;  %2753 = vadd.xlane.f32.xlu0 %v2752_v58  ;;  %2750 = vadd.xlane.f32.xlu1 %v2749_v10  ;;  %v2743_v42 = vadd.f32 %v8798_v55, %v8792_v0 }
 0x71b   : > { %11147 = vst [vmem:[#allocation29_spill] sm:$0xff] %v8800_v23  ;;  %v8802_v36 = vpop.eup %6786 }
 0x71c   : > { %11148 = vst [vmem:[#allocation33_spill] sm:$0xff] %v8802_v36  ;;  %v2746_v7 = vadd.f32 %v8802_v36, %v8800_v23 }
 0x71e   : > { %v8808_v54 = vpop.eup %6788  ;;  %2747 = vadd.xlane.f32.xlu0 %v2746_v7  ;;  %2744 = vadd.xlane.f32.xlu1 %v2743_v42 }
 0x71f   : > { %11149 = vst [vmem:[#allocation38_spill] sm:$0xff] %v8808_v54  ;;  %v8810_v26 = vpop.eup %6790 }
 0x720   : > { %v2740_v4 = vadd.f32 %v8810_v26, %v8808_v54 }
 0x722   : > { %2741 = vadd.xlane.f32.xlu0 %v2740_v4 }
 0x747   : > { %v2736_v58 = vpop.xlane.xlu1 %2735 }
 0x748   : > { %6792 = vrcp.f32 %v2736_v58 }
 0x74b   : > { %v2739_v10 = vpop.xlane.xlu0 %2738 }
 0x74c   : > { %6794 = vrcp.f32 %v2739_v10 }
 0x74f   : > { %v2730_v18 = vpop.xlane.xlu1 %2729  ;;  %v2733_v38 = vpop.xlane.xlu0 %2732 }
 0x750   : > { %6796 = vrcp.f32 %v2730_v18 }
 0x751   : > { %6798 = vrcp.f32 %v2733_v38 }
 0x753   : > { %v2724_v23 = vpop.xlane.xlu1 %2723  ;;  %v2727_v0 = vpop.xlane.xlu0 %2726 }
 0x754   : > { %6800 = vrcp.f32 %v2724_v23 }
 0x755   : > { %6802 = vrcp.f32 %v2727_v0  ;;  %v6793_v55 = vpop.eup %6792 }
 0x756   : > { %v2881_v18 = vmul.f32 %v6793_v55, %v8568_v37  ;;  %v2880_v0 = vmul.f32 %v6793_v55, %v8565_v19 }
 0x757   : > { %v2718_v7 = vpop.xlane.xlu1 %2717  ;;  %v2721_v42 = vpop.xlane.xlu0 %2720 }
 0x758   : > { %6804 = vrcp.f32 %v2718_v7 }
 0x759   : > { %v6795_v36 = vpop.eup %6794  ;;  %6806 = vrcp.f32 %v2721_v42 }
 0x75a   : > { %v2883_v4 = vmul.f32 %v6795_v36, %v8580_v8  ;;  %v2882_v58 = vmul.f32 %v6795_v36, %v8578_v62 }
 0x75b   : > { %v2712_v54 = vpop.xlane.xlu1 %2711  ;;  %v2715_v10 = vpop.xlane.xlu0 %2714 }
 0x75c   : > { %6808 = vrcp.f32 %v2712_v54  ;;  %2920 = vmatprep.subr.mxu1 %v2883_v4 }
 0x75d   : > { %v6797_v38 = vpop.eup %6796  ;;  %6810 = vrcp.f32 %v2715_v10  ;;  %2921 = vmatpush1.msra.mxu1 %v2882_v58 }
 0x75e   : > { %v6799_v23 = vpop.eup %6798  ;;  %2922 = vmatprep.subr.mxu1 %v2881_v18  ;;  %v2877_v37 = vmul.f32 %v6797_v38, %v8594_v45  ;;  %v2876_v4 = vmul.f32 %v6797_v38, %v8592_v25 }
 0x75f   : > { %v2706_v7 = vpop.xlane.xlu1 %2705  ;;  %2923 = vmatpush1.msra.mxu1 %v2880_v0  ;;  %v2709_v42 = vpop.xlane.xlu0 %2708  ;;  %v2879_v8 = vmul.f32 %v6799_v23, %v8584_v6  ;;  %v2878_v62 = vmul.f32 %v6799_v23, %v8576_v29 }
 0x760   : > { %6812 = vrcp.f32 %v2706_v7 }
 0x761   : > { %v6801_v36 = vpop.eup %6800  ;;  %6814 = vrcp.f32 %v2709_v42  ;;  %2924 = vmatprep.subr.mxu1 %v2879_v8 }
 0x762   : > { %v6803_v54 = vpop.eup %6802  ;;  %2925 = vmatpush1.msra.mxu1 %v2878_v62  ;;  %v2873_v29 = vmul.f32 %v6801_v36, %v8608_v3  ;;  %v2872_v45 = vmul.f32 %v6801_v36, %v8606_v14  ;;  %v11151_v36 = vld [vmem:[#allocation5_spill] sm:$0xff] }
 0x763   : > { %2926 = vmatprep.subr.mxu1 %v2877_v37  ;;  %v2703_v19 = vpop.xlane.xlu0 %2702  ;;  %v2875_v55 = vmul.f32 %v6803_v54, %v8599_v27  ;;  %v2874_v58 = vmul.f32 %v6803_v54, %v8590_v13 }
 0x764   : > { %2927 = vmatpush1.msra.mxu1 %v2876_v4  ;;  %6816 = vrcp.f32 %v2703_v19 }
 0x765   : > { %v6805_v6 = vpop.eup %6804  ;;  %2928 = vmatprep.subr.mxu1 %v2875_v55 }
 0x766   : > { %v6807_v10 = vpop.eup %6806  ;;  %2929 = vmatpush1.msra.mxu1 %v2874_v58  ;;  %v2869_v13 = vmul.f32 %v6805_v6, %v8622_v39  ;;  %v2868_v3 = vmul.f32 %v6805_v6, %v8620_v21 }
 0x767   : > { %2930 = vmatprep.subr.mxu1 %v2873_v29  ;;  %v2700_v18 = vpop.xlane.xlu0 %2699  ;;  %v2871_v25 = vmul.f32 %v6807_v10, %v8613_v15  ;;  %v2870_v38 = vmul.f32 %v6807_v10, %v8604_v52 }
 0x768   : > { %2931 = vmatpush1.msra.mxu1 %v2872_v45  ;;  %6818 = vrcp.f32 %v2700_v18 }
 0x769   : > { %v6809_v27 = vpop.eup %6808  ;;  %2932 = vmatprep.subr.mxu1 %v2871_v25 }
 0x76a   : > { %v6811_v0 = vpop.eup %6810  ;;  %2933 = vmatpush1.msra.mxu1 %v2870_v38  ;;  %v2865_v52 = vmul.f32 %v6809_v27, %v8632_v12  ;;  %v2864_v42 = vmul.f32 %v6809_v27, %v8630_v2  ;;  %v11152_v12 = vld [vmem:[#allocation31_spill] sm:$0xff] }
 0x76b   : > { %2934 = vmatprep.subr.mxu1 %v2869_v13  ;;  %v2867_v23 = vmul.f32 %v6811_v0, %v8624_v16  ;;  %v2866_v14 = vmul.f32 %v6811_v0, %v8618_v61  ;;  %v11150_v61 = vld [vmem:[#allocation36_spill] sm:$0xff] }
 0x76c   : > { %2935 = vmatpush1.msra.mxu1 %v2868_v3 }
 0x76d   : > { %v6813_v7 = vpop.eup %6812  ;;  %2936 = vmatprep.subr.mxu1 %v2867_v23 }
 0x76e   : > { %v6815_v15 = vpop.eup %6814  ;;  %2937 = vmatpush1.msra.mxu1 %v2866_v14  ;;  %v2861_v16 = vmul.f32 %v6813_v7, %v8644_v9  ;;  %v2860_v62 = vmul.f32 %v6813_v7, %v11150_v61  ;;  %v2694_v9 = vpop.xlane.xlu0 %2693  ;;  %v11154_v14 = vld [vmem:[#allocation7_spill] sm:$0xff] }
 0x76f   : > { %2938 = vmatprep.subr.mxu1 %v2865_v52  ;;  %v2863_v39 = vmul.f32 %v6815_v15, %v8640_v43  ;;  %v2862_v8 = vmul.f32 %v6815_v15, %v8634_v32  ;;  %v11153_v32 = vld [vmem:[#allocation6_spill] sm:$0xff]  ;;  %6820 = vrcp.f32 %v2694_v9 }
 0x770   : > { %2939 = vmatpush1.msra.mxu1 %v2864_v42  ;;  %v11155_v42 = vld [vmem:[#allocation42_spill] sm:$0xff] }
 0x771   : > { %v6817_v21 = vpop.eup %6816  ;;  %2940 = vmatprep.subr.mxu1 %v2863_v39  ;;  %v11156_v39 = vld [vmem:[#allocation8_spill] sm:$0xff] }
 0x772   : > { %2941 = vmatpush1.msra.mxu1 %v2862_v8  ;;  %v2859_v37 = vmul.f32 %v6817_v21, %v11151_v36  ;;  %v2858_v54 = vmul.f32 %v6817_v21, %v11152_v12 }
 0x773   : > { %2942 = vmatprep.subr.mxu1 %v2861_v16 }
 0x774   : > { %2943 = vmatpush1.msra.mxu1 %v2860_v62 }
 0x775   : > { %v6819_v2 = vpop.eup %6818  ;;  %2944 = vmatprep.subr.mxu1 %v2859_v37 }
 0x776   : > { %2945 = vmatpush1.msra.mxu1 %v2858_v54  ;;  %v2857_v43 = vmul.f32 %v6819_v2, %v8658_v59  ;;  %v2856_v4 = vmul.f32 %v6819_v2, %v11153_v32 }
 0x778   : > { %2946 = vmatprep.subr.mxu1 %v2857_v43 }
 0x779   : > { %2947 = vmatpush1.msra.mxu1 %v2856_v4 }
 0x77c   : > { %v6821_v45 = vpop.eup %6820 }
 0x77d   : > { %v2853_v15 = vmul.f32 %v6821_v45, %v8666_v34 }
 0x77e   : > { %v739_v19 = vpop.xlane.xlu1 %738 }
 0x77f   : > { %v746_v55 = vmul.f32 0.00390625, %v739_v19 }
 0x781   : > { %v749_v58 = vadd.f32 1e-05, %v746_v55 }
 0x782   : > { %v2697_v6 = vpop.xlane.xlu1 %2696 }
 0x783   : > { %6822 = vrsqrt.f32 %v749_v58 }
 0x784   : > { %6824 = vrcp.f32 %v2697_v6 }
 0x787   : > { %v2784_v29 = vpop.xlane.xlu0 %2783 }
 0x788   : > { %6826 = vrcp.f32 %v2784_v29 }
 0x78b   : > { %v2787_v10 = vpop.xlane.xlu1 %2786 }
 0x78c   : > { %6828 = vrcp.f32 %v2787_v10 }
 0x78f   : > { %v2781_v18 = vpop.xlane.xlu1 %2780 }
 0x790   : > { %v6823_v25 = vpop.eup %6822  ;;  %6830 = vrcp.f32 %v2781_v18 }
 0x791   : > { %v6825_v59 = vpop.eup %6824  ;;  %v756_v38 = vmul.f32 %v6823_v25, %v8678_v24  ;;  %v755_v27 = vmul.f32 %v6823_v25, %v8675_v31  ;;  %v2852_v24 = vmul.f32 %v6821_v45, %v11155_v42 }
 0x792   : > { %v2855_v13 = vmul.f32 %v6825_v59, %v8690_v51  ;;  %v2854_v0 = vmul.f32 %v6825_v59, %v8685_v11 }
 0x793   : > { %v2775_v3 = vpop.xlane.xlu1 %2774  ;;  %v2778_v23 = vpop.xlane.xlu0 %2777  ;;  %v762_v7 = vmul.f32 %v756_v38, %v11154_v14  ;;  %v761_v52 = vmul.f32 %v755_v27, %v11154_v14 }
 0x794   : > { %6832 = vrcp.f32 %v2775_v3  ;;  %2948 = vmatprep.subr.mxu1 %v2855_v13 }
 0x795   : > { %6834 = vrcp.f32 %v2778_v23  ;;  %2949 = vmatpush1.msra.mxu1 %v2854_v0  ;;  %v8851_v31 = vadd.f32 %v762_v7, %v11156_v39  ;;  %v8854_v51 = vadd.f32 %v761_v52, %v11156_v39  ;;  %v6827_v61 = vpop.eup %6826  ;;  %v11160_v52 = vld [vmem:[#allocation21_spill] sm:$0xff] }
 0x796   : > { %2950 = vmatprep.subr.mxu1 %v2853_v15  ;;  %v2913_v54 = vmul.f32 %v6827_v61, %v8704_v30  ;;  %v2912_v43 = vmul.f32 %v6827_v61, %v8701_v41  ;;  %v11164_v61 = vld [vmem:[#allocation29_spill] sm:$0xff] }
 0x797   : > { %11157 = vst [vmem:[#allocation35_spill] sm:$0xff] %v8851_v31  ;;  %11158 = vst [vmem:[#allocation34_spill] sm:$0xff] %v8854_v51  ;;  %v2769_v11 = vpop.xlane.xlu1 %2768  ;;  %2951 = vmatpush1.msra.mxu1 %v2852_v24  ;;  %v2772_v8 = vpop.xlane.xlu0 %2771  ;;  %v10884_v21 = vmax.f32 %v8851_v31, 0.0  ;;  %v10883_v16 = vmax.f32 %v8854_v51, 0.0  ;;  %v11162_v24 = vld [vmem:[#allocation44_spill] sm:$0xff] }
 0x798   : > { %6836 = vrcp.f32 %v2769_v11 }
 0x799   : > { %v6829_v34 = vpop.eup %6828  ;;  %6838 = vrcp.f32 %v2772_v8  ;;  %3038 = vxpose.xlu0.b32.start.end [1/1] (short) %v10884_v21, 128  ;;  %3006 = vxpose.xlu1.b32.start.end [1/1] (short) %v10883_v16, 128 }
 0x79a   : > { %v2915_v62 = vmul.f32 %v6829_v34, %v8714_v5  ;;  %v2914_v36 = vmul.f32 %v6829_v34, %v8711_v28 }
 0x79b   : > { %v2763_v37 = vpop.xlane.xlu1 %2762  ;;  %v2766_v12 = vpop.xlane.xlu0 %2765 }
 0x79c   : > { %6840 = vrcp.f32 %v2763_v37  ;;  %2952 = vmatprep.subr.mxu1 %v2915_v62  ;;  %v11165_v62 = vld [vmem:[#allocation45_spill] sm:$0xff]  ;;  %v11166_v37 = vld [vmem:[#allocation10_spill] sm:$0xff] }
 0x79d   : > { %v6831_v2 = vpop.eup %6830  ;;  %6842 = vrcp.f32 %v2766_v12  ;;  %2953 = vmatpush2.msra.mxu1 %v2914_v36 }
 0x79e   : > { %2954 = vmatprep.subr.mxu1 %v2913_v54  ;;  %v2911_v32 = vmul.f32 %v6831_v2, %v8724_v47  ;;  %v2910_v4 = vmul.f32 %v6831_v2, %v8721_v40  ;;  %v11167_v2 = vld [vmem:[#allocation38_spill] sm:$0xff] }
 0x79f   : > { %v2757_v19 = vpop.xlane.xlu1 %2756  ;;  %2955 = vmatpush2.msra.mxu1 %v2912_v43  ;;  %v2760_v5 = vpop.xlane.xlu0 %2759 }
 0x7a0   : > { %6844 = vrcp.f32 %v2757_v19  ;;  %2956 = vmatprep.subr.mxu1 %v2911_v32  ;;  %v11168_v32 = vld [vmem:[#allocation32_spill] sm:$0xff] }
 0x7a1   : > { %v6833_v28 = vpop.eup %6832  ;;  %6846 = vrcp.f32 %v2760_v5  ;;  %2957 = vmatpush2.msra.mxu1 %v2910_v4  ;;  %v11169_v4 = vmax.f32 %v11168_v32, 0.0  ;;  %v11170_v19 = vld [vmem:[#allocation28_spill] sm:$0xff]  ;;  %v11171_v5 = vld [vmem:[#allocation27_spill] sm:$0xff] }
 0x7a2   : > { %v6835_v9 = vpop.eup %6834  ;;  %v2907_v40 = vmul.f32 %v6833_v28, %v8730_v1  ;;  %v2906_v29 = vmul.f32 %v6833_v28, %v8726_v50  ;;  %v11172_v28 = vmax.f32 %v11171_v5, 0.0 }
 0x7a3   : > { %v2751_v30 = vpop.xlane.xlu1 %2750  ;;  %v2754_v55 = vpop.xlane.xlu0 %2753  ;;  %v2909_v58 = vmul.f32 %v6835_v9, %v8738_v57  ;;  %v2908_v41 = vmul.f32 %v6835_v9, %v8735_v63  ;;  %v11173_v9 = vmov 0.0  }
 0x7a4   : > { %6848 = vrcp.f32 %v2751_v30 }
 0x7a5   : > { %v6837_v6 = vpop.eup %6836  ;;  %6850 = vrcp.f32 %v2754_v55  ;;  %2958 = vmatprep.subr.mxu1 %v2909_v58 }
 0x7a6   : > { %v6839_v47 = vpop.eup %6838  ;;  %2959 = vmatpush2.msra.mxu1 %v2908_v41  ;;  %v2903_v57 = vmul.f32 %v6837_v6, %v8746_v56  ;;  %v2902_v1 = vmul.f32 %v6837_v6, %v8740_v20 }
 0x7a7   : > { %2960 = vmatprep.subr.mxu1 %v2907_v40  ;;  %v2745_v10 = vpop.xlane.xlu1 %2744  ;;  %v2748_v45 = vpop.xlane.xlu0 %2747  ;;  %v2905_v18 = vmul.f32 %v6839_v47, %v8752_v44  ;;  %v2904_v25 = vmul.f32 %v6839_v47, %v8750_v49 }
 0x7a8   : > { %6852 = vrcp.f32 %v2745_v10  ;;  %2961 = vmatpush2.msra.mxu1 %v2906_v29 }
 0x7a9   : > { %v6841_v63 = vpop.eup %6840  ;;  %6854 = vrcp.f32 %v2748_v45  ;;  %2962 = vmatprep.subr.mxu1 %v2905_v18 }
 0x7aa   : > { %v6843_v59 = vpop.eup %6842  ;;  %2963 = vmatpush2.msra.mxu1 %v2904_v25  ;;  %v2899_v44 = vmul.f32 %v6841_v63, %v8760_v60  ;;  %v2898_v56 = vmul.f32 %v6841_v63, %v8754_v46  ;;  %v11159_v60 = vld [vmem:[#allocation9_spill] sm:$0xff] }
 0x7ab   : > { %2964 = vmatprep.subr.mxu1 %v2903_v57  ;;  %v2742_v50 = vpop.xlane.xlu0 %2741  ;;  %v2901_v38 = vmul.f32 %v6843_v59, %v8766_v22  ;;  %v2900_v27 = vmul.f32 %v6843_v59, %v8764_v17 }
 0x7ac   : > { %2965 = vmatpush2.msra.mxu1 %v2902_v1  ;;  %6856 = vrcp.f32 %v2742_v50 }
 0x7ad   : > { %v6845_v49 = vpop.eup %6844  ;;  %2966 = vmatprep.subr.mxu1 %v2901_v38 }
 0x7ae   : > { %v6847_v13 = vpop.eup %6846  ;;  %2967 = vmatpush2.msra.mxu1 %v2900_v27  ;;  %v2895_v17 = vmul.f32 %v6845_v49, %v8774_v35  ;;  %v2894_v23 = vmul.f32 %v6845_v49, %v8768_v53  ;;  %v11163_v35 = vld [vmem:[#allocation33_spill] sm:$0xff] }
 0x7af   : > { %2968 = vmatprep.subr.mxu1 %v2899_v44  ;;  %v2897_v0 = vmul.f32 %v6847_v13, %v8778_v48  ;;  %v2896_v20 = vmul.f32 %v6847_v13, %v8776_v33  ;;  %v11161_v48 = vld [vmem:[#allocation43_spill] sm:$0xff] }
 0x7b0   : > { %2969 = vmatpush2.msra.mxu1 %v2898_v56 }
 0x7b1   : > { %v6849_v3 = vpop.eup %6848  ;;  %2970 = vmatprep.subr.mxu1 %v2897_v0 }
 0x7b2   : > { %v6851_v22 = vpop.eup %6850  ;;  %2971 = vmatpush2.msra.mxu1 %v2896_v20  ;;  %v2891_v42 = vmul.f32 %v6849_v3, %v11161_v48  ;;  %v2890_v11 = vmul.f32 %v6849_v3, %v11162_v24 }
 0x7b3   : > { %2972 = vmatprep.subr.mxu1 %v2895_v17  ;;  %v2893_v7 = vmul.f32 %v6851_v22, %v11159_v60  ;;  %v2892_v15 = vmul.f32 %v6851_v22, %v11160_v52 }
 0x7b4   : > { %2973 = vmatpush2.msra.mxu1 %v2894_v23 }
 0x7b5   : > { %v6853_v46 = vpop.eup %6852  ;;  %2974 = vmatprep.subr.mxu1 %v2893_v7 }
 0x7b6   : > { %v6855_v33 = vpop.eup %6854  ;;  %2975 = vmatpush2.msra.mxu1 %v2892_v15  ;;  %v2887_v36 = vmul.f32 %v6853_v46, %v11165_v62  ;;  %v2886_v12 = vmul.f32 %v6853_v46, %v11166_v37 }
 0x7b7   : > { %2976 = vmatprep.subr.mxu1 %v2891_v42  ;;  %v2889_v8 = vmul.f32 %v6855_v33, %v11163_v35  ;;  %v2888_v34 = vmul.f32 %v6855_v33, %v11164_v61 }
 0x7b8   : > { %2977 = vmatpush2.msra.mxu1 %v2890_v11 }
 0x7b9   : > { %v6857_v53 = vpop.eup %6856  ;;  %2978 = vmatprep.subr.mxu1 %v2889_v8 }
 0x7ba   : > { %2979 = vmatpush2.msra.mxu1 %v2888_v34  ;;  %v2885_v54 = vmul.f32 %v6857_v53, %v8810_v26  ;;  %v2884_v43 = vmul.f32 %v6857_v53, %v11167_v2 }
 0x7bb   : > { %2980 = vmatprep.subr.mxu1 %v2887_v36 }
 0x7bc   : > { %2981 = vmatpush2.msra.mxu1 %v2886_v12 }
 0x7bd   : > { %2982 = vmatprep.subr.mxu1 %v2885_v54 }
 0x7be   : > { %2983 = vmatpush2.msra.mxu1 %v2884_v43 }
 0x7bf   : > { %3196 = vmatprep.subr.mxu1 %v11169_v4  ;;  %2985 = vmatmul.mubr.f32.vlgmr.msra.gmra.mxu1 %v11170_v19 }
 0x7c0   : > { %3197 = vmatpush1.msra.mxu1 %v11172_v28  ;;  %3230 = vmatprep.mubr.f32.mxu1 %v11173_v9 }
 0x815   : > { %v3022_v30 = vpop.trf.xlu1  ;;  %v3054_v10 = vpop.trf.xlu0 }
 0x816   : > { %6338 = vmatmul.mubr.msk.f32.vlgmr.msra.gmra.mxu1 %vm1031_vm1, %v3022_v30 }
 0x817   : > { %3236 = vmatprep.mubr.f32.mxu1 %v11173_v9 }
 0x819   : > { %v3023_v26 = vpop.trf.xlu1  ;;  %v3055_v18 = vpop.trf.xlu0 }
 0x81a   : > { %6339 = vmatmul.mubr.msk.f32.gmra.mxu1 %vm1031_vm1, %v3023_v26 }
 0x81b   : > { %3242 = vmatprep.mubr.f32.mxu1 %v11173_v9 }
 0x81d   : > { %v3024_v55 = vpop.trf.xlu1  ;;  %v3056_v57 = vpop.trf.xlu0 }
 0x81e   : > { %6340 = vmatmul.mubr.msk.f32.gmra.mxu1 %vm1031_vm1, %v3024_v55 }
 0x81f   : > { %3248 = vmatprep.mubr.f32.mxu1 %v11173_v9 }
 0x821   : > { %v3025_v58 = vpop.trf.xlu1  ;;  %v3057_v1 = vpop.trf.xlu0 }
 0x822   : > { %6341 = vmatmul.mubr.msk.f32.gmra.mxu1 %vm1031_vm1, %v3025_v58 }
 0x823   : > { %3254 = vmatprep.mubr.f32.mxu1 %v11173_v9 }
 0x825   : > { %v3026_v41 = vpop.trf.xlu1  ;;  %v3058_v27 = vpop.trf.xlu0 }
 0x826   : > { %6342 = vmatmul.mubr.msk.f32.gmra.mxu1 %vm1031_vm1, %v3026_v41 }
 0x827   : > { %3260 = vmatprep.mubr.f32.mxu1 %v11173_v9 }
 0x829   : > { %v3027_v6 = vpop.trf.xlu1  ;;  %v3059_v44 = vpop.trf.xlu0 }
 0x82a   : > { %6343 = vmatmul.mubr.msk.f32.gmra.mxu1 %vm1031_vm1, %v3027_v6 }
 0x82b   : > { %3266 = vmatprep.mubr.f32.mxu1 %v11173_v9 }
 0x82d   : > { %v3028_v40 = vpop.trf.xlu1  ;;  %v3060_v13 = vpop.trf.xlu0 }
 0x82e   : > { %6344 = vmatmul.mubr.msk.f32.gmra.mxu1 %vm1031_vm1, %v3028_v40 }
 0x82f   : > { %3272 = vmatprep.mubr.f32.mxu1 %v11173_v9 }
 0x831   : > { %v3029_v47 = vpop.trf.xlu1  ;;  %v3061_v56 = vpop.trf.xlu0 }
 0x832   : > { %6345 = vmatmul.mubr.msk.f32.gmra.mxu1 %vm1031_vm1, %v3029_v47 }
 0x833   : > { %3278 = vmatprep.mubr.f32.mxu1 %v11173_v9 }
 0x835   : > { %v3030_v29 = vpop.trf.xlu1  ;;  %v3062_v0 = vpop.trf.xlu0 }
 0x836   : > { %6346 = vmatmul.mubr.msk.f32.gmra.mxu1 %vm1031_vm1, %v3030_v29 }
 0x837   : > { %3284 = vmatprep.mubr.f32.mxu1 %v11173_v9 }
 0x839   : > { %v3031_v45 = vpop.trf.xlu1  ;;  %v3063_v20 = vpop.trf.xlu0 }
 0x83a   : > { %6347 = vmatmul.mubr.msk.f32.gmra.mxu1 %vm1031_vm1, %v3031_v45 }
 0x83b   : > { %3290 = vmatprep.mubr.f32.mxu1 %v11173_v9 }
 0x83d   : > { %v3032_v25 = vpop.trf.xlu1  ;;  %v3064_v3 = vpop.trf.xlu0 }
 0x83e   : > { %6348 = vmatmul.mubr.msk.f32.gmra.mxu1 %vm1031_vm1, %v3032_v25 }
 0x83f   : > { %3296 = vmatprep.mubr.f32.mxu1 %v11173_v9 }
 0x841   : > { %v3033_v63 = vpop.trf.xlu1  ;;  %v3065_v17 = vpop.trf.xlu0 }
 0x842   : > { %6349 = vmatmul.mubr.msk.f32.gmra.mxu1 %vm1031_vm1, %v3033_v63 }
 0x843   : > { %3302 = vmatprep.mubr.f32.mxu1 %v11173_v9 }
 0x845   : > { %v3034_v59 = vpop.trf.xlu1  ;;  %v3066_v22 = vpop.trf.xlu0 }
 0x846   : > { %6350 = vmatmul.mubr.msk.f32.gmra.mxu1 %vm1031_vm1, %v3034_v59 }
 0x847   : > { %3308 = vmatprep.mubr.f32.mxu1 %v11173_v9 }
 0x849   : > { %v3035_v50 = vpop.trf.xlu1  ;;  %v3067_v7 = vpop.trf.xlu0 }
 0x84a   : > { %6351 = vmatmul.mubr.msk.f32.gmra.mxu1 %vm1031_vm1, %v3035_v50 }
 0x84b   : > { %3314 = vmatprep.mubr.f32.mxu1 %v11173_v9 }
 0x84d   : > { %v3036_v38 = vpop.trf.xlu1  ;;  %v3068_v52 = vpop.trf.xlu0 }
 0x84e   : > { %6352 = vmatmul.mubr.msk.f32.gmra.mxu1 %vm1031_vm1, %v3036_v38 }
 0x84f   : > { %3320 = vmatprep.mubr.f32.mxu1 %v11173_v9 }
 0x851   : > { %v3037_v49 = vpop.trf.xlu1  ;;  %v3069_v15 = vpop.trf.xlu0 }
 0x852   : > { %6353 = vmatmul.mubr.msk.f32.gmra.mxu1 %vm1031_vm1, %v3037_v49 }
 0x853   : > { %3326 = vmatprep.mubr.f32.mxu1 %v11173_v9 }
 0x856   : > { %6354 = vmatmul.mubr.msk.f32.gmra.mxu1 %vm1031_vm1, %v3054_v10 }
 0x857   : > { %3332 = vmatprep.mubr.f32.mxu1 %v11173_v9 }
 0x85a   : > { %6355 = vmatmul.mubr.msk.f32.gmra.mxu1 %vm1031_vm1, %v3055_v18 }
 0x85b   : > { %3338 = vmatprep.mubr.f32.mxu1 %v11173_v9 }
 0x85e   : > { %6356 = vmatmul.mubr.msk.f32.gmra.mxu1 %vm1031_vm1, %v3056_v57 }
 0x85f   : > { %3344 = vmatprep.mubr.f32.mxu1 %v11173_v9 }
 0x862   : > { %6357 = vmatmul.mubr.msk.f32.gmra.mxu1 %vm1031_vm1, %v3057_v1 }
 0x863   : > { %3350 = vmatprep.mubr.f32.mxu1 %v11173_v9 }
 0x866   : > { %6358 = vmatmul.mubr.msk.f32.gmra.mxu1 %vm1031_vm1, %v3058_v27 }
 0x867   : > { %3356 = vmatprep.mubr.f32.mxu1 %v11173_v9 }
 0x86a   : > { %6359 = vmatmul.mubr.msk.f32.gmra.mxu1 %vm1031_vm1, %v3059_v44 }
 0x86b   : > { %3362 = vmatprep.mubr.f32.mxu1 %v11173_v9 }
 0x86e   : > { %6360 = vmatmul.mubr.msk.f32.gmra.mxu1 %vm1031_vm1, %v3060_v13 }
 0x86f   : > { %3368 = vmatprep.mubr.f32.mxu1 %v11173_v9 }
 0x872   : > { %6361 = vmatmul.mubr.msk.f32.gmra.mxu1 %vm1031_vm1, %v3061_v56 }
 0x873   : > { %3374 = vmatprep.mubr.f32.mxu1 %v11173_v9 }
 0x876   : > { %6362 = vmatmul.mubr.msk.f32.gmra.mxu1 %vm1031_vm1, %v3062_v0 }
 0x877   : > { %3380 = vmatprep.mubr.f32.mxu1 %v11173_v9 }
 0x87a   : > { %6363 = vmatmul.mubr.msk.f32.gmra.mxu1 %vm1031_vm1, %v3063_v20 }
 0x87b   : > { %3386 = vmatprep.mubr.f32.mxu1 %v11173_v9 }
 0x87e   : > { %6364 = vmatmul.mubr.msk.f32.gmra.mxu1 %vm1031_vm1, %v3064_v3 }
 0x87f   : > { %3392 = vmatprep.mubr.f32.mxu1 %v11173_v9  ;;  %v2986_v23 = vpop.f32.mrf.mxu1 }
 0x880   : > { %2993 = vst [vmem:[#allocation4] sm:$0xff] %v2986_v23 }
 0x881   : > { %v2988_v60 = vpop.f32.mrf.mxu1 }
 0x882   : > { %6365 = vmatmul.mubr.msk.f32.gmra.mxu1 %vm1031_vm1, %v3065_v17  ;;  %2994 = vst [vmem:[#allocation4 + $0x8] sm:$0xff] %v2988_v60 }
 0x883   : > { %3398 = vmatprep.mubr.f32.mxu1 %v11173_v9 }
 0x886   : > { %6366 = vmatmul.mubr.msk.f32.gmra.mxu1 %vm1031_vm1, %v3066_v22 }
 0x887   : > { %3404 = vmatprep.mubr.f32.mxu1 %v11173_v9 }
 0x88a   : > { %6367 = vmatmul.mubr.msk.f32.gmra.mxu1 %vm1031_vm1, %v3067_v7 }
 0x88b   : > { %3410 = vmatprep.mubr.f32.mxu1 %v11173_v9 }
 0x88e   : > { %6368 = vmatmul.mubr.msk.f32.gmra.mxu1 %vm1031_vm1, %v3068_v52 }
 0x88f   : > { %3416 = vmatprep.mubr.f32.mxu1 %v11173_v9 }
 0x892   : > { %6369 = vmatmul.mubr.msk.f32.gmra.mxu1 %vm1031_vm1, %v3069_v15 }
 0x8d6   : > { %v8963_v46 = vpop.f32.mrf.mxu1 }
 0x8d7   : > { %11174 = vst [vmem:[#allocation41_spill] sm:$0xff] %v8963_v46 }
 0x8d8   : > { %v8965_v48 = vpop.f32.mrf.mxu1 }
 0x8d9   : > { %11175 = vst [vmem:[#allocation46_spill] sm:$0xff] %v8965_v48 }
 0x8da   : > { %v8967_v42 = vpop.f32.mrf.mxu1 }
 0x8db   : > { %11176 = vst [vmem:[#allocation37_spill] sm:$0xff] %v8967_v42 }
 0x8dc   : > { %v8969_v33 = vpop.f32.mrf.mxu1 }
 0x8dd   : > { %11177 = vst [vmem:[#allocation39_spill] sm:$0xff] %v8969_v33  ;;  %v3426_v7 = vmax.f32 %v8967_v42, %v8969_v33  ;;  %v11191_v42 = vld [vmem:[#allocation24_spill] sm:$0xff] }
 0x8de   : > { %v8971_v24 = vpop.f32.mrf.mxu1 }
 0x8df   : > { %11178 = vst [vmem:[#allocation40_spill] sm:$0xff] %v8971_v24 }
 0x8e0   : > { %v8973_v11 = vpop.f32.mrf.mxu1 }
 0x8e1   : > { %11179 = vst [vmem:[#allocation36_spill] sm:$0xff] %v8973_v11 }
 0x8e2   : > { %v8975_v35 = vpop.f32.mrf.mxu1 }
 0x8e4   : > { %v8977_v8 = vpop.f32.mrf.mxu1 }
 0x8e5   : > { %v3432_v17 = vmax.f32 %v8975_v35, %v8977_v8 }
 0x8e6   : > { %v8979_v61 = vpop.f32.mrf.mxu1 }
 0x8e8   : > { %v8981_v34 = vpop.f32.mrf.mxu1 }
 0x8e9   : > { %11180 = vst [vmem:[#allocation5_spill] sm:$0xff] %v8981_v34  ;;  %v3435_v52 = vmax.f32 %v8979_v61, %v8981_v34 }
 0x8ea   : > { %v8983_v53 = vpop.f32.mrf.mxu1 }
 0x8ec   : > { %v8985_v62 = vpop.f32.mrf.mxu1 }
 0x8ed   : > { %v3438_v56 = vmax.f32 %v8983_v53, %v8985_v62 }
 0x8ee   : > { %v8987_v36 = vpop.f32.mrf.mxu1 }
 0x8f0   : > { %v8989_v37 = vpop.f32.mrf.mxu1 }
 0x8f1   : > { %v3441_v22 = vmax.f32 %v8987_v36, %v8989_v37 }
 0x8f2   : > { %v8991_v12 = vpop.f32.mrf.mxu1 }
 0x8f4   : > { %v8993_v54 = vpop.f32.mrf.mxu1 }
 0x8f5   : > { %v3444_v27 = vmax.f32 %v8991_v12, %v8993_v54 }
 0x8f6   : > { %v8995_v2 = vpop.f32.mrf.mxu1 }
 0x8f8   : > { %v8997_v43 = vpop.f32.mrf.mxu1 }
 0x8f9   : > { %v3447_v0 = vmax.f32 %v8995_v2, %v8997_v43 }
 0x8fa   : > { %v8999_v32 = vpop.f32.mrf.mxu1 }
 0x8fc   : > { %v9001_v4 = vpop.f32.mrf.mxu1 }
 0x8fd   : > { %v3450_v59 = vmax.f32 %v8999_v32, %v9001_v4 }
 0x8fe   : > { %v9003_v19 = vpop.f32.mrf.mxu1 }
 0x900   : > { %v9005_v5 = vpop.f32.mrf.mxu1 }
 0x901   : > { %v3453_v49 = vmax.f32 %v9003_v19, %v9005_v5 }
 0x902   : > { %v9007_v28 = vpop.f32.mrf.mxu1 }
 0x904   : > { %v9009_v30 = vpop.f32.mrf.mxu1 }
 0x905   : > { %v3456_v18 = vmax.f32 %v9007_v28, %v9009_v30 }
 0x906   : > { %v9011_v26 = vpop.f32.mrf.mxu1 }
 0x908   : > { %v9013_v55 = vpop.f32.mrf.mxu1 }
 0x909   : > { %v3459_v1 = vmax.f32 %v9011_v26, %v9013_v55 }
 0x90a   : > { %v9015_v58 = vpop.f32.mrf.mxu1 }
 0x90c   : > { %v9017_v41 = vpop.f32.mrf.mxu1 }
 0x90d   : > { %v3462_v6 = vmax.f32 %v9015_v58, %v9017_v41 }
 0x90e   : > { %v9021_v40 = vpop.f32.mrf.mxu1 }
 0x90f   : > { %3463 = vmax.xlane.f32.xlu1 %v3462_v6 }
 0x910   : > { %v9023_v47 = vpop.f32.mrf.mxu1 }
 0x911   : > { %v3465_v29 = vmax.f32 %v9021_v40, %v9023_v47 }
 0x912   : > { %v9027_v10 = vpop.f32.mrf.mxu1 }
 0x913   : > { %3466 = vmax.xlane.f32.xlu1 %v3465_v29  ;;  %v3429_v29 = vmax.f32 %v8971_v24, %v8973_v11 }
 0x914   : > { %v9029_v45 = vpop.f32.mrf.mxu1 }
 0x915   : > { %v3468_v25 = vmax.f32 %v9027_v10, %v9029_v45 }
 0x916   : > { %v9035_v63 = vpop.f32.mrf.mxu1 }
 0x917   : > { %11181 = vst [vmem:[#allocation31_spill] sm:$0xff] %v9035_v63  ;;  %3457 = vmax.xlane.f32.xlu1 %v3456_v18  ;;  %3469 = vmax.xlane.f32.xlu0 %v3468_v25 }
 0x918   : > { %v9037_v57 = vpop.f32.mrf.mxu1 }
 0x919   : > { %11182 = vst [vmem:[#allocation6_spill] sm:$0xff] %v9037_v57 }
 0x91a   : > { %v9043_v50 = vpop.f32.mrf.mxu1 }
 0x91b   : > { %11183 = vst [vmem:[#allocation42_spill] sm:$0xff] %v9043_v50  ;;  %3451 = vmax.xlane.f32.xlu1 %v3450_v59  ;;  %3460 = vmax.xlane.f32.xlu0 %v3459_v1  ;;  %v3423_v59 = vmax.f32 %v8963_v46, %v8965_v48  ;;  %v11192_v48 = vld [vmem:[#allocation26_spill] sm:$0xff] }
 0x91c   : > { %v9045_v38 = vpop.f32.mrf.mxu1  ;;  %v877_v46 = vadd.f32 %v11192_v48, %v11191_v42 }
 0x91d   : > { %11184 = vst [vmem:[#allocation9_spill] sm:$0xff] %v9045_v38 }
 0x91e   : > { %v9051_v44 = vpop.f32.mrf.mxu1 }
 0x91f   : > { %3445 = vmax.xlane.f32.xlu1 %v3444_v27  ;;  %3454 = vmax.xlane.f32.xlu0 %v3453_v49 }
 0x920   : > { %v9053_v13 = vpop.f32.mrf.mxu1 }
 0x921   : > { %11185 = vst [vmem:[#allocation21_spill] sm:$0xff] %v9053_v13 }
 0x922   : > { %v9059_v20 = vpop.f32.mrf.mxu1 }
 0x923   : > { %11186 = vst [vmem:[#allocation43_spill] sm:$0xff] %v9059_v20  ;;  %3439 = vmax.xlane.f32.xlu1 %v3438_v56  ;;  %3448 = vmax.xlane.f32.xlu0 %v3447_v0 }
 0x924   : > { %v9061_v3 = vpop.f32.mrf.mxu1 }
 0x925   : > { %11187 = vst [vmem:[#allocation44_spill] sm:$0xff] %v9061_v3 }
 0x926   : > { %v9067_v23 = vpop.f32.mrf.mxu1 }
 0x927   : > { %11188 = vst [vmem:[#allocation33_spill] sm:$0xff] %v9067_v23  ;;  %3433 = vmax.xlane.f32.xlu1 %v3432_v17  ;;  %3442 = vmax.xlane.f32.xlu0 %v3441_v22 }
 0x928   : > { %v9069_v60 = vpop.f32.mrf.mxu1 }
 0x929   : > { %11189 = vst [vmem:[#allocation29_spill] sm:$0xff] %v9069_v60 }
 0x92a   : > { %v9075_v15 = vpop.f32.mrf.mxu1 }
 0x92b   : > { %3427 = vmax.xlane.f32.xlu1 %v3426_v7  ;;  %3436 = vmax.xlane.f32.xlu0 %v3435_v52 }
 0x92c   : > { %v9077_v6 = vpop.f32.mrf.mxu1 }
 0x92e   : > { %v9081_v18 = vpop.f32.mrf.mxu1 }
 0x92f   : > { %3430 = vmax.xlane.f32.xlu0 %v3429_v29 }
 0x930   : > { %v9083_v25 = vpop.f32.mrf.mxu1 }
 0x932   : > { %v9087_v1 = vpop.f32.mrf.mxu1 }
 0x933   : > { %3424 = vmax.xlane.f32.xlu0 %v3423_v59 }
 0x934   : > { %v9089_v27 = vpop.f32.mrf.mxu1 }
 0x936   : > { %v9091_v49 = vpop.f32.mrf.mxu1 }
 0x938   : > { %v9093_v56 = vpop.f32.mrf.mxu1 }
 0x93a   : > { %v9095_v0 = vpop.f32.mrf.mxu1 }
 0x93c   : > { %v9097_v17 = vpop.f32.mrf.mxu1 }
 0x93e   : > { %v9099_v22 = vpop.f32.mrf.mxu1 }
 0x940   : > { %v9101_v7 = vpop.f32.mrf.mxu1 }
 0x942   : > { %v9103_v52 = vpop.f32.mrf.mxu1 }
 0x944   : > { %v9105_v29 = vpop.f32.mrf.mxu1 }
 0x945   : > { %v3504_v24 = vmax.f32 %v9103_v52, %v9105_v29 }
 0x946   : > { %v9107_v16 = vpop.f32.mrf.mxu1 }
 0x948   : > { %v9109_v59 = vpop.f32.mrf.mxu1 }
 0x94a   : > { %v9111_v21 = vpop.f32.mrf.mxu1 }
 0x94c   : > { %v9113_v51 = vpop.f32.mrf.mxu1 }
 0x94d   : > { %v3510_v34 = vmax.f32 %v9111_v21, %v9113_v51 }
 0x94e   : > { %v9115_v31 = vpop.f32.mrf.mxu1 }
 0x950   : > { %v9117_v9 = vpop.f32.mrf.mxu1 }
 0x951   : > { %11190 = vst [vmem:[#allocation45_spill] sm:$0xff] %v9117_v9  ;;  %v3513_v39 = vmax.f32 %v9115_v31, %v9117_v9  ;;  %v3507_v9 = vmax.f32 %v9107_v16, %v9109_v59 }
 0x952   : > { %v9121_v14 = vpop.f32.mrf.mxu1 }
 0x953   : > { %3514 = vmax.xlane.f32.xlu0 %v3513_v39  ;;  %v3498_v39 = vmax.f32 %v9095_v0, %v9097_v17 }
 0x954   : > { %v9123_v33 = vpop.f32.mrf.mxu1 }
 0x955   : > { %v3516_v11 = vmax.f32 %v9121_v14, %v9123_v33 }
 0x957   : > { %3517 = vmax.xlane.f32.xlu1 %v3516_v11  ;;  %878 = vadd.xlane.f32.xlu0 %v877_v46  ;;  %v3492_v11 = vmax.f32 %v9087_v1, %v9089_v27  ;;  %v3501_v46 = vmax.f32 %v9099_v22, %v9101_v7 }
 0x95b   : > { %3511 = vmax.xlane.f32.xlu1 %v3510_v34  ;;  %3505 = vmax.xlane.f32.xlu0 %v3504_v24  ;;  %v3486_v34 = vmax.f32 %v9075_v15, %v9077_v6  ;;  %v3495_v24 = vmax.f32 %v9091_v49, %v9093_v56 }
 0x95f   : > { %3508 = vmax.xlane.f32.xlu1 %v3507_v9  ;;  %3499 = vmax.xlane.f32.xlu0 %v3498_v39  ;;  %v3480_v9 = vmax.f32 %v9059_v20, %v9061_v3  ;;  %v3489_v39 = vmax.f32 %v9081_v18, %v9083_v25 }
 0x963   : > { %3502 = vmax.xlane.f32.xlu1 %v3501_v46  ;;  %3493 = vmax.xlane.f32.xlu0 %v3492_v11  ;;  %v3474_v46 = vmax.f32 %v9043_v50, %v9045_v38  ;;  %v3483_v11 = vmax.f32 %v9067_v23, %v9069_v60 }
 0x967   : > { %3496 = vmax.xlane.f32.xlu1 %v3495_v24  ;;  %3487 = vmax.xlane.f32.xlu0 %v3486_v34  ;;  %v3477_v24 = vmax.f32 %v9051_v44, %v9053_v13  ;;  %v3471_v34 = vmax.f32 %v9035_v63, %v9037_v57 }
 0x96b   : > { %3490 = vmax.xlane.f32.xlu1 %v3489_v39  ;;  %3481 = vmax.xlane.f32.xlu0 %v3480_v9 }
 0x96f   : > { %3484 = vmax.xlane.f32.xlu1 %v3483_v11  ;;  %3475 = vmax.xlane.f32.xlu0 %v3474_v46 }
 0x973   : > { %3478 = vmax.xlane.f32.xlu1 %v3477_v24 }
 0x977   : > { %3472 = vmax.xlane.f32.xlu1 %v3471_v34 }
 0x998   : > { %v3464_v3 = vpop.xlane.xlu1 %3463 }
 0x999   : > { %v3545_v38 = vsub.f32 %v9015_v58, %v3464_v3  ;;  %v3546_v23 = vsub.f32 %v9017_v41, %v3464_v3 }
 0x99b   : > { %v3635_v13 = vmul.f32 1.442695, %v3545_v38  ;;  %v3637_v58 = vmul.f32 1.442695, %v3546_v23 }
 0x99c   : > { %v3467_v20 = vpop.xlane.xlu1 %3466 }
 0x99d   : > { %v3547_v9 = vsub.f32 %v9021_v40, %v3467_v20  ;;  %v3548_v39 = vsub.f32 %v9023_v47, %v3467_v20 }
 0x99f   : > { %v3639_v50 = vmul.f32 1.442695, %v3547_v9  ;;  %v3641_v60 = vmul.f32 1.442695, %v3548_v39 }
 0x9a0   : > { %v3458_v11 = vpop.xlane.xlu1 %3457  ;;  %v3470_v46 = vpop.xlane.xlu0 %3469 }
 0x9a1   : > { %6858 = vpow2.f32 %v3639_v50  ;;  %v3549_v24 = vsub.f32 %v9027_v10, %v3470_v46  ;;  %v3541_v34 = vsub.f32 %v9007_v28, %v3458_v11  ;;  %v3550_v57 = vsub.f32 %v9029_v45, %v3470_v46 }
 0x9a2   : > { %6860 = vpow2.f32 %v3641_v60  ;;  %v3542_v9 = vsub.f32 %v9009_v30, %v3458_v11 }
 0x9a3   : > { %v3643_v40 = vmul.f32 1.442695, %v3549_v24  ;;  %v3645_v63 = vmul.f32 1.442695, %v3550_v57  ;;  %6862 = vpow2.f32 %v3635_v13  ;;  %v3627_v41 = vmul.f32 1.442695, %v3541_v34 }
 0x9a4   : > { %v3452_v47 = vpop.xlane.xlu1 %3451  ;;  %v3461_v20 = vpop.xlane.xlu0 %3460  ;;  %v3629_v57 = vmul.f32 1.442695, %v3542_v9 }
 0x9a5   : > { %v3543_v39 = vsub.f32 %v9011_v26, %v3461_v20  ;;  %v3537_v50 = vsub.f32 %v8999_v32, %v3452_v47  ;;  %v3544_v10 = vsub.f32 %v9013_v55, %v3461_v20  ;;  %6864 = vpow2.f32 %v3643_v40 }
 0x9a6   : > { %6866 = vpow2.f32 %v3645_v63  ;;  %v3538_v23 = vsub.f32 %v9001_v4, %v3452_v47 }
 0x9a7   : > { %v3631_v38 = vmul.f32 1.442695, %v3543_v39  ;;  %v3633_v28 = vmul.f32 1.442695, %v3544_v10  ;;  %6868 = vpow2.f32 %v3637_v58  ;;  %v3619_v26 = vmul.f32 1.442695, %v3537_v50 }
 0x9a8   : > { %v3446_v45 = vpop.xlane.xlu1 %3445  ;;  %v3455_v3 = vpop.xlane.xlu0 %3454  ;;  %6870 = vpow2.f32 %v3627_v41  ;;  %v3621_v46 = vmul.f32 1.442695, %v3538_v23 }
 0x9a9   : > { %v3539_v30 = vsub.f32 %v9003_v19, %v3455_v3  ;;  %v3533_v13 = vsub.f32 %v8991_v12, %v3446_v45  ;;  %v3540_v32 = vsub.f32 %v9005_v5, %v3455_v3  ;;  %6872 = vpow2.f32 %v3631_v38 }
 0x9aa   : > { %6874 = vpow2.f32 %v3633_v28  ;;  %v3534_v24 = vsub.f32 %v8993_v54, %v3446_v45 }
 0x9ab   : > { %v3623_v55 = vmul.f32 1.442695, %v3539_v30  ;;  %v3625_v60 = vmul.f32 1.442695, %v3540_v32  ;;  %6876 = vpow2.f32 %v3629_v57  ;;  %v3611_v19 = vmul.f32 1.442695, %v3533_v13 }
 0x9ac   : > { %v3440_v63 = vpop.xlane.xlu1 %3439  ;;  %v3449_v11 = vpop.xlane.xlu0 %3448  ;;  %6878 = vpow2.f32 %v3619_v26  ;;  %v3613_v54 = vmul.f32 1.442695, %v3534_v24  ;;  %v11193_v30 = vld [vmem:[#allocation5_spill] sm:$0xff] }
 0x9ad   : > { %v3535_v4 = vsub.f32 %v8995_v2, %v3449_v11  ;;  %v3536_v12 = vsub.f32 %v8997_v43, %v3449_v11  ;;  %6880 = vpow2.f32 %v3623_v55  ;;  %v3529_v2 = vsub.f32 %v8983_v53, %v3440_v63 }
 0x9ae   : > { %v9174_v34 = vpop.eup %6858  ;;  %6882 = vpow2.f32 %v3625_v60  ;;  %v3530_v39 = vsub.f32 %v8985_v62, %v3440_v63 }
 0x9af   : > { %v9177_v40 = vpop.eup %6860  ;;  %v3615_v5 = vmul.f32 1.442695, %v3535_v4  ;;  %v3617_v47 = vmul.f32 1.442695, %v3536_v12  ;;  %6884 = vpow2.f32 %v3621_v46  ;;  %v3603_v53 = vmul.f32 1.442695, %v3529_v2 }
 0x9b0   : > { %v3443_v20 = vpop.xlane.xlu0 %3442  ;;  %v3753_v58 = vadd.f32 %v9177_v40, %v9174_v34  ;;  %6886 = vpow2.f32 %v3611_v19  ;;  %v3434_v43 = vpop.xlane.xlu1 %3433  ;;  %v11195_v12 = vld [vmem:[#allocation36_spill] sm:$0xff] }
 0x9b1   : > { %v3531_v9 = vsub.f32 %v8987_v36, %v3443_v20  ;;  %v3532_v41 = vsub.f32 %v8989_v37, %v3443_v20  ;;  %v9185_v50 = vpop.eup %6862  ;;  %6888 = vpow2.f32 %v3615_v5  ;;  %v3525_v36 = vsub.f32 %v8975_v35, %v3434_v43 }
 0x9b2   : > { %3754 = vadd.xlane.f32.xlu1 %v3753_v58  ;;  %v9187_v38 = vpop.eup %6864  ;;  %6890 = vpow2.f32 %v3617_v47  ;;  %v3605_v37 = vmul.f32 1.442695, %v3530_v39  ;;  %v3526_v23 = vsub.f32 %v8977_v8, %v3434_v43  ;;  %v11194_v8 = vld [vmem:[#allocation40_spill] sm:$0xff]  ;;  %v11196_v39 = vld [vmem:[#allocation41_spill] sm:$0xff] }
 0x9b3   : > { %v3607_v10 = vmul.f32 1.442695, %v3531_v9  ;;  %v3609_v28 = vmul.f32 1.442695, %v3532_v41  ;;  %v9189_v3 = vpop.eup %6866  ;;  %6892 = vpow2.f32 %v3613_v54  ;;  %v3595_v11 = vmul.f32 1.442695, %v3525_v36 }
 0x9b4   : > { %v3437_v45 = vpop.xlane.xlu0 %3436  ;;  %v9193_v57 = vpop.eup %6868  ;;  %v3756_v13 = vadd.f32 %v9189_v3, %v9187_v38  ;;  %v3597_v19 = vmul.f32 1.442695, %v3526_v23 }
 0x9b5   : > { %v3527_v62 = vsub.f32 %v8979_v61, %v3437_v45  ;;  %v3528_v26 = vsub.f32 %v11193_v30, %v3437_v45  ;;  %v9199_v32 = vpop.eup %6870  ;;  %6894 = vpow2.f32 %v3607_v10  ;;  %v3750_v24 = vadd.f32 %v9193_v57, %v9185_v50  ;;  %v11197_v45 = vld [vmem:[#allocation46_spill] sm:$0xff] }
 0x9b6   : > { %v9201_v60 = vpop.eup %6872  ;;  %6896 = vpow2.f32 %v3609_v28  ;;  %3757 = vadd.xlane.f32.xlu0 %v3756_v13 }
 0x9b7   : > { %v3599_v55 = vmul.f32 1.442695, %v3527_v62  ;;  %v3601_v35 = vmul.f32 1.442695, %v3528_v26  ;;  %v9203_v63 = vpop.eup %6874  ;;  %6898 = vpow2.f32 %v3603_v53 }
 0x9b8   : > { %v3431_v61 = vpop.xlane.xlu0 %3430  ;;  %v9208_v4 = vpop.eup %6876  ;;  %6900 = vpow2.f32 %v3605_v37  ;;  %v3747_v47 = vadd.f32 %v9203_v63, %v9201_v60 }
 0x9b9   : > { %v3523_v46 = vsub.f32 %v11194_v8, %v3431_v61  ;;  %v3524_v5 = vsub.f32 %v11195_v12, %v3431_v61  ;;  %v9213_v20 = vpop.eup %6878  ;;  %6902 = vpow2.f32 %v3599_v55  ;;  %v3744_v41 = vadd.f32 %v9208_v4, %v9199_v32 }
 0x9ba   : > { %v9215_v58 = vpop.eup %6880  ;;  %6904 = vpow2.f32 %v3601_v35  ;;  %3748 = vadd.xlane.f32.xlu1 %v3747_v47  ;;  %3751 = vadd.xlane.f32.xlu0 %v3750_v24 }
 0x9bb   : > { %v9217_v2 = vpop.eup %6882  ;;  %6906 = vpow2.f32 %v3595_v11  ;;  %v3591_v9 = vmul.f32 1.442695, %v3523_v46  ;;  %v3593_v28 = vmul.f32 1.442695, %v3524_v5 }
 0x9bc   : > { %v3425_v54 = vpop.xlane.xlu0 %3424  ;;  %v9222_v10 = vpop.eup %6884  ;;  %6908 = vpow2.f32 %v3597_v19  ;;  %v3741_v36 = vadd.f32 %v9217_v2, %v9215_v58 }
 0x9bd   : > { %v3519_v43 = vsub.f32 %v11196_v39, %v3425_v54  ;;  %v3520_v53 = vsub.f32 %v11197_v45, %v3425_v54  ;;  %v9227_v62 = vpop.eup %6886  ;;  %6910 = vpow2.f32 %v3591_v9  ;;  %v3738_v35 = vadd.f32 %v9222_v10, %v9213_v20 }
 0x9be   : > { %v9229_v37 = vpop.eup %6888  ;;  %3742 = vadd.xlane.f32.xlu1 %v3741_v36  ;;  %3745 = vadd.xlane.f32.xlu0 %v3744_v41  ;;  %6912 = vpow2.f32 %v3593_v28  ;;  %v3428_v41 = vpop.xlane.xlu1 %3427 }
 0x9bf   : > { %v9231_v23 = vpop.eup %6890  ;;  %v3583_v30 = vmul.f32 1.442695, %v3519_v43  ;;  %v3585_v13 = vmul.f32 1.442695, %v3520_v53  ;;  %v11202_v53 = vld [vmem:[#allocation37_spill] sm:$0xff] }
 0x9c0   : > { %v9233_v26 = vpop.eup %6892  ;;  %v3735_v55 = vadd.f32 %v9231_v23, %v9229_v37  ;;  %v3521_v36 = vsub.f32 %v11202_v53, %v3428_v41 }
 0x9c1   : > { %6914 = vpow2.f32 %v3583_v30  ;;  %v3732_v24 = vadd.f32 %v9233_v26, %v9227_v62 }
 0x9c2   : > { %v9239_v61 = vpop.eup %6894  ;;  %3736 = vadd.xlane.f32.xlu1 %v3735_v55  ;;  %3739 = vadd.xlane.f32.xlu0 %v3738_v35  ;;  %6916 = vpow2.f32 %v3585_v13  ;;  %v11204_v13 = vld [vmem:[#allocation39_spill] sm:$0xff] }
 0x9c3   : > { %v9241_v11 = vpop.eup %6896  ;;  %v3522_v55 = vsub.f32 %v11204_v13, %v3428_v41 }
 0x9c4   : > { %v9243_v8 = vpop.eup %6898  ;;  %v3729_v46 = vadd.f32 %v9241_v11, %v9239_v61 }
 0x9c5   : > { %v9249_v19 = vpop.eup %6900 }
 0x9c6   : > { %v9251_v12 = vpop.eup %6902  ;;  %3730 = vadd.xlane.f32.xlu1 %v3729_v46  ;;  %3733 = vadd.xlane.f32.xlu0 %v3732_v24  ;;  %v3726_v9 = vadd.f32 %v9249_v19, %v9243_v8  ;;  %v3587_v24 = vmul.f32 1.442695, %v3521_v36 }
 0x9c7   : > { %11198 = vst [vmem:[#allocation10_spill] sm:$0xff] %v9251_v12  ;;  %v9253_v5 = vpop.eup %6904 }
 0x9c8   : > { %v9255_v47 = vpop.eup %6906  ;;  %v3723_v54 = vadd.f32 %v9253_v5, %v9251_v12  ;;  %6918 = vpow2.f32 %v3587_v24 }
 0x9c9   : > { %11199 = vst [vmem:[#allocation38_spill] sm:$0xff] %v9255_v47  ;;  %v9261_v39 = vpop.eup %6908 }
 0x9ca   : > { %11200 = vst [vmem:[#allocation32_spill] sm:$0xff] %v9261_v39  ;;  %3724 = vadd.xlane.f32.xlu1 %v3723_v54  ;;  %3727 = vadd.xlane.f32.xlu0 %v3726_v9  ;;  %v9263_v43 = vpop.eup %6910  ;;  %v3720_v28 = vadd.f32 %v9261_v39, %v9255_v47  ;;  %v3589_v54 = vmul.f32 1.442695, %v3522_v55  ;;  %v11205_v47 = vld [vmem:[#allocation45_spill] sm:$0xff] }
 0x9cb   : > { %11201 = vst [vmem:[#allocation28_spill] sm:$0xff] %v9263_v43  ;;  %v9267_v45 = vpop.eup %6912 }
 0x9cc   : > { %v3717_v35 = vadd.f32 %v9267_v45, %v9263_v43  ;;  %6920 = vpow2.f32 %v3589_v54 }
 0x9ce   : > { %3721 = vadd.xlane.f32.xlu0 %v3720_v28  ;;  %v9270_v30 = vpop.eup %6914 }
 0x9cf   : > { %11203 = vst [vmem:[#allocation27_spill] sm:$0xff] %v9270_v30  ;;  %v9275_v46 = vpop.eup %6916 }
 0x9d0   : > { %v3711_v9 = vadd.f32 %v9275_v46, %v9270_v30 }
 0x9d2   : > { %3718 = vadd.xlane.f32.xlu0 %v3717_v35 }
 0x9d6   : > { %3712 = vadd.xlane.f32.xlu0 %v3711_v9 }
 0x9dc   : > { %v3515_v28 = vpop.xlane.xlu0 %3514 }
 0x9dd   : > { %v3579_v53 = vsub.f32 %v9115_v31, %v3515_v28  ;;  %v3580_v39 = vsub.f32 %v11205_v47, %v3515_v28 }
 0x9df   : > { %v3703_v41 = vmul.f32 1.442695, %v3579_v53  ;;  %v3705_v13 = vmul.f32 1.442695, %v3580_v39 }
 0x9e0   : > { %v3518_v12 = vpop.xlane.xlu1 %3517  ;;  %v879_v43 = vpop.xlane.xlu0 %878 }
 0x9e1   : > { %6922 = vpow2.f32 %v3703_v41  ;;  %v3581_v35 = vsub.f32 %v9121_v14, %v3518_v12  ;;  %v3582_v36 = vsub.f32 %v9123_v33, %v3518_v12  ;;  %v886_v55 = vmul.f32 0.00390625, %v879_v43  ;;  %v9294_v12 = vpop.eup %6918 }
 0x9e2   : > { %6924 = vpow2.f32 %v3705_v13  ;;  %v9299_v28 = vpop.eup %6920 }
 0x9e3   : > { %v3707_v30 = vmul.f32 1.442695, %v3581_v35  ;;  %v3709_v9 = vmul.f32 1.442695, %v3582_v36  ;;  %v9284_v24 = vsub.f32 %v11191_v42, %v886_v55  ;;  %v9287_v31 = vsub.f32 %v11192_v48, %v886_v55 }
 0x9e4   : > { %v3512_v47 = vpop.xlane.xlu1 %3511  ;;  %v3506_v54 = vpop.xlane.xlu0 %3505 }
 0x9e5   : > { %6926 = vpow2.f32 %v3707_v30  ;;  %v895_v39 = vmul.f32 %v9284_v24, %v9284_v24  ;;  %v896_v14 = vmul.f32 %v9287_v31, %v9287_v31  ;;  %v3577_v33 = vsub.f32 %v9111_v21, %v3512_v47 }
 0x9e6   : > { %6928 = vpow2.f32 %v3709_v9  ;;  %v3578_v42 = vsub.f32 %v9113_v51, %v3512_v47  ;;  %v3573_v43 = vsub.f32 %v9103_v52, %v3506_v54  ;;  %v3574_v48 = vsub.f32 %v9105_v29, %v3506_v54 }
 0x9e7   : > { %v3699_v30 = vmul.f32 1.442695, %v3577_v33  ;;  %v901_v53 = vadd.f32 %v896_v14, %v895_v39  ;;  %v3714_v29 = vadd.f32 %v9299_v28, %v9294_v12 }
 0x9e8   : > { %v3701_v41 = vmul.f32 1.442695, %v3578_v42  ;;  %v3691_v13 = vmul.f32 1.442695, %v3573_v43  ;;  %v3693_v35 = vmul.f32 1.442695, %v3574_v48  ;;  %v3509_v36 = vpop.xlane.xlu1 %3508  ;;  %v3500_v55 = vpop.xlane.xlu0 %3499 }
 0x9e9   : > { %6930 = vpow2.f32 %v3699_v30  ;;  %v3575_v21 = vsub.f32 %v9107_v16, %v3509_v36  ;;  %v3576_v9 = vsub.f32 %v9109_v59, %v3509_v36  ;;  %v3569_v51 = vsub.f32 %v9095_v0, %v3500_v55  ;;  %902 = vadd.xlane.f32.xlu1 %v901_v53 }
 0x9ea   : > { %6932 = vpow2.f32 %v3701_v41  ;;  %v3570_v52 = vsub.f32 %v9097_v17, %v3500_v55 }
 0x9eb   : > { %6934 = vpow2.f32 %v3691_v13  ;;  %v3695_v47 = vmul.f32 1.442695, %v3575_v21  ;;  %v3697_v54 = vmul.f32 1.442695, %v3576_v9  ;;  %v3683_v39 = vmul.f32 1.442695, %v3569_v51 }
 0x9ec   : > { %6936 = vpow2.f32 %v3693_v35  ;;  %v3685_v14 = vmul.f32 1.442695, %v3570_v52  ;;  %v3503_v33 = vpop.xlane.xlu1 %3502  ;;  %v3494_v42 = vpop.xlane.xlu0 %3493 }
 0x9ed   : > { %6938 = vpow2.f32 %v3695_v47  ;;  %v3571_v16 = vsub.f32 %v9099_v22, %v3503_v33  ;;  %v3572_v0 = vsub.f32 %v9101_v7, %v3503_v33  ;;  %v3565_v59 = vsub.f32 %v9087_v1, %v3494_v42  ;;  %3715 = vadd.xlane.f32.xlu1 %v3714_v29 }
 0x9ee   : > { %v9310_v17 = vpop.eup %6922  ;;  %6940 = vpow2.f32 %v3697_v54  ;;  %v3566_v43 = vsub.f32 %v9089_v27, %v3494_v42  ;;  %v11207_v42 = vld [vmem:[#allocation44_spill] sm:$0xff] }
 0x9ef   : > { %v9313_v48 = vpop.eup %6924  ;;  %6942 = vpow2.f32 %v3683_v39  ;;  %v3687_v30 = vmul.f32 1.442695, %v3571_v16  ;;  %v3689_v53 = vmul.f32 1.442695, %v3572_v0  ;;  %v3675_v41 = vmul.f32 1.442695, %v3565_v59 }
 0x9f0   : > { %6944 = vpow2.f32 %v3685_v14  ;;  %v3677_v13 = vmul.f32 1.442695, %v3566_v43  ;;  %v3497_v35 = vpop.xlane.xlu1 %3496  ;;  %v3488_v22 = vpop.xlane.xlu0 %3487  ;;  %v3801_v7 = vadd.f32 %v9313_v48, %v9310_v17 }
 0x9f1   : > { %6946 = vpow2.f32 %v3687_v30  ;;  %v3567_v1 = vsub.f32 %v9091_v49, %v3497_v35  ;;  %v3568_v36 = vsub.f32 %v9093_v56, %v3497_v35  ;;  %v3561_v27 = vsub.f32 %v9075_v15, %v3488_v22 }
 0x9f2   : > { %v9320_v55 = vpop.eup %6926  ;;  %6948 = vpow2.f32 %v3689_v53  ;;  %v3562_v21 = vsub.f32 %v9077_v6, %v3488_v22  ;;  %3802 = vadd.xlane.f32.xlu0 %v3801_v7  ;;  %v11206_v6 = vld [vmem:[#allocation43_spill] sm:$0xff]  ;;  %v11208_v22 = vld [vmem:[#allocation33_spill] sm:$0xff] }
 0x9f3   : > { %v9323_v9 = vpop.eup %6928  ;;  %6950 = vpow2.f32 %v3675_v41  ;;  %v3679_v51 = vmul.f32 1.442695, %v3567_v1  ;;  %v3681_v52 = vmul.f32 1.442695, %v3568_v36  ;;  %v3667_v29 = vmul.f32 1.442695, %v3561_v27 }
 0x9f4   : > { %6952 = vpow2.f32 %v3677_v13  ;;  %v3669_v47 = vmul.f32 1.442695, %v3562_v21  ;;  %v3491_v54 = vpop.xlane.xlu1 %3490  ;;  %v3482_v49 = vpop.xlane.xlu0 %3481  ;;  %v3804_v56 = vadd.f32 %v9323_v9, %v9320_v55  ;;  %v11209_v1 = vld [vmem:[#allocation29_spill] sm:$0xff]  ;;  %v11210_v27 = vld [vmem:[#allocation42_spill] sm:$0xff] }
 0x9f5   : > { %6954 = vpow2.f32 %v3679_v51  ;;  %v3563_v15 = vsub.f32 %v9081_v18, %v3491_v54  ;;  %v3564_v39 = vsub.f32 %v9083_v25, %v3491_v54  ;;  %v3557_v14 = vsub.f32 %v11206_v6, %v3482_v49 }
 0x9f6   : > { %v9330_v33 = vpop.eup %6930  ;;  %6956 = vpow2.f32 %v3681_v52  ;;  %v3558_v16 = vsub.f32 %v11207_v42, %v3482_v49  ;;  %3805 = vadd.xlane.f32.xlu1 %v3804_v56  ;;  %v11211_v52 = vld [vmem:[#allocation9_spill] sm:$0xff] }
 0x9f7   : > { %v9333_v0 = vpop.eup %6932  ;;  %6958 = vpow2.f32 %v3667_v29  ;;  %v3671_v59 = vmul.f32 1.442695, %v3563_v15  ;;  %v3673_v43 = vmul.f32 1.442695, %v3564_v39  ;;  %v3659_v30 = vmul.f32 1.442695, %v3557_v14 }
 0x9f8   : > { %v9335_v53 = vpop.eup %6934  ;;  %6960 = vpow2.f32 %v3669_v47  ;;  %v3661_v18 = vmul.f32 1.442695, %v3558_v16  ;;  %v3485_v41 = vpop.xlane.xlu1 %3484  ;;  %v3798_v13 = vadd.f32 %v9333_v0, %v9330_v33 }
 0x9f9   : > { %v3476_v25 = vpop.xlane.xlu0 %3475  ;;  %v9339_v35 = vpop.eup %6936  ;;  %6962 = vpow2.f32 %v3671_v59  ;;  %v3559_v7 = vsub.f32 %v11208_v22, %v3485_v41  ;;  %v3560_v36 = vsub.f32 %v11209_v1, %v3485_v41 }
 0x9fa   : > { %v3553_v21 = vsub.f32 %v11210_v27, %v3476_v25  ;;  %v9344_v51 = vpop.eup %6938  ;;  %6964 = vpow2.f32 %v3673_v43  ;;  %v3554_v29 = vsub.f32 %v11211_v52, %v3476_v25  ;;  %3799 = vadd.xlane.f32.xlu1 %v3798_v13  ;;  %v3792_v42 = vadd.f32 %v9339_v35, %v9335_v53  ;;  %v11212_v43 = vld [vmem:[#allocation21_spill] sm:$0xff]  ;;  %v11213_v27 = vld [vmem:[#allocation31_spill] sm:$0xff]  ;;  %v11214_v52 = vld [vmem:[#allocation6_spill] sm:$0xff] }
 0x9fb   : > { %v9347_v47 = vpop.eup %6940  ;;  %6966 = vpow2.f32 %v3659_v30  ;;  %v3663_v54 = vmul.f32 1.442695, %v3559_v7  ;;  %v3665_v49 = vmul.f32 1.442695, %v3560_v36 }
 0x9fc   : > { %v3651_v56 = vmul.f32 1.442695, %v3553_v21  ;;  %v9349_v15 = vpop.eup %6942  ;;  %6968 = vpow2.f32 %v3661_v18  ;;  %v3653_v39 = vmul.f32 1.442695, %v3554_v29  ;;  %v3479_v6 = vpop.xlane.xlu1 %3478  ;;  %v3795_v14 = vadd.f32 %v9347_v47, %v9344_v51 }
 0x9fd   : > { %v9355_v16 = vpop.eup %6944  ;;  %6970 = vpow2.f32 %v3663_v54  ;;  %v3555_v59 = vsub.f32 %v9051_v44, %v3479_v6  ;;  %v3556_v30 = vsub.f32 %v11212_v43, %v3479_v6 }
 0x9fe   : > { %v9359_v41 = vpop.eup %6946  ;;  %6972 = vpow2.f32 %v3665_v49  ;;  %3796 = vadd.xlane.f32.xlu0 %v3795_v14  ;;  %3793 = vadd.xlane.f32.xlu1 %v3792_v42  ;;  %v3786_v44 = vadd.f32 %v9355_v16, %v9349_v15 }
 0x9ff   : > { %v9361_v18 = vpop.eup %6948  ;;  %6974 = vpow2.f32 %v3651_v56  ;;  %v3655_v25 = vmul.f32 1.442695, %v3555_v59  ;;  %v3657_v13 = vmul.f32 1.442695, %v3556_v30 }
 0xa00   : > { %v9363_v22 = vpop.eup %6950  ;;  %6976 = vpow2.f32 %v3653_v39  ;;  %v3473_v7 = vpop.xlane.xlu1 %3472  ;;  %v3789_v1 = vadd.f32 %v9361_v18, %v9359_v41 }
 0xa01   : > { %v9369_v36 = vpop.eup %6952  ;;  %6978 = vpow2.f32 %v3655_v25  ;;  %v3551_v21 = vsub.f32 %v11213_v27, %v3473_v7  ;;  %v3552_v29 = vsub.f32 %v11214_v52, %v3473_v7 }
 0xa02   : > { %v9373_v54 = vpop.eup %6954  ;;  %6980 = vpow2.f32 %v3657_v13  ;;  %3790 = vadd.xlane.f32.xlu0 %v3789_v1  ;;  %3787 = vadd.xlane.f32.xlu1 %v3786_v44  ;;  %v3780_v42 = vadd.f32 %v9369_v36, %v9363_v22 }
 0xa03   : > { %v9375_v49 = vpop.eup %6956  ;;  %v3647_v56 = vmul.f32 1.442695, %v3551_v21  ;;  %v3649_v39 = vmul.f32 1.442695, %v3552_v29 }
 0xa04   : > { %v9377_v6 = vpop.eup %6958  ;;  %v3783_v14 = vadd.f32 %v9375_v49, %v9373_v54 }
 0xa05   : > { %v9383_v59 = vpop.eup %6960  ;;  %6982 = vpow2.f32 %v3647_v56 }
 0xa06   : > { %v9385_v43 = vpop.eup %6962  ;;  %6984 = vpow2.f32 %v3649_v39  ;;  %3784 = vadd.xlane.f32.xlu0 %v3783_v14  ;;  %3781 = vadd.xlane.f32.xlu1 %v3780_v42  ;;  %v3774_v7 = vadd.f32 %v9383_v59, %v9377_v6 }
 0xa07   : > { %v9387_v30 = vpop.eup %6964 }
 0xa08   : > { %v9389_v25 = vpop.eup %6966  ;;  %v3777_v13 = vadd.f32 %v9387_v30, %v9385_v43 }
 0xa09   : > { %11215 = vst [vmem:[#allocation24_spill] sm:$0xff] %v9389_v25  ;;  %v9395_v1 = vpop.eup %6968 }
 0xa0a   : > { %11216 = vst [vmem:[#allocation26_spill] sm:$0xff] %v9395_v1  ;;  %v9397_v44 = vpop.eup %6970  ;;  %3778 = vadd.xlane.f32.xlu0 %v3777_v13  ;;  %3775 = vadd.xlane.f32.xlu1 %v3774_v7  ;;  %v3768_v29 = vadd.f32 %v9395_v1, %v9389_v25 }
 0xa0b   : > { %11217 = vst [vmem:[#allocation5_spill] sm:$0xff] %v9397_v44  ;;  %v9399_v27 = vpop.eup %6972 }
 0xa0c   : > { %11218 = vst [vmem:[#allocation40_spill] sm:$0xff] %v9399_v27  ;;  %v9401_v21 = vpop.eup %6974  ;;  %v3771_v52 = vadd.f32 %v9399_v27, %v9397_v44 }
 0xa0d   : > { %11219 = vst [vmem:[#allocation36_spill] sm:$0xff] %v9401_v21  ;;  %v9407_v56 = vpop.eup %6976 }
 0xa0e   : > { %11220 = vst [vmem:[#allocation41_spill] sm:$0xff] %v9407_v56  ;;  %v9409_v39 = vpop.eup %6978  ;;  %3772 = vadd.xlane.f32.xlu0 %v3771_v52  ;;  %3769 = vadd.xlane.f32.xlu1 %v3768_v29  ;;  %v3762_v13 = vadd.f32 %v9407_v56, %v9401_v21 }
 0xa0f   : > { %11221 = vst [vmem:[#allocation46_spill] sm:$0xff] %v9409_v39  ;;  %v9411_v14 = vpop.eup %6980 }
 0xa10   : > { %11222 = vst [vmem:[#allocation37_spill] sm:$0xff] %v9411_v14  ;;  %v3765_v42 = vadd.f32 %v9411_v14, %v9409_v39 }
 0xa12   : > { %v9417_v7 = vpop.eup %6982  ;;  %3766 = vadd.xlane.f32.xlu0 %v3765_v42  ;;  %3763 = vadd.xlane.f32.xlu1 %v3762_v13 }
 0xa13   : > { %11223 = vst [vmem:[#allocation39_spill] sm:$0xff] %v9417_v7  ;;  %v9419_v44 = vpop.eup %6984 }
 0xa14   : > { %v3759_v25 = vadd.f32 %v9419_v44, %v9417_v7 }
 0xa16   : > { %3760 = vadd.xlane.f32.xlu0 %v3759_v25 }
 0xa3b   : > { %v3755_v52 = vpop.xlane.xlu1 %3754 }
 0xa3c   : > { %6986 = vrcp.f32 %v3755_v52 }
 0xa3f   : > { %v3758_v29 = vpop.xlane.xlu0 %3757 }
 0xa40   : > { %6988 = vrcp.f32 %v3758_v29 }
 0xa43   : > { %v3749_v1 = vpop.xlane.xlu1 %3748  ;;  %v3752_v27 = vpop.xlane.xlu0 %3751 }
 0xa44   : > { %6990 = vrcp.f32 %v3749_v1 }
 0xa45   : > { %6992 = vrcp.f32 %v3752_v27 }
 0xa47   : > { %v3743_v39 = vpop.xlane.xlu1 %3742  ;;  %v3746_v21 = vpop.xlane.xlu0 %3745 }
 0xa48   : > { %6994 = vrcp.f32 %v3743_v39 }
 0xa49   : > { %6996 = vrcp.f32 %v3746_v21  ;;  %v6987_v56 = vpop.eup %6986 }
 0xa4a   : > { %v3900_v1 = vmul.f32 %v6987_v56, %v9177_v40  ;;  %v3899_v21 = vmul.f32 %v6987_v56, %v9174_v34 }
 0xa4b   : > { %v3737_v42 = vpop.xlane.xlu1 %3736  ;;  %v3740_v13 = vpop.xlane.xlu0 %3739 }
 0xa4c   : > { %6998 = vrcp.f32 %v3737_v42 }
 0xa4d   : > { %v6989_v14 = vpop.eup %6988  ;;  %7000 = vrcp.f32 %v3740_v13 }
 0xa4e   : > { %v3902_v25 = vmul.f32 %v6989_v14, %v9189_v3  ;;  %v3901_v52 = vmul.f32 %v6989_v14, %v9187_v38 }
 0xa4f   : > { %v3731_v7 = vpop.xlane.xlu1 %3730  ;;  %v3734_v29 = vpop.xlane.xlu0 %3733 }
 0xa50   : > { %7002 = vrcp.f32 %v3731_v7  ;;  %3939 = vmatprep.subr.mxu0 %v3902_v25 }
 0xa51   : > { %v6991_v27 = vpop.eup %6990  ;;  %7004 = vrcp.f32 %v3734_v29  ;;  %3940 = vmatpush1.msra.mxu0 %v3901_v52 }
 0xa52   : > { %v6993_v39 = vpop.eup %6992  ;;  %3941 = vmatprep.subr.mxu0 %v3900_v1  ;;  %v3896_v40 = vmul.f32 %v6991_v27, %v9203_v63  ;;  %v3895_v25 = vmul.f32 %v6991_v27, %v9201_v60 }
 0xa53   : > { %v3725_v42 = vpop.xlane.xlu1 %3724  ;;  %3942 = vmatpush1.msra.mxu0 %v3899_v21  ;;  %v3728_v13 = vpop.xlane.xlu0 %3727  ;;  %v3898_v3 = vmul.f32 %v6993_v39, %v9193_v57  ;;  %v3897_v38 = vmul.f32 %v6993_v39, %v9185_v50 }
 0xa54   : > { %7006 = vrcp.f32 %v3725_v42 }
 0xa55   : > { %v6995_v14 = vpop.eup %6994  ;;  %7008 = vrcp.f32 %v3728_v13  ;;  %3943 = vmatprep.subr.mxu0 %v3898_v3 }
 0xa56   : > { %v6997_v7 = vpop.eup %6996  ;;  %3944 = vmatpush1.msra.mxu0 %v3897_v38  ;;  %v3892_v50 = vmul.f32 %v6995_v14, %v9217_v2  ;;  %v3891_v63 = vmul.f32 %v6995_v14, %v9215_v58  ;;  %v11225_v14 = vld [vmem:[#allocation32_spill] sm:$0xff] }
 0xa57   : > { %3945 = vmatprep.subr.mxu0 %v3896_v40  ;;  %v3722_v34 = vpop.xlane.xlu0 %3721  ;;  %v3894_v56 = vmul.f32 %v6997_v7, %v9208_v4  ;;  %v3893_v52 = vmul.f32 %v6997_v7, %v9199_v32 }
 0xa58   : > { %3946 = vmatpush1.msra.mxu0 %v3895_v25  ;;  %7010 = vrcp.f32 %v3722_v34 }
 0xa59   : > { %v6999_v57 = vpop.eup %6998  ;;  %3947 = vmatprep.subr.mxu0 %v3894_v56 }
 0xa5a   : > { %v7001_v29 = vpop.eup %7000  ;;  %3948 = vmatpush1.msra.mxu0 %v3893_v52  ;;  %v3888_v32 = vmul.f32 %v6999_v57, %v9231_v23  ;;  %v3887_v2 = vmul.f32 %v6999_v57, %v9229_v37 }
 0xa5b   : > { %3949 = vmatprep.subr.mxu0 %v3892_v50  ;;  %v3719_v1 = vpop.xlane.xlu0 %3718  ;;  %v3890_v60 = vmul.f32 %v7001_v29, %v9222_v10  ;;  %v3889_v27 = vmul.f32 %v7001_v29, %v9213_v20 }
 0xa5c   : > { %3950 = vmatpush1.msra.mxu0 %v3891_v63  ;;  %7012 = vrcp.f32 %v3719_v1 }
 0xa5d   : > { %v7003_v4 = vpop.eup %7002  ;;  %3951 = vmatprep.subr.mxu0 %v3890_v60 }
 0xa5e   : > { %v7005_v21 = vpop.eup %7004  ;;  %3952 = vmatpush1.msra.mxu0 %v3889_v27  ;;  %v3884_v20 = vmul.f32 %v7003_v4, %v9241_v11  ;;  %v3883_v13 = vmul.f32 %v7003_v4, %v9239_v61  ;;  %v11226_v11 = vld [vmem:[#allocation38_spill] sm:$0xff] }
 0xa5f   : > { %3953 = vmatprep.subr.mxu0 %v3888_v32  ;;  %v3886_v39 = vmul.f32 %v7005_v21, %v9233_v26  ;;  %v3885_v58 = vmul.f32 %v7005_v21, %v9227_v62  ;;  %v11224_v62 = vld [vmem:[#allocation10_spill] sm:$0xff] }
 0xa60   : > { %3954 = vmatpush1.msra.mxu0 %v3887_v2 }
 0xa61   : > { %v7007_v42 = vpop.eup %7006  ;;  %3955 = vmatprep.subr.mxu0 %v3886_v39 }
 0xa62   : > { %v7009_v10 = vpop.eup %7008  ;;  %3956 = vmatpush1.msra.mxu0 %v3885_v58  ;;  %v3880_v26 = vmul.f32 %v7007_v42, %v9253_v5  ;;  %v3879_v38 = vmul.f32 %v7007_v42, %v11224_v62  ;;  %v3713_v5 = vpop.xlane.xlu0 %3712  ;;  %v11228_v58 = vld [vmem:[#allocation7_spill] sm:$0xff] }
 0xa63   : > { %3957 = vmatprep.subr.mxu0 %v3884_v20  ;;  %v3882_v23 = vmul.f32 %v7009_v10, %v9249_v19  ;;  %v3881_v3 = vmul.f32 %v7009_v10, %v9243_v8  ;;  %v11227_v8 = vld [vmem:[#allocation28_spill] sm:$0xff]  ;;  %7014 = vrcp.f32 %v3713_v5 }
 0xa64   : > { %3958 = vmatpush1.msra.mxu0 %v3883_v13  ;;  %v11229_v13 = vld [vmem:[#allocation27_spill] sm:$0xff] }
 0xa65   : > { %v7011_v37 = vpop.eup %7010  ;;  %3959 = vmatprep.subr.mxu0 %v3882_v23  ;;  %v11230_v23 = vld [vmem:[#allocation8_spill] sm:$0xff] }
 0xa66   : > { %3960 = vmatpush1.msra.mxu0 %v3881_v3  ;;  %v3878_v40 = vmul.f32 %v7011_v37, %v11225_v14  ;;  %v3877_v7 = vmul.f32 %v7011_v37, %v11226_v11 }
 0xa67   : > { %3961 = vmatprep.subr.mxu0 %v3880_v26 }
 0xa68   : > { %3962 = vmatpush1.msra.mxu0 %v3879_v38 }
 0xa69   : > { %v7013_v61 = vpop.eup %7012  ;;  %3963 = vmatprep.subr.mxu0 %v3878_v40 }
 0xa6a   : > { %3964 = vmatpush1.msra.mxu0 %v3877_v7  ;;  %v3876_v19 = vmul.f32 %v7013_v61, %v9267_v45  ;;  %v3875_v25 = vmul.f32 %v7013_v61, %v11227_v8 }
 0xa6c   : > { %3965 = vmatprep.subr.mxu0 %v3876_v19 }
 0xa6d   : > { %3966 = vmatpush1.msra.mxu0 %v3875_v25 }
 0xa70   : > { %v7015_v63 = vpop.eup %7014 }
 0xa71   : > { %v3872_v10 = vmul.f32 %v7015_v63, %v9275_v46 }
 0xa72   : > { %v903_v34 = vpop.xlane.xlu1 %902 }
 0xa73   : > { %v910_v56 = vmul.f32 0.00390625, %v903_v34 }
 0xa75   : > { %v913_v52 = vadd.f32 1e-05, %v910_v56 }
 0xa76   : > { %v3716_v57 = vpop.xlane.xlu1 %3715 }
 0xa77   : > { %7016 = vrsqrt.f32 %v913_v52 }
 0xa78   : > { %7018 = vrcp.f32 %v3716_v57 }
 0xa7b   : > { %v3803_v50 = vpop.xlane.xlu0 %3802 }
 0xa7c   : > { %7020 = vrcp.f32 %v3803_v50 }
 0xa7f   : > { %v3806_v29 = vpop.xlane.xlu1 %3805 }
 0xa80   : > { %7022 = vrcp.f32 %v3806_v29 }
 0xa83   : > { %v3800_v1 = vpop.xlane.xlu1 %3799 }
 0xa84   : > { %v7017_v60 = vpop.eup %7016  ;;  %7024 = vrcp.f32 %v3800_v1 }
 0xa85   : > { %v7019_v45 = vpop.eup %7018  ;;  %v920_v27 = vmul.f32 %v7017_v60, %v9287_v31  ;;  %v919_v4 = vmul.f32 %v7017_v60, %v9284_v24  ;;  %v3871_v31 = vmul.f32 %v7015_v63, %v11229_v13  ;;  %v11234_v13 = vld [vmem:[#allocation24_spill] sm:$0xff] }
 0xa86   : > { %v3874_v32 = vmul.f32 %v7019_v45, %v9299_v28  ;;  %v3873_v21 = vmul.f32 %v7019_v45, %v9294_v12 }
 0xa87   : > { %v3794_v2 = vpop.xlane.xlu1 %3793  ;;  %v3797_v39 = vpop.xlane.xlu0 %3796  ;;  %v926_v42 = vmul.f32 %v920_v27, %v11228_v58  ;;  %v925_v20 = vmul.f32 %v919_v4, %v11228_v58 }
 0xa88   : > { %7026 = vrcp.f32 %v3794_v2  ;;  %3967 = vmatprep.subr.mxu0 %v3874_v32 }
 0xa89   : > { %7028 = vrcp.f32 %v3797_v39  ;;  %3968 = vmatpush1.msra.mxu0 %v3873_v21  ;;  %v932_v24 = vadd.f32 %v926_v42, %v11230_v23  ;;  %v931_v28 = vadd.f32 %v925_v20, %v11230_v23  ;;  %v7021_v62 = vpop.eup %7020  ;;  %v11232_v42 = vld [vmem:[#allocation5_spill] sm:$0xff] }
 0xa8a   : > { %3969 = vmatprep.subr.mxu0 %v3872_v10  ;;  %v3932_v7 = vmul.f32 %v7021_v62, %v9313_v48  ;;  %v3931_v19 = vmul.f32 %v7021_v62, %v9310_v17 }
 0xa8b   : > { %v3788_v12 = vpop.xlane.xlu1 %3787  ;;  %3970 = vmatpush1.msra.mxu0 %v3871_v31  ;;  %v3791_v3 = vpop.xlane.xlu0 %3790  ;;  %v938_v37 = vmax.f32 %v932_v24, 0.0  ;;  %v937_v26 = vmax.f32 %v931_v28, 0.0  ;;  %v11236_v24 = vld [vmem:[#allocation46_spill] sm:$0xff] }
 0xa8c   : > { %7030 = vrcp.f32 %v3788_v12  ;;  %v11237_v12 = vld [vmem:[#allocation41_spill] sm:$0xff] }
 0xa8d   : > { %v7023_v38 = vpop.eup %7022  ;;  %7032 = vrcp.f32 %v3791_v3  ;;  %4059 = vxpose.xlu0.b32.start.end [1/1] (short) %v938_v37, 128  ;;  %4027 = vxpose.xlu1.b32.start.end [1/1] (short) %v937_v26, 128  ;;  %v11238_v37 = vld [vmem:[#allocation36_spill] sm:$0xff] }
 0xa8e   : > { %v3934_v46 = vmul.f32 %v7023_v38, %v9323_v9  ;;  %v3933_v14 = vmul.f32 %v7023_v38, %v9320_v55  ;;  %v11239_v38 = vld [vmem:[#allocation39_spill] sm:$0xff] }
 0xa8f   : > { %v3782_v40 = vpop.xlane.xlu1 %3781  ;;  %v3785_v11 = vpop.xlane.xlu0 %3784 }
 0xa90   : > { %7034 = vrcp.f32 %v3782_v40  ;;  %3971 = vmatprep.subr.mxu0 %v3934_v46  ;;  %v11240_v40 = vld [vmem:[#allocation13_spill] sm:$0xff] }
 0xa91   : > { %v7025_v61 = vpop.eup %7024  ;;  %7036 = vrcp.f32 %v3785_v11  ;;  %3972 = vmatpush2.msra.mxu0 %v3933_v14  ;;  %v3935_v14 = vld [vmem:[#allocation3] sm:$0xff]  ;;  %v11241_v11 = vld [vmem:[#allocation14_spill] sm:$0xff] }
 0xa92   : > { %3973 = vmatprep.subr.mxu0 %v3932_v7  ;;  %v3930_v8 = vmul.f32 %v7025_v61, %v9333_v0  ;;  %v3929_v25 = vmul.f32 %v7025_v61, %v9330_v33  ;;  %v11242_v7 = vmov 0.0  }
 0xa93   : > { %v3776_v34 = vpop.xlane.xlu1 %3775  ;;  %3974 = vmatpush2.msra.mxu0 %v3931_v19  ;;  %v3779_v9 = vpop.xlane.xlu0 %3778 }
 0xa94   : > { %7038 = vrcp.f32 %v3776_v34  ;;  %3975 = vmatprep.subr.mxu0 %v3930_v8 }
 0xa95   : > { %v7027_v55 = vpop.eup %7026  ;;  %7040 = vrcp.f32 %v3779_v9  ;;  %3976 = vmatpush2.msra.mxu0 %v3929_v25 }
 0xa96   : > { %v7029_v5 = vpop.eup %7028  ;;  %v3926_v33 = vmul.f32 %v7027_v55, %v9339_v35  ;;  %v3925_v50 = vmul.f32 %v7027_v55, %v9335_v53 }
 0xa97   : > { %v3770_v48 = vpop.xlane.xlu1 %3769  ;;  %v3773_v56 = vpop.xlane.xlu0 %3772  ;;  %v3928_v52 = vmul.f32 %v7029_v5, %v9347_v47  ;;  %v3927_v17 = vmul.f32 %v7029_v5, %v9344_v51 }
 0xa98   : > { %7042 = vrcp.f32 %v3770_v48 }
 0xa99   : > { %v7031_v57 = vpop.eup %7030  ;;  %7044 = vrcp.f32 %v3773_v56  ;;  %3977 = vmatprep.subr.mxu0 %v3928_v52 }
 0xa9a   : > { %v7033_v0 = vpop.eup %7032  ;;  %3978 = vmatpush2.msra.mxu0 %v3927_v17  ;;  %v3922_v47 = vmul.f32 %v7031_v57, %v9355_v16  ;;  %v3921_v35 = vmul.f32 %v7031_v57, %v9349_v15 }
 0xa9b   : > { %3979 = vmatprep.subr.mxu0 %v3926_v33  ;;  %v3764_v29 = vpop.xlane.xlu1 %3763  ;;  %v3767_v63 = vpop.xlane.xlu0 %3766  ;;  %v3924_v1 = vmul.f32 %v7033_v0, %v9361_v18  ;;  %v3923_v60 = vmul.f32 %v7033_v0, %v9359_v41 }
 0xa9c   : > { %7046 = vrcp.f32 %v3764_v29  ;;  %3980 = vmatpush2.msra.mxu0 %v3925_v50 }
 0xa9d   : > { %v7035_v51 = vpop.eup %7034  ;;  %7048 = vrcp.f32 %v3767_v63  ;;  %3981 = vmatprep.subr.mxu0 %v3924_v1 }
 0xa9e   : > { %v7037_v45 = vpop.eup %7036  ;;  %3982 = vmatpush2.msra.mxu0 %v3923_v60  ;;  %v3918_v18 = vmul.f32 %v7035_v51, %v9369_v36  ;;  %v3917_v16 = vmul.f32 %v7035_v51, %v9363_v22  ;;  %v11231_v36 = vld [vmem:[#allocation40_spill] sm:$0xff] }
 0xa9f   : > { %3983 = vmatprep.subr.mxu0 %v3922_v47  ;;  %v3761_v53 = vpop.xlane.xlu0 %3760  ;;  %v3920_v27 = vmul.f32 %v7037_v45, %v9375_v49  ;;  %v3919_v4 = vmul.f32 %v7037_v45, %v9373_v54 }
 0xaa0   : > { %3984 = vmatpush2.msra.mxu0 %v3921_v35  ;;  %7050 = vrcp.f32 %v3761_v53 }
 0xaa1   : > { %v7039_v41 = vpop.eup %7038  ;;  %3985 = vmatprep.subr.mxu0 %v3920_v27 }
 0xaa2   : > { %v7041_v32 = vpop.eup %7040  ;;  %3986 = vmatpush2.msra.mxu0 %v3919_v4  ;;  %v3914_v54 = vmul.f32 %v7039_v41, %v9383_v59  ;;  %v3913_v39 = vmul.f32 %v7039_v41, %v9377_v6  ;;  %v11235_v59 = vld [vmem:[#allocation37_spill] sm:$0xff] }
 0xaa3   : > { %3987 = vmatprep.subr.mxu0 %v3918_v18  ;;  %v3916_v21 = vmul.f32 %v7041_v32, %v9387_v30  ;;  %v3915_v15 = vmul.f32 %v7041_v32, %v9385_v43  ;;  %v11233_v30 = vld [vmem:[#allocation26_spill] sm:$0xff]  ;;  %v9550_v32 = vld [vmem:[#allocation4] ss:$8 sm:$0x3] }
 0xaa4   : > { %3988 = vmatpush2.msra.mxu0 %v3917_v16  ;;  %11243 = vst [vmem:[#allocation45_spill] sm:$0xff] %v9550_v32 }
 0xaa5   : > { %v7043_v2 = vpop.eup %7042  ;;  %3989 = vmatprep.subr.mxu0 %v3916_v21 }
 0xaa6   : > { %v7045_v49 = vpop.eup %7044  ;;  %3990 = vmatpush2.msra.mxu0 %v3915_v15  ;;  %v3910_v10 = vmul.f32 %v7043_v2, %v11233_v30  ;;  %v3909_v31 = vmul.f32 %v7043_v2, %v11234_v13 }
 0xaa7   : > { %3991 = vmatprep.subr.mxu0 %v3914_v54  ;;  %v3912_v58 = vmul.f32 %v7045_v49, %v11231_v36  ;;  %v3911_v20 = vmul.f32 %v7045_v49, %v11232_v42  ;;  %v11247_v42 = vld [vmem:[#allocation19_spill] sm:$0xff] }
 0xaa8   : > { %3992 = vmatpush2.msra.mxu0 %v3913_v39 }
 0xaa9   : > { %v7047_v22 = vpop.eup %7046  ;;  %3993 = vmatprep.subr.mxu0 %v3912_v58 }
 0xaaa   : > { %v7049_v43 = vpop.eup %7048  ;;  %3994 = vmatpush2.msra.mxu0 %v3911_v20  ;;  %v3906_v3 = vmul.f32 %v7047_v22, %v11237_v12  ;;  %v3905_v26 = vmul.f32 %v7047_v22, %v11238_v37 }
 0xaab   : > { %3995 = vmatprep.subr.mxu0 %v3910_v10  ;;  %v3908_v23 = vmul.f32 %v7049_v43, %v11235_v59  ;;  %v3907_v28 = vmul.f32 %v7049_v43, %v11236_v24 }
 0xaac   : > { %3996 = vmatpush2.msra.mxu0 %v3909_v31 }
 0xaad   : > { %v7051_v6 = vpop.eup %7050  ;;  %3997 = vmatprep.subr.mxu0 %v3908_v23 }
 0xaae   : > { %3998 = vmatpush2.msra.mxu0 %v3907_v28  ;;  %v3904_v62 = vmul.f32 %v7051_v6, %v9419_v44  ;;  %v3903_v46 = vmul.f32 %v7051_v6, %v11239_v38 }
 0xaaf   : > { %3999 = vmatprep.subr.mxu0 %v3906_v3 }
 0xab0   : > { %4000 = vmatpush2.msra.mxu0 %v3905_v26 }
 0xab1   : > { %4001 = vmatprep.subr.mxu0 %v3904_v62 }
 0xab2   : > { %4002 = vmatpush2.msra.mxu0 %v3903_v46 }
 0xab3   : > { %4004 = vmatmul.mubr.f32.vlgmr.msra.gmra.mxu0 %v3935_v14  ;;  %4217 = vmatprep.subr.mxu0 %v11240_v40 }
 0xab4   : > { %4218 = vmatpush1.msra.mxu0 %v11241_v11  ;;  %4251 = vmatprep.mubr.f32.mxu0 %v11242_v7 }
 0xb09   : > { %v4043_v61 = vpop.trf.xlu1  ;;  %v4075_v48 = vpop.trf.xlu0 }
 0xb0a   : > { %6370 = vmatmul.mubr.msk.f32.vlgmr.msra.gmra.mxu0 %vm1031_vm1, %v4043_v61 }
 0xb0b   : > { %4257 = vmatprep.mubr.f32.mxu0 %v11242_v7 }
 0xb0d   : > { %v4044_v44 = vpop.trf.xlu1  ;;  %v4076_v52 = vpop.trf.xlu0 }
 0xb0e   : > { %6371 = vmatmul.mubr.msk.f32.gmra.mxu0 %vm1031_vm1, %v4044_v44 }
 0xb0f   : > { %4263 = vmatprep.mubr.f32.mxu0 %v11242_v7 }
 0xb11   : > { %v4045_v19 = vpop.trf.xlu1  ;;  %v4077_v33 = vpop.trf.xlu0 }
 0xb12   : > { %6372 = vmatmul.mubr.msk.f32.gmra.mxu0 %vm1031_vm1, %v4045_v19 }
 0xb13   : > { %4269 = vmatprep.mubr.f32.mxu0 %v11242_v7 }
 0xb15   : > { %v4046_v8 = vpop.trf.xlu1  ;;  %v4078_v50 = vpop.trf.xlu0 }
 0xb16   : > { %6373 = vmatmul.mubr.msk.f32.gmra.mxu0 %vm1031_vm1, %v4046_v8 }
 0xb17   : > { %4275 = vmatprep.mubr.f32.mxu0 %v11242_v7 }
 0xb19   : > { %v4047_v25 = vpop.trf.xlu1  ;;  %v4079_v1 = vpop.trf.xlu0 }
 0xb1a   : > { %6374 = vmatmul.mubr.msk.f32.gmra.mxu0 %vm1031_vm1, %v4047_v25 }
 0xb1b   : > { %4281 = vmatprep.mubr.f32.mxu0 %v11242_v7 }
 0xb1d   : > { %v4048_v34 = vpop.trf.xlu1  ;;  %v4080_v51 = vpop.trf.xlu0 }
 0xb1e   : > { %6375 = vmatmul.mubr.msk.f32.gmra.mxu0 %vm1031_vm1, %v4048_v34 }
 0xb1f   : > { %4287 = vmatprep.mubr.f32.mxu0 %v11242_v7 }
 0xb21   : > { %v4049_v9 = vpop.trf.xlu1  ;;  %v4081_v47 = vpop.trf.xlu0 }
 0xb22   : > { %6376 = vmatmul.mubr.msk.f32.gmra.mxu0 %vm1031_vm1, %v4049_v9 }
 0xb23   : > { %4293 = vmatprep.mubr.f32.mxu0 %v11242_v7 }
 0xb25   : > { %v4050_v55 = vpop.trf.xlu1  ;;  %v4082_v45 = vpop.trf.xlu0 }
 0xb26   : > { %6377 = vmatmul.mubr.msk.f32.gmra.mxu0 %vm1031_vm1, %v4050_v55 }
 0xb27   : > { %4299 = vmatprep.mubr.f32.mxu0 %v11242_v7 }
 0xb29   : > { %v4051_v5 = vpop.trf.xlu1  ;;  %v4083_v35 = vpop.trf.xlu0 }
 0xb2a   : > { %6378 = vmatmul.mubr.msk.f32.gmra.mxu0 %vm1031_vm1, %v4051_v5 }
 0xb2b   : > { %4305 = vmatprep.mubr.f32.mxu0 %v11242_v7 }
 0xb2d   : > { %v4052_v56 = vpop.trf.xlu1  ;;  %v4084_v53 = vpop.trf.xlu0 }
 0xb2e   : > { %6379 = vmatmul.mubr.msk.f32.gmra.mxu0 %vm1031_vm1, %v4052_v56 }
 0xb2f   : > { %4311 = vmatprep.mubr.f32.mxu0 %v11242_v7 }
 0xb31   : > { %v4053_v17 = vpop.trf.xlu1  ;;  %v4085_v27 = vpop.trf.xlu0 }
 0xb32   : > { %6380 = vmatmul.mubr.msk.f32.gmra.mxu0 %vm1031_vm1, %v4053_v17 }
 0xb33   : > { %4317 = vmatprep.mubr.f32.mxu0 %v11242_v7 }
 0xb35   : > { %v4054_v57 = vpop.trf.xlu1  ;;  %v4086_v4 = vpop.trf.xlu0 }
 0xb36   : > { %6381 = vmatmul.mubr.msk.f32.gmra.mxu0 %vm1031_vm1, %v4054_v57 }
 0xb37   : > { %4323 = vmatprep.mubr.f32.mxu0 %v11242_v7 }
 0xb39   : > { %v4055_v0 = vpop.trf.xlu1  ;;  %v4087_v41 = vpop.trf.xlu0 }
 0xb3a   : > { %6382 = vmatmul.mubr.msk.f32.gmra.mxu0 %vm1031_vm1, %v4055_v0 }
 0xb3b   : > { %4329 = vmatprep.mubr.f32.mxu0 %v11242_v7 }
 0xb3d   : > { %v4056_v29 = vpop.trf.xlu1  ;;  %v4088_v21 = vpop.trf.xlu0 }
 0xb3e   : > { %6383 = vmatmul.mubr.msk.f32.gmra.mxu0 %vm1031_vm1, %v4056_v29 }
 0xb3f   : > { %4335 = vmatprep.mubr.f32.mxu0 %v11242_v7 }
 0xb41   : > { %v4057_v63 = vpop.trf.xlu1  ;;  %v4089_v15 = vpop.trf.xlu0 }
 0xb42   : > { %6384 = vmatmul.mubr.msk.f32.gmra.mxu0 %vm1031_vm1, %v4057_v63 }
 0xb43   : > { %4341 = vmatprep.mubr.f32.mxu0 %v11242_v7 }
 0xb45   : > { %v4058_v60 = vpop.trf.xlu1  ;;  %v4090_v39 = vpop.trf.xlu0 }
 0xb46   : > { %6385 = vmatmul.mubr.msk.f32.gmra.mxu0 %vm1031_vm1, %v4058_v60 }
 0xb47   : > { %4347 = vmatprep.mubr.f32.mxu0 %v11242_v7 }
 0xb4a   : > { %6386 = vmatmul.mubr.msk.f32.gmra.mxu0 %vm1031_vm1, %v4075_v48 }
 0xb4b   : > { %4353 = vmatprep.mubr.f32.mxu0 %v11242_v7 }
 0xb4e   : > { %6387 = vmatmul.mubr.msk.f32.gmra.mxu0 %vm1031_vm1, %v4076_v52 }
 0xb4f   : > { %4359 = vmatprep.mubr.f32.mxu0 %v11242_v7 }
 0xb52   : > { %6388 = vmatmul.mubr.msk.f32.gmra.mxu0 %vm1031_vm1, %v4077_v33 }
 0xb53   : > { %4365 = vmatprep.mubr.f32.mxu0 %v11242_v7 }
 0xb56   : > { %6389 = vmatmul.mubr.msk.f32.gmra.mxu0 %vm1031_vm1, %v4078_v50 }
 0xb57   : > { %4371 = vmatprep.mubr.f32.mxu0 %v11242_v7 }
 0xb5a   : > { %6390 = vmatmul.mubr.msk.f32.gmra.mxu0 %vm1031_vm1, %v4079_v1 }
 0xb5b   : > { %4377 = vmatprep.mubr.f32.mxu0 %v11242_v7 }
 0xb5e   : > { %6391 = vmatmul.mubr.msk.f32.gmra.mxu0 %vm1031_vm1, %v4080_v51 }
 0xb5f   : > { %4383 = vmatprep.mubr.f32.mxu0 %v11242_v7 }
 0xb62   : > { %6392 = vmatmul.mubr.msk.f32.gmra.mxu0 %vm1031_vm1, %v4081_v47 }
 0xb63   : > { %4389 = vmatprep.mubr.f32.mxu0 %v11242_v7 }
 0xb66   : > { %6393 = vmatmul.mubr.msk.f32.gmra.mxu0 %vm1031_vm1, %v4082_v45 }
 0xb67   : > { %4395 = vmatprep.mubr.f32.mxu0 %v11242_v7 }
 0xb6a   : > { %6394 = vmatmul.mubr.msk.f32.gmra.mxu0 %vm1031_vm1, %v4083_v35 }
 0xb6b   : > { %4401 = vmatprep.mubr.f32.mxu0 %v11242_v7 }
 0xb6e   : > { %6395 = vmatmul.mubr.msk.f32.gmra.mxu0 %vm1031_vm1, %v4084_v53 }
 0xb6f   : > { %4407 = vmatprep.mubr.f32.mxu0 %v11242_v7 }
 0xb72   : > { %6396 = vmatmul.mubr.msk.f32.gmra.mxu0 %vm1031_vm1, %v4085_v27 }
 0xb73   : > { %v4005_v18 = vpop.f32.mrf.mxu0  ;;  %4413 = vmatprep.mubr.f32.mxu0 %v11242_v7 }
 0xb74   : > { %4012 = vst [vmem:[#allocation4] sm:$0xff] %v4005_v18 }
 0xb75   : > { %v4007_v16 = vpop.f32.mrf.mxu0 }
 0xb76   : > { %6397 = vmatmul.mubr.msk.f32.gmra.mxu0 %vm1031_vm1, %v4086_v4  ;;  %4013 = vst [vmem:[#allocation4 + $0x8] sm:$0xff] %v4007_v16 }
 0xb77   : > { %4419 = vmatprep.mubr.f32.mxu0 %v11242_v7 }
 0xb7a   : > { %6398 = vmatmul.mubr.msk.f32.gmra.mxu0 %vm1031_vm1, %v4087_v41 }
 0xb7b   : > { %4425 = vmatprep.mubr.f32.mxu0 %v11242_v7 }
 0xb7d   : > { %v4014_v2 = vld [vmem:[#allocation4] ss:$8 sm:$0x3]  ;;  %v9557_v54 = vld [vmem:[#allocation4 + $0x1] ss:$8 sm:$0x3] }
 0xb7e   : > { %6399 = vmatmul.mubr.msk.f32.gmra.mxu0 %vm1031_vm1, %v4088_v21  ;;  %11244 = vst [vmem:[#allocation43_spill] sm:$0xff] %v9557_v54  ;;  %4019 = vst.msk [vmem:[#allocation3 + $0x1] ss:$8 sm:$0x3] %vm8177_vm2, %v4014_v2 }
 0xb7f   : > { %4431 = vmatprep.mubr.f32.mxu0 %v11242_v7  ;;  %4017 = vst.msk [vmem:[#allocation3] ss:$8 sm:$0x3] %vm8177_vm2, %v9557_v54 }
 0xb82   : > { %6400 = vmatmul.mubr.msk.f32.gmra.mxu0 %vm1031_vm1, %v4089_v15 }
 0xb83   : > { %4437 = vmatprep.mubr.f32.mxu0 %v11242_v7 }
 0xb86   : > { %6401 = vmatmul.mubr.msk.f32.gmra.mxu0 %vm1031_vm1, %v4090_v39  ;;  %v4957_v36 = vld [vmem:[#allocation3 + $0x8] sm:$0xff]  ;;  %v9568_v58 = vld [vmem:[#allocation3] sm:$0xff] }
 0xb87   : > { %11246 = vst [vmem:[#allocation44_spill] sm:$0xff] %v9568_v58  ;;  %5024 = vmatprep.mubr.f32.mxu1 %v4957_v36  ;;  %5039 = vst.msk [vmem:[#allocation3 + $0x1] ss:$8 sm:$0x3] %vm8177_vm2, %v11247_v42 }
 0xbca   : > { %v9573_v20 = vpop.f32.mrf.mxu0 }
 0xbcb   : > { %11248 = vst [vmem:[#allocation33_spill] sm:$0xff] %v9573_v20 }
 0xbcc   : > { %v9575_v22 = vpop.f32.mrf.mxu0 }
 0xbcd   : > { %11249 = vst [vmem:[#allocation29_spill] sm:$0xff] %v9575_v22 }
 0xbce   : > { %v9577_v30 = vpop.f32.mrf.mxu0 }
 0xbd0   : > { %v9579_v10 = vpop.f32.mrf.mxu0 }
 0xbd1   : > { %11250 = vst [vmem:[#allocation42_spill] sm:$0xff] %v9579_v10  ;;  %v4447_v36 = vmax.f32 %v9577_v30, %v9579_v10 }
 0xbd2   : > { %v9581_v43 = vpop.f32.mrf.mxu0 }
 0xbd3   : > { %11251 = vst [vmem:[#allocation9_spill] sm:$0xff] %v9581_v43 }
 0xbd4   : > { %v9583_v13 = vpop.f32.mrf.mxu0 }
 0xbd5   : > { %11252 = vst [vmem:[#allocation21_spill] sm:$0xff] %v9583_v13  ;;  %v4450_v42 = vmax.f32 %v9581_v43, %v9583_v13 }
 0xbd6   : > { %v9585_v31 = vpop.f32.mrf.mxu0 }
 0xbd8   : > { %v9587_v59 = vpop.f32.mrf.mxu0 }
 0xbd9   : > { %v4453_v21 = vmax.f32 %v9585_v31, %v9587_v59 }
 0xbda   : > { %v9589_v23 = vpop.f32.mrf.mxu0 }
 0xbdc   : > { %v9591_v24 = vpop.f32.mrf.mxu0 }
 0xbdd   : > { %v4456_v15 = vmax.f32 %v9589_v23, %v9591_v24 }
 0xbde   : > { %v9593_v28 = vpop.f32.mrf.mxu0 }
 0xbe0   : > { %v9595_v6 = vpop.f32.mrf.mxu0 }
 0xbe1   : > { %v4459_v4 = vmax.f32 %v9593_v28, %v9595_v6 }
 0xbe2   : > { %v9597_v12 = vpop.f32.mrf.mxu0 }
 0xbe4   : > { %v9599_v3 = vpop.f32.mrf.mxu0 }
 0xbe5   : > { %v4462_v41 = vmax.f32 %v9597_v12, %v9599_v3 }
 0xbe6   : > { %v9601_v37 = vpop.f32.mrf.mxu0 }
 0xbe8   : > { %v9603_v26 = vpop.f32.mrf.mxu0 }
 0xbe9   : > { %v4465_v45 = vmax.f32 %v9601_v37, %v9603_v26 }
 0xbea   : > { %v9605_v62 = vpop.f32.mrf.mxu0 }
 0xbec   : > { %v9607_v38 = vpop.f32.mrf.mxu0 }
 0xbed   : > { %v4468_v35 = vmax.f32 %v9605_v62, %v9607_v38 }
 0xbee   : > { %v9609_v46 = vpop.f32.mrf.mxu0 }
 0xbf0   : > { %v9611_v14 = vpop.f32.mrf.mxu0 }
 0xbf1   : > { %v4471_v1 = vmax.f32 %v9609_v46, %v9611_v14 }
 0xbf2   : > { %v9613_v40 = vpop.f32.mrf.mxu0 }
 0xbf4   : > { %v9615_v11 = vpop.f32.mrf.mxu0 }
 0xbf5   : > { %v4474_v60 = vmax.f32 %v9613_v40, %v9615_v11 }
 0xbf6   : > { %v9617_v61 = vpop.f32.mrf.mxu0 }
 0xbf8   : > { %v9619_v44 = vpop.f32.mrf.mxu0 }
 0xbf9   : > { %v4477_v0 = vmax.f32 %v9617_v61, %v9619_v44 }
 0xbfa   : > { %v9621_v19 = vpop.f32.mrf.mxu0 }
 0xbfc   : > { %v9623_v8 = vpop.f32.mrf.mxu0 }
 0xbfd   : > { %v4480_v50 = vmax.f32 %v9621_v19, %v9623_v8 }
 0xbfe   : > { %v9625_v25 = vpop.f32.mrf.mxu0 }
 0xc00   : > { %v9627_v34 = vpop.f32.mrf.mxu0 }
 0xc01   : > { %v4483_v52 = vmax.f32 %v9625_v25, %v9627_v34 }
 0xc02   : > { %v9629_v9 = vpop.f32.mrf.mxu0 }
 0xc04   : > { %v9631_v55 = vpop.f32.mrf.mxu0 }
 0xc05   : > { %v4486_v5 = vmax.f32 %v9629_v9, %v9631_v55 }
 0xc06   : > { %v9635_v48 = vpop.f32.mrf.mxu0 }
 0xc07   : > { %4487 = vmax.xlane.f32.xlu1 %v4486_v5 }
 0xc08   : > { %v9637_v56 = vpop.f32.mrf.mxu0 }
 0xc09   : > { %v4489_v17 = vmax.f32 %v9635_v48, %v9637_v56 }
 0xc0a   : > { %v9643_v57 = vpop.f32.mrf.mxu0 }
 0xc0b   : > { %11253 = vst [vmem:[#allocation31_spill] sm:$0xff] %v9643_v57  ;;  %4484 = vmax.xlane.f32.xlu1 %v4483_v52  ;;  %4490 = vmax.xlane.f32.xlu0 %v4489_v17  ;;  %v4444_v17 = vmax.f32 %v9573_v20, %v9575_v22 }
 0xc0c   : > { %v9645_v33 = vpop.f32.mrf.mxu0 }
 0xc0d   : > { %11254 = vst [vmem:[#allocation6_spill] sm:$0xff] %v9645_v33 }
 0xc0e   : > { %v9651_v29 = vpop.f32.mrf.mxu0 }
 0xc0f   : > { %11255 = vst [vmem:[#allocation10_spill] sm:$0xff] %v9651_v29  ;;  %4478 = vmax.xlane.f32.xlu1 %v4477_v0  ;;  %4481 = vmax.xlane.f32.xlu0 %v4480_v50 }
 0xc10   : > { %v9653_v63 = vpop.f32.mrf.mxu0 }
 0xc11   : > { %11256 = vst [vmem:[#allocation32_spill] sm:$0xff] %v9653_v63 }
 0xc12   : > { %v9659_v51 = vpop.f32.mrf.mxu0 }
 0xc13   : > { %11257 = vst [vmem:[#allocation38_spill] sm:$0xff] %v9659_v51  ;;  %4472 = vmax.xlane.f32.xlu1 %v4471_v1  ;;  %4475 = vmax.xlane.f32.xlu0 %v4474_v60 }
 0xc14   : > { %v9661_v47 = vpop.f32.mrf.mxu0 }
 0xc15   : > { %11258 = vst [vmem:[#allocation28_spill] sm:$0xff] %v9661_v47 }
 0xc16   : > { %v9667_v53 = vpop.f32.mrf.mxu0 }
 0xc17   : > { %4466 = vmax.xlane.f32.xlu1 %v4465_v45  ;;  %4469 = vmax.xlane.f32.xlu0 %v4468_v35 }
 0xc18   : > { %v9669_v27 = vpop.f32.mrf.mxu0 }
 0xc1a   : > { %v9675_v18 = vpop.f32.mrf.mxu0 }
 0xc1b   : > { %4460 = vmax.xlane.f32.xlu1 %v4459_v4  ;;  %4463 = vmax.xlane.f32.xlu0 %v4462_v41 }
 0xc1c   : > { %v9677_v16 = vpop.f32.mrf.mxu0 }
 0xc1d   : > { %11259 = vst [vmem:[#allocation7_spill] sm:$0xff] %v9677_v16 }
 0xc1e   : > { %v9683_v2 = vpop.f32.mrf.mxu0 }
 0xc1f   : > { %11260 = vst [vmem:[#allocation27_spill] sm:$0xff] %v9683_v2  ;;  %4454 = vmax.xlane.f32.xlu1 %v4453_v21  ;;  %4457 = vmax.xlane.f32.xlu0 %v4456_v15 }
 0xc20   : > { %v9685_v39 = vpop.f32.mrf.mxu0 }
 0xc21   : > { %11261 = vst [vmem:[#allocation8_spill] sm:$0xff] %v9685_v39 }
 0xc22   : > { %v9691_v5 = vpop.f32.mrf.mxu0 }
 0xc23   : > { %4448 = vmax.xlane.f32.xlu1 %v4447_v36  ;;  %4451 = vmax.xlane.f32.xlu0 %v4450_v42 }
 0xc24   : > { %v9693_v52 = vpop.f32.mrf.mxu0 }
 0xc26   : > { %v9697_v0 = vpop.f32.mrf.mxu0 }
 0xc27   : > { %4445 = vmax.xlane.f32.xlu0 %v4444_v17 }
 0xc28   : > { %v9699_v50 = vpop.f32.mrf.mxu0 }
 0xc2a   : > { %v9701_v1 = vpop.f32.mrf.mxu0 }
 0xc2c   : > { %v9703_v60 = vpop.f32.mrf.mxu0 }
 0xc2e   : > { %v9705_v45 = vpop.f32.mrf.mxu0 }
 0xc30   : > { %v9707_v35 = vpop.f32.mrf.mxu0 }
 0xc32   : > { %v9709_v4 = vpop.f32.mrf.mxu0 }
 0xc34   : > { %v9711_v41 = vpop.f32.mrf.mxu0 }
 0xc35   : > { %v4522_v43 = vmax.f32 %v9709_v4, %v9711_v41 }
 0xc36   : > { %v9713_v21 = vpop.f32.mrf.mxu0 }
 0xc38   : > { %v9715_v15 = vpop.f32.mrf.mxu0 }
 0xc3a   : > { %v9717_v36 = vpop.f32.mrf.mxu0 }
 0xc3c   : > { %v9719_v42 = vpop.f32.mrf.mxu0 }
 0xc3d   : > { %v4528_v20 = vmax.f32 %v9717_v36, %v9719_v42 }
 0xc3e   : > { %v9721_v17 = vpop.f32.mrf.mxu0 }
 0xc40   : > { %v9723_v32 = vpop.f32.mrf.mxu0 }
 0xc41   : > { %v4531_v10 = vmax.f32 %v9721_v17, %v9723_v32 }
 0xc42   : > { %v9725_v54 = vpop.f32.mrf.mxu0 }
 0xc44   : > { %v9727_v49 = vpop.f32.mrf.mxu0 }
 0xc45   : > { %11262 = vst [vmem:[#allocation40_spill] sm:$0xff] %v9727_v49  ;;  %v4534_v7 = vmax.f32 %v9725_v54, %v9727_v49  ;;  %v4525_v49 = vmax.f32 %v9713_v21, %v9715_v15 }
 0xc46   : > { %v9731_v58 = vpop.f32.mrf.mxu0 }
 0xc47   : > { %4535 = vmax.xlane.f32.xlu0 %v4534_v7  ;;  %v4516_v7 = vmax.f32 %v9701_v1, %v9703_v60 }
 0xc48   : > { %v9733_v22 = vpop.f32.mrf.mxu0 }
 0xc49   : > { %v4537_v13 = vmax.f32 %v9731_v58, %v9733_v22 }
 0xc4b   : > { %4529 = vmax.xlane.f32.xlu0 %v4528_v20  ;;  %4538 = vmax.xlane.f32.xlu1 %v4537_v13  ;;  %v4510_v20 = vmax.f32 %v9691_v5, %v9693_v52  ;;  %v4519_v13 = vmax.f32 %v9705_v45, %v9707_v35 }
 0xc4f   : > { %4523 = vmax.xlane.f32.xlu0 %v4522_v43  ;;  %4532 = vmax.xlane.f32.xlu1 %v4531_v10  ;;  %v4504_v43 = vmax.f32 %v9675_v18, %v9677_v16  ;;  %v4513_v10 = vmax.f32 %v9697_v0, %v9699_v50  ;;  %v11264_v16 = vld [vmem:[#allocation18_spill] sm:$0xff] }
 0xc53   : > { %4517 = vmax.xlane.f32.xlu0 %v4516_v7  ;;  %4526 = vmax.xlane.f32.xlu1 %v4525_v49  ;;  %v4498_v7 = vmax.f32 %v9659_v51, %v9661_v47  ;;  %v4507_v49 = vmax.f32 %v9683_v2, %v9685_v39 }
 0xc57   : > { %4511 = vmax.xlane.f32.xlu0 %v4510_v20  ;;  %4520 = vmax.xlane.f32.xlu1 %v4519_v13  ;;  %v4492_v20 = vmax.f32 %v9643_v57, %v9645_v33  ;;  %v4501_v13 = vmax.f32 %v9667_v53, %v9669_v27 }
 0xc5b   : > { %4505 = vmax.xlane.f32.xlu0 %v4504_v43  ;;  %4514 = vmax.xlane.f32.xlu1 %v4513_v10  ;;  %v4495_v43 = vmax.f32 %v9651_v29, %v9653_v63  ;;  %v11263_v10 = vld [vmem:[#allocation16_spill] sm:$0xff] }
 0xc5c   : > { %v523_v47 = vadd.f32 %v11264_v16, %v11263_v10 }
 0xc5f   : > { %4499 = vmax.xlane.f32.xlu0 %v4498_v7  ;;  %4508 = vmax.xlane.f32.xlu1 %v4507_v49 }
 0xc63   : > { %4493 = vmax.xlane.f32.xlu0 %v4492_v20  ;;  %4502 = vmax.xlane.f32.xlu1 %v4501_v13 }
 0xc67   : > { %4496 = vmax.xlane.f32.xlu1 %v4495_v43 }
 0xc6b   : > { %524 = vadd.xlane.f32.xlu1 %v523_v47 }
 0xc90   : > { %v4488_v51 = vpop.xlane.xlu1 %4487 }
 0xc91   : > { %v4568_v7 = vsub.f32 %v9629_v9, %v4488_v51  ;;  %v4569_v49 = vsub.f32 %v9631_v55, %v4488_v51 }
 0xc93   : > { %v4660_v39 = vmul.f32 1.442695, %v4568_v7  ;;  %v4662_v33 = vmul.f32 1.442695, %v4569_v49 }
 0xc94   : > { %v4485_v57 = vpop.xlane.xlu1 %4484  ;;  %v4491_v2 = vpop.xlane.xlu0 %4490 }
 0xc95   : > { %7052 = vpow2.f32 %v4660_v39  ;;  %v4566_v20 = vsub.f32 %v9625_v25, %v4485_v57  ;;  %v4567_v13 = vsub.f32 %v9627_v34, %v4485_v57  ;;  %v4570_v43 = vsub.f32 %v9635_v48, %v4491_v2 }
 0xc96   : > { %7054 = vpow2.f32 %v4662_v33  ;;  %v4571_v16 = vsub.f32 %v9637_v56, %v4491_v2 }
 0xc97   : > { %v4656_v47 = vmul.f32 1.442695, %v4566_v20  ;;  %v4658_v10 = vmul.f32 1.442695, %v4567_v13  ;;  %v4664_v63 = vmul.f32 1.442695, %v4570_v43 }
 0xc98   : > { %v4666_v9 = vmul.f32 1.442695, %v4571_v16  ;;  %v4479_v29 = vpop.xlane.xlu1 %4478  ;;  %v4482_v55 = vpop.xlane.xlu0 %4481 }
 0xc99   : > { %7056 = vpow2.f32 %v4656_v47  ;;  %v4562_v51 = vsub.f32 %v9617_v61, %v4479_v29  ;;  %v4563_v39 = vsub.f32 %v9619_v44, %v4479_v29  ;;  %v4564_v25 = vsub.f32 %v9621_v19, %v4482_v55 }
 0xc9a   : > { %7058 = vpow2.f32 %v4658_v10  ;;  %v4565_v34 = vsub.f32 %v9623_v8, %v4482_v55 }
 0xc9b   : > { %7060 = vpow2.f32 %v4664_v63  ;;  %v4648_v48 = vmul.f32 1.442695, %v4562_v51  ;;  %v4650_v57 = vmul.f32 1.442695, %v4563_v39  ;;  %v4652_v56 = vmul.f32 1.442695, %v4564_v25 }
 0xc9c   : > { %7062 = vpow2.f32 %v4666_v9  ;;  %v4654_v33 = vmul.f32 1.442695, %v4565_v34  ;;  %v4473_v2 = vpop.xlane.xlu1 %4472  ;;  %v4476_v16 = vpop.xlane.xlu0 %4475 }
 0xc9d   : > { %7064 = vpow2.f32 %v4648_v48  ;;  %v4558_v7 = vsub.f32 %v9609_v46, %v4473_v2  ;;  %v4559_v61 = vsub.f32 %v9611_v14, %v4473_v2  ;;  %v4560_v44 = vsub.f32 %v9613_v40, %v4476_v16 }
 0xc9e   : > { %7066 = vpow2.f32 %v4650_v57  ;;  %v4561_v19 = vsub.f32 %v9615_v11, %v4476_v16 }
 0xc9f   : > { %7068 = vpow2.f32 %v4652_v56  ;;  %v4640_v8 = vmul.f32 1.442695, %v4558_v7  ;;  %v4642_v29 = vmul.f32 1.442695, %v4559_v61  ;;  %v4644_v63 = vmul.f32 1.442695, %v4560_v44 }
 0xca0   : > { %7070 = vpow2.f32 %v4654_v33  ;;  %v4646_v10 = vmul.f32 1.442695, %v4561_v19  ;;  %v4467_v49 = vpop.xlane.xlu1 %4466  ;;  %v4470_v20 = vpop.xlane.xlu0 %4469 }
 0xca1   : > { %7072 = vpow2.f32 %v4640_v8  ;;  %v4554_v13 = vsub.f32 %v9601_v37, %v4467_v49  ;;  %v4555_v46 = vsub.f32 %v9603_v26, %v4467_v49  ;;  %v4556_v14 = vsub.f32 %v9605_v62, %v4470_v20 }
 0xca2   : > { %v9784_v43 = vpop.eup %7052  ;;  %7074 = vpow2.f32 %v4642_v29  ;;  %v4557_v40 = vsub.f32 %v9607_v38, %v4470_v20 }
 0xca3   : > { %v9787_v11 = vpop.eup %7054  ;;  %7076 = vpow2.f32 %v4644_v63  ;;  %v4632_v47 = vmul.f32 1.442695, %v4554_v13  ;;  %v4634_v9 = vmul.f32 1.442695, %v4555_v46  ;;  %v4636_v55 = vmul.f32 1.442695, %v4556_v14 }
 0xca4   : > { %7078 = vpow2.f32 %v4646_v10  ;;  %v4638_v51 = vmul.f32 1.442695, %v4557_v40  ;;  %v4461_v39 = vpop.xlane.xlu1 %4460  ;;  %v4464_v25 = vpop.xlane.xlu0 %4463  ;;  %v4774_v37 = vadd.f32 %v9787_v11, %v9784_v43  ;;  %v11265_v14 = vld [vmem:[#allocation42_spill] sm:$0xff] }
 0xca5   : > { %7080 = vpow2.f32 %v4632_v47  ;;  %v4550_v26 = vsub.f32 %v9593_v28, %v4461_v39  ;;  %v4551_v62 = vsub.f32 %v9595_v6, %v4461_v39  ;;  %v4552_v38 = vsub.f32 %v9597_v12, %v4464_v25  ;;  %v11266_v47 = vld [vmem:[#allocation9_spill] sm:$0xff] }
 0xca6   : > { %v9794_v34 = vpop.eup %7056  ;;  %7082 = vpow2.f32 %v4634_v9  ;;  %v4553_v48 = vsub.f32 %v9599_v3, %v4464_v25  ;;  %4775 = vadd.xlane.f32.xlu1 %v4774_v37 }
 0xca7   : > { %v9797_v57 = vpop.eup %7058  ;;  %7084 = vpow2.f32 %v4636_v55  ;;  %v4624_v56 = vmul.f32 1.442695, %v4550_v26  ;;  %v4626_v33 = vmul.f32 1.442695, %v4551_v62  ;;  %v4628_v2 = vmul.f32 1.442695, %v4552_v38 }
 0xca8   : > { %v9799_v16 = vpop.eup %7060  ;;  %7086 = vpow2.f32 %v4638_v51  ;;  %v4630_v28 = vmul.f32 1.442695, %v4553_v48  ;;  %v4455_v7 = vpop.xlane.xlu1 %4454  ;;  %v11267_v51 = vld [vmem:[#allocation21_spill] sm:$0xff]  ;;  %v4771_v25 = vadd.f32 %v9797_v57, %v9794_v34 }
 0xca9   : > { %v4458_v6 = vpop.xlane.xlu0 %4457  ;;  %v9801_v61 = vpop.eup %7062  ;;  %7088 = vpow2.f32 %v4624_v56  ;;  %v4546_v12 = vsub.f32 %v9585_v31, %v4455_v7  ;;  %v4547_v3 = vsub.f32 %v9587_v59, %v4455_v7 }
 0xcaa   : > { %v4548_v44 = vsub.f32 %v9589_v23, %v4458_v6  ;;  %v9806_v19 = vpop.eup %7064  ;;  %7090 = vpow2.f32 %v4626_v33  ;;  %v4549_v8 = vsub.f32 %v9591_v24, %v4458_v6  ;;  %v4777_v29 = vadd.f32 %v9801_v61, %v9799_v16  ;;  %v11269_v6 = vld [vmem:[#allocation29_spill] sm:$0xff] }
 0xcab   : > { %v9811_v63 = vpop.eup %7066  ;;  %7092 = vpow2.f32 %v4628_v2  ;;  %v4616_v10 = vmul.f32 1.442695, %v4546_v12  ;;  %v4618_v49 = vmul.f32 1.442695, %v4547_v3 }
 0xcac   : > { %v4620_v20 = vmul.f32 1.442695, %v4548_v44  ;;  %v9813_v13 = vpop.eup %7068  ;;  %7094 = vpow2.f32 %v4630_v28  ;;  %v4622_v31 = vmul.f32 1.442695, %v4549_v8  ;;  %4778 = vadd.xlane.f32.xlu0 %v4777_v29  ;;  %v4449_v59 = vpop.xlane.xlu1 %4448  ;;  %v11268_v28 = vld [vmem:[#allocation33_spill] sm:$0xff]  ;;  %v4765_v44 = vadd.f32 %v9811_v63, %v9806_v19 }
 0xcad   : > { %v4452_v23 = vpop.xlane.xlu0 %4451  ;;  %v9815_v46 = vpop.eup %7070  ;;  %7096 = vpow2.f32 %v4616_v10  ;;  %v4542_v24 = vsub.f32 %v9577_v30, %v4449_v59  ;;  %v4543_v40 = vsub.f32 %v11265_v14, %v4449_v59 }
 0xcae   : > { %v4544_v9 = vsub.f32 %v11266_v47, %v4452_v23  ;;  %v9820_v55 = vpop.eup %7072  ;;  %7098 = vpow2.f32 %v4618_v49  ;;  %v4545_v39 = vsub.f32 %v11267_v51, %v4452_v23  ;;  %v4768_v37 = vadd.f32 %v9815_v46, %v9813_v13 }
 0xcaf   : > { %v9827_v26 = vpop.eup %7074  ;;  %7100 = vpow2.f32 %v4620_v20  ;;  %v4608_v62 = vmul.f32 1.442695, %v4542_v24  ;;  %v4610_v30 = vmul.f32 1.442695, %v4543_v40 }
 0xcb0   : > { %v4612_v38 = vmul.f32 1.442695, %v4544_v9  ;;  %v9829_v48 = vpop.eup %7076  ;;  %7102 = vpow2.f32 %v4622_v31  ;;  %v4614_v56 = vmul.f32 1.442695, %v4545_v39  ;;  %4772 = vadd.xlane.f32.xlu0 %v4771_v25  ;;  %4769 = vadd.xlane.f32.xlu1 %v4768_v37  ;;  %v4759_v23 = vadd.f32 %v9827_v26, %v9820_v55 }
 0xcb1   : > { %v4446_v33 = vpop.xlane.xlu0 %4445  ;;  %v9831_v2 = vpop.eup %7078  ;;  %7104 = vpow2.f32 %v4608_v62 }
 0xcb2   : > { %v4540_v7 = vsub.f32 %v11268_v28, %v4446_v33  ;;  %v4541_v12 = vsub.f32 %v11269_v6, %v4446_v33  ;;  %v9835_v3 = vpop.eup %7080  ;;  %7106 = vpow2.f32 %v4610_v30  ;;  %v4762_v8 = vadd.f32 %v9831_v2, %v9829_v48 }
 0xcb3   : > { %v9841_v29 = vpop.eup %7082  ;;  %7108 = vpow2.f32 %v4612_v38 }
 0xcb4   : > { %v4604_v10 = vmul.f32 1.442695, %v4540_v7  ;;  %v4606_v49 = vmul.f32 1.442695, %v4541_v12  ;;  %v9843_v20 = vpop.eup %7084  ;;  %7110 = vpow2.f32 %v4614_v56  ;;  %4766 = vadd.xlane.f32.xlu0 %v4765_v44  ;;  %4763 = vadd.xlane.f32.xlu1 %v4762_v8  ;;  %v4753_v51 = vadd.f32 %v9841_v29, %v9835_v3 }
 0xcb5   : > { %v9845_v31 = vpop.eup %7086 }
 0xcb6   : > { %7112 = vpow2.f32 %v4604_v10  ;;  %v9847_v59 = vpop.eup %7088  ;;  %v4756_v24 = vadd.f32 %v9845_v31, %v9843_v20 }
 0xcb7   : > { %7114 = vpow2.f32 %v4606_v49  ;;  %v9853_v14 = vpop.eup %7090 }
 0xcb8   : > { %v9855_v40 = vpop.eup %7092  ;;  %4760 = vadd.xlane.f32.xlu0 %v4759_v23  ;;  %4757 = vadd.xlane.f32.xlu1 %v4756_v24  ;;  %v4747_v38 = vadd.f32 %v9853_v14, %v9847_v59 }
 0xcb9   : > { %v9857_v47 = vpop.eup %7094 }
 0xcba   : > { %v9859_v9 = vpop.eup %7096  ;;  %v4750_v39 = vadd.f32 %v9857_v47, %v9855_v40 }
 0xcbb   : > { %v9865_v25 = vpop.eup %7098 }
 0xcbc   : > { %v9867_v37 = vpop.eup %7100  ;;  %4754 = vadd.xlane.f32.xlu0 %v4753_v51  ;;  %4751 = vadd.xlane.f32.xlu1 %v4750_v39  ;;  %v4741_v12 = vadd.f32 %v9865_v25, %v9859_v9  ;;  %v11276_v51 = vld [vmem:[#allocation40_spill] sm:$0xff] }
 0xcbd   : > { %v9869_v62 = vpop.eup %7102 }
 0xcbe   : > { %v9871_v30 = vpop.eup %7104  ;;  %v4744_v56 = vadd.f32 %v9869_v62, %v9867_v37 }
 0xcbf   : > { %11270 = vst [vmem:[#allocation5_spill] sm:$0xff] %v9871_v30  ;;  %v9877_v33 = vpop.eup %7106 }
 0xcc0   : > { %11271 = vst [vmem:[#allocation26_spill] sm:$0xff] %v9877_v33  ;;  %v9879_v28 = vpop.eup %7108  ;;  %4748 = vadd.xlane.f32.xlu0 %v4747_v38  ;;  %4745 = vadd.xlane.f32.xlu1 %v4744_v56  ;;  %v4735_v49 = vadd.f32 %v9877_v33, %v9871_v30 }
 0xcc1   : > { %11272 = vst [vmem:[#allocation24_spill] sm:$0xff] %v9879_v28  ;;  %v9881_v7 = vpop.eup %7110 }
 0xcc2   : > { %11273 = vst [vmem:[#allocation37_spill] sm:$0xff] %v9881_v7  ;;  %v4738_v44 = vadd.f32 %v9881_v7, %v9879_v28 }
 0xcc3   : > { %v9883_v6 = vpop.eup %7112 }
 0xcc4   : > { %11274 = vst [vmem:[#allocation46_spill] sm:$0xff] %v9883_v6  ;;  %v9889_v8 = vpop.eup %7114  ;;  %4742 = vadd.xlane.f32.xlu0 %v4741_v12  ;;  %4739 = vadd.xlane.f32.xlu1 %v4738_v44 }
 0xcc5   : > { %11275 = vst [vmem:[#allocation41_spill] sm:$0xff] %v9889_v8  ;;  %v4732_v10 = vadd.f32 %v9889_v8, %v9883_v6 }
 0xcc8   : > { %4736 = vadd.xlane.f32.xlu0 %v4735_v49  ;;  %4733 = vadd.xlane.f32.xlu1 %v4732_v10 }
 0xcd0   : > { %v4536_v23 = vpop.xlane.xlu0 %4535 }
 0xcd1   : > { %v4600_v24 = vsub.f32 %v9725_v54, %v4536_v23  ;;  %v4601_v39 = vsub.f32 %v11276_v51, %v4536_v23 }
 0xcd3   : > { %v4724_v38 = vmul.f32 1.442695, %v4600_v24  ;;  %v4726_v56 = vmul.f32 1.442695, %v4601_v39 }
 0xcd4   : > { %v4539_v28 = vpop.xlane.xlu1 %4538  ;;  %v4530_v7 = vpop.xlane.xlu0 %4529 }
 0xcd5   : > { %7116 = vpow2.f32 %v4724_v38  ;;  %v4602_v12 = vsub.f32 %v9731_v58, %v4539_v28  ;;  %v4603_v44 = vsub.f32 %v9733_v22, %v4539_v28  ;;  %v4596_v6 = vsub.f32 %v9717_v36, %v4530_v7 }
 0xcd6   : > { %7118 = vpow2.f32 %v4726_v56  ;;  %v4597_v49 = vsub.f32 %v9719_v42, %v4530_v7 }
 0xcd7   : > { %v4728_v10 = vmul.f32 1.442695, %v4602_v12  ;;  %v4730_v8 = vmul.f32 1.442695, %v4603_v44  ;;  %v4716_v30 = vmul.f32 1.442695, %v4596_v6 }
 0xcd8   : > { %v4718_v54 = vmul.f32 1.442695, %v4597_v49  ;;  %v4533_v33 = vpop.xlane.xlu1 %4532  ;;  %v4524_v23 = vpop.xlane.xlu0 %4523 }
 0xcd9   : > { %7120 = vpow2.f32 %v4728_v10  ;;  %v4598_v24 = vsub.f32 %v9721_v17, %v4533_v33  ;;  %v4599_v51 = vsub.f32 %v9723_v32, %v4533_v33  ;;  %v4592_v58 = vsub.f32 %v9709_v4, %v4524_v23 }
 0xcda   : > { %7122 = vpow2.f32 %v4730_v8  ;;  %v4593_v22 = vsub.f32 %v9711_v41, %v4524_v23 }
 0xcdb   : > { %7124 = vpow2.f32 %v4716_v30  ;;  %v4720_v36 = vmul.f32 1.442695, %v4598_v24  ;;  %v4722_v28 = vmul.f32 1.442695, %v4599_v51  ;;  %v4708_v42 = vmul.f32 1.442695, %v4592_v58 }
 0xcdc   : > { %7126 = vpow2.f32 %v4718_v54  ;;  %v4710_v7 = vmul.f32 1.442695, %v4593_v22  ;;  %v4527_v6 = vpop.xlane.xlu1 %4526  ;;  %v4518_v39 = vpop.xlane.xlu0 %4517 }
 0xcdd   : > { %7128 = vpow2.f32 %v4720_v36  ;;  %v4594_v38 = vsub.f32 %v9713_v21, %v4527_v6  ;;  %v4595_v17 = vsub.f32 %v9715_v15, %v4527_v6  ;;  %v4588_v32 = vsub.f32 %v9701_v1, %v4518_v39  ;;  %v11277_v36 = vld [vmem:[#allocation7_spill] sm:$0xff] }
 0xcde   : > { %7130 = vpow2.f32 %v4722_v28  ;;  %v4589_v4 = vsub.f32 %v9703_v60, %v4518_v39 }
 0xcdf   : > { %7132 = vpow2.f32 %v4708_v42  ;;  %v4712_v41 = vmul.f32 1.442695, %v4594_v38  ;;  %v4714_v30 = vmul.f32 1.442695, %v4595_v17  ;;  %v4700_v33 = vmul.f32 1.442695, %v4588_v32 }
 0xce0   : > { %7134 = vpow2.f32 %v4710_v7  ;;  %v4702_v8 = vmul.f32 1.442695, %v4589_v4  ;;  %v4521_v56 = vpop.xlane.xlu1 %4520  ;;  %v4512_v12 = vpop.xlane.xlu0 %4511  ;;  %v11278_v4 = vld [vmem:[#allocation27_spill] sm:$0xff] }
 0xce1   : > { %7136 = vpow2.f32 %v4712_v41  ;;  %v4590_v44 = vsub.f32 %v9705_v45, %v4521_v56  ;;  %v4591_v21 = vsub.f32 %v9707_v35, %v4521_v56  ;;  %v4584_v15 = vsub.f32 %v9691_v5, %v4512_v12 }
 0xce2   : > { %v9912_v49 = vpop.eup %7116  ;;  %7138 = vpow2.f32 %v4714_v30  ;;  %v4585_v1 = vsub.f32 %v9693_v52, %v4512_v12  ;;  %v11279_v30 = vld [vmem:[#allocation8_spill] sm:$0xff] }
 0xce3   : > { %v9915_v60 = vpop.eup %7118  ;;  %7140 = vpow2.f32 %v4700_v33  ;;  %v4704_v10 = vmul.f32 1.442695, %v4590_v44  ;;  %v4706_v54 = vmul.f32 1.442695, %v4591_v21  ;;  %v4692_v23 = vmul.f32 1.442695, %v4584_v15 }
 0xce4   : > { %7142 = vpow2.f32 %v4702_v8  ;;  %v4694_v24 = vmul.f32 1.442695, %v4585_v1  ;;  %v4515_v51 = vpop.xlane.xlu1 %4514  ;;  %v4506_v58 = vpop.xlane.xlu0 %4505  ;;  %v4822_v45 = vadd.f32 %v9915_v60, %v9912_v49  ;;  %v11280_v15 = vld [vmem:[#allocation38_spill] sm:$0xff] }
 0xce5   : > { %7144 = vpow2.f32 %v4704_v10  ;;  %v4586_v5 = vsub.f32 %v9697_v0, %v4515_v51  ;;  %v4587_v35 = vsub.f32 %v9699_v50, %v4515_v51  ;;  %v4580_v52 = vsub.f32 %v9675_v18, %v4506_v58 }
 0xce6   : > { %v9922_v22 = vpop.eup %7120  ;;  %7146 = vpow2.f32 %v4706_v54  ;;  %v4581_v28 = vsub.f32 %v11277_v36, %v4506_v58  ;;  %4823 = vadd.xlane.f32.xlu1 %v4822_v45  ;;  %v11281_v54 = vld [vmem:[#allocation28_spill] sm:$0xff] }
 0xce7   : > { %v9925_v42 = vpop.eup %7122  ;;  %7148 = vpow2.f32 %v4692_v23  ;;  %v4696_v7 = vmul.f32 1.442695, %v4586_v5  ;;  %v4698_v6 = vmul.f32 1.442695, %v4587_v35  ;;  %v4684_v39 = vmul.f32 1.442695, %v4580_v52 }
 0xce8   : > { %v9927_v38 = vpop.eup %7124  ;;  %7150 = vpow2.f32 %v4694_v24  ;;  %v4686_v0 = vmul.f32 1.442695, %v4581_v28  ;;  %v4509_v17 = vpop.xlane.xlu1 %4508  ;;  %v4825_v18 = vadd.f32 %v9925_v42, %v9922_v22 }
 0xce9   : > { %v4500_v50 = vpop.xlane.xlu0 %4499  ;;  %v9931_v32 = vpop.eup %7126  ;;  %7152 = vpow2.f32 %v4696_v7  ;;  %v4582_v41 = vsub.f32 %v11278_v4, %v4509_v17  ;;  %v4583_v33 = vsub.f32 %v11279_v30, %v4509_v17 }
 0xcea   : > { %v9935_v8 = vpop.eup %7128  ;;  %7154 = vpow2.f32 %v4698_v6  ;;  %4826 = vadd.xlane.f32.xlu0 %v4825_v18  ;;  %v4816_v56 = vadd.f32 %v9931_v32, %v9927_v38  ;;  %v4576_v1 = vsub.f32 %v11280_v15, %v4500_v50  ;;  %v4577_v23 = vsub.f32 %v11281_v54, %v4500_v50 }
 0xceb   : > { %v9939_v12 = vpop.eup %7130  ;;  %7156 = vpow2.f32 %v4684_v39  ;;  %v4688_v44 = vmul.f32 1.442695, %v4582_v41  ;;  %v4690_v21 = vmul.f32 1.442695, %v4583_v33  ;;  %v11284_v33 = vld [vmem:[#allocation10_spill] sm:$0xff] }
 0xcec   : > { %v9942_v10 = vpop.eup %7132  ;;  %7158 = vpow2.f32 %v4686_v0  ;;  %4817 = vadd.xlane.f32.xlu1 %v4816_v56  ;;  %v4503_v24 = vpop.xlane.xlu1 %4502  ;;  %v4819_v58 = vadd.f32 %v9939_v12, %v9935_v8  ;;  %v4676_v7 = vmul.f32 1.442695, %v4576_v1  ;;  %v11282_v0 = vld [vmem:[#allocation31_spill] sm:$0xff]  ;;  %v4678_v18 = vmul.f32 1.442695, %v4577_v23 }
 0xced   : > { %v4494_v51 = vpop.xlane.xlu0 %4493  ;;  %v9947_v45 = vpop.eup %7134  ;;  %7160 = vpow2.f32 %v4688_v44  ;;  %v4578_v5 = vsub.f32 %v9667_v53, %v4503_v24  ;;  %v4579_v35 = vsub.f32 %v9669_v27, %v4503_v24  ;;  %v11283_v53 = vld [vmem:[#allocation6_spill] sm:$0xff]  ;;  %v11285_v44 = vld [vmem:[#allocation32_spill] sm:$0xff] }
 0xcee   : > { %v9951_v52 = vpop.eup %7136  ;;  %7162 = vpow2.f32 %v4690_v21  ;;  %4820 = vadd.xlane.f32.xlu0 %v4819_v58  ;;  %v4810_v36 = vadd.f32 %v9947_v45, %v9942_v10  ;;  %v4572_v17 = vsub.f32 %v11282_v0, %v4494_v51  ;;  %v4573_v4 = vsub.f32 %v11283_v53, %v4494_v51  ;;  %v11287_v53 = vld [vmem:[#allocation16_spill] sm:$0xff] }
 0xcef   : > { %v9955_v28 = vpop.eup %7138  ;;  %v4680_v6 = vmul.f32 1.442695, %v4578_v5  ;;  %v4682_v39 = vmul.f32 1.442695, %v4579_v35 }
 0xcf0   : > { %v9958_v50 = vpop.eup %7140  ;;  %4811 = vadd.xlane.f32.xlu1 %v4810_v36  ;;  %v4497_v27 = vpop.xlane.xlu1 %4496  ;;  %v4813_v41 = vadd.f32 %v9955_v28, %v9951_v52  ;;  %v4668_v23 = vmul.f32 1.442695, %v4572_v17  ;;  %v4670_v5 = vmul.f32 1.442695, %v4573_v4 }
 0xcf1   : > { %v9963_v30 = vpop.eup %7142  ;;  %7164 = vpow2.f32 %v4680_v6  ;;  %v4574_v56 = vsub.f32 %v11284_v33, %v4497_v27  ;;  %v4575_v21 = vsub.f32 %v11285_v44, %v4497_v27  ;;  %v11289_v27 = vld [vmem:[#allocation18_spill] sm:$0xff] }
 0xcf2   : > { %v9967_v15 = vpop.eup %7144  ;;  %7166 = vpow2.f32 %v4682_v39  ;;  %4814 = vadd.xlane.f32.xlu0 %v4813_v41  ;;  %v4804_v1 = vadd.f32 %v9963_v30, %v9958_v50 }
 0xcf3   : > { %v9971_v54 = vpop.eup %7146  ;;  %7168 = vpow2.f32 %v4676_v7  ;;  %v4672_v24 = vmul.f32 1.442695, %v4574_v56  ;;  %v4674_v51 = vmul.f32 1.442695, %v4575_v21 }
 0xcf4   : > { %v9973_v58 = vpop.eup %7148  ;;  %7170 = vpow2.f32 %v4678_v18  ;;  %4805 = vadd.xlane.f32.xlu1 %v4804_v1  ;;  %v525_v35 = vpop.xlane.xlu1 %524  ;;  %v4807_v36 = vadd.f32 %v9971_v54, %v9967_v15 }
 0xcf5   : > { %v9977_v6 = vpop.eup %7150  ;;  %7172 = vpow2.f32 %v4672_v24  ;;  %v530_v39 = vmul.f32 0.00390625, %v525_v35 }
 0xcf6   : > { %v9979_v0 = vpop.eup %7152  ;;  %7174 = vpow2.f32 %v4674_v51  ;;  %4808 = vadd.xlane.f32.xlu0 %v4807_v36  ;;  %v4798_v7 = vadd.f32 %v9977_v6, %v9973_v58 }
 0xcf7   : > { %v9983_v17 = vpop.eup %7154  ;;  %7176 = vpow2.f32 %v4668_v23  ;;  %v9988_v4 = vsub.f32 %v11287_v53, %v530_v39  ;;  %v9991_v41 = vsub.f32 %v11289_v27, %v530_v39 }
 0xcf8   : > { %v9985_v18 = vpop.eup %7156  ;;  %7178 = vpow2.f32 %v4670_v5  ;;  %4799 = vadd.xlane.f32.xlu1 %v4798_v7  ;;  %v4801_v33 = vadd.f32 %v9983_v17, %v9979_v0 }
 0xcf9   : > { %11286 = vst [vmem:[#allocation36_spill] sm:$0xff] %v9985_v18  ;;  %11288 = vst [vmem:[#allocation39_spill] sm:$0xff] %v9988_v4  ;;  %v9995_v56 = vpop.eup %7158  ;;  %v540_v23 = vmul.f32 %v9988_v4, %v9988_v4  ;;  %v541_v24 = vmul.f32 %v9991_v41, %v9991_v41 }
 0xcfa   : > { %11290 = vst [vmem:[#allocation13_spill] sm:$0xff] %v9991_v41  ;;  %v9997_v44 = vpop.eup %7160  ;;  %4802 = vadd.xlane.f32.xlu0 %v4801_v33  ;;  %v4792_v21 = vadd.f32 %v9995_v56, %v9985_v18  ;;  %v11298_v41 = vld [vmem:[#allocation35_spill] sm:$0xff] }
 0xcfb   : > { %v10001_v1 = vpop.eup %7162  ;;  %v547_v39 = vadd.f32 %v541_v24, %v540_v23 }
 0xcfc   : > { %4793 = vadd.xlane.f32.xlu1 %v4792_v21  ;;  %v4795_v51 = vadd.f32 %v10001_v1, %v9997_v44 }
 0xcfe   : > { %v10009_v5 = vpop.eup %7164  ;;  %4796 = vadd.xlane.f32.xlu0 %v4795_v51 }
 0xcff   : > { %11291 = vst [vmem:[#allocation14_spill] sm:$0xff] %v10009_v5  ;;  %v10011_v35 = vpop.eup %7166 }
 0xd00   : > { %11292 = vst [vmem:[#allocation19_spill] sm:$0xff] %v10011_v35  ;;  %v10013_v36 = vpop.eup %7168  ;;  %v4789_v7 = vadd.f32 %v10011_v35, %v10009_v5  ;;  %v11299_v5 = vmax.f32 %v11298_v41, 0.0 }
 0xd01   : > { %11293 = vst [vmem:[#allocation42_spill] sm:$0xff] %v10013_v36  ;;  %v10017_v53 = vpop.eup %7170 }
 0xd02   : > { %v10019_v27 = vpop.eup %7172  ;;  %548 = vadd.xlane.f32.xlu0 %v547_v39  ;;  %4790 = vadd.xlane.f32.xlu1 %v4789_v7  ;;  %v4786_v4 = vadd.f32 %v10017_v53, %v10013_v36 }
 0xd03   : > { %11294 = vst [vmem:[#allocation9_spill] sm:$0xff] %v10019_v27  ;;  %v10021_v33 = vpop.eup %7174 }
 0xd04   : > { %11295 = vst [vmem:[#allocation21_spill] sm:$0xff] %v10021_v33  ;;  %v10023_v21 = vpop.eup %7176  ;;  %v4783_v51 = vadd.f32 %v10021_v33, %v10019_v27  ;;  %v11300_v33 = vld [vmem:[#allocation34_spill] sm:$0xff] }
 0xd05   : > { %11296 = vst [vmem:[#allocation33_spill] sm:$0xff] %v10023_v21  ;;  %v10029_v23 = vpop.eup %7178  ;;  %v11301_v18 = vmax.f32 %v11300_v33, 0.0 }
 0xd06   : > { %11297 = vst [vmem:[#allocation29_spill] sm:$0xff] %v10029_v23  ;;  %4784 = vadd.xlane.f32.xlu1 %v4783_v51  ;;  %4787 = vadd.xlane.f32.xlu0 %v4786_v4  ;;  %v4780_v24 = vadd.f32 %v10029_v23, %v10023_v21 }
 0xd0a   : > { %4781 = vadd.xlane.f32.xlu0 %v4780_v24 }
 0xd2f   : > { %v4776_v39 = vpop.xlane.xlu1 %4775 }
 0xd30   : > { %7180 = vrcp.f32 %v4776_v39 }
 0xd35   : > { %v4779_v7 = vpop.xlane.xlu0 %4778 }
 0xd36   : > { %7182 = vrcp.f32 %v4779_v7 }
 0xd37   : > { %5079 = vxpose.xlu0.b32.start.end [1/1] (short) %v11299_v5, 128 }
 0xd39   : > { %v4770_v35 = vpop.xlane.xlu1 %4769  ;;  %v4773_v27 = vpop.xlane.xlu0 %4772  ;;  %5047 = vxpose.xlu1.b32.start.end [1/1] (short) %v11301_v18, 128 }
 0xd3a   : > { %7184 = vrcp.f32 %v4770_v35 }
 0xd3b   : > { %7186 = vrcp.f32 %v4773_v27 }
 0xd3d   : > { %v4764_v51 = vpop.xlane.xlu1 %4763  ;;  %v4767_v4 = vpop.xlane.xlu0 %4766 }
 0xd3e   : > { %7188 = vrcp.f32 %v4764_v51  ;;  %v7181_v23 = vpop.eup %7180 }
 0xd3f   : > { %7190 = vrcp.f32 %v4767_v4  ;;  %v4921_v18 = vmul.f32 %v7181_v23, %v9787_v11  ;;  %v4920_v27 = vmul.f32 %v7181_v23, %v9784_v43 }
 0xd41   : > { %v4758_v21 = vpop.xlane.xlu1 %4757  ;;  %v4761_v24 = vpop.xlane.xlu0 %4760 }
 0xd42   : > { %7192 = vrcp.f32 %v4758_v21 }
 0xd43   : > { %v7183_v39 = vpop.eup %7182  ;;  %7194 = vrcp.f32 %v4761_v24 }
 0xd44   : > { %v4923_v41 = vmul.f32 %v7183_v39, %v9801_v61  ;;  %v4922_v5 = vmul.f32 %v7183_v39, %v9799_v16 }
 0xd45   : > { %v4752_v7 = vpop.xlane.xlu1 %4751  ;;  %v4755_v36 = vpop.xlane.xlu0 %4754 }
 0xd46   : > { %7196 = vrcp.f32 %v4752_v7  ;;  %4960 = vmatprep.subr.mxu1 %v4923_v41 }
 0xd47   : > { %v7185_v35 = vpop.eup %7184  ;;  %7198 = vrcp.f32 %v4755_v36  ;;  %4961 = vmatpush1.msra.mxu1 %v4922_v5 }
 0xd48   : > { %v7187_v33 = vpop.eup %7186  ;;  %4962 = vmatprep.subr.mxu1 %v4921_v18  ;;  %v4917_v11 = vmul.f32 %v7185_v35, %v9815_v46  ;;  %v4916_v36 = vmul.f32 %v7185_v35, %v9813_v13 }
 0xd49   : > { %v4746_v21 = vpop.xlane.xlu1 %4745  ;;  %4963 = vmatpush1.msra.mxu1 %v4920_v27  ;;  %v4749_v51 = vpop.xlane.xlu0 %4748  ;;  %v4919_v61 = vmul.f32 %v7187_v33, %v9797_v57  ;;  %v4918_v16 = vmul.f32 %v7187_v33, %v9794_v34 }
 0xd4a   : > { %7200 = vrcp.f32 %v4746_v21 }
 0xd4b   : > { %v7189_v4 = vpop.eup %7188  ;;  %7202 = vrcp.f32 %v4749_v51  ;;  %4964 = vmatprep.subr.mxu1 %v4919_v61 }
 0xd4c   : > { %v7191_v24 = vpop.eup %7190  ;;  %4965 = vmatpush1.msra.mxu1 %v4918_v16  ;;  %v4913_v57 = vmul.f32 %v7189_v4, %v9831_v2  ;;  %v4912_v46 = vmul.f32 %v7189_v4, %v9829_v48 }
 0xd4d   : > { %4966 = vmatprep.subr.mxu1 %v4917_v11  ;;  %v4740_v43 = vpop.xlane.xlu1 %4739  ;;  %v4743_v23 = vpop.xlane.xlu0 %4742  ;;  %v4915_v39 = vmul.f32 %v7191_v24, %v9811_v63  ;;  %v4914_v41 = vmul.f32 %v7191_v24, %v9806_v19  ;;  %v11303_v24 = vld [vmem:[#allocation24_spill] sm:$0xff] }
 0xd4e   : > { %7204 = vrcp.f32 %v4740_v43  ;;  %4967 = vmatpush1.msra.mxu1 %v4916_v36 }
 0xd4f   : > { %v7193_v34 = vpop.eup %7192  ;;  %7206 = vrcp.f32 %v4743_v23  ;;  %4968 = vmatprep.subr.mxu1 %v4915_v39  ;;  %v11305_v23 = vld [vmem:[#allocation5_spill] sm:$0xff] }
 0xd50   : > { %v7195_v5 = vpop.eup %7194  ;;  %4969 = vmatpush1.msra.mxu1 %v4914_v41  ;;  %v4909_v35 = vmul.f32 %v7193_v34, %v9845_v31  ;;  %v4908_v2 = vmul.f32 %v7193_v34, %v9843_v20 }
 0xd51   : > { %4970 = vmatprep.subr.mxu1 %v4913_v57  ;;  %v4734_v13 = vpop.xlane.xlu1 %4733  ;;  %v4737_v7 = vpop.xlane.xlu0 %4736  ;;  %v4911_v18 = vmul.f32 %v7195_v5, %v9827_v26  ;;  %v4910_v63 = vmul.f32 %v7195_v5, %v9820_v55 }
 0xd52   : > { %7208 = vrcp.f32 %v4734_v13  ;;  %4971 = vmatpush1.msra.mxu1 %v4912_v46 }
 0xd53   : > { %v7197_v19 = vpop.eup %7196  ;;  %7210 = vrcp.f32 %v4737_v7  ;;  %4972 = vmatprep.subr.mxu1 %v4911_v18 }
 0xd54   : > { %v7199_v27 = vpop.eup %7198  ;;  %4973 = vmatpush1.msra.mxu1 %v4910_v63  ;;  %v4905_v55 = vmul.f32 %v7197_v19, %v9857_v47  ;;  %v4904_v51 = vmul.f32 %v7197_v19, %v9855_v40 }
 0xd55   : > { %4974 = vmatprep.subr.mxu1 %v4909_v35  ;;  %v4907_v48 = vmul.f32 %v7199_v27, %v9841_v29  ;;  %v4906_v33 = vmul.f32 %v7199_v27, %v9835_v3 }
 0xd56   : > { %4975 = vmatpush1.msra.mxu1 %v4908_v2 }
 0xd57   : > { %v7201_v26 = vpop.eup %7200  ;;  %4976 = vmatprep.subr.mxu1 %v4907_v48 }
 0xd58   : > { %v7203_v21 = vpop.eup %7202  ;;  %4977 = vmatpush1.msra.mxu1 %v4906_v33  ;;  %v4901_v29 = vmul.f32 %v7201_v26, %v9869_v62  ;;  %v4900_v16 = vmul.f32 %v7201_v26, %v9867_v37  ;;  %v11304_v62 = vld [vmem:[#allocation26_spill] sm:$0xff]  ;;  %v11306_v37 = vld [vmem:[#allocation41_spill] sm:$0xff] }
 0xd59   : > { %4978 = vmatprep.subr.mxu1 %v4905_v55  ;;  %v4903_v31 = vmul.f32 %v7203_v21, %v9853_v14  ;;  %v4902_v61 = vmul.f32 %v7203_v21, %v9847_v59  ;;  %v11302_v14 = vld [vmem:[#allocation37_spill] sm:$0xff] }
 0xd5a   : > { %4979 = vmatpush1.msra.mxu1 %v4904_v51 }
 0xd5b   : > { %v7205_v20 = vpop.eup %7204  ;;  %4980 = vmatprep.subr.mxu1 %v4903_v31 }
 0xd5c   : > { %v7207_v3 = vpop.eup %7206  ;;  %4981 = vmatpush1.msra.mxu1 %v4902_v61  ;;  %v4897_v11 = vmul.f32 %v7205_v20, %v11302_v14  ;;  %v4896_v36 = vmul.f32 %v7205_v20, %v11303_v24 }
 0xd5d   : > { %4982 = vmatprep.subr.mxu1 %v4901_v29  ;;  %v4899_v47 = vmul.f32 %v7207_v3, %v9865_v25  ;;  %v4898_v4 = vmul.f32 %v7207_v3, %v9859_v9  ;;  %v11307_v9 = vld [vmem:[#allocation46_spill] sm:$0xff] }
 0xd5e   : > { %4983 = vmatpush1.msra.mxu1 %v4900_v16 }
 0xd5f   : > { %v7209_v40 = vpop.eup %7208  ;;  %4984 = vmatprep.subr.mxu1 %v4899_v47 }
 0xd60   : > { %v7211_v59 = vpop.eup %7210  ;;  %4985 = vmatpush1.msra.mxu1 %v4898_v4  ;;  %v4893_v25 = vmul.f32 %v7209_v40, %v11306_v37  ;;  %v4892_v41 = vmul.f32 %v7209_v40, %v11307_v9 }
 0xd61   : > { %4986 = vmatprep.subr.mxu1 %v4897_v11  ;;  %v4895_v43 = vmul.f32 %v7211_v59, %v11304_v62  ;;  %v4894_v39 = vmul.f32 %v7211_v59, %v11305_v23 }
 0xd62   : > { %4987 = vmatpush1.msra.mxu1 %v4896_v36 }
 0xd63   : > { %4988 = vmatprep.subr.mxu1 %v4895_v43 }
 0xd64   : > { %4989 = vmatpush1.msra.mxu1 %v4894_v39 }
 0xd65   : > { %4990 = vmatprep.subr.mxu1 %v4893_v25  ;;  %v11308_v25 = vld [vmem:[#allocation36_spill] sm:$0xff] }
 0xd66   : > { %4991 = vmatpush1.msra.mxu1 %v4892_v41  ;;  %v11309_v41 = vld [vmem:[#allocation19_spill] sm:$0xff] }
 0xd6f   : > { %v4824_v34 = vpop.xlane.xlu1 %4823 }
 0xd70   : > { %7212 = vrcp.f32 %v4824_v34  ;;  %v11310_v34 = vld [vmem:[#allocation14_spill] sm:$0xff] }
 0xd73   : > { %v4827_v57 = vpop.xlane.xlu0 %4826 }
 0xd74   : > { %7214 = vrcp.f32 %v4827_v57 }
 0xd75   : > { %v4818_v5 = vpop.xlane.xlu1 %4817 }
 0xd76   : > { %7216 = vrcp.f32 %v4818_v5  ;;  %v11311_v5 = vld [vmem:[#allocation13_spill] sm:$0xff] }
 0xd77   : > { %v4821_v46 = vpop.xlane.xlu0 %4820 }
 0xd78   : > { %7218 = vrcp.f32 %v4821_v46  ;;  %v11312_v46 = vld [vmem:[#allocation39_spill] sm:$0xff] }
 0xd79   : > { %v4812_v13 = vpop.xlane.xlu1 %4811 }
 0xd7a   : > { %7220 = vrcp.f32 %v4812_v13 }
 0xd7b   : > { %v4815_v7 = vpop.xlane.xlu0 %4814 }
 0xd7c   : > { %7222 = vrcp.f32 %v4815_v7 }
 0xd7d   : > { %v4806_v18 = vpop.xlane.xlu1 %4805  ;;  %v7213_v19 = vpop.eup %7212 }
 0xd7e   : > { %7224 = vrcp.f32 %v4806_v18  ;;  %v4953_v55 = vmul.f32 %v7213_v19, %v9915_v60  ;;  %v4952_v31 = vmul.f32 %v7213_v19, %v9912_v49  ;;  %v11313_v18 = vld [vmem:[#allocation42_spill] sm:$0xff]  ;;  %v11314_v19 = vld [vmem:[#allocation11_spill] sm:$0xff] }
 0xd7f   : > { %v4809_v63 = vpop.xlane.xlu0 %4808 }
 0xd80   : > { %7226 = vrcp.f32 %v4809_v63 }
 0xd81   : > { %v7215_v35 = vpop.eup %7214  ;;  %v4800_v27 = vpop.xlane.xlu1 %4799 }
 0xd82   : > { %v4955_v2 = vmul.f32 %v7215_v35, %v9925_v42  ;;  %v4954_v48 = vmul.f32 %v7215_v35, %v9922_v22  ;;  %7228 = vrcp.f32 %v4800_v27 }
 0xd83   : > { %v4803_v33 = vpop.xlane.xlu0 %4802  ;;  %v7217_v26 = vpop.eup %7216 }
 0xd84   : > { %7230 = vrcp.f32 %v4803_v33  ;;  %4992 = vmatprep.subr.mxu1 %v4955_v2  ;;  %v4949_v29 = vmul.f32 %v7217_v26, %v9931_v32  ;;  %v4948_v60 = vmul.f32 %v7217_v26, %v9927_v38  ;;  %v11316_v26 = vld [vmem:[#allocation29_spill] sm:$0xff] }
 0xd85   : > { %v7219_v21 = vpop.eup %7218  ;;  %v4794_v51 = vpop.xlane.xlu1 %4793  ;;  %4993 = vmatpush2.msra.mxu1 %v4954_v48  ;;  %v11315_v48 = vld [vmem:[#allocation21_spill] sm:$0xff] }
 0xd86   : > { %4994 = vmatprep.subr.mxu1 %v4953_v55  ;;  %v4951_v61 = vmul.f32 %v7219_v21, %v9939_v12  ;;  %v4950_v20 = vmul.f32 %v7219_v21, %v9935_v8  ;;  %7232 = vrcp.f32 %v4794_v51  ;;  %v11317_v21 = vld [vmem:[#allocation12_spill] sm:$0xff] }
 0xd87   : > { %4995 = vmatpush2.msra.mxu1 %v4952_v31  ;;  %v4797_v22 = vpop.xlane.xlu0 %4796  ;;  %v7221_v42 = vpop.eup %7220 }
 0xd88   : > { %7234 = vrcp.f32 %v4797_v22  ;;  %4996 = vmatprep.subr.mxu1 %v4951_v61  ;;  %v4945_v40 = vmul.f32 %v7221_v42, %v9947_v45  ;;  %v4944_v32 = vmul.f32 %v7221_v42, %v9942_v10  ;;  %v11318_v61 = vld [vmem:[#allocation9_spill] sm:$0xff] }
 0xd89   : > { %v7223_v3 = vpop.eup %7222  ;;  %4997 = vmatpush2.msra.mxu1 %v4950_v20 }
 0xd8a   : > { %4998 = vmatprep.subr.mxu1 %v4949_v29  ;;  %v4947_v49 = vmul.f32 %v7223_v3, %v9955_v28  ;;  %v4946_v16 = vmul.f32 %v7223_v3, %v9951_v52  ;;  %v11320_v3 = vld [vmem:[#allocation44_spill] sm:$0xff] }
 0xd8b   : > { %v4791_v12 = vpop.xlane.xlu1 %4790  ;;  %4999 = vmatpush2.msra.mxu1 %v4948_v60  ;;  %v549_v8 = vpop.xlane.xlu0 %548  ;;  %v11321_v60 = vmov 0.0  }
 0xd8c   : > { %v7225_v47 = vpop.eup %7224  ;;  %7236 = vrcp.f32 %v4791_v12  ;;  %v554_v4 = vmul.f32 0.00390625, %v549_v8  ;;  %5000 = vmatprep.subr.mxu1 %v4947_v49 }
 0xd8d   : > { %v7227_v14 = vpop.eup %7226  ;;  %5001 = vmatpush2.msra.mxu1 %v4946_v16  ;;  %v4941_v36 = vmul.f32 %v7225_v47, %v9963_v30  ;;  %v4940_v45 = vmul.f32 %v7225_v47, %v9958_v50 }
 0xd8e   : > { %v557_v11 = vadd.f32 1e-05, %v554_v4  ;;  %5002 = vmatprep.subr.mxu1 %v4945_v40  ;;  %v4943_v38 = vmul.f32 %v7227_v14, %v9971_v54  ;;  %v4942_v28 = vmul.f32 %v7227_v14, %v9967_v15 }
 0xd8f   : > { %v4785_v52 = vpop.xlane.xlu1 %4784  ;;  %5003 = vmatpush2.msra.mxu1 %v4944_v32  ;;  %v4788_v59 = vpop.xlane.xlu0 %4787 }
 0xd90   : > { %v7229_v24 = vpop.eup %7228  ;;  %7238 = vrsqrt.f32 %v557_v11  ;;  %5004 = vmatprep.subr.mxu1 %v4943_v38 }
 0xd91   : > { %v7231_v62 = vpop.eup %7230  ;;  %7240 = vrcp.f32 %v4785_v52  ;;  %5005 = vmatpush2.msra.mxu1 %v4942_v28  ;;  %v4937_v23 = vmul.f32 %v7229_v24, %v9977_v6  ;;  %v4936_v30 = vmul.f32 %v7229_v24, %v9973_v58 }
 0xd92   : > { %7242 = vrcp.f32 %v4788_v59  ;;  %5006 = vmatprep.subr.mxu1 %v4941_v36  ;;  %v4939_v10 = vmul.f32 %v7231_v62, %v9983_v17  ;;  %v4938_v54 = vmul.f32 %v7231_v62, %v9979_v0 }
 0xd93   : > { %5007 = vmatpush2.msra.mxu1 %v4940_v45  ;;  %v4782_v15 = vpop.xlane.xlu0 %4781  ;;  %v7233_v43 = vpop.eup %7232 }
 0xd94   : > { %7244 = vrcp.f32 %v4782_v15  ;;  %5008 = vmatprep.subr.mxu1 %v4939_v10  ;;  %v4933_v0 = vmul.f32 %v7233_v43, %v9995_v56  ;;  %v4932_v9 = vmul.f32 %v7233_v43, %v11308_v25 }
 0xd95   : > { %v7235_v39 = vpop.eup %7234  ;;  %5009 = vmatpush2.msra.mxu1 %v4938_v54 }
 0xd96   : > { %5010 = vmatprep.subr.mxu1 %v4937_v23  ;;  %v4935_v50 = vmul.f32 %v7235_v39, %v10001_v1  ;;  %v4934_v37 = vmul.f32 %v7235_v39, %v9997_v44 }
 0xd97   : > { %5011 = vmatpush2.msra.mxu1 %v4936_v30 }
 0xd98   : > { %5012 = vmatprep.subr.mxu1 %v4935_v50 }
 0xd99   : > { %v7237_v17 = vpop.eup %7236  ;;  %5013 = vmatpush2.msra.mxu1 %v4934_v37 }
 0xd9a   : > { %5014 = vmatprep.subr.mxu1 %v4933_v0  ;;  %v4931_v6 = vmul.f32 %v7237_v17, %v11309_v41  ;;  %v4930_v57 = vmul.f32 %v7237_v17, %v11310_v34 }
 0xd9b   : > { %5015 = vmatpush2.msra.mxu1 %v4932_v9 }
 0xd9c   : > { %5016 = vmatprep.subr.mxu1 %v4931_v6 }
 0xd9d   : > { %v7239_v58 = vpop.eup %7238  ;;  %5017 = vmatpush2.msra.mxu1 %v4930_v57 }
 0xd9e   : > { %v7241_v1 = vpop.eup %7240  ;;  %v565_v44 = vmul.f32 %v7239_v58, %v11311_v5  ;;  %v564_v13 = vmul.f32 %v7239_v58, %v11312_v46 }
 0xd9f   : > { %v7243_v7 = vpop.eup %7242  ;;  %v4927_v33 = vmul.f32 %v7241_v1, %v11315_v48  ;;  %v4926_v20 = vmul.f32 %v7241_v1, %v11318_v61 }
 0xda0   : > { %v4929_v56 = vmul.f32 %v7243_v7, %v10017_v53  ;;  %v4928_v63 = vmul.f32 %v7243_v7, %v11313_v18  ;;  %v586_v35 = vmul.f32 %v11314_v19, %v565_v44  ;;  %v585_v27 = vmul.f32 %v11314_v19, %v564_v13  ;;  %v11319_v53 = vld [vmem:[#allocation33_spill] sm:$0xff] }
 0xda1   : > { %v7245_v2 = vpop.eup %7244 }
 0xda2   : > { %5018 = vmatprep.subr.mxu1 %v4929_v56  ;;  %v4925_v55 = vmul.f32 %v7245_v2, %v11316_v26  ;;  %v607_v51 = vadd.f32 %v11317_v21, %v586_v35  ;;  %v606_v31 = vadd.f32 %v11317_v21, %v585_v27  ;;  %v4924_v22 = vmul.f32 %v7245_v2, %v11319_v53 }
 0xda3   : > { %5019 = vmatpush2.msra.mxu1 %v4928_v63 }
 0xda4   : > { %5020 = vmatprep.subr.mxu1 %v4927_v33  ;;  %v613_v42 = vmax.f32 %v607_v51, 0.0  ;;  %v612_v29 = vmax.f32 %v606_v31, 0.0 }
 0xda5   : > { %5021 = vmatpush2.msra.mxu1 %v4926_v20 }
 0xda6   : > { %5022 = vmatprep.subr.mxu1 %v4925_v55 }
 0xda7   : > { %5023 = vmatpush2.msra.mxu1 %v4924_v22 }
 0xda8   : > { %5025 = vmatmul.mubr.f32.vlgmr.msra.gmra.mxu1 %v11320_v3  ;;  %5237 = vmatprep.subr.mxu1 %v613_v42 }
 0xda9   : > { %5238 = vmatpush1.msra.mxu1 %v612_v29  ;;  %5271 = vmatprep.mubr.f32.mxu1 %v11321_v60 }
 0xdb3   : > { %v5095_v11 = vpop.trf.xlu0 }
 0xdb5   : > { %v5063_v49 = vpop.trf.xlu1 }
 0xdb6   : > { %6402 = vmatmul.mubr.msk.f32.vlgmr.msra.gmra.mxu1 %vm1031_vm1, %v5063_v49 }
 0xdb7   : > { %5277 = vmatprep.mubr.f32.mxu1 %v11321_v60  ;;  %v5096_v28 = vpop.trf.xlu0 }
 0xdb9   : > { %v5064_v16 = vpop.trf.xlu1 }
 0xdba   : > { %6403 = vmatmul.mubr.msk.f32.gmra.mxu1 %vm1031_vm1, %v5064_v16 }
 0xdbb   : > { %5283 = vmatprep.mubr.f32.mxu1 %v11321_v60  ;;  %v5097_v24 = vpop.trf.xlu0 }
 0xdbd   : > { %v5065_v12 = vpop.trf.xlu1 }
 0xdbe   : > { %6404 = vmatmul.mubr.msk.f32.gmra.mxu1 %vm1031_vm1, %v5065_v12 }
 0xdbf   : > { %5289 = vmatprep.mubr.f32.mxu1 %v11321_v60  ;;  %v5098_v62 = vpop.trf.xlu0 }
 0xdc1   : > { %v5066_v8 = vpop.trf.xlu1 }
 0xdc2   : > { %6405 = vmatmul.mubr.msk.f32.gmra.mxu1 %vm1031_vm1, %v5066_v8 }
 0xdc3   : > { %5295 = vmatprep.mubr.f32.mxu1 %v11321_v60  ;;  %v5099_v54 = vpop.trf.xlu0 }
 0xdc5   : > { %v5067_v47 = vpop.trf.xlu1 }
 0xdc6   : > { %6406 = vmatmul.mubr.msk.f32.gmra.mxu1 %vm1031_vm1, %v5067_v47 }
 0xdc7   : > { %5301 = vmatprep.mubr.f32.mxu1 %v11321_v60  ;;  %v5100_v43 = vpop.trf.xlu0 }
 0xdc9   : > { %v5068_v4 = vpop.trf.xlu1 }
 0xdca   : > { %6407 = vmatmul.mubr.msk.f32.gmra.mxu1 %vm1031_vm1, %v5068_v4 }
 0xdcb   : > { %5307 = vmatprep.mubr.f32.mxu1 %v11321_v60  ;;  %v5101_v23 = vpop.trf.xlu0 }
 0xdcd   : > { %v5069_v40 = vpop.trf.xlu1 }
 0xdce   : > { %6408 = vmatmul.mubr.msk.f32.gmra.mxu1 %vm1031_vm1, %v5069_v40 }
 0xdcf   : > { %5313 = vmatprep.mubr.f32.mxu1 %v11321_v60  ;;  %v5102_v39 = vpop.trf.xlu0 }
 0xdd1   : > { %v5070_v14 = vpop.trf.xlu1 }
 0xdd2   : > { %6409 = vmatmul.mubr.msk.f32.gmra.mxu1 %vm1031_vm1, %v5070_v14 }
 0xdd3   : > { %5319 = vmatprep.mubr.f32.mxu1 %v11321_v60  ;;  %v5103_v30 = vpop.trf.xlu0 }
 0xdd5   : > { %v5071_v32 = vpop.trf.xlu1 }
 0xdd6   : > { %6410 = vmatmul.mubr.msk.f32.gmra.mxu1 %vm1031_vm1, %v5071_v32 }
 0xdd7   : > { %5325 = vmatprep.mubr.f32.mxu1 %v11321_v60  ;;  %v5104_v50 = vpop.trf.xlu0 }
 0xdd9   : > { %v5072_v38 = vpop.trf.xlu1 }
 0xdda   : > { %6411 = vmatmul.mubr.msk.f32.gmra.mxu1 %vm1031_vm1, %v5072_v38 }
 0xddb   : > { %5331 = vmatprep.mubr.f32.mxu1 %v11321_v60  ;;  %v5105_v37 = vpop.trf.xlu0 }
 0xddd   : > { %v5073_v52 = vpop.trf.xlu1 }
 0xdde   : > { %6412 = vmatmul.mubr.msk.f32.gmra.mxu1 %vm1031_vm1, %v5073_v52 }
 0xddf   : > { %5337 = vmatprep.mubr.f32.mxu1 %v11321_v60  ;;  %v5106_v0 = vpop.trf.xlu0 }
 0xde1   : > { %v5074_v59 = vpop.trf.xlu1 }
 0xde2   : > { %6413 = vmatmul.mubr.msk.f32.gmra.mxu1 %vm1031_vm1, %v5074_v59 }
 0xde3   : > { %5343 = vmatprep.mubr.f32.mxu1 %v11321_v60  ;;  %v5107_v17 = vpop.trf.xlu0 }
 0xde5   : > { %v5075_v36 = vpop.trf.xlu1 }
 0xde6   : > { %6414 = vmatmul.mubr.msk.f32.gmra.mxu1 %vm1031_vm1, %v5075_v36 }
 0xde7   : > { %5349 = vmatprep.mubr.f32.mxu1 %v11321_v60  ;;  %v5108_v25 = vpop.trf.xlu0 }
 0xde9   : > { %v5076_v45 = vpop.trf.xlu1 }
 0xdea   : > { %6415 = vmatmul.mubr.msk.f32.gmra.mxu1 %vm1031_vm1, %v5076_v45 }
 0xdeb   : > { %5355 = vmatprep.mubr.f32.mxu1 %v11321_v60  ;;  %v5109_v9 = vpop.trf.xlu0 }
 0xded   : > { %v5077_v10 = vpop.trf.xlu1 }
 0xdee   : > { %6416 = vmatmul.mubr.msk.f32.gmra.mxu1 %vm1031_vm1, %v5077_v10 }
 0xdef   : > { %5361 = vmatprep.mubr.f32.mxu1 %v11321_v60  ;;  %v5110_v41 = vpop.trf.xlu0 }
 0xdf1   : > { %v5078_v15 = vpop.trf.xlu1 }
 0xdf2   : > { %6417 = vmatmul.mubr.msk.f32.gmra.mxu1 %vm1031_vm1, %v5078_v15 }
 0xdf3   : > { %5367 = vmatprep.mubr.f32.mxu1 %v11321_v60 }
 0xdf6   : > { %6418 = vmatmul.mubr.msk.f32.gmra.mxu1 %vm1031_vm1, %v5095_v11 }
 0xdf7   : > { %5373 = vmatprep.mubr.f32.mxu1 %v11321_v60 }
 0xdfa   : > { %6419 = vmatmul.mubr.msk.f32.gmra.mxu1 %vm1031_vm1, %v5096_v28 }
 0xdfb   : > { %5379 = vmatprep.mubr.f32.mxu1 %v11321_v60 }
 0xdfe   : > { %6420 = vmatmul.mubr.msk.f32.gmra.mxu1 %vm1031_vm1, %v5097_v24 }
 0xdff   : > { %5385 = vmatprep.mubr.f32.mxu1 %v11321_v60 }
 0xe02   : > { %6421 = vmatmul.mubr.msk.f32.gmra.mxu1 %vm1031_vm1, %v5098_v62 }
 0xe03   : > { %5391 = vmatprep.mubr.f32.mxu1 %v11321_v60 }
 0xe06   : > { %6422 = vmatmul.mubr.msk.f32.gmra.mxu1 %vm1031_vm1, %v5099_v54 }
 0xe07   : > { %5397 = vmatprep.mubr.f32.mxu1 %v11321_v60 }
 0xe0a   : > { %6423 = vmatmul.mubr.msk.f32.gmra.mxu1 %vm1031_vm1, %v5100_v43 }
 0xe0b   : > { %5403 = vmatprep.mubr.f32.mxu1 %v11321_v60 }
 0xe0e   : > { %6424 = vmatmul.mubr.msk.f32.gmra.mxu1 %vm1031_vm1, %v5101_v23 }
 0xe0f   : > { %5409 = vmatprep.mubr.f32.mxu1 %v11321_v60 }
 0xe12   : > { %6425 = vmatmul.mubr.msk.f32.gmra.mxu1 %vm1031_vm1, %v5102_v39 }
 0xe13   : > { %5415 = vmatprep.mubr.f32.mxu1 %v11321_v60 }
 0xe16   : > { %6426 = vmatmul.mubr.msk.f32.gmra.mxu1 %vm1031_vm1, %v5103_v30 }
 0xe17   : > { %5421 = vmatprep.mubr.f32.mxu1 %v11321_v60 }
 0xe1a   : > { %6427 = vmatmul.mubr.msk.f32.gmra.mxu1 %vm1031_vm1, %v5104_v50 }
 0xe1b   : > { %5427 = vmatprep.mubr.f32.mxu1 %v11321_v60 }
 0xe1e   : > { %6428 = vmatmul.mubr.msk.f32.gmra.mxu1 %vm1031_vm1, %v5105_v37 }
 0xe1f   : > { %5433 = vmatprep.mubr.f32.mxu1 %v11321_v60 }
 0xe22   : > { %6429 = vmatmul.mubr.msk.f32.gmra.mxu1 %vm1031_vm1, %v5106_v0 }
 0xe23   : > { %5439 = vmatprep.mubr.f32.mxu1 %v11321_v60 }
 0xe26   : > { %6430 = vmatmul.mubr.msk.f32.gmra.mxu1 %vm1031_vm1, %v5107_v17 }
 0xe27   : > { %5445 = vmatprep.mubr.f32.mxu1 %v11321_v60 }
 0xe2a   : > { %6431 = vmatmul.mubr.msk.f32.gmra.mxu1 %vm1031_vm1, %v5108_v25 }
 0xe2b   : > { %5451 = vmatprep.mubr.f32.mxu1 %v11321_v60 }
 0xe2e   : > { %6432 = vmatmul.mubr.msk.f32.gmra.mxu1 %vm1031_vm1, %v5109_v9 }
 0xe2f   : > { %5457 = vmatprep.mubr.f32.mxu1 %v11321_v60 }
 0xe32   : > { %6433 = vmatmul.mubr.msk.f32.gmra.mxu1 %vm1031_vm1, %v5110_v41 }
 0xe68   : > { %v5026_v6 = vpop.f32.mrf.mxu1 }
 0xe69   : > { %5033 = vst [vmem:[#allocation4] sm:$0xff] %v5026_v6 }
 0xe6a   : > { %v5028_v34 = vpop.f32.mrf.mxu1 }
 0xe6b   : > { %5034 = vst [vmem:[#allocation4 + $0x8] sm:$0xff] %v5028_v34 }
 0xe72   : > { %v5035_v57 = vld [vmem:[#allocation4] ss:$8 sm:$0x3] }
 0xe73   : > { %5037 = vst.msk [vmem:[#allocation3] ss:$8 sm:$0x3] %vm8177_vm2, %v5035_v57 }
 0xe76   : > { %v10174_v1 = vpop.f32.mrf.mxu1 }
 0xe77   : > { %11323 = vst [vmem:[#allocation40_spill] sm:$0xff] %v10174_v1 }
 0xe78   : > { %v10176_v5 = vpop.f32.mrf.mxu1 }
 0xe79   : > { %11324 = vst [vmem:[#allocation7_spill] sm:$0xff] %v10176_v5  ;;  %v5464_v57 = vmax.f32 %v10174_v1, %v10176_v5 }
 0xe7a   : > { %v10178_v44 = vpop.f32.mrf.mxu1  ;;  %v5977_v46 = vld [vmem:[#allocation3 + $0x8] sm:$0xff] }
 0xe7b   : > { %6044 = vmatprep.mubr.f32.mxu0 %v5977_v46 }
 0xe7c   : > { %v10180_v13 = vpop.f32.mrf.mxu1 }
 0xe7d   : > { %11325 = vst [vmem:[#allocation27_spill] sm:$0xff] %v10180_v13  ;;  %v5467_v9 = vmax.f32 %v10178_v44, %v10180_v13 }
 0xe7e   : > { %v10182_v7 = vpop.f32.mrf.mxu1 }
 0xe7f   : > { %11326 = vst [vmem:[#allocation8_spill] sm:$0xff] %v10182_v7 }
 0xe80   : > { %v10184_v56 = vpop.f32.mrf.mxu1 }
 0xe81   : > { %11327 = vst [vmem:[#allocation38_spill] sm:$0xff] %v10184_v56  ;;  %v5470_v41 = vmax.f32 %v10182_v7, %v10184_v56 }
 0xe82   : > { %v10186_v18 = vpop.f32.mrf.mxu1 }
 0xe84   : > { %v10188_v63 = vpop.f32.mrf.mxu1 }
 0xe85   : > { %v5473_v37 = vmax.f32 %v10186_v18, %v10188_v63 }
 0xe86   : > { %v10190_v19 = vpop.f32.mrf.mxu1 }
 0xe88   : > { %v10192_v35 = vpop.f32.mrf.mxu1 }
 0xe89   : > { %v5476_v0 = vmax.f32 %v10190_v19, %v10192_v35 }
 0xe8a   : > { %v10194_v27 = vpop.f32.mrf.mxu1 }
 0xe8c   : > { %v10196_v2 = vpop.f32.mrf.mxu1 }
 0xe8d   : > { %v5479_v23 = vmax.f32 %v10194_v27, %v10196_v2 }
 0xe8e   : > { %v10198_v48 = vpop.f32.mrf.mxu1 }
 0xe90   : > { %v10200_v33 = vpop.f32.mrf.mxu1 }
 0xe91   : > { %v5482_v39 = vmax.f32 %v10198_v48, %v10200_v33 }
 0xe92   : > { %v10202_v26 = vpop.f32.mrf.mxu1 }
 0xe94   : > { %v10204_v55 = vpop.f32.mrf.mxu1 }
 0xe95   : > { %v5485_v10 = vmax.f32 %v10202_v26, %v10204_v55 }
 0xe96   : > { %v10206_v21 = vpop.f32.mrf.mxu1 }
 0xe98   : > { %v10208_v51 = vpop.f32.mrf.mxu1 }
 0xe99   : > { %v5488_v54 = vmax.f32 %v10206_v21, %v10208_v51 }
 0xe9a   : > { %v10210_v31 = vpop.f32.mrf.mxu1 }
 0xe9c   : > { %v10212_v61 = vpop.f32.mrf.mxu1 }
 0xe9d   : > { %v5491_v24 = vmax.f32 %v10210_v31, %v10212_v61 }
 0xe9e   : > { %v10214_v20 = vpop.f32.mrf.mxu1 }
 0xea0   : > { %v10216_v53 = vpop.f32.mrf.mxu1 }
 0xea1   : > { %v5494_v36 = vmax.f32 %v10214_v20, %v10216_v53 }
 0xea2   : > { %v10218_v22 = vpop.f32.mrf.mxu1 }
 0xea4   : > { %v10220_v42 = vpop.f32.mrf.mxu1 }
 0xea5   : > { %v5497_v38 = vmax.f32 %v10218_v22, %v10220_v42 }
 0xea6   : > { %v10222_v29 = vpop.f32.mrf.mxu1 }
 0xea8   : > { %v10224_v3 = vpop.f32.mrf.mxu1 }
 0xea9   : > { %v5500_v28 = vmax.f32 %v10222_v29, %v10224_v3 }
 0xeaa   : > { %v10226_v60 = vpop.f32.mrf.mxu1 }
 0xeac   : > { %v10228_v49 = vpop.f32.mrf.mxu1 }
 0xead   : > { %v5503_v40 = vmax.f32 %v10226_v60, %v10228_v49 }
 0xeae   : > { %v10230_v16 = vpop.f32.mrf.mxu1 }
 0xeb0   : > { %v10232_v12 = vpop.f32.mrf.mxu1 }
 0xeb1   : > { %v5506_v8 = vmax.f32 %v10230_v16, %v10232_v12 }
 0xeb2   : > { %v10236_v47 = vpop.f32.mrf.mxu1 }
 0xeb3   : > { %5507 = vmax.xlane.f32.xlu1 %v5506_v8 }
 0xeb4   : > { %v10238_v4 = vpop.f32.mrf.mxu1 }
 0xeb5   : > { %v5509_v14 = vmax.f32 %v10236_v47, %v10238_v4 }
 0xeb6   : > { %v10244_v32 = vpop.f32.mrf.mxu1 }
 0xeb7   : > { %11328 = vst [vmem:[#allocation28_spill] sm:$0xff] %v10244_v32  ;;  %5504 = vmax.xlane.f32.xlu1 %v5503_v40  ;;  %5510 = vmax.xlane.f32.xlu0 %v5509_v14 }
 0xeb8   : > { %v10246_v11 = vpop.f32.mrf.mxu1 }
 0xeb9   : > { %11329 = vst [vmem:[#allocation31_spill] sm:$0xff] %v10246_v11 }
 0xeba   : > { %v10252_v52 = vpop.f32.mrf.mxu1 }
 0xebb   : > { %11330 = vst [vmem:[#allocation6_spill] sm:$0xff] %v10252_v52  ;;  %5498 = vmax.xlane.f32.xlu1 %v5497_v38  ;;  %5501 = vmax.xlane.f32.xlu0 %v5500_v28 }
 0xebc   : > { %v10254_v59 = vpop.f32.mrf.mxu1 }
 0xebd   : > { %11331 = vst [vmem:[#allocation10_spill] sm:$0xff] %v10254_v59 }
 0xebe   : > { %v10260_v62 = vpop.f32.mrf.mxu1 }
 0xebf   : > { %11332 = vst [vmem:[#allocation32_spill] sm:$0xff] %v10260_v62  ;;  %5492 = vmax.xlane.f32.xlu1 %v5491_v24  ;;  %5495 = vmax.xlane.f32.xlu0 %v5494_v36 }
 0xec0   : > { %v10262_v45 = vpop.f32.mrf.mxu1 }
 0xec1   : > { %11333 = vst [vmem:[#allocation16_spill] sm:$0xff] %v10262_v45 }
 0xec2   : > { %v10268_v15 = vpop.f32.mrf.mxu1 }
 0xec3   : > { %5486 = vmax.xlane.f32.xlu1 %v5485_v10  ;;  %5489 = vmax.xlane.f32.xlu0 %v5488_v54 }
 0xec4   : > { %v10270_v43 = vpop.f32.mrf.mxu1 }
 0xec5   : > { %11334 = vst [vmem:[#allocation18_spill] sm:$0xff] %v10270_v43 }
 0xec6   : > { %v10276_v30 = vpop.f32.mrf.mxu1 }
 0xec7   : > { %5480 = vmax.xlane.f32.xlu1 %v5479_v23  ;;  %5483 = vmax.xlane.f32.xlu0 %v5482_v39 }
 0xec8   : > { %v10278_v50 = vpop.f32.mrf.mxu1 }
 0xeca   : > { %v10284_v17 = vpop.f32.mrf.mxu1 }
 0xecb   : > { %11335 = vst [vmem:[#allocation35_spill] sm:$0xff] %v10284_v17  ;;  %5474 = vmax.xlane.f32.xlu1 %v5473_v37  ;;  %5477 = vmax.xlane.f32.xlu0 %v5476_v0 }
 0xecc   : > { %v10286_v25 = vpop.f32.mrf.mxu1 }
 0xecd   : > { %11336 = vst [vmem:[#allocation34_spill] sm:$0xff] %v10286_v25 }
 0xece   : > { %v10292_v6 = vpop.f32.mrf.mxu1 }
 0xecf   : > { %5468 = vmax.xlane.f32.xlu1 %v5467_v9  ;;  %5471 = vmax.xlane.f32.xlu0 %v5470_v41 }
 0xed0   : > { %v10294_v34 = vpop.f32.mrf.mxu1 }
 0xed2   : > { %v10298_v46 = vpop.f32.mrf.mxu1 }
 0xed3   : > { %5465 = vmax.xlane.f32.xlu0 %v5464_v57 }
 0xed4   : > { %v10300_v8 = vpop.f32.mrf.mxu1 }
 0xed6   : > { %v10302_v40 = vpop.f32.mrf.mxu1 }
 0xed8   : > { %v10304_v14 = vpop.f32.mrf.mxu1 }
 0xeda   : > { %v10306_v38 = vpop.f32.mrf.mxu1 }
 0xedc   : > { %v10308_v28 = vpop.f32.mrf.mxu1 }
 0xede   : > { %v10310_v24 = vpop.f32.mrf.mxu1 }
 0xee0   : > { %v10312_v36 = vpop.f32.mrf.mxu1 }
 0xee1   : > { %v5542_v7 = vmax.f32 %v10310_v24, %v10312_v36 }
 0xee2   : > { %v10314_v10 = vpop.f32.mrf.mxu1 }
 0xee4   : > { %v10316_v54 = vpop.f32.mrf.mxu1 }
 0xee6   : > { %v10318_v23 = vpop.f32.mrf.mxu1 }
 0xee8   : > { %v10320_v39 = vpop.f32.mrf.mxu1 }
 0xee9   : > { %v5548_v1 = vmax.f32 %v10318_v23, %v10320_v39 }
 0xeea   : > { %v10322_v37 = vpop.f32.mrf.mxu1 }
 0xeec   : > { %v10324_v0 = vpop.f32.mrf.mxu1 }
 0xeed   : > { %v5551_v13 = vmax.f32 %v10322_v37, %v10324_v0 }
 0xeee   : > { %v10326_v9 = vpop.f32.mrf.mxu1 }
 0xef0   : > { %v10328_v41 = vpop.f32.mrf.mxu1 }
 0xef1   : > { %11337 = vst [vmem:[#allocation37_spill] sm:$0xff] %v10328_v41  ;;  %v5554_v57 = vmax.f32 %v10326_v9, %v10328_v41  ;;  %v5545_v41 = vmax.f32 %v10314_v10, %v10316_v54 }
 0xef2   : > { %v10332_v58 = vpop.f32.mrf.mxu1 }
 0xef3   : > { %5555 = vmax.xlane.f32.xlu0 %v5554_v57  ;;  %v5536_v57 = vmax.f32 %v10302_v40, %v10304_v14 }
 0xef4   : > { %v10334_v5 = vpop.f32.mrf.mxu1 }
 0xef5   : > { %v5557_v56 = vmax.f32 %v10332_v58, %v10334_v5 }
 0xef7   : > { %5549 = vmax.xlane.f32.xlu0 %v5548_v1  ;;  %5558 = vmax.xlane.f32.xlu1 %v5557_v56  ;;  %v5530_v1 = vmax.f32 %v10292_v6, %v10294_v34  ;;  %v5539_v56 = vmax.f32 %v10306_v38, %v10308_v28 }
 0xefb   : > { %5543 = vmax.xlane.f32.xlu0 %v5542_v7  ;;  %5552 = vmax.xlane.f32.xlu1 %v5551_v13  ;;  %v5524_v7 = vmax.f32 %v10276_v30, %v10278_v50  ;;  %v5533_v13 = vmax.f32 %v10298_v46, %v10300_v8 }
 0xeff   : > { %5537 = vmax.xlane.f32.xlu0 %v5536_v57  ;;  %5546 = vmax.xlane.f32.xlu1 %v5545_v41  ;;  %v5518_v57 = vmax.f32 %v10260_v62, %v10262_v45  ;;  %v5527_v41 = vmax.f32 %v10284_v17, %v10286_v25 }
 0xf03   : > { %5531 = vmax.xlane.f32.xlu0 %v5530_v1  ;;  %5540 = vmax.xlane.f32.xlu1 %v5539_v56  ;;  %v5512_v1 = vmax.f32 %v10244_v32, %v10246_v11  ;;  %v5521_v56 = vmax.f32 %v10268_v15, %v10270_v43 }
 0xf07   : > { %5525 = vmax.xlane.f32.xlu0 %v5524_v7  ;;  %5534 = vmax.xlane.f32.xlu1 %v5533_v13  ;;  %v5515_v7 = vmax.f32 %v10252_v52, %v10254_v59 }
 0xf0b   : > { %5519 = vmax.xlane.f32.xlu0 %v5518_v57  ;;  %5528 = vmax.xlane.f32.xlu1 %v5527_v41 }
 0xf0f   : > { %5513 = vmax.xlane.f32.xlu0 %v5512_v1  ;;  %5522 = vmax.xlane.f32.xlu1 %v5521_v56 }
 0xf13   : > { %5516 = vmax.xlane.f32.xlu1 %v5515_v7 }
 0xf3c   : > { %v5508_v13 = vpop.xlane.xlu1 %5507 }
 0xf3d   : > { %v5588_v45 = vsub.f32 %v10230_v16, %v5508_v13  ;;  %v5589_v62 = vsub.f32 %v10232_v12, %v5508_v13 }
 0xf3f   : > { %v5680_v25 = vmul.f32 1.442695, %v5588_v45  ;;  %v5682_v57 = vmul.f32 1.442695, %v5589_v62 }
 0xf40   : > { %v5505_v41 = vpop.xlane.xlu1 %5504  ;;  %v5511_v17 = vpop.xlane.xlu0 %5510 }
 0xf41   : > { %7246 = vpow2.f32 %v5680_v25  ;;  %v5586_v11 = vsub.f32 %v10226_v60, %v5505_v41  ;;  %v5587_v32 = vsub.f32 %v10228_v49, %v5505_v41  ;;  %v5590_v1 = vsub.f32 %v10236_v47, %v5511_v17 }
 0xf42   : > { %7248 = vpow2.f32 %v5682_v57  ;;  %v5591_v56 = vsub.f32 %v10238_v4, %v5511_v17 }
 0xf43   : > { %v5676_v7 = vmul.f32 1.442695, %v5586_v11  ;;  %v5678_v59 = vmul.f32 1.442695, %v5587_v32  ;;  %v5684_v52 = vmul.f32 1.442695, %v5590_v1 }
 0xf44   : > { %v5686_v16 = vmul.f32 1.442695, %v5591_v56  ;;  %v5499_v43 = vpop.xlane.xlu1 %5498  ;;  %v5502_v12 = vpop.xlane.xlu0 %5501 }
 0xf45   : > { %7250 = vpow2.f32 %v5676_v7  ;;  %v5582_v62 = vsub.f32 %v10218_v22, %v5499_v43  ;;  %v5583_v45 = vsub.f32 %v10220_v42, %v5499_v43  ;;  %v5584_v60 = vsub.f32 %v10222_v29, %v5502_v12 }
 0xf46   : > { %7252 = vpow2.f32 %v5678_v59  ;;  %v5585_v49 = vsub.f32 %v10224_v3, %v5502_v12 }
 0xf47   : > { %7254 = vpow2.f32 %v5684_v52  ;;  %v5668_v47 = vmul.f32 1.442695, %v5582_v62  ;;  %v5670_v25 = vmul.f32 1.442695, %v5583_v45  ;;  %v5672_v4 = vmul.f32 1.442695, %v5584_v60 }
 0xf48   : > { %7256 = vpow2.f32 %v5686_v16  ;;  %v5674_v32 = vmul.f32 1.442695, %v5585_v49  ;;  %v5493_v11 = vpop.xlane.xlu1 %5492  ;;  %v5496_v17 = vpop.xlane.xlu0 %5495 }
 0xf49   : > { %7258 = vpow2.f32 %v5668_v47  ;;  %v5578_v13 = vsub.f32 %v10210_v31, %v5493_v11  ;;  %v5579_v22 = vsub.f32 %v10212_v61, %v5493_v11  ;;  %v5580_v42 = vsub.f32 %v10214_v20, %v5496_v17 }
 0xf4a   : > { %7260 = vpow2.f32 %v5670_v25  ;;  %v5581_v29 = vsub.f32 %v10216_v53, %v5496_v17 }
 0xf4b   : > { %7262 = vpow2.f32 %v5672_v4  ;;  %v5660_v3 = vmul.f32 1.442695, %v5578_v13  ;;  %v5662_v52 = vmul.f32 1.442695, %v5579_v22  ;;  %v5664_v59 = vmul.f32 1.442695, %v5580_v42 }
 0xf4c   : > { %7264 = vpow2.f32 %v5674_v32  ;;  %v5666_v43 = vmul.f32 1.442695, %v5581_v29  ;;  %v5487_v57 = vpop.xlane.xlu1 %5486  ;;  %v5490_v41 = vpop.xlane.xlu0 %5489 }
 0xf4d   : > { %7266 = vpow2.f32 %v5660_v3  ;;  %v5574_v1 = vsub.f32 %v10202_v26, %v5487_v57  ;;  %v5575_v31 = vsub.f32 %v10204_v55, %v5487_v57  ;;  %v5576_v61 = vsub.f32 %v10206_v21, %v5490_v41 }
 0xf4e   : > { %v10383_v56 = vpop.eup %7246  ;;  %7268 = vpow2.f32 %v5662_v52  ;;  %v5577_v20 = vsub.f32 %v10208_v51, %v5490_v41 }
 0xf4f   : > { %v10386_v53 = vpop.eup %7248  ;;  %7270 = vpow2.f32 %v5664_v59  ;;  %v5652_v7 = vmul.f32 1.442695, %v5574_v1  ;;  %v5654_v16 = vmul.f32 1.442695, %v5575_v31  ;;  %v5656_v12 = vmul.f32 1.442695, %v5576_v61 }
 0xf50   : > { %7272 = vpow2.f32 %v5666_v43  ;;  %v5658_v62 = vmul.f32 1.442695, %v5577_v20  ;;  %v5481_v45 = vpop.xlane.xlu1 %5480  ;;  %v5484_v60 = vpop.xlane.xlu0 %5483  ;;  %v5794_v26 = vadd.f32 %v10386_v53, %v10383_v56  ;;  %v11338_v61 = vld [vmem:[#allocation27_spill] sm:$0xff] }
 0xf51   : > { %7274 = vpow2.f32 %v5652_v7  ;;  %v5570_v55 = vsub.f32 %v10194_v27, %v5481_v45  ;;  %v5571_v21 = vsub.f32 %v10196_v2, %v5481_v45  ;;  %v5572_v51 = vsub.f32 %v10198_v48, %v5484_v60  ;;  %v11339_v7 = vld [vmem:[#allocation8_spill] sm:$0xff] }
 0xf52   : > { %v10393_v49 = vpop.eup %7250  ;;  %7276 = vpow2.f32 %v5654_v16  ;;  %v5573_v47 = vsub.f32 %v10200_v33, %v5484_v60  ;;  %5795 = vadd.xlane.f32.xlu0 %v5794_v26 }
 0xf53   : > { %v10396_v25 = vpop.eup %7252  ;;  %7278 = vpow2.f32 %v5656_v12  ;;  %v5644_v4 = vmul.f32 1.442695, %v5570_v55  ;;  %v5646_v32 = vmul.f32 1.442695, %v5571_v21  ;;  %v5648_v11 = vmul.f32 1.442695, %v5572_v51 }
 0xf54   : > { %v10398_v17 = vpop.eup %7254  ;;  %7280 = vpow2.f32 %v5658_v62  ;;  %v5650_v27 = vmul.f32 1.442695, %v5573_v47  ;;  %v5475_v13 = vpop.xlane.xlu1 %5474  ;;  %v11340_v62 = vld [vmem:[#allocation38_spill] sm:$0xff]  ;;  %v5791_v60 = vadd.f32 %v10396_v25, %v10393_v49 }
 0xf55   : > { %v5478_v2 = vpop.xlane.xlu0 %5477  ;;  %v10400_v22 = vpop.eup %7256  ;;  %7282 = vpow2.f32 %v5644_v4  ;;  %v5566_v48 = vsub.f32 %v10186_v18, %v5475_v13  ;;  %v5567_v33 = vsub.f32 %v10188_v63, %v5475_v13 }
 0xf56   : > { %v5568_v42 = vsub.f32 %v10190_v19, %v5478_v2  ;;  %v10405_v29 = vpop.eup %7258  ;;  %7284 = vpow2.f32 %v5646_v32  ;;  %v5569_v3 = vsub.f32 %v10192_v35, %v5478_v2  ;;  %v5797_v52 = vadd.f32 %v10400_v22, %v10398_v17  ;;  %v11342_v2 = vld [vmem:[#allocation7_spill] sm:$0xff] }
 0xf57   : > { %v10410_v59 = vpop.eup %7260  ;;  %7286 = vpow2.f32 %v5648_v11  ;;  %v5636_v43 = vmul.f32 1.442695, %v5566_v48  ;;  %v5638_v57 = vmul.f32 1.442695, %v5567_v33 }
 0xf58   : > { %v5640_v41 = vmul.f32 1.442695, %v5568_v42  ;;  %v10412_v1 = vpop.eup %7262  ;;  %7288 = vpow2.f32 %v5650_v27  ;;  %v5642_v18 = vmul.f32 1.442695, %v5569_v3  ;;  %5798 = vadd.xlane.f32.xlu1 %v5797_v52  ;;  %v5469_v63 = vpop.xlane.xlu1 %5468  ;;  %v11341_v27 = vld [vmem:[#allocation40_spill] sm:$0xff]  ;;  %v5785_v42 = vadd.f32 %v10410_v59, %v10405_v29 }
 0xf59   : > { %v5472_v19 = vpop.xlane.xlu0 %5471  ;;  %v10414_v31 = vpop.eup %7264  ;;  %7290 = vpow2.f32 %v5636_v43  ;;  %v5562_v35 = vsub.f32 %v10178_v44, %v5469_v63  ;;  %v5563_v20 = vsub.f32 %v11338_v61, %v5469_v63 }
 0xf5a   : > { %v5564_v16 = vsub.f32 %v11339_v7, %v5472_v19  ;;  %v10419_v12 = vpop.eup %7266  ;;  %7292 = vpow2.f32 %v5638_v57  ;;  %v5565_v45 = vsub.f32 %v11340_v62, %v5472_v19  ;;  %v5788_v26 = vadd.f32 %v10414_v31, %v10412_v1 }
 0xf5b   : > { %v10426_v55 = vpop.eup %7268  ;;  %7294 = vpow2.f32 %v5640_v41  ;;  %v5628_v21 = vmul.f32 1.442695, %v5562_v35  ;;  %v5630_v44 = vmul.f32 1.442695, %v5563_v20 }
 0xf5c   : > { %v5632_v51 = vmul.f32 1.442695, %v5564_v16  ;;  %v10428_v47 = vpop.eup %7270  ;;  %7296 = vpow2.f32 %v5642_v18  ;;  %v5634_v4 = vmul.f32 1.442695, %v5565_v45  ;;  %5792 = vadd.xlane.f32.xlu1 %v5791_v60  ;;  %5789 = vadd.xlane.f32.xlu0 %v5788_v26  ;;  %v5779_v19 = vadd.f32 %v10426_v55, %v10419_v12 }
 0xf5d   : > { %v5466_v32 = vpop.xlane.xlu0 %5465  ;;  %v10430_v11 = vpop.eup %7272  ;;  %7298 = vpow2.f32 %v5628_v21 }
 0xf5e   : > { %v5560_v13 = vsub.f32 %v11341_v27, %v5466_v32  ;;  %v5561_v48 = vsub.f32 %v11342_v2, %v5466_v32  ;;  %v10434_v33 = vpop.eup %7274  ;;  %7300 = vpow2.f32 %v5630_v44  ;;  %v5782_v3 = vadd.f32 %v10430_v11, %v10428_v47 }
 0xf5f   : > { %v10440_v52 = vpop.eup %7276  ;;  %7302 = vpow2.f32 %v5632_v51 }
 0xf60   : > { %v5624_v43 = vmul.f32 1.442695, %v5560_v13  ;;  %v5626_v57 = vmul.f32 1.442695, %v5561_v48  ;;  %v10442_v41 = vpop.eup %7278  ;;  %7304 = vpow2.f32 %v5634_v4  ;;  %5786 = vadd.xlane.f32.xlu1 %v5785_v42  ;;  %5783 = vadd.xlane.f32.xlu0 %v5782_v3  ;;  %v5773_v62 = vadd.f32 %v10440_v52, %v10434_v33 }
 0xf61   : > { %v10444_v18 = vpop.eup %7280 }
 0xf62   : > { %7306 = vpow2.f32 %v5624_v43  ;;  %v10446_v63 = vpop.eup %7282  ;;  %v5776_v35 = vadd.f32 %v10444_v18, %v10442_v41 }
 0xf63   : > { %7308 = vpow2.f32 %v5626_v57  ;;  %v10452_v61 = vpop.eup %7284 }
 0xf64   : > { %v10454_v20 = vpop.eup %7286  ;;  %5780 = vadd.xlane.f32.xlu1 %v5779_v19  ;;  %5777 = vadd.xlane.f32.xlu0 %v5776_v35  ;;  %v5767_v51 = vadd.f32 %v10452_v61, %v10446_v63 }
 0xf65   : > { %v10456_v7 = vpop.eup %7288 }
 0xf66   : > { %v10458_v16 = vpop.eup %7290  ;;  %v5770_v45 = vadd.f32 %v10456_v7, %v10454_v20 }
 0xf67   : > { %v10464_v60 = vpop.eup %7292 }
 0xf68   : > { %v10466_v26 = vpop.eup %7294  ;;  %5774 = vadd.xlane.f32.xlu1 %v5773_v62  ;;  %5771 = vadd.xlane.f32.xlu0 %v5770_v45  ;;  %v5761_v48 = vadd.f32 %v10464_v60, %v10458_v16  ;;  %v11349_v62 = vld [vmem:[#allocation37_spill] sm:$0xff] }
 0xf69   : > { %v10468_v21 = vpop.eup %7296 }
 0xf6a   : > { %v10470_v44 = vpop.eup %7298  ;;  %v5764_v4 = vadd.f32 %v10468_v21, %v10466_v26 }
 0xf6b   : > { %11343 = vst [vmem:[#allocation24_spill] sm:$0xff] %v10470_v44  ;;  %v10476_v32 = vpop.eup %7300 }
 0xf6c   : > { %11344 = vst [vmem:[#allocation26_spill] sm:$0xff] %v10476_v32  ;;  %v10478_v27 = vpop.eup %7302  ;;  %5768 = vadd.xlane.f32.xlu1 %v5767_v51  ;;  %5765 = vadd.xlane.f32.xlu0 %v5764_v4  ;;  %v5755_v57 = vadd.f32 %v10476_v32, %v10470_v44 }
 0xf6d   : > { %11345 = vst [vmem:[#allocation5_spill] sm:$0xff] %v10478_v27  ;;  %v10480_v13 = vpop.eup %7304 }
 0xf6e   : > { %11346 = vst [vmem:[#allocation41_spill] sm:$0xff] %v10480_v13  ;;  %v5758_v42 = vadd.f32 %v10480_v13, %v10478_v27 }
 0xf6f   : > { %v10482_v2 = vpop.eup %7306 }
 0xf70   : > { %11347 = vst [vmem:[#allocation46_spill] sm:$0xff] %v10482_v2  ;;  %v10488_v3 = vpop.eup %7308  ;;  %5762 = vadd.xlane.f32.xlu1 %v5761_v48  ;;  %5759 = vadd.xlane.f32.xlu0 %v5758_v42 }
 0xf71   : > { %11348 = vst [vmem:[#allocation36_spill] sm:$0xff] %v10488_v3  ;;  %v5752_v43 = vadd.f32 %v10488_v3, %v10482_v2 }
 0xf74   : > { %5756 = vadd.xlane.f32.xlu1 %v5755_v57  ;;  %5753 = vadd.xlane.f32.xlu0 %v5752_v43 }
 0xf7c   : > { %v5556_v19 = vpop.xlane.xlu0 %5555 }
 0xf7d   : > { %v5620_v35 = vsub.f32 %v10326_v9, %v5556_v19  ;;  %v5621_v45 = vsub.f32 %v11349_v62, %v5556_v19 }
 0xf7f   : > { %v5744_v51 = vmul.f32 1.442695, %v5620_v35  ;;  %v5746_v4 = vmul.f32 1.442695, %v5621_v45 }
 0xf80   : > { %v5559_v27 = vpop.xlane.xlu1 %5558  ;;  %v5550_v13 = vpop.xlane.xlu0 %5549 }
 0xf81   : > { %7310 = vpow2.f32 %v5744_v51  ;;  %v5622_v48 = vsub.f32 %v10332_v58, %v5559_v27  ;;  %v5623_v42 = vsub.f32 %v10334_v5, %v5559_v27  ;;  %v5616_v2 = vsub.f32 %v10318_v23, %v5550_v13 }
 0xf82   : > { %7312 = vpow2.f32 %v5746_v4  ;;  %v5617_v57 = vsub.f32 %v10320_v39, %v5550_v13 }
 0xf83   : > { %v5748_v43 = vmul.f32 1.442695, %v5622_v48  ;;  %v5750_v3 = vmul.f32 1.442695, %v5623_v42  ;;  %v5736_v44 = vmul.f32 1.442695, %v5616_v2 }
 0xf84   : > { %v5738_v9 = vmul.f32 1.442695, %v5617_v57  ;;  %v5553_v32 = vpop.xlane.xlu1 %5552  ;;  %v5544_v19 = vpop.xlane.xlu0 %5543 }
 0xf85   : > { %7314 = vpow2.f32 %v5748_v43  ;;  %v5618_v35 = vsub.f32 %v10322_v37, %v5553_v32  ;;  %v5619_v62 = vsub.f32 %v10324_v0, %v5553_v32  ;;  %v5612_v58 = vsub.f32 %v10310_v24, %v5544_v19 }
 0xf86   : > { %7316 = vpow2.f32 %v5750_v3  ;;  %v5613_v5 = vsub.f32 %v10312_v36, %v5544_v19 }
 0xf87   : > { %7318 = vpow2.f32 %v5736_v44  ;;  %v5740_v23 = vmul.f32 1.442695, %v5618_v35  ;;  %v5742_v27 = vmul.f32 1.442695, %v5619_v62  ;;  %v5728_v39 = vmul.f32 1.442695, %v5612_v58 }
 0xf88   : > { %7320 = vpow2.f32 %v5738_v9  ;;  %v5730_v13 = vmul.f32 1.442695, %v5613_v5  ;;  %v5547_v2 = vpop.xlane.xlu1 %5546  ;;  %v5538_v45 = vpop.xlane.xlu0 %5537 }
 0xf89   : > { %7322 = vpow2.f32 %v5740_v23  ;;  %v5614_v51 = vsub.f32 %v10314_v10, %v5547_v2  ;;  %v5615_v37 = vsub.f32 %v10316_v54, %v5547_v2  ;;  %v5608_v0 = vsub.f32 %v10302_v40, %v5538_v45 }
 0xf8a   : > { %7324 = vpow2.f32 %v5742_v27  ;;  %v5609_v24 = vsub.f32 %v10304_v14, %v5538_v45 }
 0xf8b   : > { %7326 = vpow2.f32 %v5728_v39  ;;  %v5732_v36 = vmul.f32 1.442695, %v5614_v51  ;;  %v5734_v44 = vmul.f32 1.442695, %v5615_v37  ;;  %v5720_v32 = vmul.f32 1.442695, %v5608_v0 }
 0xf8c   : > { %7328 = vpow2.f32 %v5730_v13  ;;  %v5722_v3 = vmul.f32 1.442695, %v5609_v24  ;;  %v5541_v4 = vpop.xlane.xlu1 %5540  ;;  %v5532_v48 = vpop.xlane.xlu0 %5531  ;;  %v11351_v24 = vld [vmem:[#allocation34_spill] sm:$0xff] }
 0xf8d   : > { %7330 = vpow2.f32 %v5732_v36  ;;  %v5610_v42 = vsub.f32 %v10306_v38, %v5541_v4  ;;  %v5611_v10 = vsub.f32 %v10308_v28, %v5541_v4  ;;  %v5604_v54 = vsub.f32 %v10292_v6, %v5532_v48  ;;  %v11353_v4 = vld [vmem:[#allocation16_spill] sm:$0xff] }
 0xf8e   : > { %v10511_v57 = vpop.eup %7310  ;;  %7332 = vpow2.f32 %v5734_v44  ;;  %v5605_v40 = vsub.f32 %v10294_v34, %v5532_v48  ;;  %v11352_v44 = vld [vmem:[#allocation32_spill] sm:$0xff] }
 0xf8f   : > { %v10514_v14 = vpop.eup %7312  ;;  %7334 = vpow2.f32 %v5720_v32  ;;  %v5724_v43 = vmul.f32 1.442695, %v5610_v42  ;;  %v5726_v9 = vmul.f32 1.442695, %v5611_v10  ;;  %v5712_v19 = vmul.f32 1.442695, %v5604_v54 }
 0xf90   : > { %7336 = vpow2.f32 %v5722_v3  ;;  %v5714_v35 = vmul.f32 1.442695, %v5605_v40  ;;  %v5535_v62 = vpop.xlane.xlu1 %5534  ;;  %v5526_v58 = vpop.xlane.xlu0 %5525  ;;  %v5842_v38 = vadd.f32 %v10514_v14, %v10511_v57 }
 0xf91   : > { %7338 = vpow2.f32 %v5724_v43  ;;  %v5606_v6 = vsub.f32 %v10298_v46, %v5535_v62  ;;  %v5607_v28 = vsub.f32 %v10300_v8, %v5535_v62  ;;  %v5600_v34 = vsub.f32 %v10276_v30, %v5526_v58 }
 0xf92   : > { %v10521_v5 = vpop.eup %7314  ;;  %7340 = vpow2.f32 %v5726_v9  ;;  %v5601_v23 = vsub.f32 %v10278_v50, %v5526_v58  ;;  %5843 = vadd.xlane.f32.xlu0 %v5842_v38  ;;  %v11350_v50 = vld [vmem:[#allocation35_spill] sm:$0xff] }
 0xf93   : > { %v10524_v27 = vpop.eup %7316  ;;  %7342 = vpow2.f32 %v5712_v19  ;;  %v5716_v39 = vmul.f32 1.442695, %v5606_v6  ;;  %v5718_v13 = vmul.f32 1.442695, %v5607_v28  ;;  %v5704_v2 = vmul.f32 1.442695, %v5600_v34 }
 0xf94   : > { %v10526_v45 = vpop.eup %7318  ;;  %7344 = vpow2.f32 %v5714_v35  ;;  %v5706_v46 = vmul.f32 1.442695, %v5601_v23  ;;  %v5529_v51 = vpop.xlane.xlu1 %5528  ;;  %v5845_v30 = vadd.f32 %v10524_v27, %v10521_v5  ;;  %v11354_v28 = vld [vmem:[#allocation18_spill] sm:$0xff]  ;;  %v11355_v23 = vld [vmem:[#allocation28_spill] sm:$0xff] }
 0xf95   : > { %v5520_v8 = vpop.xlane.xlu0 %5519  ;;  %v10530_v37 = vpop.eup %7320  ;;  %7346 = vpow2.f32 %v5716_v39  ;;  %v5602_v0 = vsub.f32 %v11350_v50, %v5529_v51  ;;  %v5603_v36 = vsub.f32 %v11351_v24, %v5529_v51 }
 0xf96   : > { %v5596_v32 = vsub.f32 %v11352_v44, %v5520_v8  ;;  %v10535_v3 = vpop.eup %7322  ;;  %7348 = vpow2.f32 %v5718_v13  ;;  %v5597_v48 = vsub.f32 %v11353_v4, %v5520_v8  ;;  %5846 = vadd.xlane.f32.xlu1 %v5845_v30  ;;  %v5836_v42 = vadd.f32 %v10530_v37, %v10526_v45  ;;  %v11357_v4 = vld [vmem:[#allocation6_spill] sm:$0xff] }
 0xf97   : > { %v10540_v10 = vpop.eup %7324  ;;  %7350 = vpow2.f32 %v5704_v2  ;;  %v5708_v54 = vmul.f32 1.442695, %v5602_v0  ;;  %v5710_v40 = vmul.f32 1.442695, %v5603_v36  ;;  %v11356_v2 = vld [vmem:[#allocation31_spill] sm:$0xff] }
 0xf98   : > { %v5696_v43 = vmul.f32 1.442695, %v5596_v32  ;;  %v10542_v9 = vpop.eup %7326  ;;  %7352 = vpow2.f32 %v5706_v46  ;;  %v5698_v19 = vmul.f32 1.442695, %v5597_v48  ;;  %5837 = vadd.xlane.f32.xlu0 %v5836_v42  ;;  %v5523_v35 = vpop.xlane.xlu1 %5522  ;;  %v5839_v58 = vadd.f32 %v10540_v10, %v10535_v3  ;;  %v11358_v42 = vld [vmem:[#allocation10_spill] sm:$0xff] }
 0xf99   : > { %v5514_v62 = vpop.xlane.xlu0 %5513  ;;  %v10546_v38 = vpop.eup %7328  ;;  %7354 = vpow2.f32 %v5708_v54  ;;  %v5598_v6 = vsub.f32 %v10268_v15, %v5523_v35  ;;  %v5599_v34 = vsub.f32 %v11354_v28, %v5523_v35 }
 0xf9a   : > { %v5592_v39 = vsub.f32 %v11355_v23, %v5514_v62  ;;  %v10551_v13 = vpop.eup %7330  ;;  %7356 = vpow2.f32 %v5710_v40  ;;  %v5593_v46 = vsub.f32 %v11356_v2, %v5514_v62  ;;  %5840 = vadd.xlane.f32.xlu1 %v5839_v58  ;;  %v5830_v51 = vadd.f32 %v10546_v38, %v10542_v9 }
 0xf9b   : > { %v10556_v8 = vpop.eup %7332  ;;  %7358 = vpow2.f32 %v5696_v43  ;;  %v5700_v30 = vmul.f32 1.442695, %v5598_v6  ;;  %v5702_v50 = vmul.f32 1.442695, %v5599_v34 }
 0xf9c   : > { %v5688_v0 = vmul.f32 1.442695, %v5592_v39  ;;  %v10558_v15 = vpop.eup %7334  ;;  %7360 = vpow2.f32 %v5698_v19  ;;  %v5690_v24 = vmul.f32 1.442695, %v5593_v46  ;;  %5831 = vadd.xlane.f32.xlu0 %v5830_v51  ;;  %v5517_v36 = vpop.xlane.xlu1 %5516  ;;  %v5833_v44 = vadd.f32 %v10556_v8, %v10551_v13 }
 0xf9d   : > { %v10562_v32 = vpop.eup %7336  ;;  %7362 = vpow2.f32 %v5700_v30  ;;  %v5594_v48 = vsub.f32 %v11357_v4, %v5517_v36  ;;  %v5595_v54 = vsub.f32 %v11358_v42, %v5517_v36 }
 0xf9e   : > { %v10566_v40 = vpop.eup %7338  ;;  %7364 = vpow2.f32 %v5702_v50  ;;  %5834 = vadd.xlane.f32.xlu1 %v5833_v44  ;;  %v5824_v43 = vadd.f32 %v10562_v32, %v10558_v15 }
 0xf9f   : > { %v10570_v19 = vpop.eup %7340  ;;  %7366 = vpow2.f32 %v5688_v0  ;;  %v5692_v35 = vmul.f32 1.442695, %v5594_v48  ;;  %v5694_v62 = vmul.f32 1.442695, %v5595_v54 }
 0xfa0   : > { %v10572_v58 = vpop.eup %7342  ;;  %7368 = vpow2.f32 %v5690_v24  ;;  %5825 = vadd.xlane.f32.xlu0 %v5824_v43  ;;  %v5827_v6 = vadd.f32 %v10570_v19, %v10566_v40 }
 0xfa1   : > { %v10576_v28 = vpop.eup %7344  ;;  %7370 = vpow2.f32 %v5692_v35 }
 0xfa2   : > { %v10578_v34 = vpop.eup %7346  ;;  %7372 = vpow2.f32 %v5694_v62  ;;  %5828 = vadd.xlane.f32.xlu1 %v5827_v6  ;;  %v5818_v23 = vadd.f32 %v10576_v28, %v10572_v58 }
 0xfa3   : > { %v10582_v39 = vpop.eup %7348 }
 0xfa4   : > { %v10584_v2 = vpop.eup %7350  ;;  %5819 = vadd.xlane.f32.xlu0 %v5818_v23  ;;  %v5821_v46 = vadd.f32 %v10582_v39, %v10578_v34 }
 0xfa5   : > { %11359 = vst [vmem:[#allocation19_spill] sm:$0xff] %v10584_v2  ;;  %v10588_v51 = vpop.eup %7352 }
 0xfa6   : > { %11360 = vst [vmem:[#allocation14_spill] sm:$0xff] %v10588_v51  ;;  %v10590_v30 = vpop.eup %7354  ;;  %5822 = vadd.xlane.f32.xlu1 %v5821_v46  ;;  %v5812_v50 = vadd.f32 %v10588_v51, %v10584_v2 }
 0xfa7   : > { %11361 = vst [vmem:[#allocation13_spill] sm:$0xff] %v10590_v30  ;;  %v10594_v0 = vpop.eup %7356 }
 0xfa8   : > { %v10596_v24 = vpop.eup %7358  ;;  %5813 = vadd.xlane.f32.xlu0 %v5812_v50  ;;  %v5815_v36 = vadd.f32 %v10594_v0, %v10590_v30  ;;  %v11370_v50 = vld [vmem:[#allocation15_spill] sm:$0xff] }
 0xfa9   : > { %11362 = vst [vmem:[#allocation39_spill] sm:$0xff] %v10596_v24  ;;  %v10600_v44 = vpop.eup %7360 }
 0xfaa   : > { %11363 = vst [vmem:[#allocation42_spill] sm:$0xff] %v10600_v44  ;;  %v10602_v4 = vpop.eup %7362  ;;  %5816 = vadd.xlane.f32.xlu1 %v5815_v36  ;;  %v5806_v48 = vadd.f32 %v10600_v44, %v10596_v24  ;;  %v11371_v36 = vld [vmem:[#allocation17_spill] sm:$0xff]  ;;  %v11372_v24 = vld [vmem:[#allocation20_spill] sm:$0xff]  ;;  %v11373_v44 = vld [vmem:[#allocation22_spill] sm:$0xff] }
 0xfab   : > { %11364 = vst [vmem:[#allocation11_spill] sm:$0xff] %v10602_v4  ;;  %v10606_v42 = vpop.eup %7364 }
 0xfac   : > { %11365 = vst [vmem:[#allocation21_spill] sm:$0xff] %v10606_v42  ;;  %v10608_v54 = vpop.eup %7366  ;;  %5807 = vadd.xlane.f32.xlu0 %v5806_v48  ;;  %v5809_v43 = vadd.f32 %v10606_v42, %v10602_v4  ;;  %v719_v48 = vadd.f32 %v11371_v36, %v11370_v50  ;;  %v526_v4 = vadd.f32 %v11373_v44, %v11372_v24  ;;  %v11374_v42 = vld [vmem:[#allocation23_spill] sm:$0xff] }
 0xfad   : > { %11366 = vst [vmem:[#allocation29_spill] sm:$0xff] %v10608_v54  ;;  %v10612_v35 = vpop.eup %7368 }
 0xfae   : > { %11367 = vst [vmem:[#allocation12_spill] sm:$0xff] %v10612_v35  ;;  %v10614_v62 = vpop.eup %7370  ;;  %5810 = vadd.xlane.f32.xlu1 %v5809_v43  ;;  %v5800_v6 = vadd.f32 %v10612_v35, %v10608_v54  ;;  %v11375_v43 = vld [vmem:[#allocation25_spill] sm:$0xff] }
 0xfaf   : > { %11368 = vst [vmem:[#allocation9_spill] sm:$0xff] %v10614_v62  ;;  %v10618_v23 = vpop.eup %7372  ;;  %v883_v2 = vadd.f32 %v11375_v43, %v11374_v42 }
 0xfb0   : > { %11369 = vst [vmem:[#allocation33_spill] sm:$0xff] %v10618_v23  ;;  %5801 = vadd.xlane.f32.xlu0 %v5800_v6  ;;  %v5803_v46 = vadd.f32 %v10618_v23, %v10614_v62 }
 0xfb2   : > { %5804 = vadd.xlane.f32.xlu1 %v5803_v46 }
 0xfb4   : > { %720 = vadd.xlane.f32.xlu0 %v719_v48 }
 0xfb6   : > { %527 = vadd.xlane.f32.xlu1 %v526_v4 }
 0xfba   : > { %884 = vadd.xlane.f32.xlu1 %v883_v2 }
 0xfdb   : > { %v5796_v54 = vpop.xlane.xlu0 %5795 }
 0xfdc   : > { %7374 = vrcp.f32 %v5796_v54 }
 0xfe1   : > { %v5799_v35 = vpop.xlane.xlu1 %5798 }
 0xfe2   : > { %7376 = vrcp.f32 %v5799_v35 }
 0xfe5   : > { %v5793_v6 = vpop.xlane.xlu1 %5792  ;;  %v5790_v51 = vpop.xlane.xlu0 %5789 }
 0xfe6   : > { %7378 = vrcp.f32 %v5793_v6 }
 0xfe7   : > { %7380 = vrcp.f32 %v5790_v51 }
 0xfe9   : > { %v5787_v62 = vpop.xlane.xlu1 %5786  ;;  %v5784_v23 = vpop.xlane.xlu0 %5783 }
 0xfea   : > { %7382 = vrcp.f32 %v5787_v62  ;;  %v7375_v48 = vpop.eup %7374 }
 0xfeb   : > { %7384 = vrcp.f32 %v5784_v23  ;;  %v5941_v51 = vmul.f32 %v7375_v48, %v10386_v53  ;;  %v5940_v62 = vmul.f32 %v7375_v48, %v10383_v56 }
 0xfed   : > { %v5781_v46 = vpop.xlane.xlu1 %5780  ;;  %v5778_v30 = vpop.xlane.xlu0 %5777 }
 0xfee   : > { %7386 = vrcp.f32 %v5781_v46 }
 0xfef   : > { %v7377_v4 = vpop.eup %7376  ;;  %7388 = vrcp.f32 %v5778_v30 }
 0xff0   : > { %v5943_v2 = vmul.f32 %v7377_v4, %v10400_v22  ;;  %v5942_v54 = vmul.f32 %v7377_v4, %v10398_v17 }
 0xff1   : > { %v5775_v43 = vpop.xlane.xlu1 %5774  ;;  %v5772_v35 = vpop.xlane.xlu0 %5771 }
 0xff2   : > { %7390 = vrcp.f32 %v5775_v43  ;;  %5980 = vmatprep.subr.mxu0 %v5943_v2 }
 0xff3   : > { %v7379_v6 = vpop.eup %7378  ;;  %7392 = vrcp.f32 %v5772_v35  ;;  %5981 = vmatpush1.msra.mxu0 %v5942_v54 }
 0xff4   : > { %v7381_v23 = vpop.eup %7380  ;;  %5982 = vmatprep.subr.mxu0 %v5941_v51  ;;  %v5939_v46 = vmul.f32 %v7379_v6, %v10396_v25  ;;  %v5938_v30 = vmul.f32 %v7379_v6, %v10393_v49 }
 0xff5   : > { %v5769_v22 = vpop.xlane.xlu1 %5768  ;;  %5983 = vmatpush1.msra.mxu0 %v5940_v62  ;;  %v5766_v17 = vpop.xlane.xlu0 %5765  ;;  %v5937_v43 = vmul.f32 %v7381_v23, %v10414_v31  ;;  %v5936_v53 = vmul.f32 %v7381_v23, %v10412_v1 }
 0xff6   : > { %7394 = vrcp.f32 %v5769_v22  ;;  %5984 = vmatprep.subr.mxu0 %v5939_v46 }
 0xff7   : > { %v7383_v4 = vpop.eup %7382  ;;  %7396 = vrcp.f32 %v5766_v17  ;;  %5985 = vmatpush1.msra.mxu0 %v5938_v30 }
 0xff8   : > { %v7385_v2 = vpop.eup %7384  ;;  %5986 = vmatprep.subr.mxu0 %v5937_v43  ;;  %v5935_v56 = vmul.f32 %v7383_v4, %v10410_v59  ;;  %v5934_v25 = vmul.f32 %v7383_v4, %v10405_v29 }
 0xff9   : > { %v5763_v48 = vpop.xlane.xlu1 %5762  ;;  %5987 = vmatpush1.msra.mxu0 %v5936_v53  ;;  %v5760_v49 = vpop.xlane.xlu0 %5759  ;;  %v5933_v54 = vmul.f32 %v7385_v2, %v10430_v11  ;;  %v5932_v31 = vmul.f32 %v7385_v2, %v10428_v47  ;;  %v11376_v53 = vld [vmem:[#allocation41_spill] sm:$0xff] }
 0xffa   : > { %7398 = vrcp.f32 %v5763_v48  ;;  %5988 = vmatprep.subr.mxu0 %v5935_v56 }
 0xffb   : > { %v7387_v35 = vpop.eup %7386  ;;  %7400 = vrcp.f32 %v5760_v49  ;;  %5989 = vmatpush1.msra.mxu0 %v5934_v25  ;;  %v11379_v49 = vld [vmem:[#allocation24_spill] sm:$0xff] }
 0xffc   : > { %v7389_v51 = vpop.eup %7388  ;;  %5990 = vmatprep.subr.mxu0 %v5933_v54  ;;  %v5931_v1 = vmul.f32 %v7387_v35, %v10426_v55  ;;  %v5930_v59 = vmul.f32 %v7387_v35, %v10419_v12  ;;  %v11380_v54 = vld [vmem:[#allocation36_spill] sm:$0xff] }
 0xffd   : > { %v5757_v6 = vpop.xlane.xlu1 %5756  ;;  %5991 = vmatpush1.msra.mxu0 %v5932_v31  ;;  %v5754_v29 = vpop.xlane.xlu0 %5753  ;;  %v5929_v62 = vmul.f32 %v7389_v51, %v10444_v18  ;;  %v5928_v11 = vmul.f32 %v7389_v51, %v10442_v41 }
 0xffe   : > { %7402 = vrcp.f32 %v5757_v6  ;;  %5992 = vmatprep.subr.mxu0 %v5931_v1 }
 0xfff   : > { %v7391_v23 = vpop.eup %7390  ;;  %7404 = vrcp.f32 %v5754_v29  ;;  %5993 = vmatpush1.msra.mxu0 %v5930_v59 }
0x1000   : > { %v7393_v46 = vpop.eup %7392  ;;  %5994 = vmatprep.subr.mxu0 %v5929_v62  ;;  %v5927_v47 = vmul.f32 %v7391_v23, %v10440_v52  ;;  %v5926_v55 = vmul.f32 %v7391_v23, %v10434_v33 }
0x1001   : > { %5995 = vmatpush1.msra.mxu0 %v5928_v11  ;;  %v5925_v12 = vmul.f32 %v7393_v46, %v10456_v7  ;;  %v5924_v22 = vmul.f32 %v7393_v46, %v10454_v20 }
0x1002   : > { %5996 = vmatprep.subr.mxu0 %v5927_v47 }
0x1003   : > { %v7395_v30 = vpop.eup %7394  ;;  %5997 = vmatpush1.msra.mxu0 %v5926_v55 }
0x1004   : > { %v7397_v18 = vpop.eup %7396  ;;  %5998 = vmatprep.subr.mxu0 %v5925_v12  ;;  %v5923_v17 = vmul.f32 %v7395_v30, %v10452_v61  ;;  %v5922_v41 = vmul.f32 %v7395_v30, %v10446_v63  ;;  %v11377_v63 = vld [vmem:[#allocation5_spill] sm:$0xff] }
0x1005   : > { %5999 = vmatpush1.msra.mxu0 %v5924_v22  ;;  %v5921_v52 = vmul.f32 %v7397_v18, %v10468_v21  ;;  %v5920_v33 = vmul.f32 %v7397_v18, %v10466_v26  ;;  %v11378_v21 = vld [vmem:[#allocation26_spill] sm:$0xff] }
0x1006   : > { %6000 = vmatprep.subr.mxu0 %v5923_v17 }
0x1007   : > { %v7399_v43 = vpop.eup %7398  ;;  %6001 = vmatpush1.msra.mxu0 %v5922_v41 }
0x1008   : > { %v7401_v4 = vpop.eup %7400  ;;  %6002 = vmatprep.subr.mxu0 %v5921_v52  ;;  %v5919_v7 = vmul.f32 %v7399_v43, %v10464_v60  ;;  %v5918_v20 = vmul.f32 %v7399_v43, %v10458_v16  ;;  %v11381_v16 = vld [vmem:[#allocation46_spill] sm:$0xff] }
0x1009   : > { %6003 = vmatpush1.msra.mxu0 %v5920_v33  ;;  %v5917_v61 = vmul.f32 %v7401_v4, %v11376_v53  ;;  %v5916_v56 = vmul.f32 %v7401_v4, %v11377_v63 }
0x100a   : > { %6004 = vmatprep.subr.mxu0 %v5919_v7 }
0x100b   : > { %v7403_v2 = vpop.eup %7402  ;;  %6005 = vmatpush1.msra.mxu0 %v5918_v20 }
0x100c   : > { %v7405_v25 = vpop.eup %7404  ;;  %6006 = vmatprep.subr.mxu0 %v5917_v61  ;;  %v5915_v48 = vmul.f32 %v7403_v2, %v11378_v21  ;;  %v5914_v26 = vmul.f32 %v7403_v2, %v11379_v49 }
0x100d   : > { %6007 = vmatpush1.msra.mxu0 %v5916_v56  ;;  %v5913_v60 = vmul.f32 %v7405_v25, %v11380_v54  ;;  %v5912_v35 = vmul.f32 %v7405_v25, %v11381_v16 }
0x100e   : > { %6008 = vmatprep.subr.mxu0 %v5915_v48 }
0x100f   : > { %6009 = vmatpush1.msra.mxu0 %v5914_v26 }
0x1010   : > { %6010 = vmatprep.subr.mxu0 %v5913_v60 }
0x1011   : > { %6011 = vmatpush1.msra.mxu0 %v5912_v35 }
0x101b   : > { %v5844_v31 = vpop.xlane.xlu0 %5843 }
0x101c   : > { %7406 = vrcp.f32 %v5844_v31 }
0x101f   : > { %v5847_v51 = vpop.xlane.xlu1 %5846 }
0x1020   : > { %7408 = vrcp.f32 %v5847_v51  ;;  %v11382_v51 = vld [vmem:[#allocation13_spill] sm:$0xff] }
0x1021   : > { %v5838_v1 = vpop.xlane.xlu0 %5837 }
0x1022   : > { %7410 = vrcp.f32 %v5838_v1 }
0x1023   : > { %v5841_v59 = vpop.xlane.xlu1 %5840 }
0x1024   : > { %7412 = vrcp.f32 %v5841_v59 }
0x1025   : > { %v5832_v6 = vpop.xlane.xlu0 %5831 }
0x1026   : > { %7414 = vrcp.f32 %v5832_v6 }
0x1027   : > { %v5835_v29 = vpop.xlane.xlu1 %5834 }
0x1028   : > { %7416 = vrcp.f32 %v5835_v29 }
0x1029   : > { %v5826_v62 = vpop.xlane.xlu0 %5825  ;;  %v7407_v11 = vpop.eup %7406 }
0x102a   : > { %7418 = vrcp.f32 %v5826_v62  ;;  %v5973_v18 = vmul.f32 %v7407_v11, %v10514_v14  ;;  %v5972_v52 = vmul.f32 %v7407_v11, %v10511_v57  ;;  %v11383_v62 = vld [vmem:[#allocation14_spill] sm:$0xff] }
0x102b   : > { %v5829_v23 = vpop.xlane.xlu1 %5828 }
0x102c   : > { %7420 = vrcp.f32 %v5829_v23  ;;  %v11384_v23 = vld [vmem:[#allocation19_spill] sm:$0xff] }
0x102d   : > { %v7409_v46 = vpop.eup %7408  ;;  %v5820_v47 = vpop.xlane.xlu0 %5819 }
0x102e   : > { %v5975_v55 = vmul.f32 %v7409_v46, %v10524_v27  ;;  %v5974_v12 = vmul.f32 %v7409_v46, %v10521_v5  ;;  %7422 = vrcp.f32 %v5820_v47 }
0x102f   : > { %v5823_v30 = vpop.xlane.xlu1 %5822  ;;  %v7411_v22 = vpop.eup %7410 }
0x1030   : > { %7424 = vrcp.f32 %v5823_v30  ;;  %6012 = vmatprep.subr.mxu0 %v5975_v55  ;;  %v5969_v4 = vmul.f32 %v7411_v22, %v10530_v37  ;;  %v5968_v20 = vmul.f32 %v7411_v22, %v10526_v45 }
0x1031   : > { %v7413_v17 = vpop.eup %7412  ;;  %v5814_v41 = vpop.xlane.xlu0 %5813  ;;  %6013 = vmatpush2.msra.mxu0 %v5974_v12  ;;  %v11386_v12 = vld [vmem:[#allocation21_spill] sm:$0xff] }
0x1032   : > { %6014 = vmatprep.subr.mxu0 %v5973_v18  ;;  %v5971_v43 = vmul.f32 %v7413_v17, %v10540_v10  ;;  %v5970_v33 = vmul.f32 %v7413_v17, %v10535_v3  ;;  %v11387_v18 = vld [vmem:[#allocation11_spill] sm:$0xff] }
0x1033   : > { %v5817_v27 = vpop.xlane.xlu1 %5816  ;;  %6015 = vmatpush2.msra.mxu0 %v5972_v52  ;;  %v7415_v5 = vpop.eup %7414 }
0x1034   : > { %7426 = vrcp.f32 %v5817_v27  ;;  %6016 = vmatprep.subr.mxu0 %v5971_v43  ;;  %v5965_v61 = vmul.f32 %v7415_v5, %v10546_v38  ;;  %v5964_v63 = vmul.f32 %v7415_v5, %v10542_v9  ;;  %v11388_v43 = vld [vmem:[#allocation42_spill] sm:$0xff]  ;;  %v11389_v5 = vld [vmem:[#allocation39_spill] sm:$0xff] }
0x1035   : > { %v7417_v7 = vpop.eup %7416  ;;  %7428 = vrcp.f32 %v5814_v41  ;;  %v5808_v14 = vpop.xlane.xlu0 %5807  ;;  %6017 = vmatpush2.msra.mxu0 %v5970_v33 }
0x1036   : > { %6018 = vmatprep.subr.mxu0 %v5969_v4  ;;  %v5967_v57 = vmul.f32 %v7417_v7, %v10556_v8  ;;  %v5966_v10 = vmul.f32 %v7417_v7, %v10551_v13  ;;  %v11390_v7 = vld [vmem:[#allocation33_spill] sm:$0xff] }
0x1037   : > { %v5811_v53 = vpop.xlane.xlu1 %5810  ;;  %6019 = vmatpush2.msra.mxu0 %v5968_v20  ;;  %v7419_v3 = vpop.eup %7418 }
0x1038   : > { %7430 = vrcp.f32 %v5811_v53  ;;  %6020 = vmatprep.subr.mxu0 %v5967_v57  ;;  %v5961_v25 = vmul.f32 %v7419_v3, %v10562_v32  ;;  %v5960_v48 = vmul.f32 %v7419_v3, %v10558_v15  ;;  %v11391_v57 = vld [vmem:[#allocation9_spill] sm:$0xff]  ;;  %v11392_v53 = vld [vmem:[#allocation12_spill] sm:$0xff] }
0x1039   : > { %v7421_v2 = vpop.eup %7420  ;;  %7432 = vrcp.f32 %v5808_v14  ;;  %v5802_v37 = vpop.xlane.xlu0 %5801  ;;  %6021 = vmatpush2.msra.mxu0 %v5966_v10 }
0x103a   : > { %6022 = vmatprep.subr.mxu0 %v5965_v61  ;;  %v5963_v45 = vmul.f32 %v7421_v2, %v10570_v19  ;;  %v5962_v8 = vmul.f32 %v7421_v2, %v10566_v40  ;;  %v11393_v61 = vld [vmem:[#allocation29_spill] sm:$0xff] }
0x103b   : > { %v5805_v56 = vpop.xlane.xlu1 %5804  ;;  %6023 = vmatpush2.msra.mxu0 %v5964_v63  ;;  %v7423_v13 = vpop.eup %7422  ;;  %v415_v63 = vld [vmem:[%s10768_s4 + $0x10] sm:$0xff] }
0x103c   : > { %7434 = vrcp.f32 %v5805_v56  ;;  %6024 = vmatprep.subr.mxu0 %v5963_v45  ;;  %v5957_v60 = vmul.f32 %v7423_v13, %v10576_v28  ;;  %v5956_v15 = vmul.f32 %v7423_v13, %v10572_v58  ;;  %v418_v45 = vld [vmem:[%s10769_s5 + $0x10] sm:$0xff] }
0x103d   : > { %v7425_v21 = vpop.eup %7424  ;;  %7436 = vrcp.f32 %v5802_v37  ;;  %v721_v38 = vpop.xlane.xlu0 %720  ;;  %6025 = vmatpush2.msra.mxu0 %v5962_v8  ;;  %v5976_v37 = vld [vmem:[#allocation3] sm:$0xff] }
0x103e   : > { %v724_v49 = vmul.f32 0.00390625, %v721_v38  ;;  %6026 = vmatprep.subr.mxu0 %v5961_v25  ;;  %v5959_v9 = vmul.f32 %v7425_v21, %v10582_v39  ;;  %v5958_v19 = vmul.f32 %v7425_v21, %v10578_v34 }
0x103f   : > { %6027 = vmatpush2.msra.mxu0 %v5960_v48  ;;  %v528_v40 = vpop.xlane.xlu1 %527 }
0x1040   : > { %v10679_v26 = vsub.f32 %v11370_v50, %v724_v49  ;;  %v10682_v54 = vsub.f32 %v11371_v36, %v724_v49  ;;  %v531_v32 = vmul.f32 0.00390625, %v528_v40  ;;  %6028 = vmatprep.subr.mxu0 %v5959_v9 }
0x1041   : > { %v7427_v16 = vpop.eup %7426  ;;  %6029 = vmatpush2.msra.mxu0 %v5958_v19 }
0x1042   : > { %v7429_v35 = vpop.eup %7428  ;;  %v735_v34 = vmul.f32 %v10679_v26, %v10679_v26  ;;  %v736_v39 = vmul.f32 %v10682_v54, %v10682_v54  ;;  %v10691_v50 = vsub.f32 %v11372_v24, %v531_v32  ;;  %v10694_v36 = vsub.f32 %v11373_v44, %v531_v32  ;;  %6030 = vmatprep.subr.mxu0 %v5957_v60 }
0x1043   : > { %6031 = vmatpush2.msra.mxu0 %v5956_v15  ;;  %v885_v28 = vpop.xlane.xlu1 %884  ;;  %v5955_v31 = vmul.f32 %v7427_v16, %v10594_v0  ;;  %v5954_v58 = vmul.f32 %v7427_v16, %v11382_v51  ;;  %v5953_v44 = vmul.f32 %v7429_v35, %v11383_v62  ;;  %v5952_v11 = vmul.f32 %v7429_v35, %v11384_v23  ;;  %v11385_v0 = vld [vmem:[#allocation25_spill] sm:$0xff] }
0x1044   : > { %v542_v1 = vmul.f32 %v10691_v50, %v10691_v50  ;;  %v543_v59 = vmul.f32 %v10694_v36, %v10694_v36  ;;  %v888_v6 = vmul.f32 0.00390625, %v885_v28  ;;  %v743_v29 = vadd.f32 %v736_v39, %v735_v34 }
0x1045   : > { %v7431_v24 = vpop.eup %7430  ;;  %6032 = vmatprep.subr.mxu0 %v5955_v31 }
0x1046   : > { %v7433_v46 = vpop.eup %7432  ;;  %v10705_v47 = vsub.f32 %v11374_v42, %v888_v6  ;;  %v10708_v55 = vsub.f32 %v11385_v0, %v888_v6  ;;  %744 = vadd.xlane.f32.xlu1 %v743_v29  ;;  %6033 = vmatpush2.msra.mxu0 %v5954_v58  ;;  %v5951_v30 = vmul.f32 %v7431_v24, %v11386_v12  ;;  %v5036_v12 = vld [vmem:[#allocation4 + $0x1] ss:$8 sm:$0x3] }
0x1047   : > { %6034 = vmatprep.subr.mxu0 %v5953_v44  ;;  %v550_v22 = vadd.f32 %v543_v59, %v542_v1  ;;  %v5950_v17 = vmul.f32 %v7431_v24, %v11387_v18  ;;  %v5949_v33 = vmul.f32 %v7433_v46, %v11388_v43  ;;  %v5948_v4 = vmul.f32 %v7433_v46, %v11389_v5  ;;  %v11395_v18 = vld [vmem:[#allocation43_spill] sm:$0xff] }
0x1048   : > { %v899_v41 = vmul.f32 %v10705_v47, %v10705_v47  ;;  %v900_v52 = vmul.f32 %v10708_v55, %v10708_v55  ;;  %6035 = vmatpush2.msra.mxu0 %v5952_v11 }
0x1049   : > { %v7435_v42 = vpop.eup %7434  ;;  %6036 = vmatprep.subr.mxu0 %v5951_v30  ;;  %551 = vadd.xlane.f32.xlu0 %v550_v22 }
0x104a   : > { %v7437_v27 = vpop.eup %7436  ;;  %6037 = vmatpush2.msra.mxu0 %v5950_v17  ;;  %v5947_v14 = vmul.f32 %v7435_v42, %v11390_v7  ;;  %v907_v20 = vadd.f32 %v900_v52, %v899_v41  ;;  %v5946_v10 = vmul.f32 %v7435_v42, %v11391_v57  ;;  %v11396_v17 = vld [vmem:[#allocation45_spill] sm:$0xff] }
0x104b   : > { %6038 = vmatprep.subr.mxu0 %v5949_v33  ;;  %v5945_v3 = vmul.f32 %v7437_v27, %v11392_v53  ;;  %v5944_v2 = vmul.f32 %v7437_v27, %v11393_v61 }
0x104c   : > { %6039 = vmatpush2.msra.mxu0 %v5948_v4 }
0x104d   : > { %6040 = vmatprep.subr.mxu0 %v5947_v14  ;;  %908 = vadd.xlane.f32.xlu0 %v907_v20 }
0x104e   : > { %6041 = vmatpush2.msra.mxu0 %v5946_v10 }
0x104f   : > { %6042 = vmatprep.subr.mxu0 %v5945_v3 }
0x1050   : > { %6043 = vmatpush2.msra.mxu0 %v5944_v2 }
0x1051   : > { %6045 = vmatmul.mubr.f32.vlgmr.msra.gmra.mxu0 %v5976_v37 }
0x1057   : > { %580 = vperm.xlu1 %6464, %v415_v63  }
0x1063   : > { %601 = vperm.xlu0 %6465, %v418_v45  }
0x10cf   : > { %v745_v8 = vpop.xlane.xlu1 %744 }
0x10d0   : > { %v748_v56 = vmul.f32 0.00390625, %v745_v8 }
0x10d2   : > { %v751_v13 = vadd.f32 1e-05, %v748_v56  ;;  %v552_v25 = vpop.xlane.xlu0 %551 }
0x10d3   : > { %v555_v21 = vmul.f32 0.00390625, %v552_v25  ;;  %v581_v60 = vpop.permute.xlu1 %580 }
0x10d4   : > { %7438 = vrsqrt.f32 %v751_v13 }
0x10d5   : > { %v558_v38 = vadd.f32 1e-05, %v555_v21 }
0x10d6   : > { %v909_v48 = vpop.xlane.xlu0 %908 }
0x10d7   : > { %7440 = vrsqrt.f32 %v558_v38  ;;  %v912_v49 = vmul.f32 0.00390625, %v909_v48 }
0x10d9   : > { %v915_v9 = vadd.f32 1e-05, %v912_v49 }
0x10db   : > { %7442 = vrsqrt.f32 %v915_v9 }
0x10de   : > { %v602_v28 = vpop.permute.xlu0 %601 }
0x10e1   : > { %v7439_v19 = vpop.eup %7438 }
0x10e2   : > { %v759_v40 = vmul.f32 %v7439_v19, %v10679_v26  ;;  %v760_v32 = vmul.f32 %v7439_v19, %v10682_v54 }
0x10e4   : > { %v7441_v16 = vpop.eup %7440  ;;  %v765_v15 = vmul.f32 %v759_v40, %v581_v60  ;;  %v766_v35 = vmul.f32 %v760_v32, %v581_v60 }
0x10e5   : > { %v566_v34 = vmul.f32 %v7441_v16, %v10691_v50  ;;  %v567_v39 = vmul.f32 %v7441_v16, %v10694_v36 }
0x10e6   : > { %v771_v31 = vadd.f32 %v765_v15, %v602_v28  ;;  %v772_v51 = vadd.f32 %v766_v35, %v602_v28 }
0x10e7   : > { %v587_v58 = vmul.f32 %v581_v60, %v566_v34  ;;  %v588_v1 = vmul.f32 %v581_v60, %v567_v39 }
0x10e8   : > { %v7443_v26 = vpop.eup %7442  ;;  %v777_v54 = vmax.f32 %v771_v31, 0.0  ;;  %v778_v59 = vmax.f32 %v772_v51, 0.0 }
0x10e9   : > { %v923_v6 = vmul.f32 %v7443_v26, %v10705_v47  ;;  %v924_v29 = vmul.f32 %v7443_v26, %v10708_v55  ;;  %v608_v50 = vadd.f32 %v602_v28, %v587_v58  ;;  %v609_v24 = vadd.f32 %v602_v28, %v588_v1 }
0x10ea   : > { %784 = vst [vmem:[%s399_s23] sm:$0xff] %v777_v54  ;;  %785 = vst [vmem:[%s399_s23 + $0x8] sm:$0xff] %v778_v59 }
0x10eb   : > { %v614_v36 = vmax.f32 %v608_v50, 0.0  ;;  %v615_v62 = vmax.f32 %v609_v24, 0.0  ;;  %v929_v44 = vmul.f32 %v923_v6, %v581_v60  ;;  %v930_v23 = vmul.f32 %v924_v29, %v581_v60 }
0x10ed   : > { %620 = vst [vmem:[%s394_s25] sm:$0xff] %v614_v36  ;;  %621 = vst [vmem:[%s394_s25 + $0x8] sm:$0xff] %v615_v62  ;;  %v935_v11 = vadd.f32 %v929_v44, %v602_v28  ;;  %v936_v46 = vadd.f32 %v930_v23, %v602_v28 }
0x10ef   : > { %v941_v47 = vmax.f32 %v935_v11, 0.0  ;;  %v942_v0 = vmax.f32 %v936_v46, 0.0 }
0x10f1   : > { %948 = vst [vmem:[%s404_s28] sm:$0xff] %v941_v47  ;;  %949 = vst [vmem:[%s404_s28 + $0x8] sm:$0xff] %v942_v0 }
0x1111   : > { %v6046_v55 = vpop.f32.mrf.mxu0 }
0x1112   : > { %6053 = vst [vmem:[#allocation4] sm:$0xff] %v6046_v55 }
0x1113   : > { %v6048_v30 = vpop.f32.mrf.mxu0 }
0x1114   : > { %6054 = vst [vmem:[#allocation4 + $0x8] sm:$0xff] %v6048_v30 }
0x1115   : > { %6056 = vst.msk [vmem:[#allocation4 + $0x2] ss:$8 sm:$0x3] %vm8177_vm2, %v5036_v12  ;;  %6059 = vst.msk [vmem:[#allocation4 + $0x3] ss:$8 sm:$0x3] %vm8177_vm2, %v11395_v18 }
0x1116   : > { %6062 = vst.msk [vmem:[#allocation4 + $0x4] ss:$8 sm:$0x3] %vm8177_vm2, %v11396_v17 }
0x111d   : > { %v6064_v41 = vld [vmem:[#allocation4] sm:$0xff]  ;;  %v6065_v52 = vld [vmem:[#allocation4 + $0x8] sm:$0xff] }
0x111e   : > { %6066 = vst [vmem:[%s409_s13] sm:$0xff] %v6064_v41  ;;  %6067 = vst [vmem:[%s409_s13 + $0x8] sm:$0xff] %v6065_v52 }
0x111f PF: > { %s20_s30 = sadd.s32 1, %s7450_s30  }
0x1120   : > { %p17_p4 = scmp.ge.s32.totalorder %s20_s30, 4  }
0x1122   :  { %19 = sbr.rel (!%p17_p4) target bundleno = 1 (0x1), region = 123 }

</bundles_post_ra>
